<compile_context>
chip_gen: v5e
topology: v5e:2x2
jax: 0.10.0
libtpu: 0.0.40
codegen_flags: <defaults>
</compile_context>

<pallas_src>
import jax
import jax.numpy as jnp
import numpy as np
from jax.experimental import pallas as pl
from jax.experimental.pallas import tpu as pltpu


# ----------------------------- Pallas kernel ---------------------------------
def _qa_head_kernel(tf_ref, vf_ref, am_ref, vm_ref,
                    t1w_ref, t1b_ref, t2w_ref, t2b_ref,
                    v1w_ref, v1b_ref, v2w_ref, v2b_ref,
                    vpw_ref, vpb_ref, tpw_ref, tpb_ref,
                    c1wv_ref, c1wt_ref, c1b_ref, c2w_ref, c2b_ref,
                    out_ref,
                    vis_sc, seq_sc, acc_sc):
    j = pl.program_id(1)   # classifier hidden-tile index (reduction axis)

    # ---- stage A (once per batch tile): gates, softmax, pooling, projections ----
    @pl.when(j == 0)
    def _stage_a():
        tf = tf_ref[...]            # [tb, Lt, D] f32
        vf = vf_ref[...]            # [tb, Lv, D] f32
        am = am_ref[...]            # [tb, Lt]    f32 (0/1)
        vm = vm_ref[...]            # [tb, Lv]    f32 (0/1)
        tb, Lt, D = tf.shape
        Lv = vf.shape[1]

        def gate_scores(x3, w1_ref, b1_ref, w2_ref, b2_ref, L):
            # nn.Sequential(Linear(D, D), ReLU, Linear(D, 1)) -> squeeze(-1)
            x2 = x3.reshape(tb * L, D).astype(jnp.bfloat16)
            h = jnp.dot(x2, w1_ref[...], preferred_element_type=jnp.float32)
            h = jnp.maximum(h + b1_ref[...], 0.0)                        # f32 VPU
            s = jnp.sum(h * w2_ref[...].astype(jnp.float32), axis=-1) + b2_ref[0, 0]
            return s.reshape(tb, L)

        def softmax_last(s):
            m = jnp.max(s, axis=-1, keepdims=True)
            e = jnp.exp(s - m)
            return e / jnp.sum(e, axis=-1, keepdims=True)

        # get_cl_output1 does NOT pre-mask the gate scores (spec); the 0/1 mask
        # is folded into the pooling weight (same math, one fewer [tb,L,D] mul).
        t_w = softmax_last(gate_scores(tf, t1w_ref, t1b_ref, t2w_ref, t2b_ref, Lt)) * am
        v_w = softmax_last(gate_scores(vf, v1w_ref, v1b_ref, v2w_ref, v2b_ref, Lv)) * vm

        # einsum('atc,at->ac', feat * mask, weight)
        seq_pool = jnp.sum(tf * t_w[:, :, None], axis=1)        # [tb, D] f32
        vis_pool = jnp.sum(vf * v_w[:, :, None], axis=1)        # [tb, D] f32

        # v_proj / t_proj : Linear(D, 4D); stored bf16 for the classifier dots
        vis_sc[...] = (jnp.dot(vis_pool.astype(jnp.bfloat16), vpw_ref[...],
                               preferred_element_type=jnp.float32)
                       + vpb_ref[...]).astype(jnp.bfloat16)
        seq_sc[...] = (jnp.dot(seq_pool.astype(jnp.bfloat16), tpw_ref[...],
                               preferred_element_type=jnp.float32)
                       + tpb_ref[...]).astype(jnp.bfloat16)
        acc_sc[...] = jnp.zeros_like(acc_sc)

    # ---- stage B (every j): one streamed hidden tile of the classifier ---------
    # cat((visual, sequence)) @ W1  ==  visual @ W1[:4D] + sequence @ W1[4D:]
    # (dropout is identity in eval mode)
    h = jnp.dot(vis_sc[...], c1wv_ref[...], preferred_element_type=jnp.float32)
    h = h + jnp.dot(seq_sc[...], c1wt_ref[...], preferred_element_type=jnp.float32)
    h = jnp.maximum(h + c1b_ref[...], 0.0)                               # [tb, tn] f32
    acc_sc[...] += jnp.dot(h.astype(jnp.bfloat16), c2w_ref[...],
                           preferred_element_type=jnp.float32)           # [tb, NLp]

    @pl.when(j == pl.num_programs(1) - 1)
    def _finalize():
        out_ref[...] = acc_sc[...] + c2b_ref[...]


# ----------------------------- tiling heuristics -------------------------------
def _pick_batch_tile(B, Lt, Lv, D, budget_bytes=4 << 20):
    """Largest batch tile (whole B, or a multiple-of-8 divisor of B) whose f32
    feature blocks fit a per-buffer VMEM budget.  Fewer batch tiles => the big
    classifier weights are streamed from HBM fewer times."""
    per_row = (Lt + Lv) * D * 4          # text + video feature bytes per batch row
    cap = max(1, budget_bytes // max(per_row, 1))
    if B <= cap or B % 8 != 0:
        return B
    best = 8
    t = 8
    while t <= min(B, cap):
        if B % t == 0:
            best = t
        t += 8
    return best


def _pick_hidden_tile(H1, H2, NLp, budget_bytes=16 << 20):
    """Largest classifier hidden tile whose double-buffered weight slabs
    (two [H1, tn] halves + one [tn, NLp]) fit a VMEM budget."""
    for cand in (2048, 1024, 512, 256, 128):
        if H2 % cand == 0 and (8 * H1 * cand + 4 * cand * NLp) <= budget_bytes:
            return cand
    return H2


# ----------------------------- wrapper ----------------------------------------
def emcl4qa_head(text_feat, video_feat, attention_mask, video_mask, params,
                 vmem_limit_bytes=None):
    """get_cl_output1 (eval-mode forward of EMCL4QA) as a single tiled Pallas call."""
    B, Lt, D = text_feat.shape
    Lv = video_feat.shape[1]
    H1 = 4 * D                        # v_proj / t_proj output width
    H2 = params["cls_b1"].shape[-1]   # classifier hidden = 16 * D
    NL = params["cls_b2"].shape[-1]   # num_labels
    NLp = ((NL + 127) // 128) * 128   # lane-dense padded output width

    # pad classifier output dim to a multiple of 128 (unmasked vst); slice outside
    c2w, c2b = params["cls_w2"], params["cls_b2"]
    if NLp != NL:
        c2w = jnp.pad(c2w, ((0, 0), (0, NLp - NL)))
        c2b = jnp.pad(c2b, ((0, 0), (0, NLp - NL)))

    # split cls_w1 along the concat axis -> two accumulating dots, no concat copy
    c1w_v = params["cls_w1"][:H1, :]
    c1w_t = params["cls_w1"][H1:, :]

    # classifier hidden tile (weights streamed from HBM, double-buffered by Pallas)
    tn = _pick_hidden_tile(H1, H2, NLp)
    # batch tile -> "parallel" grid axis (shards across TCs when B is large)
    tb = _pick_batch_tile(B, Lt, Lv, D)
    grid = (B // tb, H2 // tn)

    const = lambda i, j: (0, 0)
    smem = pl.BlockSpec(memory_space=pltpu.MemorySpace.SMEM)
    in_specs = [
        pl.BlockSpec((tb, Lt, D), lambda i, j: (i, 0, 0)),    # text_feat
        pl.BlockSpec((tb, Lv, D), lambda i, j: (i, 0, 0)),    # video_feat
        pl.BlockSpec((tb, Lt), lambda i, j: (i, 0)),          # attention_mask
        pl.BlockSpec((tb, Lv), lambda i, j: (i, 0)),          # video_mask
        pl.BlockSpec((D, D), const),                          # t_w1[0].weight^T (bf16)
        pl.BlockSpec((1, D), const),                          # t_w1[0].bias
        pl.BlockSpec((1, D), const),                          # t_w1[2].weight   (bf16)
        smem,                                                 # t_w1[2].bias (scalar)
        pl.BlockSpec((D, D), const),                          # v_w1[0].weight^T (bf16)
        pl.BlockSpec((1, D), const),                          # v_w1[0].bias
        pl.BlockSpec((1, D), const),                          # v_w1[2].weight   (bf16)
        smem,                                                 # v_w1[2].bias (scalar)
        pl.BlockSpec((D, H1), const),                         # v_proj.weight^T  (bf16)
        pl.BlockSpec((1, H1), const),                         # v_proj.bias
        pl.BlockSpec((D, H1), const),                         # t_proj.weight^T  (bf16)
        pl.BlockSpec((1, H1), const),                         # t_proj.bias
        pl.BlockSpec((H1, tn), lambda i, j: (0, j)),          # classifier[0].W^T, visual half
        pl.BlockSpec((H1, tn), lambda i, j: (0, j)),          # classifier[0].W^T, text half
        pl.BlockSpec((1, tn), lambda i, j: (0, j)),           # classifier[0].bias
        pl.BlockSpec((tn, NLp), lambda i, j: (j, 0)),         # classifier[2].W^T (padded)
        pl.BlockSpec((1, NLp), const),                        # classifier[2].bias (padded)
    ]

    grid_spec = pltpu.PrefetchScalarGridSpec(
        num_scalar_prefetch=0,
        grid=grid,
        in_specs=in_specs,
        out_specs=pl.BlockSpec((tb, NLp), lambda i, j: (i, 0)),
        scratch_shapes=[
            pltpu.VMEM((tb, H1), jnp.bfloat16),    # visual projection (persists over j)
            pltpu.VMEM((tb, H1), jnp.bfloat16),    # sequence projection
            pltpu.VMEM((tb, NLp), jnp.float32),    # logits accumulator
        ],
    )

    if vmem_limit_bytes is None:
        cparams = pltpu.CompilerParams(
            dimension_semantics=("parallel", "arbitrary"))
    else:
        cparams = pltpu.CompilerParams(
            dimension_semantics=("parallel", "arbitrary"),
            vmem_limit_bytes=vmem_limit_bytes)

    out = pl.pallas_call(
        _qa_head_kernel,
        out_shape=jax.ShapeDtypeStruct((B, NLp), jnp.float32),
        grid_spec=grid_spec,
        compiler_params=cparams,
    )(text_feat, video_feat, attention_mask, video_mask,
      params["t_w1_w1"], params["t_w1_b1"], params["t_w1_w2"], params["t_w1_b2"],
      params["v_w1_w1"], params["v_w1_b1"], params["v_w1_w2"], params["v_w1_b2"],
      params["v_proj_w"], params["v_proj_b"],
      params["t_proj_w"], params["t_proj_b"],
      c1w_v, c1w_t, params["cls_b1"], c2w, c2b)

    return out[:, :NL]


# ----------------------------- parameter setup --------------------------------
def init_params(key, D, num_labels):
    """Synthetic parameters matching EMCL4QA.__init__ shapes (transformer_width=D).

    nn.Linear(in, out) stores weight [out, in]; here weights are pre-transposed to
    [in, out] so kernels compute x @ W.  Weight matrices are bf16 (MXU-native);
    biases stay f32 (VPU adds in f32).
    """
    ks = jax.random.split(key, 16)
    s = 0.05
    w = lambda k, fi, fo: (jax.random.normal(k, (fi, fo), jnp.float32) * s).astype(jnp.bfloat16)
    b = lambda k, n: jax.random.normal(k, (1, n), jnp.float32) * s
    return {
        # t_w1 / v_w1 = Sequential(Linear(D, D), ReLU, Linear(D, 1))
        "t_w1_w1": w(ks[0], D, D), "t_w1_b1": b(ks[1], D),
        "t_w1_w2": w(ks[2], 1, D),
        "t_w1_b2": jax.random.normal(ks[3], (1, 1), jnp.float32) * s,
        "v_w1_w1": w(ks[4], D, D), "v_w1_b1": b(ks[5], D),
        "v_w1_w2": w(ks[6], 1, D),
        "v_w1_b2": jax.random.normal(ks[7], (1, 1), jnp.float32) * s,
        # v_proj / t_proj = Linear(D, 4D)
        "v_proj_w": w(ks[8], D, 4 * D), "v_proj_b": b(ks[9], 4 * D),
        "t_proj_w": w(ks[10], D, 4 * D), "t_proj_b": b(ks[11], 4 * D),
        # classifier = Sequential(Linear(8D, 16D), ReLU, Linear(16D, num_labels))
        "cls_w1": w(ks[12], 8 * D, 16 * D), "cls_b1": b(ks[13], 16 * D),
        "cls_w2": w(ks[14], 16 * D, num_labels), "cls_b2": b(ks[15], num_labels),
    }


# ----------------------------- pure-JAX reference ------------------------------
def reference_head(text_feat, video_feat, attention_mask, video_mask, p):
    """get_cl_output1 in pure JAX with the same bf16-operand / f32-accumulate policy."""
    bf16, f32 = jnp.bfloat16, jnp.float32
    mm = lambda x, wt: jnp.dot(x.astype(bf16), wt.astype(bf16),
                               preferred_element_type=f32)

    def gate(x, w1, b1, w2, b2):
        B, L, D = x.shape
        h = jnp.maximum(mm(x.reshape(B * L, D), w1) + b1, 0.0)
        s = jnp.sum(h * w2.astype(f32), axis=-1) + b2[0, 0]
        return s.reshape(B, L)

    t_w = jax.nn.softmax(gate(text_feat, p["t_w1_w1"], p["t_w1_b1"],
                              p["t_w1_w2"], p["t_w1_b2"]), axis=-1)
    v_w = jax.nn.softmax(gate(video_feat, p["v_w1_w1"], p["v_w1_b1"],
                              p["v_w1_w2"], p["v_w1_b2"]), axis=-1)
    seq = jnp.einsum("atc,at->ac", text_feat * attention_mask[:, :, None], t_w)
    vis = jnp.einsum("atc,at->ac", video_feat * video_mask[:, :, None], v_w)
    vis = (mm(vis, p["v_proj_w"]) + p["v_proj_b"]).astype(bf16)
    seq = (mm(seq, p["t_proj_w"]) + p["t_proj_b"]).astype(bf16)
    pooled = jnp.concatenate([vis, seq], axis=1)          # dropout = identity (eval)
    h = jnp.maximum(mm(pooled, p["cls_w1"]) + p["cls_b1"], 0.0)
    return mm(h, p["cls_w2"]) + p["cls_b2"]


# ----------------------------- main --------------------------------------------
if __name__ == "__main__":
    # Small demo shapes (real EMCL4QA: D = transformer_width = 512, Lt = max_words,
    # Lv = max_frames).  D=128 keeps every lane of the 128-wide vregs busy.
    B, Lt, Lv, D = 2, 8, 8, 128
    NUM_LABELS = 16

    key = jax.random.PRNGKey(0)
    k_tf, k_vf, k_p = jax.random.split(key, 3)

    # Encoder outputs (stand-ins for CLIP text/video features), layout [B, L, D].
    text_feat = jax.random.normal(k_tf, (B, Lt, D), jnp.float32)
    video_feat = jax.random.normal(k_vf, (B, Lv, D), jnp.float32)
    attention_mask = jnp.ones((B, Lt), jnp.float32).at[:, Lt - 2:].set(0.0)
    video_mask = jnp.ones((B, Lv), jnp.float32).at[:, Lv - 1:].set(0.0)

    params = init_params(k_p, D, NUM_LABELS)

    logits = emcl4qa_head(text_feat, video_feat, attention_mask, video_mask, params)
    logits = jax.block_until_ready(logits)
    assert logits.shape == (B, NUM_LABELS)

    ref = reference_head(text_feat, video_feat, attention_mask, video_mask, params)
    np.testing.assert_allclose(np.asarray(logits), np.asarray(ref),
                               rtol=2e-2, atol=2e-3)

    print("KERNEL_OK")
</pallas_src>

<mosaic_0001>
module attributes {stable_mosaic.version = 11 : i64} {
  func.func @_qa_head_kernel(%arg0: i32, %arg1: i32, %arg2: memref<2x8x128xf32, #tpu.memory_space<vmem>>, %arg3: memref<2x8x128xf32, #tpu.memory_space<vmem>>, %arg4: memref<2x8xf32, #tpu.memory_space<vmem>>, %arg5: memref<2x8xf32, #tpu.memory_space<vmem>>, %arg6: memref<128x128xbf16, #tpu.memory_space<vmem>>, %arg7: memref<1x128xf32, #tpu.memory_space<vmem>>, %arg8: memref<1x128xbf16, #tpu.memory_space<vmem>>, %arg9: memref<1x1xf32, #tpu.memory_space<smem>>, %arg10: memref<128x128xbf16, #tpu.memory_space<vmem>>, %arg11: memref<1x128xf32, #tpu.memory_space<vmem>>, %arg12: memref<1x128xbf16, #tpu.memory_space<vmem>>, %arg13: memref<1x1xf32, #tpu.memory_space<smem>>, %arg14: memref<128x512xbf16, #tpu.memory_space<vmem>>, %arg15: memref<1x512xf32, #tpu.memory_space<vmem>>, %arg16: memref<128x512xbf16, #tpu.memory_space<vmem>>, %arg17: memref<1x512xf32, #tpu.memory_space<vmem>>, %arg18: memref<512x2048xbf16, #tpu.memory_space<vmem>>, %arg19: memref<512x2048xbf16, #tpu.memory_space<vmem>>, %arg20: memref<1x2048xf32, #tpu.memory_space<vmem>>, %arg21: memref<2048x128xbf16, #tpu.memory_space<vmem>>, %arg22: memref<1x128xf32, #tpu.memory_space<vmem>>, %arg23: memref<2x128xf32, #tpu.memory_space<vmem>>, %arg24: memref<2x512xbf16, #tpu.memory_space<vmem>>, %arg25: memref<2x512xbf16, #tpu.memory_space<vmem>>, %arg26: memref<2x128xf32, #tpu.memory_space<vmem>>) attributes {dimension_semantics = [#tpu.dimension_semantics<parallel>, #tpu.dimension_semantics<arbitrary>], iteration_bounds = array<i64: 1, 1>, scalar_prefetch = 0 : i64, scratch_operands = 3 : i64, tpu.core_type = #tpu.core_type<tc>, window_params = [{transform_indices = @transform_0, window_bounds = array<i64: 2, 8, 128>}, {transform_indices = @transform_1, window_bounds = array<i64: 2, 8, 128>}, {transform_indices = @transform_2, window_bounds = array<i64: 2, 8>}, {transform_indices = @transform_3, window_bounds = array<i64: 2, 8>}, {pipeline_mode = #tpu.pipeline_mode<synchronous>, transform_indices = @transform_4, window_bounds = array<i64: 128, 128>}, {pipeline_mode = #tpu.pipeline_mode<synchronous>, transform_indices = @transform_5, window_bounds = array<i64: 1, 128>}, {pipeline_mode = #tpu.pipeline_mode<synchronous>, transform_indices = @transform_6, window_bounds = array<i64: 1, 128>}, {transform_indices = @transform_7, window_bounds = array<i64: 1, 1>}, {pipeline_mode = #tpu.pipeline_mode<synchronous>, transform_indices = @transform_8, window_bounds = array<i64: 128, 128>}, {pipeline_mode = #tpu.pipeline_mode<synchronous>, transform_indices = @transform_9, window_bounds = array<i64: 1, 128>}, {pipeline_mode = #tpu.pipeline_mode<synchronous>, transform_indices = @transform_10, window_bounds = array<i64: 1, 128>}, {transform_indices = @transform_11, window_bounds = array<i64: 1, 1>}, {pipeline_mode = #tpu.pipeline_mode<synchronous>, transform_indices = @transform_12, window_bounds = array<i64: 128, 512>}, {pipeline_mode = #tpu.pipeline_mode<synchronous>, transform_indices = @transform_13, window_bounds = array<i64: 1, 512>}, {pipeline_mode = #tpu.pipeline_mode<synchronous>, transform_indices = @transform_14, window_bounds = array<i64: 128, 512>}, {pipeline_mode = #tpu.pipeline_mode<synchronous>, transform_indices = @transform_15, window_bounds = array<i64: 1, 512>}, {transform_indices = @transform_16, window_bounds = array<i64: 512, 2048>}, {transform_indices = @transform_17, window_bounds = array<i64: 512, 2048>}, {transform_indices = @transform_18, window_bounds = array<i64: 1, 2048>}, {transform_indices = @transform_19, window_bounds = array<i64: 2048, 128>}, {pipeline_mode = #tpu.pipeline_mode<synchronous>, transform_indices = @transform_20, window_bounds = array<i64: 1, 128>}, {transform_indices = @transform_21, window_bounds = array<i64: 2, 128>}]} {
    %c0_i32 = arith.constant 0 : i32
    %0 = arith.cmpi eq, %arg1, %c0_i32 : i32
    %1 = arith.extui %0 : i1 to i32
    %c0_i32_0 = arith.constant 0 : i32
    %2 = arith.cmpi ne, %1, %c0_i32_0 : i32
    scf.if %2 {
      %c0_21 = arith.constant 0 : index
      %c0_22 = arith.constant 0 : index
      %c0_23 = arith.constant 0 : index
      %24 = vector.load %arg2[%c0_21, %c0_22, %c0_23] : memref<2x8x128xf32, #tpu.memory_space<vmem>>, vector<2x8x128xf32>
      %c0_24 = arith.constant 0 : index
      %c0_25 = arith.constant 0 : index
      %c0_26 = arith.constant 0 : index
      %25 = vector.load %arg3[%c0_24, %c0_25, %c0_26] : memref<2x8x128xf32, #tpu.memory_space<vmem>>, vector<2x8x128xf32>
      %c0_27 = arith.constant 0 : index
      %c0_28 = arith.constant 0 : index
      %26 = vector.load %arg4[%c0_27, %c0_28] : memref<2x8xf32, #tpu.memory_space<vmem>>, vector<2x8xf32>
      %c0_29 = arith.constant 0 : index
      %c0_30 = arith.constant 0 : index
      %27 = vector.load %arg5[%c0_29, %c0_30] : memref<2x8xf32, #tpu.memory_space<vmem>>, vector<2x8xf32>
      %28 = vector.shape_cast %24 : vector<2x8x128xf32> to vector<16x128xf32>
      %29 = arith.truncf %28 : vector<16x128xf32> to vector<16x128xbf16>
      %c0_31 = arith.constant 0 : index
      %c0_32 = arith.constant 0 : index
      %30 = vector.load %arg6[%c0_31, %c0_32] : memref<128x128xbf16, #tpu.memory_space<vmem>>, vector<128x128xbf16>
      %cst_33 = arith.constant dense<0.000000e+00> : vector<16x128xf32>
      %31 = tpu.matmul %29, %30, %cst_33 {dimension_numbers = #tpu.dot_dimension_numbers<[1], [0], [0], [1], [0, 0, 1, 1], [], []>} : vector<16x128xbf16>, vector<128x128xbf16>, vector<16x128xf32> -> vector<16x128xf32>
      %c0_34 = arith.constant 0 : index
      %c0_35 = arith.constant 0 : index
      %32 = vector.load %arg7[%c0_34, %c0_35] : memref<1x128xf32, #tpu.memory_space<vmem>>, vector<1x128xf32>
      %33 = vector.broadcast %32 : vector<1x128xf32> to vector<16x128xf32>
      %34 = arith.addf %31, %33 : vector<16x128xf32>
      %cst_36 = arith.constant 0.000000e+00 : f32
      %35 = vector.broadcast %cst_36 : f32 to vector<16x128xf32>
      %36 = arith.maximumf %34, %35 : vector<16x128xf32>
      %c0_37 = arith.constant 0 : index
      %c0_38 = arith.constant 0 : index
      %37 = vector.load %arg8[%c0_37, %c0_38] : memref<1x128xbf16, #tpu.memory_space<vmem>>, vector<1x128xbf16>
      %38 = arith.extf %37 : vector<1x128xbf16> to vector<1x128xf32>
      %39 = vector.broadcast %38 : vector<1x128xf32> to vector<16x128xf32>
      %40 = arith.mulf %36, %39 : vector<16x128xf32>
      %cst_39 = arith.constant dense<0.000000e+00> : vector<16xf32>
      %41 = vector.multi_reduction <add>, %40, %cst_39 [1] : vector<16x128xf32> to vector<16xf32>
      %c0_40 = arith.constant 0 : index
      %c0_41 = arith.constant 0 : index
      %42 = memref.load %arg9[%c0_40, %c0_41] : memref<1x1xf32, #tpu.memory_space<smem>>
      %43 = vector.broadcast %42 : f32 to vector<16xf32>
      %44 = arith.addf %41, %43 : vector<16xf32>
      %45 = vector.shape_cast %44 : vector<16xf32> to vector<2x8xf32>
      %cst_42 = arith.constant dense<0xFF800000> : vector<2xf32>
      %46 = vector.multi_reduction <maximumf>, %45, %cst_42 [1] : vector<2x8xf32> to vector<2xf32>
      %47 = vector.shape_cast %46 : vector<2xf32> to vector<2x1xf32>
      %48 = vector.broadcast %47 : vector<2x1xf32> to vector<2x8xf32>
      %49 = arith.subf %45, %48 : vector<2x8xf32>
      %50 = math.exp %49 : vector<2x8xf32>
      %cst_43 = arith.constant dense<0.000000e+00> : vector<2xf32>
      %51 = vector.multi_reduction <add>, %50, %cst_43 [1] : vector<2x8xf32> to vector<2xf32>
      %52 = vector.shape_cast %51 : vector<2xf32> to vector<2x1xf32>
      %53 = vector.broadcast %52 : vector<2x1xf32> to vector<2x8xf32>
      %54 = arith.divf %50, %53 : vector<2x8xf32>
      %55 = arith.mulf %54, %26 : vector<2x8xf32>
      %56 = vector.shape_cast %25 : vector<2x8x128xf32> to vector<16x128xf32>
      %57 = arith.truncf %56 : vector<16x128xf32> to vector<16x128xbf16>
      %c0_44 = arith.constant 0 : index
      %c0_45 = arith.constant 0 : index
      %58 = vector.load %arg10[%c0_44, %c0_45] : memref<128x128xbf16, #tpu.memory_space<vmem>>, vector<128x128xbf16>
      %cst_46 = arith.constant dense<0.000000e+00> : vector<16x128xf32>
      %59 = tpu.matmul %57, %58, %cst_46 {dimension_numbers = #tpu.dot_dimension_numbers<[1], [0], [0], [1], [0, 0, 1, 1], [], []>} : vector<16x128xbf16>, vector<128x128xbf16>, vector<16x128xf32> -> vector<16x128xf32>
      %c0_47 = arith.constant 0 : index
      %c0_48 = arith.constant 0 : index
      %60 = vector.load %arg11[%c0_47, %c0_48] : memref<1x128xf32, #tpu.memory_space<vmem>>, vector<1x128xf32>
      %61 = vector.broadcast %60 : vector<1x128xf32> to vector<16x128xf32>
      %62 = arith.addf %59, %61 : vector<16x128xf32>
      %cst_49 = arith.constant 0.000000e+00 : f32
      %63 = vector.broadcast %cst_49 : f32 to vector<16x128xf32>
      %64 = arith.maximumf %62, %63 : vector<16x128xf32>
      %c0_50 = arith.constant 0 : index
      %c0_51 = arith.constant 0 : index
      %65 = vector.load %arg12[%c0_50, %c0_51] : memref<1x128xbf16, #tpu.memory_space<vmem>>, vector<1x128xbf16>
      %66 = arith.extf %65 : vector<1x128xbf16> to vector<1x128xf32>
      %67 = vector.broadcast %66 : vector<1x128xf32> to vector<16x128xf32>
      %68 = arith.mulf %64, %67 : vector<16x128xf32>
      %cst_52 = arith.constant dense<0.000000e+00> : vector<16xf32>
      %69 = vector.multi_reduction <add>, %68, %cst_52 [1] : vector<16x128xf32> to vector<16xf32>
      %c0_53 = arith.constant 0 : index
      %c0_54 = arith.constant 0 : index
      %70 = memref.load %arg13[%c0_53, %c0_54] : memref<1x1xf32, #tpu.memory_space<smem>>
      %71 = vector.broadcast %70 : f32 to vector<16xf32>
      %72 = arith.addf %69, %71 : vector<16xf32>
      %73 = vector.shape_cast %72 : vector<16xf32> to vector<2x8xf32>
      %cst_55 = arith.constant dense<0xFF800000> : vector<2xf32>
      %74 = vector.multi_reduction <maximumf>, %73, %cst_55 [1] : vector<2x8xf32> to vector<2xf32>
      %75 = vector.shape_cast %74 : vector<2xf32> to vector<2x1xf32>
      %76 = vector.broadcast %75 : vector<2x1xf32> to vector<2x8xf32>
      %77 = arith.subf %73, %76 : vector<2x8xf32>
      %78 = math.exp %77 : vector<2x8xf32>
      %cst_56 = arith.constant dense<0.000000e+00> : vector<2xf32>
      %79 = vector.multi_reduction <add>, %78, %cst_56 [1] : vector<2x8xf32> to vector<2xf32>
      %80 = vector.shape_cast %79 : vector<2xf32> to vector<2x1xf32>
      %81 = vector.broadcast %80 : vector<2x1xf32> to vector<2x8xf32>
      %82 = arith.divf %78, %81 : vector<2x8xf32>
      %83 = arith.mulf %82, %27 : vector<2x8xf32>
      %84 = vector.shape_cast %55 : vector<2x8xf32> to vector<2x8x1xf32>
      %85 = vector.broadcast %84 : vector<2x8x1xf32> to vector<2x8x128xf32>
      %86 = arith.mulf %24, %85 : vector<2x8x128xf32>
      %cst_57 = arith.constant dense<0.000000e+00> : vector<2x128xf32>
      %87 = vector.multi_reduction <add>, %86, %cst_57 [1] : vector<2x8x128xf32> to vector<2x128xf32>
      %88 = vector.shape_cast %83 : vector<2x8xf32> to vector<2x8x1xf32>
      %89 = vector.broadcast %88 : vector<2x8x1xf32> to vector<2x8x128xf32>
      %90 = arith.mulf %25, %89 : vector<2x8x128xf32>
      %cst_58 = arith.constant dense<0.000000e+00> : vector<2x128xf32>
      %91 = vector.multi_reduction <add>, %90, %cst_58 [1] : vector<2x8x128xf32> to vector<2x128xf32>
      %92 = arith.truncf %91 : vector<2x128xf32> to vector<2x128xbf16>
      %c0_59 = arith.constant 0 : index
      %c0_60 = arith.constant 0 : index
      %93 = vector.load %arg14[%c0_59, %c0_60] : memref<128x512xbf16, #tpu.memory_space<vmem>>, vector<128x512xbf16>
      %cst_61 = arith.constant dense<0.000000e+00> : vector<2x512xf32>
      %94 = tpu.matmul %92, %93, %cst_61 {dimension_numbers = #tpu.dot_dimension_numbers<[1], [0], [0], [1], [0, 0, 1, 1], [], []>} : vector<2x128xbf16>, vector<128x512xbf16>, vector<2x512xf32> -> vector<2x512xf32>
      %c0_62 = arith.constant 0 : index
      %c0_63 = arith.constant 0 : index
      %95 = vector.load %arg15[%c0_62, %c0_63] : memref<1x512xf32, #tpu.memory_space<vmem>>, vector<1x512xf32>
      %96 = vector.broadcast %95 : vector<1x512xf32> to vector<2x512xf32>
      %97 = arith.addf %94, %96 : vector<2x512xf32>
      %98 = arith.truncf %97 : vector<2x512xf32> to vector<2x512xbf16>
      %c0_64 = arith.constant 0 : index
      %c0_65 = arith.constant 0 : index
      %99 = vector.load %arg24[%c0_64, %c0_65] : memref<2x512xbf16, #tpu.memory_space<vmem>>, vector<2x512xbf16>
      tpu.vector_store %arg24[%c0_64, %c0_65], %98 {strides = array<i32>} : memref<2x512xbf16, #tpu.memory_space<vmem>>, vector<2x512xbf16>,
      %100 = arith.truncf %87 : vector<2x128xf32> to vector<2x128xbf16>
      %c0_66 = arith.constant 0 : index
      %c0_67 = arith.constant 0 : index
      %101 = vector.load %arg16[%c0_66, %c0_67] : memref<128x512xbf16, #tpu.memory_space<vmem>>, vector<128x512xbf16>
      %cst_68 = arith.constant dense<0.000000e+00> : vector<2x512xf32>
      %102 = tpu.matmul %100, %101, %cst_68 {dimension_numbers = #tpu.dot_dimension_numbers<[1], [0], [0], [1], [0, 0, 1, 1], [], []>} : vector<2x128xbf16>, vector<128x512xbf16>, vector<2x512xf32> -> vector<2x512xf32>
      %c0_69 = arith.constant 0 : index
      %c0_70 = arith.constant 0 : index
      %103 = vector.load %arg17[%c0_69, %c0_70] : memref<1x512xf32, #tpu.memory_space<vmem>>, vector<1x512xf32>
      %104 = vector.broadcast %103 : vector<1x512xf32> to vector<2x512xf32>
      %105 = arith.addf %102, %104 : vector<2x512xf32>
      %106 = arith.truncf %105 : vector<2x512xf32> to vector<2x512xbf16>
      %c0_71 = arith.constant 0 : index
      %c0_72 = arith.constant 0 : index
      %107 = vector.load %arg25[%c0_71, %c0_72] : memref<2x512xbf16, #tpu.memory_space<vmem>>, vector<2x512xbf16>
      tpu.vector_store %arg25[%c0_71, %c0_72], %106 {strides = array<i32>} : memref<2x512xbf16, #tpu.memory_space<vmem>>, vector<2x512xbf16>,
      %cst_73 = arith.constant 0.000000e+00 : f32
      %108 = vector.broadcast %cst_73 : f32 to vector<2x128xf32>
      %c0_74 = arith.constant 0 : index
      %c0_75 = arith.constant 0 : index
      %109 = vector.load %arg26[%c0_74, %c0_75] : memref<2x128xf32, #tpu.memory_space<vmem>>, vector<2x128xf32>
      tpu.vector_store %arg26[%c0_74, %c0_75], %108 {strides = array<i32>} : memref<2x128xf32, #tpu.memory_space<vmem>>, vector<2x128xf32>,
    } else {
    }
    %c0 = arith.constant 0 : index
    %c0_1 = arith.constant 0 : index
    %3 = vector.load %arg24[%c0, %c0_1] : memref<2x512xbf16, #tpu.memory_space<vmem>>, vector<2x512xbf16>
    %c0_2 = arith.constant 0 : index
    %c0_3 = arith.constant 0 : index
    %4 = vector.load %arg18[%c0_2, %c0_3] : memref<512x2048xbf16, #tpu.memory_space<vmem>>, vector<512x2048xbf16>
    %cst = arith.constant dense<0.000000e+00> : vector<2x2048xf32>
    %5 = tpu.matmul %3, %4, %cst {dimension_numbers = #tpu.dot_dimension_numbers<[1], [0], [0], [1], [0, 0, 1, 1], [], []>} : vector<2x512xbf16>, vector<512x2048xbf16>, vector<2x2048xf32> -> vector<2x2048xf32>
    %c0_4 = arith.constant 0 : index
    %c0_5 = arith.constant 0 : index
    %6 = vector.load %arg25[%c0_4, %c0_5] : memref<2x512xbf16, #tpu.memory_space<vmem>>, vector<2x512xbf16>
    %c0_6 = arith.constant 0 : index
    %c0_7 = arith.constant 0 : index
    %7 = vector.load %arg19[%c0_6, %c0_7] : memref<512x2048xbf16, #tpu.memory_space<vmem>>, vector<512x2048xbf16>
    %cst_8 = arith.constant dense<0.000000e+00> : vector<2x2048xf32>
    %8 = tpu.matmul %6, %7, %cst_8 {dimension_numbers = #tpu.dot_dimension_numbers<[1], [0], [0], [1], [0, 0, 1, 1], [], []>} : vector<2x512xbf16>, vector<512x2048xbf16>, vector<2x2048xf32> -> vector<2x2048xf32>
    %9 = arith.addf %5, %8 : vector<2x2048xf32>
    %c0_9 = arith.constant 0 : index
    %c0_10 = arith.constant 0 : index
    %10 = vector.load %arg20[%c0_9, %c0_10] : memref<1x2048xf32, #tpu.memory_space<vmem>>, vector<1x2048xf32>
    %11 = vector.broadcast %10 : vector<1x2048xf32> to vector<2x2048xf32>
    %12 = arith.addf %9, %11 : vector<2x2048xf32>
    %cst_11 = arith.constant 0.000000e+00 : f32
    %13 = vector.broadcast %cst_11 : f32 to vector<2x2048xf32>
    %14 = arith.maximumf %12, %13 : vector<2x2048xf32>
    %c0_12 = arith.constant 0 : index
    %c0_13 = arith.constant 0 : index
    %15 = vector.load %arg26[%c0_12, %c0_13] : memref<2x128xf32, #tpu.memory_space<vmem>>, vector<2x128xf32>
    %16 = arith.truncf %14 : vector<2x2048xf32> to vector<2x2048xbf16>
    %c0_14 = arith.constant 0 : index
    %c0_15 = arith.constant 0 : index
    %17 = vector.load %arg21[%c0_14, %c0_15] : memref<2048x128xbf16, #tpu.memory_space<vmem>>, vector<2048x128xbf16>
    %cst_16 = arith.constant dense<0.000000e+00> : vector<2x128xf32>
    %18 = tpu.matmul %16, %17, %cst_16 {dimension_numbers = #tpu.dot_dimension_numbers<[1], [0], [0], [1], [0, 0, 1, 1], [], []>} : vector<2x2048xbf16>, vector<2048x128xbf16>, vector<2x128xf32> -> vector<2x128xf32>
    %19 = arith.addf %15, %18 : vector<2x128xf32>
    %c0_17 = arith.constant 0 : index
    %c0_18 = arith.constant 0 : index
    %20 = vector.load %arg26[%c0_17, %c0_18] : memref<2x128xf32, #tpu.memory_space<vmem>>, vector<2x128xf32>
    tpu.vector_store %arg26[%c0_17, %c0_18], %19 {strides = array<i32>} : memref<2x128xf32, #tpu.memory_space<vmem>>, vector<2x128xf32>,
    %c0_i32_19 = arith.constant 0 : i32
    %21 = arith.cmpi eq, %arg1, %c0_i32_19 : i32
    %22 = arith.extui %21 : i1 to i32
    %c0_i32_20 = arith.constant 0 : i32
    %23 = arith.cmpi ne, %22, %c0_i32_20 : i32
    scf.if %23 {
      %c0_21 = arith.constant 0 : index
      %c0_22 = arith.constant 0 : index
      %24 = vector.load %arg26[%c0_21, %c0_22] : memref<2x128xf32, #tpu.memory_space<vmem>>, vector<2x128xf32>
      %c0_23 = arith.constant 0 : index
      %c0_24 = arith.constant 0 : index
      %25 = vector.load %arg22[%c0_23, %c0_24] : memref<1x128xf32, #tpu.memory_space<vmem>>, vector<1x128xf32>
      %26 = vector.broadcast %25 : vector<1x128xf32> to vector<2x128xf32>
      %27 = arith.addf %24, %26 : vector<2x128xf32>
      %c0_25 = arith.constant 0 : index
      %c0_26 = arith.constant 0 : index
      %28 = vector.load %arg23[%c0_25, %c0_26] : memref<2x128xf32, #tpu.memory_space<vmem>>, vector<2x128xf32>
      tpu.vector_store %arg23[%c0_25, %c0_26], %27 {strides = array<i32>} : memref<2x128xf32, #tpu.memory_space<vmem>>, vector<2x128xf32>,
    } else {
    }
    return
  }
  func.func @transform_0(%arg0: i32, %arg1: i32) -> (i32, i32, i32) {
    %c0_i32 = arith.constant 0 : i32
    %c0_i32_0 = arith.constant 0 : i32
    %c0_i32_1 = arith.constant 0 : i32
    return %arg0, %c0_i32, %c0_i32_0 : i32, i32, i32
  }
  func.func @transform_1(%arg0: i32, %arg1: i32) -> (i32, i32, i32) {
    %c0_i32 = arith.constant 0 : i32
    %c0_i32_0 = arith.constant 0 : i32
    %c0_i32_1 = arith.constant 0 : i32
    return %arg0, %c0_i32, %c0_i32_0 : i32, i32, i32
  }
  func.func @transform_2(%arg0: i32, %arg1: i32) -> (i32, i32) {
    %c0_i32 = arith.constant 0 : i32
    %c0_i32_0 = arith.constant 0 : i32
    return %arg0, %c0_i32 : i32, i32
  }
  func.func @transform_3(%arg0: i32, %arg1: i32) -> (i32, i32) {
    %c0_i32 = arith.constant 0 : i32
    %c0_i32_0 = arith.constant 0 : i32
    return %arg0, %c0_i32 : i32, i32
  }
  func.func @transform_4(%arg0: i32, %arg1: i32) -> (i32, i32) {
    %c0_i32 = arith.constant 0 : i32
    %c0_i32_0 = arith.constant 0 : i32
    %c0_i32_1 = arith.constant 0 : i32
    return %c0_i32, %c0_i32_0 : i32, i32
  }
  func.func @transform_5(%arg0: i32, %arg1: i32) -> (i32, i32) {
    %c0_i32 = arith.constant 0 : i32
    %c0_i32_0 = arith.constant 0 : i32
    %c0_i32_1 = arith.constant 0 : i32
    return %c0_i32, %c0_i32_0 : i32, i32
  }
  func.func @transform_6(%arg0: i32, %arg1: i32) -> (i32, i32) {
    %c0_i32 = arith.constant 0 : i32
    %c0_i32_0 = arith.constant 0 : i32
    %c0_i32_1 = arith.constant 0 : i32
    return %c0_i32, %c0_i32_0 : i32, i32
  }
  func.func @transform_7(%arg0: i32, %arg1: i32) -> (i32, i32) {
    %c0_i32 = arith.constant 0 : i32
    %c0_i32_0 = arith.constant 0 : i32
    %c0_i32_1 = arith.constant 0 : i32
    return %c0_i32, %c0_i32_0 : i32, i32
  }
  func.func @transform_8(%arg0: i32, %arg1: i32) -> (i32, i32) {
    %c0_i32 = arith.constant 0 : i32
    %c0_i32_0 = arith.constant 0 : i32
    %c0_i32_1 = arith.constant 0 : i32
    return %c0_i32, %c0_i32_0 : i32, i32
  }
  func.func @transform_9(%arg0: i32, %arg1: i32) -> (i32, i32) {
    %c0_i32 = arith.constant 0 : i32
    %c0_i32_0 = arith.constant 0 : i32
    %c0_i32_1 = arith.constant 0 : i32
    return %c0_i32, %c0_i32_0 : i32, i32
  }
  func.func @transform_10(%arg0: i32, %arg1: i32) -> (i32, i32) {
    %c0_i32 = arith.constant 0 : i32
    %c0_i32_0 = arith.constant 0 : i32
    %c0_i32_1 = arith.constant 0 : i32
    return %c0_i32, %c0_i32_0 : i32, i32
  }
  func.func @transform_11(%arg0: i32, %arg1: i32) -> (i32, i32) {
    %c0_i32 = arith.constant 0 : i32
    %c0_i32_0 = arith.constant 0 : i32
    %c0_i32_1 = arith.constant 0 : i32
    return %c0_i32, %c0_i32_0 : i32, i32
  }
  func.func @transform_12(%arg0: i32, %arg1: i32) -> (i32, i32) {
    %c0_i32 = arith.constant 0 : i32
    %c0_i32_0 = arith.constant 0 : i32
    %c0_i32_1 = arith.constant 0 : i32
    return %c0_i32, %c0_i32_0 : i32, i32
  }
  func.func @transform_13(%arg0: i32, %arg1: i32) -> (i32, i32) {
    %c0_i32 = arith.constant 0 : i32
    %c0_i32_0 = arith.constant 0 : i32
    %c0_i32_1 = arith.constant 0 : i32
    return %c0_i32, %c0_i32_0 : i32, i32
  }
  func.func @transform_14(%arg0: i32, %arg1: i32) -> (i32, i32) {
    %c0_i32 = arith.constant 0 : i32
    %c0_i32_0 = arith.constant 0 : i32
    %c0_i32_1 = arith.constant 0 : i32
    return %c0_i32, %c0_i32_0 : i32, i32
  }
  func.func @transform_15(%arg0: i32, %arg1: i32) -> (i32, i32) {
    %c0_i32 = arith.constant 0 : i32
    %c0_i32_0 = arith.constant 0 : i32
    %c0_i32_1 = arith.constant 0 : i32
    return %c0_i32, %c0_i32_0 : i32, i32
  }
  func.func @transform_16(%arg0: i32, %arg1: i32) -> (i32, i32) {
    %c0_i32 = arith.constant 0 : i32
    %c0_i32_0 = arith.constant 0 : i32
    return %c0_i32, %arg1 : i32, i32
  }
  func.func @transform_17(%arg0: i32, %arg1: i32) -> (i32, i32) {
    %c0_i32 = arith.constant 0 : i32
    %c0_i32_0 = arith.constant 0 : i32
    return %c0_i32, %arg1 : i32, i32
  }
  func.func @transform_18(%arg0: i32, %arg1: i32) -> (i32, i32) {
    %c0_i32 = arith.constant 0 : i32
    %c0_i32_0 = arith.constant 0 : i32
    return %c0_i32, %arg1 : i32, i32
  }
  func.func @transform_19(%arg0: i32, %arg1: i32) -> (i32, i32) {
    %c0_i32 = arith.constant 0 : i32
    %c0_i32_0 = arith.constant 0 : i32
    return %arg1, %c0_i32 : i32, i32
  }
  func.func @transform_20(%arg0: i32, %arg1: i32) -> (i32, i32) {
    %c0_i32 = arith.constant 0 : i32
    %c0_i32_0 = arith.constant 0 : i32
    %c0_i32_1 = arith.constant 0 : i32
    return %c0_i32, %c0_i32_0 : i32, i32
  }
  func.func @transform_21(%arg0: i32, %arg1: i32) -> (i32, i32) {
    %c0_i32 = arith.constant 0 : i32
    %c0_i32_0 = arith.constant 0 : i32
    return %arg0, %c0_i32 : i32, i32
  }
}

</mosaic_0001>

<bundles_post_ra>
// kernel: tpu_custom_call.1
= control target key start
LH: loop header
LB: loop body
LE: loop exit
PB: predicated region body
PF: predicated region fallthrough
CT: control target
= control target key end

     0   :  { %s17866_s0 = inlined_call_operand.hbm [shape: f32[2,8,128], index: 0, kind: input, shape index: {}]   ;;  %s17867_s1 = inlined_call_operand.hbm [shape: f32[2,8,128], index: 1, kind: input, shape index: {}]   ;;  %s17868_s2 = inlined_call_operand.hbm [shape: f32[2,8], index: 2, kind: input, shape index: {}]   ;;  %s17869_s3 = inlined_call_operand.hbm [shape: f32[2,8], index: 3, kind: input, shape index: {}]   ;;  %s17870_s4 = inlined_call_operand.hbm [shape: bf16[128,128], index: 4, kind: input, shape index: {}]   ;;  %s17871_s5 = inlined_call_operand.hbm [shape: f32[1,128], index: 5, kind: input, shape index: {}]   ;;  %s17872_s6 = inlined_call_operand.hbm [shape: bf16[1,128], index: 6, kind: input, shape index: {}]   ;;  %s17873_s7 = inlined_call_operand.<no memory space> [shape: f32[1,1], index: 7, kind: input, shape index: {}]   ;;  %s17874_s8 = inlined_call_operand.hbm [shape: bf16[128,128], index: 8, kind: input, shape index: {}]   ;;  %s17875_s9 = inlined_call_operand.hbm [shape: f32[1,128], index: 9, kind: input, shape index: {}]   ;;  %s17876_s10 = inlined_call_operand.hbm [shape: bf16[1,128], index: 10, kind: input, shape index: {}]   ;;  %s17877_s11 = inlined_call_operand.<no memory space> [shape: f32[1,1], index: 11, kind: input, shape index: {}]   ;;  %s17878_s12 = inlined_call_operand.hbm [shape: bf16[128,512], index: 12, kind: input, shape index: {}]   ;;  %s17879_s13 = inlined_call_operand.hbm [shape: f32[1,512], index: 13, kind: input, shape index: {}]   ;;  %s17880_s14 = inlined_call_operand.hbm [shape: bf16[128,512], index: 14, kind: input, shape index: {}]   ;;  %s17881_s15 = inlined_call_operand.hbm [shape: f32[1,512], index: 15, kind: input, shape index: {}]   ;;  %s17882_s16 = inlined_call_operand.hbm [shape: bf16[512,2048], index: 16, kind: input, shape index: {}]   ;;  %s17883_s17 = inlined_call_operand.hbm [shape: bf16[512,2048], index: 17, kind: input, shape index: {}]   ;;  %s17884_s18 = inlined_call_operand.hbm [shape: f32[1,2048], index: 18, kind: input, shape index: {}]   ;;  %s17885_s19 = inlined_call_operand.hbm [shape: bf16[2048,128], index: 19, kind: input, shape index: {}]   ;;  %s17886_s20 = inlined_call_operand.hbm [shape: f32[1,128], index: 20, kind: input, shape index: {}]   ;;  %s17887_s21 = inlined_call_operand.hbm [shape: f32[2,128], index: 21, kind: output, shape index: {}]  }
   0x1   :  { %17890 = sst [smem:[#allocation49_spill]] %s17866_s0 }
   0x2   :  { %17891 = sst [smem:[#allocation50_spill]] %s17867_s1 }
   0x3   :  { %17892 = sst [smem:[#allocation51_spill]] %s17868_s2 }
   0x4   :  { %17893 = sst [smem:[#allocation52_spill]] %s17869_s3 }
   0x5   :  { %17894 = sst [smem:[#allocation53_spill]] %s17870_s4 }
   0x6   :  { %17895 = sst [smem:[#allocation54_spill]] %s17871_s5 }
   0x7   :  { %17896 = sst [smem:[#allocation55_spill]] %s17887_s21 }
   0x8   :  { %28 = vsyncpa [#allocation8], 0 }
   0x9   :  { %29 = vsyncpa [#allocation11], 0 }
   0xa   :  { %30 = vsyncpa [#allocation14], 0 }
   0xb   :  { %31 = vsyncpa [#allocation17], 0 }
   0xc   :  { %32 = vsyncpa [#allocation20], 0 }
   0xd   :  { %33 = vsyncpa [#allocation23], 0 }
   0xe   :  { %34 = vsyncpa [#allocation26], 0 }
   0xf   :  { %35 = vsyncpa [#allocation29], 0 }
  0x10   :  { %36 = vsyncpa [#allocation32], 0 }
  0x11   :  { %37 = vsyncpa [#allocation35], 0 }
  0x12   :  { %38 = vsyncpa [#allocation9], 0  ;;  %s17897_s26 = sld [smem:[#allocation50_spill]]  ;;  %s17258_s3 = smov [#allocation10]  }
  0x13   :  { %s58_s28 = sshll.u32 %s17258_s3, 4  ;;  %s17898_s4 = sld [smem:[#allocation52_spill]]  ;;  %s59_s28 = int_to_ptr.vmem [resolvable:$true] %s58_s28 }
  0x14   :  { %s17888_s5 = smov 128   ;;  %s17889_s22 = smov 8  }
  0x15   :  { %s17261_s23 = smov [#allocation13]   ;;  %s17899_s25 = sld [smem:[#allocation54_spill]] }
  0x16   :  { %s83_s1 = sshll.u32 %s17261_s23, 4  ;;  %s17262_s3 = smov [#allocation16]   ;;  %s84_s1 = int_to_ptr.vmem [resolvable:$true] %s83_s1 }
  0x17   :  { %s107_s21 = sshll.u32 %s17262_s3, 4  ;;  %s17264_s24 = smov 64   ;;  %s108_s21 = int_to_ptr.vmem [resolvable:$true] %s107_s21 }
  0x18   :  { %s56_s27 = sshll.u32 %s17897_s26, 4  ;;  %s17265_s2 = smov 4   ;;  %s57_s27 = int_to_ptr.hbm [resolvable:$true] %s56_s27 }
  0x19   :  { %s81_s30 = sshll.u32 %s17898_s4, 4  ;;  %s128_s4 = sshll.u32 %s17874_s8, 4  ;;  %s82_s30 = int_to_ptr.hbm [resolvable:$true] %s81_s30  ;;  %s129_s4 = int_to_ptr.hbm [resolvable:$true] %s128_s4 }
  0x1a   :  { %64 = dma.hbm_to_vmem [thread:$0]  %s57_s27, 256, %s59_s28, [#allocation11], %s17888_s5, %s17888_s5, %s17889_s22  }
  0x1b   :  { %s105_s26 = sshll.u32 %s17899_s25, 4  ;;  %s17263_s27 = smov [#allocation19]   ;;  %s106_s26 = int_to_ptr.hbm [resolvable:$true] %s105_s26 }
  0x1c   :  { %86 = dma.hbm_to_vmem [thread:$0]  %s82_s30, 32, %s84_s1, [#allocation14]  }
  0x1d   :  { %110 = dma.hbm_to_vmem [thread:$0]  %s106_s26, 16, %s108_s21, [#allocation17]  }
  0x1e   :  { %s130_s28 = sshll.u32 %s17263_s27, 4  ;;  %s153_s22 = sshll.u32 %s17876_s10, 4  ;;  %s131_s28 = int_to_ptr.vmem [resolvable:$true] %s130_s28  ;;  %s154_s22 = int_to_ptr.hbm [resolvable:$true] %s153_s22 }
  0x1f   :  { %136 = dma.hbm_to_vmem [thread:$0]  %s129_s4, 1024, %s131_s28, [#allocation20], %s17264_s24, %s17264_s24, %s17265_s2  }
  0x20   :  { %s179_s8 = sshll.u32 %s17879_s13, 4  ;;  %s17266_s21 = smov [#allocation22]   ;;  %s180_s8 = int_to_ptr.hbm [resolvable:$true] %s179_s8 }
  0x21   :  { %s155_s25 = sshll.u32 %s17266_s21, 4  ;;  %s17267_s26 = smov [#allocation25]   ;;  %s156_s25 = int_to_ptr.vmem [resolvable:$true] %s155_s25 }
  0x22   :  { %158 = dma.hbm_to_vmem [thread:$0]  %s154_s22, 16, %s156_s25, [#allocation23]  }
  0x23   :  { %s181_s5 = sshll.u32 %s17267_s26, 4  ;;  %s203_s29 = sshll.u32 %s17881_s15, 4  ;;  %s182_s5 = int_to_ptr.vmem [resolvable:$true] %s181_s5  ;;  %s204_s29 = int_to_ptr.hbm [resolvable:$true] %s203_s29 }
  0x24   :  { %184 = dma.hbm_to_vmem [thread:$0]  %s180_s8, 64, %s182_s5, [#allocation26]  }
  0x25   :  { %s17268_s0 = smov [#allocation28]   ;;  %s226_s13 = sshll.u32 %s17883_s17, 4  ;;  %s227_s13 = int_to_ptr.hbm [resolvable:$true] %s226_s13 }
  0x26   :  { %s205_s4 = sshll.u32 %s17268_s0, 4  ;;  %s250_s30 = sshll.u32 %s17885_s19, 4  ;;  %s206_s4 = int_to_ptr.vmem [resolvable:$true] %s205_s4  ;;  %s251_s30 = int_to_ptr.hbm [resolvable:$true] %s250_s30 }
  0x27   :  { %208 = dma.hbm_to_vmem [thread:$0]  %s204_s29, 64, %s206_s4, [#allocation29]  }
  0x28   :  { %s17269_s1 = smov [#allocation31]   ;;  %s17270_s15 = smov 1024  }
  0x29   :  { %s228_s21 = sshll.u32 %s17269_s1, 4  ;;  %s17271_s8 = smov [#allocation34]   ;;  %s229_s21 = int_to_ptr.vmem [resolvable:$true] %s228_s21 }
  0x2a   :  { %234 = dma.hbm_to_vmem [thread:$0]  %s227_s13, 65536, %s229_s21, [#allocation32], %s17270_s15, %s17270_s15, %s17264_s24  }
  0x2b   :  { %s252_s25 = sshll.u32 %s17271_s8, 4  ;;  %s17900_s5 = sld [smem:[#allocation49_spill]]  ;;  %s253_s25 = int_to_ptr.vmem [resolvable:$true] %s252_s25 }
  0x2c   :  { %258 = dma.hbm_to_vmem [thread:$0]  %s251_s30, 16384, %s253_s25, [#allocation35], %s17264_s24, %s17264_s24, %s17265_s2  }
  0x2d   :  { %s17901_s29 = sld [smem:[#allocation51_spill]]  ;;  %s17272_s4 = smov [#allocation7]  }
  0x2e   :  { %s45_s27 = sshll.u32 %s17272_s4, 4  ;;  %s17902_s28 = smov 8   ;;  %s46_s27 = int_to_ptr.vmem [resolvable:$true] %s45_s27 }
  0x2f   :  { %s17903_s13 = smov 128   ;;  %s17273_s23 = smov [#allocation12]  }
  0x30   :  { %s72_s22 = sshll.u32 %s17273_s23, 4  ;;  %s17904_s8 = sld [smem:[#allocation53_spill]]  ;;  %s73_s22 = int_to_ptr.vmem [resolvable:$true] %s72_s22 }
  0x31   :  { %s43_s10 = sshll.u32 %s17900_s5, 4  ;;  %s116_s17 = sshll.u32 %s17872_s6, 4  ;;  %s44_s10 = int_to_ptr.hbm [resolvable:$true] %s43_s10  ;;  %s117_s17 = int_to_ptr.hbm [resolvable:$true] %s116_s17 }
  0x32   :  { %51 = dma.hbm_to_vmem [thread:$0]  %s44_s10, 256, %s46_s27, [#allocation8], %s17903_s13, %s17903_s13, %s17902_s28  }
  0x33   :  { %s70_s0 = sshll.u32 %s17901_s29, 4  ;;  %s17274_s5 = smov [#allocation15]   ;;  %s71_s0 = int_to_ptr.hbm [resolvable:$true] %s70_s0 }
  0x34   :  { %75 = dma.hbm_to_vmem [thread:$0]  %s71_s0, 32, %s73_s22, [#allocation11]  }
  0x35   :  { %s93_s19 = sshll.u32 %s17274_s5, 4  ;;  %s17275_s10 = smov [#allocation18]   ;;  %s94_s19 = int_to_ptr.vmem [resolvable:$true] %s93_s19 }
  0x36   :  { %s91_s26 = sshll.u32 %s17904_s8, 4  ;;  %s118_s3 = sshll.u32 %s17275_s10, 4  ;;  %s92_s26 = int_to_ptr.hbm [resolvable:$true] %s91_s26  ;;  %s119_s3 = int_to_ptr.vmem [resolvable:$true] %s118_s3 }
  0x37   :  { %99 = dma.hbm_to_vmem [thread:$0]  %s92_s26, 1024, %s94_s19, [#allocation14], %s17264_s24, %s17264_s24, %s17265_s2  }
  0x38   :  { %s142_s27 = sshll.u32 %s17875_s9, 4  ;;  %s165_s6 = sshll.u32 %s17878_s12, 4  ;;  %s143_s27 = int_to_ptr.hbm [resolvable:$true] %s142_s27  ;;  %s166_s6 = int_to_ptr.hbm [resolvable:$true] %s165_s6 }
  0x39   :  { %121 = dma.hbm_to_vmem [thread:$0]  %s117_s17, 16, %s119_s3, [#allocation17]  }
  0x3a   :  { %s17276_s13 = smov [#allocation21]   ;;  %s17277_s22 = smov [#allocation24]  }
  0x3b   :  { %s144_s23 = sshll.u32 %s17276_s13, 4  ;;  %s167_s2 = sshll.u32 %s17277_s22, 4  ;;  %s145_s23 = int_to_ptr.vmem [resolvable:$true] %s144_s23  ;;  %s168_s2 = int_to_ptr.vmem [resolvable:$true] %s167_s2 }
  0x3c   :  { %147 = dma.hbm_to_vmem [thread:$0]  %s143_s27, 16, %s145_s23, [#allocation20]  }
  0x3d   :  { %s17278_s1 = smov 256   ;;  %s17279_s21 = smov 16  }
  0x3e   :  { %173 = dma.hbm_to_vmem [thread:$0]  %s166_s6, 4096, %s168_s2, [#allocation23], %s17278_s1, %s17278_s1, %s17279_s21  }
  0x3f   :  { %s189_s26 = sshll.u32 %s17880_s14, 4  ;;  %s17280_s30 = smov [#allocation27]   ;;  %s190_s26 = int_to_ptr.hbm [resolvable:$true] %s189_s26 }
  0x40   :  { %s191_s25 = sshll.u32 %s17280_s30, 4  ;;  %s213_s5 = sshll.u32 %s17882_s16, 4  ;;  %s192_s25 = int_to_ptr.vmem [resolvable:$true] %s191_s25  ;;  %s214_s5 = int_to_ptr.hbm [resolvable:$true] %s213_s5 }
  0x41   :  { %197 = dma.hbm_to_vmem [thread:$0]  %s190_s26, 4096, %s192_s25, [#allocation26], %s17278_s1, %s17278_s1, %s17279_s21  }
  0x42   :  { %s17281_s19 = smov [#allocation30]   ;;  %s240_s4 = sshll.u32 %s17884_s18, 4  ;;  %s241_s4 = int_to_ptr.hbm [resolvable:$true] %s240_s4 }
  0x43   :  { %s215_s10 = sshll.u32 %s17281_s19, 4  ;;  %s264_s0 = sshll.u32 %s17886_s20, 4  ;;  %s216_s10 = int_to_ptr.vmem [resolvable:$true] %s215_s10  ;;  %s265_s0 = int_to_ptr.hbm [resolvable:$true] %s264_s0 }
  0x44   :  { %221 = dma.hbm_to_vmem [thread:$0]  %s214_s5, 65536, %s216_s10, [#allocation29], %s17270_s15, %s17270_s15, %s17264_s24  }
  0x45   :  { %s17282_s28 = smov [#allocation33]   ;;  %s17283_s6 = smov [#allocation36]  }
  0x46   :  { %s242_s16 = sshll.u32 %s17282_s28, 4  ;;  %s266_s13 = sshll.u32 %s17283_s6, 4  ;;  %s243_s16 = int_to_ptr.vmem [resolvable:$true] %s242_s16  ;;  %s267_s13 = int_to_ptr.vmem [resolvable:$true] %s266_s13 }
  0x47   :  { %245 = dma.hbm_to_vmem [thread:$0]  %s241_s4, 256, %s243_s16, [#allocation32]  }
  0x48   :  { %269 = dma.hbm_to_vmem [thread:$0]  %s265_s0, 16, %s267_s13, [#allocation35]  }
  0x49   :  { %17236 = dma.done.wait [#allocation8], 256  }
  0x4a   :  { %17237 = vsyncadd [#allocation8], 4294967040 }
  0x4b   :  { %17238 = dma.done.wait [#allocation11], 288  }
  0x4c   :  { %17239 = vsyncadd [#allocation11], 4294967008 }
  0x4d   :  { %17240 = dma.done.wait [#allocation14], 1056  }
  0x4e   :  { %17241 = vsyncadd [#allocation14], 4294966240 }
  0x4f   :  { %17242 = dma.done.wait [#allocation17], 32  }
  0x50   :  { %17243 = vsyncadd [#allocation17], 4294967264 }
  0x51   :  { %17244 = dma.done.wait [#allocation20], 1040  }
  0x52   :  { %17245 = vsyncadd [#allocation20], 4294966256 }
  0x53   :  { %17246 = dma.done.wait [#allocation23], 4112  }
  0x54   :  { %17247 = vsyncadd [#allocation23], 4294963184 }
  0x55   :  { %17248 = dma.done.wait [#allocation26], 4160  }
  0x56   :  { %17249 = vsyncadd [#allocation26], 4294963136 }
  0x57   :  { %17250 = dma.done.wait [#allocation29], 65600  }
  0x58   :  { %17251 = vsyncadd [#allocation29], 4294901696 }
  0x59   :  { %17252 = dma.done.wait [#allocation32], 65792  }
  0x5a   :  { %17253 = vsyncadd [#allocation32], 4294901504 }
  0x5b   :  { %17254 = dma.done.wait [#allocation35], 16400  }
  0x5c   :  { %17255 = vsyncadd [#allocation35], 4294950896  ;;  %v15472_v0 = vld [vmem:[#allocation19 + $0x38] sm:$0xff]  ;;  %v15471_v2 = vld [vmem:[#allocation19 + $0x30] sm:$0xff]  ;;  %v456_v48 = vlaneseq  ;;  %v642_v49 = vstv %s17877_s11  ;;  %v451_v50 = vstv %s17873_s7  ;;  %vm460_vm0 = vcmask 1041409   ;;  %s17286_s7 = smov [#allocation37]  }
  0x5d   :  { %v15464_v1 = vld [vmem:[#allocation15 + $0x38] sm:$0xff]  ;;  %616 = vmatpush.bf16.msra.mxu1 %v15472_v0  ;;  %v15463_v3 = vld [vmem:[#allocation15 + $0x30] sm:$0xff]  ;;  %v15462_v5 = vld [vmem:[#allocation15 + $0x28] sm:$0xff]  ;;  %vm463_vm1 = vcmask 58368   ;;  %s10508_s11 = sshll.u32 %s17286_s7, 4  ;;  %s17907_s2 = sld [smem:[#allocation55_spill]]  ;;  %s10509_s11 = int_to_ptr.vmem [resolvable:$true] %s10508_s11 }
  0x5e   :  { %425 = vmatpush.bf16.msra.mxu0 %v15464_v1  ;;  %v15470_v4 = vld [vmem:[#allocation19 + $0x28] sm:$0xff]  ;;  %v15469_v6 = vld [vmem:[#allocation19 + $0x20] sm:$0xff]  ;;  %v15468_v8 = vld [vmem:[#allocation19 + $0x18] sm:$0xff]  ;;  %v17493_v51 = vand.u32 127, %v456_v48 }
  0x5f   :  { %v15461_v7 = vld [vmem:[#allocation15 + $0x20] sm:$0xff]  ;;  %v15460_v9 = vld [vmem:[#allocation15 + $0x18] sm:$0xff]  ;;  %v15459_v11 = vld [vmem:[#allocation15 + $0x10] sm:$0xff] }
  0x60   :  { %v15467_v10 = vld [vmem:[#allocation19 + $0x10] sm:$0xff]  ;;  %v15466_v12 = vld [vmem:[#allocation19 + $0x8] sm:$0xff]  ;;  %v15465_v14 = vld [vmem:[#allocation19] sm:$0xff] }
  0x61   :  { %617 = vmatpush.bf16.msra.mxu1 %v15471_v2  ;;  %v15458_v13 = vld [vmem:[#allocation15 + $0x8] sm:$0xff]  ;;  %v17477_v16 = vld [vmem:[#allocation10 + $0x8] sm:$0xff]  ;;  %v15457_v17 = vld [vmem:[#allocation15] sm:$0xff]  ;;  %v17284_v2 = vmov 0  }
  0x62   :  { %426 = vmatpush.bf16.msra.mxu0 %v15463_v3  ;;  %v17475_v15 = vld [vmem:[#allocation10] sm:$0xff]  ;;  %v17479_v18 = vld [vmem:[#allocation7] sm:$0xff]  ;;  %v17481_v19 = vld [vmem:[#allocation7 + $0x8] sm:$0xff]  ;;  %16719 = vset.pattern.permute.xlu1 %v17284_v2 }
  0x63   :  { %v547_v20 = vpack.c.bf16 %v17477_v16, %v17475_v15  ;;  %v356_v21 = vpack.c.bf16 %v17481_v19, %v17479_v18  ;;  %v632_v22 = vld [vmem:[#allocation22] sm:$0x1]  ;;  %v441_v23 = vld [vmem:[#allocation18] sm:$0x1]  ;;  %v16725_v24 = vld [vmem:[#allocation21] ss:$0 sm:$0xff]  ;;  %16718 = vset.pattern.permute.xlu0 %v17284_v2  ;;  %16720 = vset.pattern.permute.xlu2 %v17284_v2 }
  0x64   :  { %v633_v25 = vunpack.c.l.bf16 %v632_v22  ;;  %v16726_v26 = vld [vmem:[#allocation16] ss:$0 sm:$0xff]  ;;  %v442_v27 = vunpack.c.l.bf16 %v441_v23  ;;  %s10510_s1 = sshll.u32 %s17907_s2, 4  ;;  %s10511_s1 = int_to_ptr.hbm [resolvable:$true] %s10510_s1 }
  0x65   :  { %618 = vmatpush.bf16.msra.mxu1 %v15470_v4 }
  0x66   :  { %427 = vmatpush.bf16.msra.mxu0 %v15462_v5  ;;  %v634_v31 = vperm.slane %v633_v25, 0  ;;  %v443_v33 = vperm.slane %v442_v27, 0  ;;  %v531_v25 = vshrl.u32 %v456_v48, 7 }
  0x69   :  { %619 = vmatpush.bf16.msra.mxu1 %v15469_v6 }
  0x6a   :  { %428 = vmatpush.bf16.msra.mxu0 %v15461_v7 }
  0x6d   :  { %620 = vmatpush.bf16.msra.mxu1 %v15468_v8 }
  0x6e   :  { %429 = vmatpush.bf16.msra.mxu0 %v15460_v9 }
  0x71   :  { %621 = vmatpush.bf16.msra.mxu1 %v15467_v10 }
  0x72   :  { %430 = vmatpush.bf16.msra.mxu0 %v15459_v11 }
  0x75   :  { %622 = vmatpush.bf16.msra.mxu1 %v15466_v12 }
  0x76   :  { %431 = vmatpush.bf16.msra.mxu0 %v15458_v13 }
  0x79   :  { %623 = vmatpush.bf16.msra.mxu1 %v15465_v14 }
  0x7a   :  { %432 = vmatpush.bf16.msra.mxu0 %v15457_v17 }
  0x7c   :  { %624 = vmatmul.bf16.vlgmr.msra.gmra.mxu1 %v547_v20 }
  0x7d   :  { %433 = vmatmul.bf16.vlgmr.msra.gmra.mxu0 %v356_v21 }
  0xf9   :  { %v625_v28 = vpop.f32.mrf.mxu1 }
  0xfa   :  { %v434_v29 = vpop.f32.mrf.mxu0  ;;  %v626_v30 = vadd.f32 %v16725_v24, %v625_v28 }
  0xfb   :  { %v435_v32 = vadd.f32 %v16726_v26, %v434_v29  ;;  %v354_v29 = vld [vmem:[#allocation12] sm:$0x3] }
  0xfc   :  { %v630_v34 = vmax.f32 %v626_v30, 0.0 }
  0xfd   :  { %v439_v35 = vmax.f32 %v435_v32, 0.0 }
  0xfe   :  { %v635_v36 = vmul.f32 %v634_v31, %v630_v34 }
  0xff   :  { %v444_v37 = vmul.f32 %v443_v33, %v439_v35 }
 0x100   :  { %637 = vadd.xlane.f32.xlu0 %v635_v36 }
 0x101   :  { %446 = vadd.xlane.f32.xlu1 %v444_v37  ;;  %v627_v38 = vpop.f32.mrf.mxu1 }
 0x102   :  { %v436_v39 = vpop.f32.mrf.mxu0  ;;  %v628_v40 = vadd.f32 %v16725_v24, %v627_v38 }
 0x103   :  { %v437_v41 = vadd.f32 %v16726_v26, %v436_v39  ;;  %v355_v26 = vld [vmem:[#allocation13] sm:$0x3] }
 0x104   :  { %v631_v42 = vmax.f32 %v628_v40, 0.0  ;;  %v716_v27 = vperm.slane %v355_v26, 0  ;;  %v723_v28 = vperm.slane %v355_v26, 1 }
 0x105   :  { %v440_v43 = vmax.f32 %v437_v41, 0.0 }
 0x106   :  { %v636_v44 = vmul.f32 %v634_v31, %v631_v42  ;;  %v529_v31 = vperm.slane %v354_v29, 0 }
 0x107   :  { %v445_v45 = vmul.f32 %v443_v33, %v440_v43  ;;  %v536_v43 = vperm.slane %v354_v29, 1 }
 0x108   :  { %639 = vadd.xlane.f32.xlu0 %v636_v44 }
 0x109   :  { %448 = vadd.xlane.f32.xlu1 %v445_v45 }
 0x173   :  { %v638_v46 = vpop.xlane.xlu0 %637 }
 0x174   :  { %v447_v47 = vpop.xlane.xlu1 %446  ;;  %v643_v52 = vadd.f32 %v642_v49, %v638_v46 }
 0x175   :  { %v452_v56 = vadd.f32 %v451_v50, %v447_v47 }
 0x176   :  { %v647_v58 = vperm.slane %v643_v52, %v17493_v51 }
 0x177   :  { %v458_v60 = vperm.slane %v452_v56, %v17493_v51 }
 0x17b   :  { %v640_v53 = vpop.xlane.xlu0 %639 }
 0x17c   :  { %v449_v54 = vpop.xlane.xlu1 %448  ;;  %v644_v55 = vadd.f32 %v642_v49, %v640_v53 }
 0x17d   :  { %v453_v57 = vadd.f32 %v451_v50, %v449_v54 }
 0x17e   :  { %v648_v59 = vperm.slane %v644_v55, %v17493_v51 }
 0x17f   :  { %v459_v62 = vperm.slane %v453_v57, %v17493_v51 }
 0x180   :  { %v649_v61 = vsel %vm460_vm0, %v648_v59, %v647_v58 }
 0x181   :  { %v651_v63 = vsel %vm463_vm1, %v649_v61, -inf  ;;  %v461_v0 = vsel %vm460_vm0, %v459_v62, %v458_v60 }
 0x182   :  { %652 = vmax.xlane.f32.xlu2 %v651_v63  ;;  %v464_v1 = vsel %vm463_vm1, %v461_v0, -inf }
 0x18a   :  { %465 = vmax.xlane.f32.xlu2 %v464_v1 }
 0x1f5   :  { %v653_v3 = vpop.xlane.xlu2 %652 }
 0x1f6   :  { %v655_v4 = vperm.slane %v653_v3, 0  ;;  %v656_v5 = vperm.slane %v653_v3, 1 }
 0x1f8   :  { %v659_v6 = vsub.f32 %v643_v52, %v655_v4  ;;  %v660_v7 = vsub.f32 %v644_v55, %v656_v5 }
 0x1fa   :  { %v661_v8 = vmul.f32 1.442695, %v659_v6  ;;  %v663_v9 = vmul.f32 1.442695, %v660_v7 }
 0x1fc   :  { %16728 = vpow2.f32 %v661_v8 }
 0x1fd   :  { %16730 = vpow2.f32 %v663_v9  ;;  %v466_v10 = vpop.xlane.xlu2 %465 }
 0x1fe   :  { %v468_v11 = vperm.slane %v466_v10, 0  ;;  %v469_v12 = vperm.slane %v466_v10, 1 }
 0x200   :  { %v472_v13 = vsub.f32 %v452_v56, %v468_v11  ;;  %v473_v21 = vsub.f32 %v453_v57, %v469_v12 }
 0x202   :  { %v17503_v14 = vpop.eup %16728  ;;  %v474_v17 = vmul.f32 1.442695, %v472_v13  ;;  %v476_v22 = vmul.f32 1.442695, %v473_v21 }
 0x203   :  { %v17505_v20 = vpop.eup %16730  ;;  %668 = vperm.xlu0 %16718, %v17503_v14  }
 0x204   :  { %16732 = vpow2.f32 %v474_v17  ;;  %671 = vperm.xlu1 %16719, %v17505_v20  }
 0x205   :  { %16734 = vpow2.f32 %v476_v22 }
 0x20a   :  { %v17509_v23 = vpop.eup %16732 }
 0x20b   :  { %481 = vperm.xlu2 %16720, %v17509_v23   ;;  %v17512_v24 = vpop.eup %16734  ;;  %16721 = vset.pattern.permute.xlu0 %v531_v25 }
 0x20c   :  { %16722 = vset.pattern.permute.xlu1 %v531_v25 }
 0x213   :  { %484 = vperm.xlu2 %16720, %v17512_v24   ;;  %721 = vperm.xlu0 %16721, %v716_v27  }
 0x21b   :  { %728 = vperm.xlu0 %16721, %v723_v28  }
 0x223   :  { %534 = vperm.xlu0 %16721, %v529_v31  }
 0x22b   :  { %16723 = vset.pattern.permute.xlu0 %v17284_v2 }
 0x265   :  { %v482_v30 = vpop.permute.xlu2 %481 }
 0x266   :  { %v486_v33 = vperm.slane %v482_v30, %v17493_v51 }
 0x26d   :  { %v485_v32 = vpop.permute.xlu2 %484 }
 0x26e   :  { %v487_v34 = vperm.slane %v485_v32, %v17493_v51 }
 0x270   :  { %v488_v35 = vsel %vm460_vm0, %v487_v34, %v486_v33 }
 0x271   :  { %v490_v36 = vsel %vm463_vm1, %v488_v35, 0.0 }
 0x272   :  { %491 = vadd.xlane.f32.xlu2 %v490_v36 }
 0x275   :  { %v669_v37 = vpop.permute.xlu0 %668 }
 0x276   :  { %v673_v38 = vperm.slane %v669_v37, %v17493_v51  ;;  %v672_v39 = vpop.permute.xlu1 %671 }
 0x277   :  { %v674_v40 = vperm.slane %v672_v39, %v17493_v51 }
 0x279   :  { %v675_v41 = vsel %vm460_vm0, %v674_v40, %v673_v38 }
 0x27a   :  { %v677_v42 = vsel %vm463_vm1, %v675_v41, 0.0 }
 0x27b   :  { %678 = vadd.xlane.f32.xlu1 %v677_v42 }
 0x285   :  { %v722_v55 = vpop.permute.xlu0 %721 }
 0x28d   :  { %v729_v21 = vpop.permute.xlu0 %728 }
 0x294   :  { %541 = vperm.xlu1 %16722, %v536_v43  }
 0x29c   :  { %16724 = vset.pattern.permute.xlu1 %v17284_v2 }
 0x2e5   :  { %v492_v44 = vpop.xlane.xlu2 %491 }
 0x2e6   :  { %v17523_v45 = vperm.slane %v492_v44, 0  ;;  %v495_v46 = vperm.slane %v492_v44, 1 }
 0x2e8   :  { %16736 = vrcp.f32 %v17523_v45  ;;  %vm503_vm2 = vweird.f32 %v17523_v45  ;;  %v507_v62 = vand.u32 2147483647, %v17523_v45  ;;  %v509_v63 = vand.u32 2147483648, %v17523_v45 }
 0x2e9   :  { %16738 = vrcp.f32 %v495_v46  ;;  %vm518_vm3 = vweird.f32 %v495_v46  ;;  %v524_v2 = vand.u32 2147483648, %v495_v46  ;;  %v522_v11 = vand.u32 2147483647, %v495_v46 }
 0x2ea   :  { %v510_v37 = vor.u32 1.1754944e-38, %v509_v63 }
 0x2eb   :  { %v525_v29 = vor.u32 1.1754944e-38, %v524_v2  ;;  %vm523_vm1 = vcmp.eq.f32.partialorder %v522_v11, 8.507059e+37 }
 0x2ee   :  { %v17526_v47 = vpop.eup %16736  ;;  %v679_v48 = vpop.xlane.xlu1 %678 }
 0x2ef   :  { %v16739_v49 = vpop.eup %16738  ;;  %v681_v50 = vperm.slane %v679_v48, 0  ;;  %v682_v51 = vperm.slane %v679_v48, 1  ;;  %v499_v53 = vmul.f32 %v17526_v47, %v17523_v45  ;;  %vm504_vm7 = vweird.f32 %v17526_v47  ;;  %v535_v45 = vpop.permute.xlu0 %534 }
 0x2f0   :  { %v514_v52 = vmul.f32 %v16739_v49, %v495_v46  ;;  %vm519_vm4 = vweird.f32 %v16739_v49  ;;  %vm505_vm15 = vmor %vm503_vm2, %vm504_vm7  ;;  %vm1052_vm2 = vcmask 1040384  }
 0x2f1   :  { %16740 = vrcp.f32 %v681_v50  ;;  %v500_v56 = vsub.f32 1.0, %v499_v53  ;;  %v696_v4 = vand.u32 2147483648, %v681_v50  ;;  %v711_v6 = vand.u32 2147483648, %v682_v51  ;;  %vm17537_vm9 = vmor %vm518_vm3, %vm519_vm4 }
 0x2f2   :  { %16742 = vrcp.f32 %v682_v51  ;;  %v515_v54 = vsub.f32 1.0, %v514_v52  ;;  %v694_v8 = vand.u32 2147483647, %v681_v50  ;;  %v709_v10 = vand.u32 2147483647, %v682_v51 }
 0x2f3   :  { %v501_v1 = vmul.f32 %v17526_v47, %v500_v56  ;;  %vm690_vm8 = vweird.f32 %v681_v50  ;;  %vm705_vm10 = vweird.f32 %v682_v51  ;;  %v697_v25 = vor.u32 1.1754944e-38, %v696_v4  ;;  %v15499_v56 = vld [vmem:[#allocation24 + $0xcc] sm:$0xf0] }
 0x2f4   :  { %v516_v58 = vmul.f32 %v16739_v49, %v515_v54  ;;  %v712_v27 = vor.u32 1.1754944e-38, %v711_v6  ;;  %vm695_vm13 = vcmp.eq.f32.partialorder %v694_v8, 8.507059e+37  ;;  %vm710_vm14 = vcmp.eq.f32.partialorder %v709_v10, 8.507059e+37  ;;  %v10717_v54 = vld [vmem:[#allocation24 + $0xf8] sm:$0xf0] }
 0x2f5   :  { %v502_v12 = vadd.f32 %v17526_v47, %v501_v1  ;;  %vm508_vm3 = vcmp.eq.f32.partialorder %v507_v62, 8.507059e+37  ;;  %v10701_v1 = vld [vmem:[#allocation24 + $0xd8] sm:$0xf0]  ;;  %v15495_v4 = vld [vmem:[#allocation24 + $0xac] sm:$0xf0]  ;;  %vm1060_vm4 = vcmask 1041408  }
 0x2f6   :  { %v517_v5 = vadd.f32 %v16739_v49, %v516_v58  ;;  %v10683_v8 = vld [vmem:[#allocation24 + $0xa8] sm:$0xf] }
 0x2f7   :  { %v16741_v57 = vpop.eup %16740  ;;  %v506_v33 = vsel %vm505_vm15, %v17526_v47, %v502_v12  ;;  %v15503_v47 = vld [vmem:[#allocation24 + $0xec] sm:$0xf0]  ;;  %v15494_v12 = vld [vmem:[#allocation24 + $0xac] sm:$0xf] }
 0x2f8   :  { %v16743_v59 = vpop.eup %16742  ;;  %v686_v60 = vmul.f32 %v16741_v57, %v681_v50  ;;  %vm691_vm5 = vweird.f32 %v16741_v57  ;;  %v521_v26 = vsel %vm17537_vm9, %v16739_v49, %v517_v5  ;;  %v511_v40 = vsel %vm508_vm3, %v510_v37, %v506_v33  ;;  %v10709_v49 = vld [vmem:[#allocation24 + $0xf0] sm:$0xf0]  ;;  %v10715_v50 = vld [vmem:[#allocation24 + $0xe8] sm:$0xf]  ;;  %v15493_v5 = vld [vmem:[#allocation24 + $0xa4] sm:$0xf] }
 0x2f9   :  { %v701_v61 = vmul.f32 %v16743_v59, %v682_v51  ;;  %vm706_vm6 = vweird.f32 %v16743_v59  ;;  %vm692_vm11 = vmor %vm690_vm8, %vm691_vm5  ;;  %v526_v35 = vsel %vm523_vm1, %v525_v29, %v521_v26  ;;  %v512_v44 = vmul.f32 %v17509_v23, %v511_v40  ;;  %v15504_v51 = vld [vmem:[#allocation24 + $0xf4] sm:$0xf0]  ;;  %v10691_v23 = vld [vmem:[#allocation24 + $0xc0] sm:$0xf] }
 0x2fa   :  { %v687_v0 = vsub.f32 1.0, %v686_v60  ;;  %vm707_vm12 = vmor %vm705_vm10, %vm706_vm6  ;;  %v527_v41 = vmul.f32 %v17512_v24, %v526_v35  ;;  %v10716_v53 = vor.u32 %v15504_v51, %v10715_v50  ;;  %v15502_v24 = vld [vmem:[#allocation24 + $0xec] sm:$0xf]  ;;  %v10692_v58 = vor.u32 %v15499_v56, %v10691_v23  ;;  %v10699_v60 = vld [vmem:[#allocation24 + $0xc8] sm:$0xf] }
 0x2fb   :  { %v702_v3 = vsub.f32 1.0, %v701_v61  ;;  %v545_v46 = vmul.f32 %v535_v45, %v512_v44  ;;  %v15500_v61 = vld [vmem:[#allocation24 + $0xd4] sm:$0xf0]  ;;  %v10669_v33 = vld [vmem:[#allocation24 + $0x98] sm:$0xf0] }
 0x2fc   :  { %v688_v7 = vmul.f32 %v16741_v57, %v687_v0  ;;  %1019 = vmatpush.bf16.msrb.mxu0 %v10716_v53  ;;  %v10700_v63 = vor.u32 %v15500_v61, %v10699_v60  ;;  %v15498_v0 = vld [vmem:[#allocation24 + $0xcc] sm:$0xf]  ;;  %v15492_v29 = vld [vmem:[#allocation24 + $0x94] sm:$0xf0]  ;;  %v10643_v35 = vld [vmem:[#allocation24 + $0x60] sm:$0xf] }
 0x2fd   :  { %v703_v9 = vmul.f32 %v16743_v59, %v702_v3  ;;  %v10704_v2 = vor.u32 %v15498_v0, %v10701_v1  ;;  %v10675_v3 = vld [vmem:[#allocation24 + $0xa0] sm:$0xf]  ;;  %v15485_v37 = vld [vmem:[#allocation24 + $0x64] sm:$0xf]  ;;  %v10651_v40 = vld [vmem:[#allocation24 + $0x68] sm:$0xf] }
 0x2fe   :  { %v689_v13 = vadd.f32 %v16741_v57, %v688_v7  ;;  %v10676_v6 = vor.u32 %v15495_v4, %v10675_v3  ;;  %v10677_v7 = vld [vmem:[#allocation24 + $0xb0] sm:$0xf0]  ;;  %v15486_v44 = vld [vmem:[#allocation24 + $0x6c] sm:$0xf]  ;;  %v10653_v45 = vld [vmem:[#allocation24 + $0x78] sm:$0xf0] }
 0x2ff   :  { %v704_v22 = vadd.f32 %v16743_v59, %v703_v9  ;;  %v15496_v9 = vld [vmem:[#allocation24 + $0xb4] sm:$0xf0]  ;;  %v10680_v10 = vor.u32 %v15493_v5, %v10677_v7  ;;  %v10635_v51 = vld [vmem:[#allocation24 + $0x48] sm:$0xf]  ;;  %v15482_v53 = vld [vmem:[#allocation24 + $0x4c] sm:$0xf] }
 0x300   :  { %v693_v28 = vsel %vm692_vm11, %v16741_v57, %v689_v13  ;;  %v15497_v57 = vld [vmem:[#allocation24 + $0xc4] sm:$0xf]  ;;  %1020 = vmatpush.bf16.msrb.mxu0 %v10700_v63  ;;  %v10684_v11 = vor.u32 %v15496_v9, %v10683_v8  ;;  %v10685_v13 = vld [vmem:[#allocation24 + $0xb8] sm:$0xf0]  ;;  %v10611_v23 = vld [vmem:[#allocation24 + $0x20] sm:$0xf] }
 0x301   :  { %v708_v30 = vsel %vm707_vm12, %v16743_v59, %v704_v22  ;;  %v698_v31 = vsel %vm695_vm13, %v697_v25, %v693_v28  ;;  %v10693_v59 = vld [vmem:[#allocation24 + $0xd0] sm:$0xf0]  ;;  %v10688_v17 = vor.u32 %v15494_v12, %v10685_v13  ;;  %v15491_v22 = vld [vmem:[#allocation24 + $0x8c] sm:$0xf0]  ;;  %v15489_v25 = vld [vmem:[#allocation24 + $0x84] sm:$0xf] }
 0x302   :  { %v713_v32 = vsel %vm710_vm14, %v712_v27, %v708_v30  ;;  %v699_v34 = vmul.f32 %v17503_v14, %v698_v31  ;;  %v10707_v14 = vld [vmem:[#allocation24 + $0xe0] sm:$0xf]  ;;  %v10696_v62 = vor.u32 %v15497_v57, %v10693_v59  ;;  %v10661_v27 = vld [vmem:[#allocation24 + $0x90] sm:$0xf0]  ;;  %v10667_v28 = vld [vmem:[#allocation24 + $0x88] sm:$0xf] }
 0x303   :  { %v714_v36 = vmul.f32 %v17505_v20, %v713_v32  ;;  %v15501_v20 = vld [vmem:[#allocation24 + $0xe4] sm:$0xf]  ;;  %v10708_v48 = vor.u32 %v15503_v47, %v10707_v14  ;;  %v10664_v30 = vor.u32 %v15489_v25, %v10661_v27  ;;  %v10668_v31 = vor.u32 %v15492_v29, %v10667_v28  ;;  %v15490_v32 = vld [vmem:[#allocation24 + $0x8c] sm:$0xf]  ;;  %v15483_v47 = vld [vmem:[#allocation24 + $0x4c] sm:$0xf0] }
 0x304   :  { %v732_v38 = vmul.f32 %v722_v55, %v699_v34  ;;  %v10712_v52 = vor.u32 %v15501_v20, %v10709_v49  ;;  %v10720_v55 = vor.u32 %v15502_v24, %v10717_v54  ;;  %1021 = vmatpush.bf16.msrb.mxu0 %v10684_v11  ;;  %v10672_v34 = vor.u32 %v15490_v32, %v10669_v33  ;;  %v15481_v20 = vld [vmem:[#allocation24 + $0x44] sm:$0xf]  ;;  %v10637_v54 = vld [vmem:[#allocation24 + $0x58] sm:$0xf0]  ;;  %v15479_v56 = vld [vmem:[#allocation24 + $0x2c] sm:$0xf0] }
 0x305   :  { %v733_v39 = vmul.f32 %v729_v21, %v714_v36  ;;  %993 = vmatpush.bf16.msra.mxu2 %v10708_v48  ;;  %v10659_v21 = vld [vmem:[#allocation24 + $0x80] sm:$0xf]  ;;  %v15487_v36 = vld [vmem:[#allocation24 + $0x6c] sm:$0xf0]  ;;  %v10656_v14 = vor.u32 %v15486_v44, %v10653_v45  ;;  %v10629_v48 = vld [vmem:[#allocation24 + $0x50] sm:$0xf0] }
 0x306   :  { %760 = vperm.xlu0 %16723, %v732_v38   ;;  %v542_v42 = vpop.permute.xlu1 %541  ;;  %1006 = vmatpush.bf16.msra.mxu3 %v10712_v52  ;;  %v10660_v26 = vor.u32 %v15491_v22, %v10659_v21  ;;  %v10644_v38 = vor.u32 %v15487_v36, %v10643_v35  ;;  %v10632_v50 = vor.u32 %v15481_v20, %v10629_v48  ;;  %v15484_v52 = vld [vmem:[#allocation24 + $0x54] sm:$0xf0]  ;;  %v15477_v57 = vld [vmem:[#allocation24 + $0x24] sm:$0xf]  ;;  %v10613_v59 = vld [vmem:[#allocation24 + $0x30] sm:$0xf0] }
 0x307   :  { %765 = vperm.xlu2 %16720, %v733_v39   ;;  %v546_v43 = vmul.f32 %v542_v42, %v527_v41  ;;  %1032 = vmatpush.bf16.msrb.mxu1 %v10720_v55  ;;  %v10645_v39 = vld [vmem:[#allocation24 + $0x70] sm:$0xf0]  ;;  %v15488_v41 = vld [vmem:[#allocation24 + $0x74] sm:$0xf0]  ;;  %v10636_v24 = vor.u32 %v15484_v52, %v10635_v51  ;;  %v10640_v55 = vor.u32 %v15482_v53, %v10637_v54  ;;  %v10619_v60 = vld [vmem:[#allocation24 + $0x28] sm:$0xf] }
 0x308   :  { %1022 = vmatpush.bf16.msrb.mxu0 %v10668_v31  ;;  %v10648_v42 = vor.u32 %v15485_v37, %v10645_v39  ;;  %v15480_v61 = vld [vmem:[#allocation24 + $0x34] sm:$0xf0]  ;;  %v15478_v0 = vld [vmem:[#allocation24 + $0x2c] sm:$0xf]  ;;  %v10621_v1 = vld [vmem:[#allocation24 + $0x38] sm:$0xf0] }
 0x309   :  { %741 = vperm.xlu1 %16724, %v546_v43   ;;  %994 = vmatpush.bf16.msra.mxu2 %v10692_v58  ;;  %v10652_v43 = vor.u32 %v15488_v41, %v10651_v40  ;;  %v10612_v58 = vor.u32 %v15479_v56, %v10611_v23  ;;  %v10620_v63 = vor.u32 %v15480_v61, %v10619_v60  ;;  %v10595_v3 = vld [vmem:[#allocation24] sm:$0xf]  ;;  %v15475_v4 = vld [vmem:[#allocation24 + $0xc] sm:$0xf0]  ;;  %v15473_v5 = vld [vmem:[#allocation24 + $0x4] sm:$0xf] }
 0x30a   :  { %1007 = vmatpush.bf16.msra.mxu3 %v10696_v62  ;;  %v10616_v62 = vor.u32 %v15477_v57, %v10613_v59  ;;  %v10597_v7 = vld [vmem:[#allocation24 + $0x10] sm:$0xf0]  ;;  %v10603_v8 = vld [vmem:[#allocation24 + $0x8] sm:$0xf]  ;;  %v15476_v9 = vld [vmem:[#allocation24 + $0x14] sm:$0xf0] }
 0x30b   :  { %1033 = vmatpush.bf16.msrb.mxu1 %v10704_v2  ;;  %v10624_v2 = vor.u32 %v15478_v0, %v10621_v1  ;;  %v10604_v11 = vor.u32 %v15476_v9, %v10603_v8  ;;  %v15474_v12 = vld [vmem:[#allocation24 + $0xc] sm:$0xf]  ;;  %v10605_v13 = vld [vmem:[#allocation24 + $0x18] sm:$0xf0]  ;;  %v15535_v22 = vld [vmem:[#allocation27 + $0xec] sm:$0xf0] }
 0x30c   :  { %1023 = vmatpush.bf16.msrb.mxu0 %v10652_v43  ;;  %v10608_v21 = vor.u32 %v15474_v12, %v10605_v13  ;;  %v15533_v25 = vld [vmem:[#allocation27 + $0xe4] sm:$0xf]  ;;  %v10843_v29 = vld [vmem:[#allocation27 + $0xe8] sm:$0xf]  ;;  %v15534_v31 = vld [vmem:[#allocation27 + $0xec] sm:$0xf] }
 0x30d   :  { %995 = vmatpush.bf16.msra.mxu2 %v10676_v6  ;;  %v10596_v6 = vor.u32 %v15475_v4, %v10595_v3  ;;  %v10845_v33 = vld [vmem:[#allocation27 + $0xf8] sm:$0xf0]  ;;  %v15531_v35 = vld [vmem:[#allocation27 + $0xcc] sm:$0xf0]  ;;  %v10821_v39 = vld [vmem:[#allocation27 + $0xd0] sm:$0xf0] }
 0x30e   :  { %736 = vperm.xlu0 %16723, %v545_v46   ;;  %1008 = vmatpush.bf16.msra.mxu3 %v10680_v10  ;;  %v10627_v46 = vld [vmem:[#allocation24 + $0x40] sm:$0xf]  ;;  %v10600_v10 = vor.u32 %v15473_v5, %v10597_v7  ;;  %v10848_v36 = vor.u32 %v15534_v31, %v10845_v33  ;;  %v10827_v40 = vld [vmem:[#allocation27 + $0xc8] sm:$0xf]  ;;  %v15530_v43 = vld [vmem:[#allocation27 + $0xcc] sm:$0xf] }
 0x30f   :  { %1034 = vmatpush.bf16.msrb.mxu1 %v10688_v17  ;;  %v10628_v49 = vor.u32 %v15483_v47, %v10627_v46  ;;  %v10835_v17 = vld [vmem:[#allocation27 + $0xe0] sm:$0xf]  ;;  %v10829_v45 = vld [vmem:[#allocation27 + $0xd8] sm:$0xf0]  ;;  %v15527_v20 = vld [vmem:[#allocation27 + $0xac] sm:$0xf0] }
 0x310   :  { %1024 = vmatpush.bf16.msrb.mxu0 %v10636_v24  ;;  %v10836_v27 = vor.u32 %v15535_v22, %v10835_v17  ;;  %v10803_v47 = vld [vmem:[#allocation27 + $0xa0] sm:$0xf]  ;;  %v15525_v48 = vld [vmem:[#allocation27 + $0xa4] sm:$0xf]  ;;  %v10811_v51 = vld [vmem:[#allocation27 + $0xa8] sm:$0xf] }
 0x311   :  { %996 = vmatpush.bf16.msra.mxu2 %v10660_v26  ;;  %v10837_v26 = vld [vmem:[#allocation27 + $0xf0] sm:$0xf0]  ;;  %v15528_v52 = vld [vmem:[#allocation27 + $0xb4] sm:$0xf0]  ;;  %v15526_v54 = vld [vmem:[#allocation27 + $0xac] sm:$0xf] }
 0x312   :  { %1009 = vmatpush.bf16.msra.mxu3 %v10664_v30  ;;  %v10840_v28 = vor.u32 %v15533_v25, %v10837_v26  ;;  %v15536_v30 = vld [vmem:[#allocation27 + $0xf4] sm:$0xf0]  ;;  %v10812_v24 = vor.u32 %v15528_v52, %v10811_v51  ;;  %v10787_v57 = vld [vmem:[#allocation27 + $0x80] sm:$0xf]  ;;  %v15521_v59 = vld [vmem:[#allocation27 + $0x84] sm:$0xf] }
 0x313   :  { %1035 = vmatpush.bf16.msrb.mxu1 %v10672_v34  ;;  %v10844_v32 = vor.u32 %v15536_v30, %v10843_v29  ;;  %v10819_v34 = vld [vmem:[#allocation27 + $0xc0] sm:$0xf]  ;;  %v10789_v61 = vld [vmem:[#allocation27 + $0x90] sm:$0xf0]  ;;  %v10797_v3 = vld [vmem:[#allocation27 + $0x98] sm:$0xf0] }
 0x314   :  { %1025 = vmatpush.bf16.msrb.mxu0 %v10620_v63  ;;  %v10820_v37 = vor.u32 %v15531_v35, %v10819_v34  ;;  %v15524_v63 = vld [vmem:[#allocation27 + $0x94] sm:$0xf0]  ;;  %v10792_v0 = vor.u32 %v15521_v59, %v10789_v61  ;;  %v15517_v7 = vld [vmem:[#allocation27 + $0x64] sm:$0xf]  ;;  %v10773_v9 = vld [vmem:[#allocation27 + $0x70] sm:$0xf0] }
 0x315   :  { %997 = vmatpush.bf16.msra.mxu2 %v10644_v38  ;;  %v15529_v38 = vld [vmem:[#allocation27 + $0xc4] sm:$0xf]  ;;  %v10776_v12 = vor.u32 %v15517_v7, %v10773_v9  ;;  %v15518_v17 = vld [vmem:[#allocation27 + $0x6c] sm:$0xf]  ;;  %v10755_v26 = vld [vmem:[#allocation27 + $0x40] sm:$0xf] }
 0x316   :  { %1010 = vmatpush.bf16.msra.mxu3 %v10648_v42  ;;  %v10824_v41 = vor.u32 %v15529_v38, %v10821_v39  ;;  %v15532_v42 = vld [vmem:[#allocation27 + $0xd4] sm:$0xf0]  ;;  %v10757_v29 = vld [vmem:[#allocation27 + $0x50] sm:$0xf0]  ;;  %v10763_v30 = vld [vmem:[#allocation27 + $0x48] sm:$0xf] }
 0x317   :  { %1036 = vmatpush.bf16.msrb.mxu1 %v10656_v14  ;;  %v10828_v44 = vor.u32 %v15532_v42, %v10827_v40  ;;  %v10832_v14 = vor.u32 %v15530_v43, %v10829_v45  ;;  %v15516_v31 = vld [vmem:[#allocation27 + $0x54] sm:$0xf0]  ;;  %v15514_v34 = vld [vmem:[#allocation27 + $0x4c] sm:$0xf]  ;;  %v10765_v35 = vld [vmem:[#allocation27 + $0x58] sm:$0xf0] }
 0x318   :  { %1026 = vmatpush.bf16.msrb.mxu0 %v10604_v11  ;;  %v15520_v11 = vld [vmem:[#allocation27 + $0x74] sm:$0xf0]  ;;  %v15511_v38 = vld [vmem:[#allocation27 + $0x2c] sm:$0xf0]  ;;  %v15509_v39 = vld [vmem:[#allocation27 + $0x24] sm:$0xf]  ;;  %v10768_v42 = vor.u32 %v15514_v34, %v10765_v35 }
 0x319   :  { %998 = vmatpush.bf16.msra.mxu2 %v10628_v49  ;;  %v10804_v49 = vor.u32 %v15527_v20, %v10803_v47  ;;  %v10741_v40 = vld [vmem:[#allocation27 + $0x30] sm:$0xf0]  ;;  %v10747_v43 = vld [vmem:[#allocation27 + $0x28] sm:$0xf]  ;;  %v15510_v45 = vld [vmem:[#allocation27 + $0x2c] sm:$0xf] }
 0x31a   :  { %1011 = vmatpush.bf16.msra.mxu3 %v10632_v50  ;;  %v10805_v50 = vld [vmem:[#allocation27 + $0xb0] sm:$0xf0]  ;;  %v10744_v47 = vor.u32 %v15509_v39, %v10741_v40  ;;  %v10723_v20 = vld [vmem:[#allocation27] sm:$0xf]  ;;  %v15505_v51 = vld [vmem:[#allocation27 + $0x4] sm:$0xf] }
 0x31b   :  { %1037 = vmatpush.bf16.msrb.mxu1 %v10640_v55  ;;  %v10808_v53 = vor.u32 %v15525_v48, %v10805_v50  ;;  %v10813_v55 = vld [vmem:[#allocation27 + $0xb8] sm:$0xf0]  ;;  %v15507_v50 = vld [vmem:[#allocation27 + $0xc] sm:$0xf0]  ;;  %v10725_v52 = vld [vmem:[#allocation27 + $0x10] sm:$0xf0] }
 0x31c   :  { %1301 = vmatpush.bf16.msra.mxu0 %v10844_v32  ;;  %v10816_v56 = vor.u32 %v15526_v54, %v10813_v55  ;;  %v10731_v55 = vld [vmem:[#allocation27 + $0x8] sm:$0xf]  ;;  %v10728_v61 = vor.u32 %v15505_v51, %v10725_v52  ;;  %v11235_v40 = vld [vmem:[#allocation31 + $0x300] sm:$0xf] }
 0x31d   :  { %999 = vmatpush.bf16.msra.mxu2 %v10612_v58  ;;  %v15523_v58 = vld [vmem:[#allocation27 + $0x8c] sm:$0xf0]  ;;  %v11171_v52 = vld [vmem:[#allocation31 + $0x280] sm:$0xf] }
 0x31e   :  { %1012 = vmatpush.bf16.msra.mxu3 %v10616_v62  ;;  %v10788_v60 = vor.u32 %v15523_v58, %v10787_v57  ;;  %v10795_v62 = vld [vmem:[#allocation27 + $0x88] sm:$0xf]  ;;  %v10733_v57 = vld [vmem:[#allocation27 + $0x18] sm:$0xf0] }
 0x31f   :  { %1038 = vmatpush.bf16.msrb.mxu1 %v10624_v2  ;;  %v10796_v1 = vor.u32 %v15524_v63, %v10795_v62  ;;  %v15522_v2 = vld [vmem:[#allocation27 + $0x8c] sm:$0xf] }
 0x320   :  { %1302 = vmatpush.bf16.msra.mxu0 %v10828_v44  ;;  %v10800_v5 = vor.u32 %v15522_v2, %v10797_v3  ;;  %v15512_v44 = vld [vmem:[#allocation27 + $0x34] sm:$0xf0] }
 0x321   :  { %1000 = vmatpush.bf16.msra.mxu2 %v10596_v6  ;;  %v15519_v6 = vld [vmem:[#allocation27 + $0x6c] sm:$0xf0] }
 0x322   :  { %1013 = vmatpush.bf16.msra.mxu3 %v10600_v10  ;;  %v10779_v10 = vld [vmem:[#allocation27 + $0x68] sm:$0xf] }
 0x323   :  { %1039 = vmatpush.bf16.msrb.mxu1 %v10608_v21  ;;  %v10780_v13 = vor.u32 %v15520_v11, %v10779_v10  ;;  %v10781_v21 = vld [vmem:[#allocation27 + $0x78] sm:$0xf0] }
 0x324   :  { %1303 = vmatpush.bf16.msra.mxu0 %v10812_v24  ;;  %v10784_v25 = vor.u32 %v15518_v17, %v10781_v21 }
 0x325   :  { %1275 = vmatpush.bf16.msrb.mxu2 %v10836_v27  ;;  %v15515_v27 = vld [vmem:[#allocation27 + $0x4c] sm:$0xf0] }
 0x326   :  { %1288 = vmatpush.bf16.msrb.mxu3 %v10840_v28  ;;  %v15513_v28 = vld [vmem:[#allocation27 + $0x44] sm:$0xf]  ;;  %v10756_v32 = vor.u32 %v15515_v27, %v10755_v26 }
 0x327   :  { %1314 = vmatpush.bf16.msra.mxu1 %v10848_v36  ;;  %v10760_v33 = vor.u32 %v15513_v28, %v10757_v29  ;;  %v10739_v36 = vld [vmem:[#allocation27 + $0x20] sm:$0xf]  ;;  %v11811_v29 = vld [vmem:[#allocation31 + $0x780] sm:$0xf] }
 0x328   :  { %1304 = vmatpush.bf16.msra.mxu0 %v10796_v1 }
 0x329   :  { %1276 = vmatpush.bf16.msrb.mxu2 %v10820_v37  ;;  %v10764_v37 = vor.u32 %v15516_v31, %v10763_v30  ;;  %v16297_v30 = vld [vmem:[#allocation31 + $0x7bc] sm:$0xf0] }
 0x32a   :  { %1289 = vmatpush.bf16.msrb.mxu3 %v10824_v41  ;;  %v12323_v31 = vld [vmem:[#allocation31 + $0xb80] sm:$0xf]  ;;  %v11812_v39 = vor.u32 %v16297_v30, %v11811_v29 }
 0x32b   :  { %1315 = vmatpush.bf16.msra.mxu1 %v10832_v14  ;;  %v10740_v14 = vor.u32 %v15511_v38, %v10739_v36  ;;  %v16361_v29 = vld [vmem:[#allocation31 + $0x9bc] sm:$0xf0] }
 0x32c   :  { %1305 = vmatpush.bf16.msra.mxu0 %v10780_v13 }
 0x32d   :  { %1277 = vmatpush.bf16.msrb.mxu2 %v10804_v49  ;;  %v10748_v49 = vor.u32 %v15512_v44, %v10747_v43 }
 0x32e   :  { %1290 = vmatpush.bf16.msrb.mxu3 %v10808_v53 }
 0x32f   :  { %1316 = vmatpush.bf16.msra.mxu1 %v10816_v56  ;;  %v15506_v56 = vld [vmem:[#allocation27 + $0xc] sm:$0xf] }
 0x330   :  { %1306 = vmatpush.bf16.msra.mxu0 %v10764_v37 }
 0x331   :  { %1278 = vmatpush.bf16.msrb.mxu2 %v10788_v60  ;;  %v10724_v60 = vor.u32 %v15507_v50, %v10723_v20  ;;  %v12771_v20 = vld [vmem:[#allocation31 + $0xf00] sm:$0xf] }
 0x332   :  { %1291 = vmatpush.bf16.msrb.mxu3 %v10792_v0 }
 0x333   :  { %1317 = vmatpush.bf16.msra.mxu1 %v10800_v5 }
 0x334   :  { %1307 = vmatpush.bf16.msra.mxu0 %v10748_v49 }
 0x336   :  { %1292 = vmatpush.bf16.msrb.mxu3 %v10776_v12 }
 0x337   :  { %1318 = vmatpush.bf16.msra.mxu1 %v10784_v25  ;;  %v16169_v25 = vld [vmem:[#allocation31 + $0x3bc] sm:$0xf0] }
 0x33a   :  { %1293 = vmatpush.bf16.msrb.mxu3 %v10760_v33  ;;  %v16553_v33 = vld [vmem:[#allocation31 + $0xfbc] sm:$0xf0] }
 0x33b   :  { %1319 = vmatpush.bf16.msra.mxu1 %v10768_v42 }
 0x33e   :  { %1294 = vmatpush.bf16.msrb.mxu3 %v10744_v47  ;;  %v16409_v47 = vld [vmem:[#allocation31 + $0xb3c] sm:$0xf0] }
 0x342   :  { %1295 = vmatpush.bf16.msrb.mxu3 %v10728_v61 }
 0x361   :  { %v766_v46 = vpop.permute.xlu2 %765 }
 0x362   :  { %v769_v23 = vmul.f32 %v766_v46, %v17477_v16  ;;  %v10771_v16 = vld [vmem:[#allocation27 + $0x60] sm:$0xf]  ;;  %v10749_v46 = vld [vmem:[#allocation27 + $0x38] sm:$0xf0] }
 0x363   :  { %v10772_v8 = vor.u32 %v15519_v6, %v10771_v16  ;;  %v10752_v54 = vor.u32 %v15510_v45, %v10749_v46  ;;  %v11747_v45 = vld [vmem:[#allocation31 + $0x700] sm:$0xf] }
 0x364   :  { %v776_v4 = vrot.slane %v769_v23, 4  ;;  %v16281_v46 = vld [vmem:[#allocation31 + $0x73c] sm:$0xf0] }
 0x365   :  { %1279 = vmatpush.bf16.msrb.mxu2 %v10772_v8  ;;  %1320 = vmatpush.bf16.msra.mxu1 %v10752_v54  ;;  %v11748_v51 = vor.u32 %v16281_v46, %v11747_v45  ;;  %v10915_v46 = vld [vmem:[#allocation31 + $0x80] sm:$0xf] }
 0x366   :  { %v777_v22 = vadd.f32 %v776_v4, %v769_v23  ;;  %v15508_v23 = vld [vmem:[#allocation27 + $0x14] sm:$0xf0] }
 0x367   :  { %v10732_v63 = vor.u32 %v15508_v23, %v10731_v55  ;;  %v11683_v23 = vld [vmem:[#allocation31 + $0x680] sm:$0xf] }
 0x368   :  { %v778_v41 = vrot.slane %v777_v22, 2 }
 0x369   :  { %1280 = vmatpush.bf16.msrb.mxu2 %v10756_v32  ;;  %1308 = vmatpush.bf16.msra.mxu0 %v10732_v63  ;;  %v16425_v32 = vld [vmem:[#allocation31 + $0xbbc] sm:$0xf0] }
 0x36a   :  { %v779_v53 = vadd.f32 %v778_v41, %v777_v22  ;;  %v11299_v22 = vld [vmem:[#allocation31 + $0x380] sm:$0xf]  ;;  %v12324_v43 = vor.u32 %v16425_v32, %v12323_v31 }
 0x36b   :  { %v11300_v38 = vor.u32 %v16169_v25, %v11299_v22  ;;  %v16153_v41 = vld [vmem:[#allocation31 + $0x33c] sm:$0xf0] }
 0x36c   :  { %v780_v0 = vrot.slane %v779_v53, 1  ;;  %v11236_v50 = vor.u32 %v16153_v41, %v11235_v40  ;;  %v16105_v22 = vld [vmem:[#allocation31 + $0x1bc] sm:$0xf0] }
 0x36d   :  { %1281 = vmatpush.bf16.msrb.mxu2 %v10740_v14  ;;  %v12259_v14 = vld [vmem:[#allocation31 + $0xb00] sm:$0xf] }
 0x36e   :  { %v781_v16 = vadd.f32 %v780_v0, %v779_v53  ;;  %v16137_v53 = vld [vmem:[#allocation31 + $0x2bc] sm:$0xf0]  ;;  %v12260_v54 = vor.u32 %v16409_v47, %v12259_v14 }
 0x36f   :  { %v11555_v25 = vld [vmem:[#allocation31 + $0x580] sm:$0xf] }
 0x370   :  { %v783_v10 = vpack.c.bf16 %v781_v16, %v781_v16  ;;  %v16121_v16 = vld [vmem:[#allocation31 + $0x23c] sm:$0xf0] }
 0x371   :  { %1282 = vmatpush.bf16.msrb.mxu2 %v10724_v60  ;;  %v16521_v60 = vld [vmem:[#allocation31 + $0xebc] sm:$0xf0] }
 0x372   :  { %v829_v26 = vunpack.c.l.b16 %v783_v10  ;;  %v16377_v10 = vld [vmem:[#allocation31 + $0xa3c] sm:$0xf0] }
 0x373   :  { %v12579_v32 = vld [vmem:[#allocation31 + $0xd80] sm:$0xf] }
 0x374   :  { %v16345_v40 = vld [vmem:[#allocation31 + $0x93c] sm:$0xf0] }
 0x375   :  { %v16073_v14 = vld [vmem:[#allocation31 + $0xbc] sm:$0xf0] }
 0x376   :  { %v11427_v47 = vld [vmem:[#allocation31 + $0x480] sm:$0xf] }
 0x378   :  { %v761_v48 = vpop.permute.xlu0 %760 }
 0x379   :  { %v768_v24 = vmul.f32 %v761_v48, %v17475_v15  ;;  %v10736_v15 = vor.u32 %v15506_v56, %v10733_v57  ;;  %v16537_v48 = vld [vmem:[#allocation31 + $0xf3c] sm:$0xf0] }
 0x37a   :  { %v12772_v55 = vor.u32 %v16537_v48, %v12771_v20  ;;  %v16265_v56 = vld [vmem:[#allocation31 + $0x6bc] sm:$0xf0]  ;;  %v10916_v20 = vor.u32 %v16073_v14, %v10915_v46  ;;  %v11109_v46 = vld [vmem:[#allocation31 + $0x240] sm:$0xf0] }
 0x37b   :  { %v770_v58 = vrot.slane %v768_v24, 4  ;;  %v742_v59 = vpop.permute.xlu1 %741  ;;  %1321 = vmatpush.bf16.msra.mxu1 %v10736_v15  ;;  %v12195_v57 = vld [vmem:[#allocation31 + $0xa80] sm:$0xf]  ;;  %v11684_v63 = vor.u32 %v16265_v56, %v11683_v23  ;;  %v16241_v14 = vld [vmem:[#allocation31 + $0x604] sm:$0xf] }
 0x37c   :  { %v745_v62 = vmul.f32 %v742_v59, %v17481_v19  ;;  %v12707_v59 = vld [vmem:[#allocation31 + $0xe80] sm:$0xf] }
 0x37d   :  { %v771_v1 = vadd.f32 %v770_v58, %v768_v24  ;;  %v16393_v58 = vld [vmem:[#allocation31 + $0xabc] sm:$0xf0]  ;;  %v12708_v15 = vor.u32 %v16521_v60, %v12707_v59 }
 0x37e   :  { %v752_v2 = vrot.slane %v745_v62, 4  ;;  %v16201_v48 = vld [vmem:[#allocation31 + $0x4bc] sm:$0xf0] }
 0x37f   :  { %v772_v3 = vrot.slane %v771_v1, 2  ;;  %v16057_v23 = vld [vmem:[#allocation31 + $0x3c] sm:$0xf0] }
 0x380   :  { %v753_v4 = vadd.f32 %v752_v2, %v745_v62  ;;  %v737_v5 = vpop.permute.xlu0 %736  ;;  %v11172_v62 = vor.u32 %v16137_v53, %v11171_v52  ;;  %v12451_v52 = vld [vmem:[#allocation31 + $0xc80] sm:$0xf] }
 0x381   :  { %v773_v6 = vadd.f32 %v772_v3, %v771_v1  ;;  %v744_v7 = vmul.f32 %v737_v5, %v17479_v18  ;;  %v12835_v18 = vld [vmem:[#allocation31 + $0xf80] sm:$0xf]  ;;  %v12196_v1 = vor.u32 %v16393_v58, %v12195_v57 }
 0x382   :  { %v754_v19 = vrot.slane %v753_v4, 2  ;;  %v12836_v44 = vor.u32 %v16553_v33, %v12835_v18  ;;  %v11107_v5 = vld [vmem:[#allocation31 + $0x200] sm:$0xf] }
 0x383   :  { %v774_v8 = vrot.slane %v773_v6, 1  ;;  %v746_v9 = vrot.slane %v744_v7, 4  ;;  %v16489_v18 = vld [vmem:[#allocation31 + $0xdbc] sm:$0xf0] }
 0x384   :  { %v755_v17 = vadd.f32 %v754_v19, %v753_v4  ;;  %v12131_v19 = vld [vmem:[#allocation31 + $0xa00] sm:$0xf]  ;;  %v12580_v33 = vor.u32 %v16489_v18, %v12579_v32  ;;  %v16129_v32 = vld [vmem:[#allocation31 + $0x284] sm:$0xf] }
 0x385   :  { %v775_v11 = vadd.f32 %v774_v8, %v773_v6  ;;  %v747_v12 = vadd.f32 %v746_v9, %v744_v7  ;;  %v11619_v6 = vld [vmem:[#allocation31 + $0x600] sm:$0xf]  ;;  %v11108_v7 = vor.u32 %v16121_v16, %v11107_v5  ;;  %v11813_v5 = vld [vmem:[#allocation31 + $0x7c0] sm:$0xf0] }
 0x386   :  { %v756_v34 = vrot.slane %v755_v17, 1  ;;  %v16249_v8 = vld [vmem:[#allocation31 + $0x63c] sm:$0xf0]  ;;  %v16417_v16 = vld [vmem:[#allocation31 + $0xb84] sm:$0xf] }
 0x387   :  { %v782_v13 = vpack.c.bf16 %v775_v11, %v775_v11  ;;  %v748_v21 = vrot.slane %v747_v12, 2  ;;  %v11620_v9 = vor.u32 %v16249_v8, %v11619_v6  ;;  %v12643_v11 = vld [vmem:[#allocation31 + $0xe00] sm:$0xf]  ;;  %v16545_v8 = vld [vmem:[#allocation31 + $0xf84] sm:$0xf] }
 0x388   :  { %v757_v49 = vadd.f32 %v756_v34, %v755_v17  ;;  %v10979_v34 = vld [vmem:[#allocation31 + $0x100] sm:$0xf]  ;;  %v11173_v18 = vld [vmem:[#allocation31 + $0x2c0] sm:$0xf0] }
 0x389   :  { %v828_v27 = vunpack.c.l.b16 %v782_v13  ;;  %v749_v28 = vadd.f32 %v748_v21, %v747_v12  ;;  %v16505_v12 = vld [vmem:[#allocation31 + $0xe3c] sm:$0xf0]  ;;  %v12132_v13 = vor.u32 %v16377_v10, %v12131_v19  ;;  %v12837_v19 = vld [vmem:[#allocation31 + $0xfc0] sm:$0xf0] }
 0x38a   :  { %v1065_v61 = vpack.c.bf16 %v757_v49, %v757_v49  ;;  %v12644_v17 = vor.u32 %v16505_v12, %v12643_v11  ;;  %v11043_v21 = vld [vmem:[#allocation31 + $0x180] sm:$0xf]  ;;  %v12840_v10 = vor.u32 %v16545_v8, %v12837_v19  ;;  %v16145_v11 = vld [vmem:[#allocation31 + $0x304] sm:$0xf] }
 0x38b   :  { %v750_v35 = vrot.slane %v749_v28, 1  ;;  %v830_v36 = vsel %vm460_vm0, %v829_v26, %v828_v27  ;;  %v11044_v26 = vor.u32 %v16105_v22, %v11043_v21  ;;  %v16233_v27 = vld [vmem:[#allocation31 + $0x5bc] sm:$0xf0]  ;;  %v11237_v12 = vld [vmem:[#allocation31 + $0x340] sm:$0xf0] }
 0x38c   :  { %v831_v37 = vpack.c.b16 %v830_v36, %v830_v36  ;;  %v1111_v2 = vunpack.c.l.b16 %v1065_v61  ;;  %v11556_v30 = vor.u32 %v16233_v27, %v11555_v25  ;;  %v11491_v36 = vld [vmem:[#allocation31 + $0x500] sm:$0xf]  ;;  %v11240_v21 = vor.u32 %v16145_v11, %v11237_v12  ;;  %v11749_v22 = vld [vmem:[#allocation31 + $0x740] sm:$0xf0] }
 0x38d   :  { %v751_v42 = vadd.f32 %v750_v35, %v749_v28  ;;  %v12067_v28 = vld [vmem:[#allocation31 + $0x980] sm:$0xf]  ;;  %v16401_v25 = vld [vmem:[#allocation31 + $0xb04] sm:$0xf] }
 0x38e   :  { %1001 = vmatmul.bf16.vlgmr.msra.gmra.mxu2 %v831_v37  ;;  %1014 = vmatmul.bf16.vlgmr.msra.gmra.mxu3 %v831_v37  ;;  %v12068_v31 = vor.u32 %v16361_v29, %v12067_v28  ;;  %v16089_v35 = vld [vmem:[#allocation31 + $0x13c] sm:$0xf0]  ;;  %v12261_v27 = vld [vmem:[#allocation31 + $0xb40] sm:$0xf0] }
 0x38f   :  { %1027 = vmatmul.bf16.vlgmr.msrb.gmra.mxu0 %v831_v37  ;;  %1040 = vmatmul.bf16.vlgmr.msrb.gmra.mxu1 %v831_v37  ;;  %v1064_v24 = vpack.c.bf16 %v751_v42, %v751_v42  ;;  %v10980_v37 = vor.u32 %v16089_v35, %v10979_v34  ;;  %v11939_v49 = vld [vmem:[#allocation31 + $0x880] sm:$0xf]  ;;  %v16529_v28 = vld [vmem:[#allocation31 + $0xf04] sm:$0xf]  ;;  %v11176_v34 = vor.u32 %v16129_v32, %v11173_v18 }
 0x390   :  { %4940 = vmatpush.bf16.msra.mxu2 %v11300_v38  ;;  %4953 = vmatpush.bf16.msra.mxu3 %v11812_v39  ;;  %v16217_v38 = vld [vmem:[#allocation31 + $0x53c] sm:$0xf0]  ;;  %v12773_v29 = vld [vmem:[#allocation31 + $0xf40] sm:$0xf0] }
 0x391   :  { %4966 = vmatpush.bf16.msrb.mxu0 %v12324_v43  ;;  %4979 = vmatpush.bf16.msrb.mxu1 %v12836_v44  ;;  %v1110_v0 = vunpack.c.l.b16 %v1064_v24  ;;  %v12003_v39 = vld [vmem:[#allocation31 + $0x900] sm:$0xf]  ;;  %v11492_v41 = vor.u32 %v16217_v38, %v11491_v36  ;;  %v11685_v35 = vld [vmem:[#allocation31 + $0x6c0] sm:$0xf0] }
 0x392   :  { %v12004_v42 = vor.u32 %v16345_v40, %v12003_v39  ;;  %v12515_v43 = vld [vmem:[#allocation31 + $0xd00] sm:$0xf]  ;;  %v16385_v36 = vld [vmem:[#allocation31 + $0xa84] sm:$0xf] }
 0x393   :  { %v1112_v3 = vsel %vm460_vm0, %v1111_v2, %v1110_v0  ;;  %v16473_v44 = vld [vmem:[#allocation31 + $0xd3c] sm:$0xf0]  ;;  %v16513_v39 = vld [vmem:[#allocation31 + $0xe84] sm:$0xf]  ;;  %vm1056_vm0 = vcmask 1042434  }
 0x394   :  { %4941 = vmatpush.bf16.msra.mxu2 %v11236_v50  ;;  %4954 = vmatpush.bf16.msra.mxu3 %v11748_v51  ;;  %v1113_v4 = vpack.c.b16 %v1112_v3, %v1112_v3  ;;  %v12516_v45 = vor.u32 %v16473_v44, %v12515_v43  ;;  %v11428_v50 = vor.u32 %v16201_v48, %v11427_v47  ;;  %v16329_v51 = vld [vmem:[#allocation31 + $0x8bc] sm:$0xf0]  ;;  %v12709_v40 = vld [vmem:[#allocation31 + $0xec0] sm:$0xf0] }
 0x395   :  { %4967 = vmatpush.bf16.msrb.mxu0 %v12260_v54  ;;  %4980 = vmatpush.bf16.msrb.mxu1 %v12772_v55  ;;  %v16457_v53 = vld [vmem:[#allocation31 + $0xcbc] sm:$0xf0]  ;;  %v11940_v24 = vor.u32 %v16329_v51, %v11939_v49  ;;  %v12712_v44 = vor.u32 %v16513_v39, %v12709_v40  ;;  %v16369_v48 = vld [vmem:[#allocation31 + $0xa04] sm:$0xf] }
 0x396   :  { %v12452_v54 = vor.u32 %v16457_v53, %v12451_v52  ;;  %v10851_v55 = vld [vmem:[#allocation31] sm:$0xf]  ;;  %v12133_v49 = vld [vmem:[#allocation31 + $0xa40] sm:$0xf0] }
 0x397   :  { %v10852_v56 = vor.u32 %v16057_v23, %v10851_v55  ;;  %v11363_v57 = vld [vmem:[#allocation31 + $0x400] sm:$0xf]  ;;  %v16497_v51 = vld [vmem:[#allocation31 + $0xe04] sm:$0xf]  ;;  %v12136_v53 = vor.u32 %v16369_v48, %v12133_v49 }
 0x398   :  { %4942 = vmatpush.bf16.msra.mxu2 %v11172_v62  ;;  %4955 = vmatpush.bf16.msra.mxu3 %v11684_v63  ;;  %v16185_v58 = vld [vmem:[#allocation31 + $0x43c] sm:$0xf0]  ;;  %v12645_v52 = vld [vmem:[#allocation31 + $0xe40] sm:$0xf0] }
 0x399   :  { %4968 = vmatpush.bf16.msrb.mxu0 %v12196_v1  ;;  %4981 = vmatpush.bf16.msrb.mxu1 %v12708_v15  ;;  %v11364_v59 = vor.u32 %v16185_v58, %v11363_v57  ;;  %v11875_v60 = vld [vmem:[#allocation31 + $0x800] sm:$0xf]  ;;  %v16161_v1 = vld [vmem:[#allocation31 + $0x384] sm:$0xf] }
 0x39a   :  { %v16313_v61 = vld [vmem:[#allocation31 + $0x83c] sm:$0xf0]  ;;  %v11301_v15 = vld [vmem:[#allocation31 + $0x3c0] sm:$0xf0] }
 0x39b   :  { %v12387_v62 = vld [vmem:[#allocation31 + $0xc00] sm:$0xf]  ;;  %v11876_v63 = vor.u32 %v16313_v61, %v11875_v60  ;;  %v11304_v3 = vor.u32 %v16161_v1, %v11301_v15  ;;  %v16097_v23 = vld [vmem:[#allocation31 + $0x184] sm:$0xf] }
 0x39c   :  { %4943 = vmatpush.bf16.msra.mxu2 %v11108_v7  ;;  %4956 = vmatpush.bf16.msra.mxu3 %v11620_v9  ;;  %v16441_v0 = vld [vmem:[#allocation31 + $0xc3c] sm:$0xf0]  ;;  %v12325_v7 = vld [vmem:[#allocation31 + $0xbc0] sm:$0xf0] }
 0x39d   :  { %4969 = vmatpush.bf16.msrb.mxu0 %v12132_v13  ;;  %4982 = vmatpush.bf16.msrb.mxu1 %v12644_v17  ;;  %v12388_v2 = vor.u32 %v16441_v0, %v12387_v62  ;;  %v12328_v9 = vor.u32 %v16417_v16, %v12325_v7  ;;  %v16273_v13 = vld [vmem:[#allocation31 + $0x704] sm:$0xf]  ;;  %v17558_v17 = vld [vmem:[#allocation25] sm:$0xf] }
 0x39e   :  { %1283 = vmatmul.bf16.vlgmr.msrb.gmra.mxu2 %v1113_v4  ;;  %1296 = vmatmul.bf16.vlgmr.msrb.gmra.mxu3 %v1113_v4  ;;  %v16225_v57 = vld [vmem:[#allocation31 + $0x584] sm:$0xf]  ;;  %v818_v0 = vperm.slane %v17558_v17, 0  ;;  %v819_v1 = vperm.slane %v17558_v17, 1 }
 0x39f   :  { %1309 = vmatmul.bf16.vlgmr.msra.gmra.mxu0 %v1113_v4  ;;  %1322 = vmatmul.bf16.vlgmr.msra.gmra.mxu1 %v1113_v4  ;;  %v16289_v4 = vld [vmem:[#allocation31 + $0x784] sm:$0xf] }
 0x3a0   :  { %4944 = vmatpush.bf16.msra.mxu2 %v11044_v26  ;;  %4957 = vmatpush.bf16.msra.mxu3 %v11556_v30  ;;  %v11816_v6 = vor.u32 %v16289_v4, %v11813_v5  ;;  %v11752_v26 = vor.u32 %v16273_v13, %v11749_v22  ;;  %v12264_v30 = vor.u32 %v16401_v25, %v12261_v27  ;;  %v11557_v61 = vld [vmem:[#allocation31 + $0x5c0] sm:$0xf0] }
 0x3a1   :  { %4970 = vmatpush.bf16.msrb.mxu0 %v12068_v31  ;;  %4983 = vmatpush.bf16.msrb.mxu1 %v12580_v33  ;;  %v12776_v31 = vor.u32 %v16529_v28, %v12773_v29  ;;  %v16257_v33 = vld [vmem:[#allocation31 + $0x684] sm:$0xf]  ;;  %v11560_v15 = vor.u32 %v16225_v57, %v11557_v61  ;;  %v17564_v29 = vld [vmem:[#allocation28] sm:$0xf] }
 0x3a2   :  { %v11688_v38 = vor.u32 %v16257_v33, %v11685_v35  ;;  %v16353_v62 = vld [vmem:[#allocation31 + $0x984] sm:$0xf] }
 0x3a3   :  { %v10981_v7 = vld [vmem:[#allocation31 + $0x140] sm:$0xf0] }
 0x3a4   :  { %4945 = vmatpush.bf16.msra.mxu2 %v10980_v37  ;;  %4958 = vmatpush.bf16.msra.mxu3 %v11492_v41  ;;  %v12197_v37 = vld [vmem:[#allocation31 + $0xac0] sm:$0xf0]  ;;  %v820_v41 = vperm.slane %v17558_v17, 2 }
 0x3a5   :  { %4971 = vmatpush.bf16.msrb.mxu0 %v12004_v42  ;;  %4984 = vmatpush.bf16.msrb.mxu1 %v12516_v45  ;;  %v821_v42 = vperm.slane %v17558_v17, 3  ;;  %v12200_v43 = vor.u32 %v16385_v36, %v12197_v37  ;;  %v16113_v45 = vld [vmem:[#allocation31 + $0x204] sm:$0xf] }
 0x3a6   :  { %v11112_v47 = vor.u32 %v16113_v45, %v11109_v46  ;;  %v16209_v8 = vld [vmem:[#allocation31 + $0x504] sm:$0xf]  ;;  %v1102_v45 = vperm.slane %v17564_v29, 2  ;;  %v1103_v46 = vperm.slane %v17564_v29, 3 }
 0x3a7   :  { %v11493_v11 = vld [vmem:[#allocation31 + $0x540] sm:$0xf0] }
 0x3a8   :  { %4946 = vmatpush.bf16.msra.mxu2 %v10916_v20  ;;  %4959 = vmatpush.bf16.msra.mxu3 %v11428_v50  ;;  %v11621_v20 = vld [vmem:[#allocation31 + $0x640] sm:$0xf0] }
 0x3a9   :  { %4972 = vmatpush.bf16.msrb.mxu0 %v11940_v24  ;;  %4985 = vmatpush.bf16.msrb.mxu1 %v12452_v54  ;;  %v11624_v50 = vor.u32 %v16241_v14, %v11621_v20  ;;  %v12648_v24 = vor.u32 %v16497_v51, %v12645_v52  ;;  %v16337_v12 = vld [vmem:[#allocation31 + $0x904] sm:$0xf] }
 0x3aa   :  { %v12005_v22 = vld [vmem:[#allocation31 + $0x940] sm:$0xf0] }
 0x3ab   :  { %v16465_v25 = vld [vmem:[#allocation31 + $0xd04] sm:$0xf] }
 0x3ac   :  { %4947 = vmatpush.bf16.msra.mxu2 %v10852_v56  ;;  %4960 = vmatpush.bf16.msra.mxu3 %v11364_v59  ;;  %v11045_v56 = vld [vmem:[#allocation31 + $0x1c0] sm:$0xf0] }
 0x3ad   :  { %4973 = vmatpush.bf16.msrb.mxu0 %v11876_v63  ;;  %4986 = vmatpush.bf16.msrb.mxu1 %v12388_v2  ;;  %v11048_v60 = vor.u32 %v16097_v23, %v11045_v56  ;;  %v12069_v63 = vld [vmem:[#allocation31 + $0x9c0] sm:$0xf0] }
 0x3ae   :  { %v16481_v2 = vld [vmem:[#allocation31 + $0xd84] sm:$0xf]  ;;  %v12072_v5 = vor.u32 %v16353_v62, %v12069_v63 }
 0x3af   :  { %v10917_v35 = vld [vmem:[#allocation31 + $0xc0] sm:$0xf0] }
 0x3b0   :  { %4992 = vmatpush.bf16.msrb.mxu2 %v11304_v3  ;;  %5005 = vmatpush.bf16.msrb.mxu3 %v11816_v6  ;;  %v12581_v3 = vld [vmem:[#allocation31 + $0xdc0] sm:$0xf0] }
 0x3b1   :  { %5018 = vmatpush.bf16.msra.mxu0 %v12328_v9  ;;  %5031 = vmatpush.bf16.msra.mxu1 %v12840_v10  ;;  %v12584_v16 = vor.u32 %v16481_v2, %v12581_v3  ;;  %v16081_v6 = vld [vmem:[#allocation31 + $0x104] sm:$0xf]  ;;  %v1101_v2 = vperm.slane %v17564_v29, 1 }
 0x3b2   :  { %v10984_v10 = vor.u32 %v16081_v6, %v10981_v7  ;;  %v16193_v36 = vld [vmem:[#allocation31 + $0x484] sm:$0xf] }
 0x3b3   :  { %v16321_v39 = vld [vmem:[#allocation31 + $0x884] sm:$0xf] }
 0x3b4   :  { %4993 = vmatpush.bf16.msrb.mxu2 %v11240_v21  ;;  %5006 = vmatpush.bf16.msrb.mxu3 %v11752_v26  ;;  %v11496_v21 = vor.u32 %v16209_v8, %v11493_v11  ;;  %v12517_v26 = vld [vmem:[#allocation31 + $0xd40] sm:$0xf0] }
 0x3b5   :  { %5019 = vmatpush.bf16.msra.mxu0 %v12264_v30  ;;  %5032 = vmatpush.bf16.msra.mxu1 %v12776_v31  ;;  %v12008_v30 = vor.u32 %v16337_v12, %v12005_v22  ;;  %v12520_v31 = vor.u32 %v16465_v25, %v12517_v26  ;;  %v11941_v40 = vld [vmem:[#allocation31 + $0x8c0] sm:$0xf0]  ;;  %v11307_v26 = vld [vmem:[#allocation31 + $0x388] sm:$0xf] }
 0x3b6   :  { %v11944_v14 = vor.u32 %v16321_v39, %v11941_v40  ;;  %v16049_v49 = vld [vmem:[#allocation31 + $0x4] sm:$0xf]  ;;  %v12267_v39 = vld [vmem:[#allocation31 + $0xb08] sm:$0xf] }
 0x3b7   :  { %v16177_v51 = vld [vmem:[#allocation31 + $0x404] sm:$0xf]  ;;  %v16410_v40 = vld [vmem:[#allocation31 + $0xb44] sm:$0xf0] }
 0x3b8   :  { %4994 = vmatpush.bf16.msrb.mxu2 %v11176_v34  ;;  %5007 = vmatpush.bf16.msrb.mxu3 %v11688_v38  ;;  %v16065_v34 = vld [vmem:[#allocation31 + $0x84] sm:$0xf] }
 0x3b9   :  { %5020 = vmatpush.bf16.msra.mxu0 %v12200_v43  ;;  %5033 = vmatpush.bf16.msra.mxu1 %v12712_v44  ;;  %v10920_v37 = vor.u32 %v16065_v34, %v10917_v35  ;;  %v11429_v38 = vld [vmem:[#allocation31 + $0x4c0] sm:$0xf0]  ;;  %v16154_v34 = vld [vmem:[#allocation31 + $0x344] sm:$0xf0] }
 0x3ba   :  { %v16449_v43 = vld [vmem:[#allocation31 + $0xc84] sm:$0xf]  ;;  %v11755_v35 = vld [vmem:[#allocation31 + $0x708] sm:$0xf] }
 0x3bb   :  { %v12453_v44 = vld [vmem:[#allocation31 + $0xcc0] sm:$0xf0] }
 0x3bc   :  { %4995 = vmatpush.bf16.msrb.mxu2 %v11112_v47  ;;  %5008 = vmatpush.bf16.msrb.mxu3 %v11624_v50  ;;  %v12456_v47 = vor.u32 %v16449_v43, %v12453_v44  ;;  %v10853_v50 = vld [vmem:[#allocation31 + $0x40] sm:$0xf0] }
 0x3bd   :  { %5021 = vmatpush.bf16.msra.mxu0 %v12136_v53  ;;  %5034 = vmatpush.bf16.msra.mxu1 %v12648_v24  ;;  %v16305_v23 = vld [vmem:[#allocation31 + $0x804] sm:$0xf] }
 0x3be   :  { %v11877_v56 = vld [vmem:[#allocation31 + $0x840] sm:$0xf0] }
 0x3c0   :  { %4996 = vmatpush.bf16.msrb.mxu2 %v11048_v60  ;;  %5009 = vmatpush.bf16.msrb.mxu3 %v11560_v15  ;;  %v11880_v60 = vor.u32 %v16305_v23, %v11877_v56  ;;  %v1100_v15 = vperm.slane %v17564_v29, 0  ;;  %v16298_v29 = vld [vmem:[#allocation31 + $0x7c4] sm:$0xf0] }
 0x3c1   :  { %5022 = vmatpush.bf16.msra.mxu0 %v12072_v5  ;;  %5035 = vmatpush.bf16.msra.mxu1 %v12584_v16  ;;  %v16394_v23 = vld [vmem:[#allocation31 + $0xac4] sm:$0xf0] }
 0x3c2   :  { %v12715_v56 = vld [vmem:[#allocation31 + $0xe88] sm:$0xf] }
 0x3c4   :  { %4997 = vmatpush.bf16.msrb.mxu2 %v10984_v10  ;;  %5010 = vmatpush.bf16.msrb.mxu3 %v11496_v21 }
 0x3c5   :  { %5023 = vmatpush.bf16.msra.mxu0 %v12008_v30  ;;  %5036 = vmatpush.bf16.msra.mxu1 %v12520_v31  ;;  %v12331_v30 = vld [vmem:[#allocation31 + $0xb88] sm:$0xf] }
 0x3c6   :  { %v16426_v31 = vld [vmem:[#allocation31 + $0xbc4] sm:$0xf0] }
 0x3c8   :  { %4998 = vmatpush.bf16.msrb.mxu2 %v10920_v37 }
 0x3c9   :  { %5024 = vmatpush.bf16.msra.mxu0 %v11944_v14  ;;  %5037 = vmatpush.bf16.msra.mxu1 %v12456_v47 }
 0x3cd   :  { %5025 = vmatpush.bf16.msra.mxu0 %v11880_v60  ;;  %v11115_v60 = vld [vmem:[#allocation31 + $0x208] sm:$0xf] }
 0x40c   :  { %v1028_v54 = vpop.f32.mrf.mxu0  ;;  %v1041_v55 = vpop.f32.mrf.mxu1 }
 0x40d   :  { %v1029_v58 = vadd.f32 %v1028_v54, %v820_v41  ;;  %v1042_v59 = vadd.f32 %v1041_v55, %v821_v42  ;;  %v11432_v42 = vor.u32 %v16193_v36, %v11429_v38  ;;  %v10856_v54 = vor.u32 %v16049_v49, %v10853_v50  ;;  %v11365_v55 = vld [vmem:[#allocation31 + $0x440] sm:$0xf0]  ;;  %v16282_v36 = vld [vmem:[#allocation31 + $0x744] sm:$0xf0] }
 0x40e   :  { %v11368_v57 = vor.u32 %v16177_v51, %v11365_v55  ;;  %v11756_v49 = vor.u32 %v16282_v36, %v11755_v35  ;;  %v11179_v50 = vld [vmem:[#allocation31 + $0x288] sm:$0xf] }
 0x40f   :  { %v1046_v4 = vpack.c.bf16 %v1042_v59, %v1029_v58  ;;  %5011 = vmatpush.bf16.msrb.mxu3 %v11432_v42  ;;  %v16433_v58 = vld [vmem:[#allocation31 + $0xc04] sm:$0xf]  ;;  %4999 = vmatpush.bf16.msrb.mxu2 %v10856_v54  ;;  %v16138_v51 = vld [vmem:[#allocation31 + $0x2c4] sm:$0xf0] }
 0x410   :  { %v12389_v59 = vld [vmem:[#allocation31 + $0xc40] sm:$0xf0]  ;;  %v16266_v54 = vld [vmem:[#allocation31 + $0x6c4] sm:$0xf0] }
 0x411   :  { %v1002_v19 = vpop.f32.mrf.mxu2  ;;  %v1015_v9 = vpop.f32.mrf.mxu3  ;;  %v1050_v27 = vrot.slane %v1046_v4, 6  ;;  %v1051_v28 = vrot.slane %v1046_v4, 1  ;;  %v12392_v61 = vor.u32 %v16433_v58, %v12389_v59  ;;  %v12203_v55 = vld [vmem:[#allocation31 + $0xa88] sm:$0xf]  ;;  %v11180_v58 = vor.u32 %v16138_v51, %v11179_v50 }
 0x412   :  { %v1003_v13 = vadd.f32 %v1002_v19, %v818_v0  ;;  %v1016_v17 = vadd.f32 %v1015_v9, %v819_v1  ;;  %v10923_v36 = vld [vmem:[#allocation31 + $0x88] sm:$0xf] }
 0x413   :  { %v1059_v20 = vsel %vm1056_vm0, %v1050_v27, %v1051_v28  ;;  %5012 = vmatpush.bf16.msrb.mxu3 %v11368_v57  ;;  %5038 = vmatpush.bf16.msra.mxu1 %v12392_v61  ;;  %v16170_v27 = vld [vmem:[#allocation31 + $0x3c4] sm:$0xf0] }
 0x414   :  { %v1045_v32 = vpack.c.bf16 %v1016_v17, %v1003_v13  ;;  %v1030_v18 = vpop.f32.mrf.mxu0  ;;  %v1043_v33 = vpop.f32.mrf.mxu1  ;;  %v11819_v28 = vld [vmem:[#allocation31 + $0x788] sm:$0xf]  ;;  %v11308_v37 = vor.u32 %v16170_v27, %v11307_v26 }
 0x415   :  { %v16554_v18 = vld [vmem:[#allocation31 + $0xfc4] sm:$0xf0]  ;;  %v11820_v38 = vor.u32 %v16298_v29, %v11819_v28 }
 0x416   :  { %v1049_v41 = vrot.slane %v1045_v32, 3  ;;  %v11243_v33 = vld [vmem:[#allocation31 + $0x308] sm:$0xf] }
 0x417   :  { %v16522_v57 = vld [vmem:[#allocation31 + $0xec4] sm:$0xf0] }
 0x418   :  { %v1055_v48 = vsel %vm1052_vm2, %v1045_v32, %v1049_v41  ;;  %v12843_v32 = vld [vmem:[#allocation31 + $0xf88] sm:$0xf] }
 0x419   :  { %v1061_v52 = vsel %vm1060_vm4, %v1055_v48, %v1059_v20  ;;  %v1004_v53 = vpop.f32.mrf.mxu2  ;;  %v1017_v24 = vpop.f32.mrf.mxu3  ;;  %v12779_v41 = vld [vmem:[#allocation31 + $0xf08] sm:$0xf]  ;;  %v11244_v48 = vor.u32 %v16154_v34, %v11243_v33 }
 0x41a   :  { %1063 = vst [vmem:[#allocation2] sm:$0xf] %v1061_v52  ;;  %v16538_v20 = vld [vmem:[#allocation31 + $0xf44] sm:$0xf0]  ;;  %v12268_v52 = vor.u32 %v16410_v40, %v12267_v39 }
 0x41b   :  { %v12780_v53 = vor.u32 %v16538_v20, %v12779_v41  ;;  %v11691_v24 = vld [vmem:[#allocation31 + $0x688] sm:$0xf] }
 0x41c   :  { %v1310_v62 = vpop.f32.mrf.mxu0  ;;  %v1323_v63 = vpop.f32.mrf.mxu1  ;;  %v11692_v59 = vor.u32 %v16266_v54, %v11691_v24  ;;  %v16122_v61 = vld [vmem:[#allocation31 + $0x244] sm:$0xf0] }
 0x41d   :  { %v1311_v0 = vadd.f32 %v1310_v62, %v1102_v45  ;;  %v1324_v1 = vadd.f32 %v1323_v63, %v1103_v46  ;;  %v12332_v45 = vor.u32 %v16426_v31, %v12331_v30  ;;  %v12844_v46 = vor.u32 %v16554_v18, %v12843_v32  ;;  %v16090_v26 = vld [vmem:[#allocation31 + $0x144] sm:$0xf0] }
 0x41e   :  { %v12204_v62 = vor.u32 %v16394_v23, %v12203_v55  ;;  %v12716_v63 = vor.u32 %v16522_v57, %v12715_v56  ;;  %v11499_v29 = vld [vmem:[#allocation31 + $0x508] sm:$0xf] }
 0x41f   :  { %v1328_v3 = vpack.c.bf16 %v1324_v1, %v1311_v0  ;;  %v11627_v0 = vld [vmem:[#allocation31 + $0x608] sm:$0xf] }
 0x420   :  { %v16250_v1 = vld [vmem:[#allocation31 + $0x644] sm:$0xf0] }
 0x421   :  { %v1284_v4 = vpop.f32.mrf.mxu2  ;;  %v1297_v5 = vpop.f32.mrf.mxu3  ;;  %v1332_v7 = vrot.slane %v1328_v3, 6  ;;  %v1333_v8 = vrot.slane %v1328_v3, 1  ;;  %v1344_v14 = vld [vmem:[#allocation2] sm:$0xf]  ;;  %v12651_v3 = vld [vmem:[#allocation31 + $0xe08] sm:$0xf] }
 0x422   :  { %v1285_v16 = vadd.f32 %v1284_v4, %v1100_v15  ;;  %v1298_v6 = vadd.f32 %v1297_v5, %v1101_v2  ;;  %v12139_v15 = vld [vmem:[#allocation31 + $0xa08] sm:$0xf]  ;;  %v11116_v5 = vor.u32 %v16122_v61, %v11115_v60  ;;  %v16290_v60 = vld [vmem:[#allocation31 + $0x78c] sm:$0xf] }
 0x423   :  { %v1339_v12 = vsel %vm1056_vm0, %v1332_v7, %v1333_v8  ;;  %v16378_v2 = vld [vmem:[#allocation31 + $0xa44] sm:$0xf0]  ;;  %v11821_v61 = vld [vmem:[#allocation31 + $0x7c8] sm:$0xf0] }
 0x424   :  { %v1327_v19 = vpack.c.bf16 %v1298_v6, %v1285_v16  ;;  %v1312_v9 = vpop.f32.mrf.mxu0  ;;  %v1325_v10 = vpop.f32.mrf.mxu1  ;;  %v16506_v4 = vld [vmem:[#allocation31 + $0xe44] sm:$0xf0]  ;;  %v11628_v16 = vor.u32 %v16250_v1, %v11627_v0  ;;  %v12140_v8 = vor.u32 %v16378_v2, %v12139_v15  ;;  %v12333_v1 = vld [vmem:[#allocation31 + $0xbc8] sm:$0xf0] }
 0x425   :  { %v11051_v6 = vld [vmem:[#allocation31 + $0x188] sm:$0xf]  ;;  %v16546_v15 = vld [vmem:[#allocation31 + $0xf8c] sm:$0xf] }
 0x426   :  { %v1331_v11 = vrot.slane %v1327_v19, 3  ;;  %v16106_v7 = vld [vmem:[#allocation31 + $0x1c4] sm:$0xf0]  ;;  %v12845_v2 = vld [vmem:[#allocation31 + $0xfc8] sm:$0xf0] }
 0x427   :  { %v11563_v9 = vld [vmem:[#allocation31 + $0x588] sm:$0xf] }
 0x428   :  { %v1336_v13 = vsel %vm1052_vm2, %v1327_v19, %v1331_v11  ;;  %v12652_v19 = vor.u32 %v16506_v4, %v12651_v3  ;;  %v16234_v10 = vld [vmem:[#allocation31 + $0x5c4] sm:$0xf0] }
 0x429   :  { %v1340_v17 = vsel %vm1060_vm4, %v1336_v13, %v1339_v12  ;;  %v1286_v21 = vpop.f32.mrf.mxu2  ;;  %v1299_v22 = vpop.f32.mrf.mxu3  ;;  %v12075_v11 = vld [vmem:[#allocation31 + $0x988] sm:$0xf] }
 0x42a   :  { %1342 = vst [vmem:[#allocation3] sm:$0xf] %v1340_v17  ;;  %v16362_v12 = vld [vmem:[#allocation31 + $0x9c4] sm:$0xf0]  ;;  %v11052_v21 = vor.u32 %v16106_v7, %v11051_v6  ;;  %v11564_v22 = vor.u32 %v16234_v10, %v11563_v9  ;;  %v16146_v6 = vld [vmem:[#allocation31 + $0x30c] sm:$0xf] }
 0x42b   :  { %v12587_v13 = vld [vmem:[#allocation31 + $0xd88] sm:$0xf]  ;;  %v12076_v27 = vor.u32 %v16362_v12, %v12075_v11  ;;  %v11245_v7 = vld [vmem:[#allocation31 + $0x348] sm:$0xf0] }
 0x42c   :  { %v16490_v17 = vld [vmem:[#allocation31 + $0xdc4] sm:$0xf0]  ;;  %v16274_v9 = vld [vmem:[#allocation31 + $0x70c] sm:$0xf] }
 0x42d   :  { %v12588_v28 = vor.u32 %v16490_v17, %v12587_v13  ;;  %v16218_v30 = vld [vmem:[#allocation31 + $0x544] sm:$0xf0]  ;;  %v11757_v10 = vld [vmem:[#allocation31 + $0x748] sm:$0xf0] }
 0x42e   :  { %v12011_v31 = vld [vmem:[#allocation31 + $0x908] sm:$0xf]  ;;  %v11500_v35 = vor.u32 %v16218_v30, %v11499_v29  ;;  %v16402_v11 = vld [vmem:[#allocation31 + $0xb0c] sm:$0xf] }
 0x42f   :  { %v16346_v32 = vld [vmem:[#allocation31 + $0x944] sm:$0xf0]  ;;  %v12269_v12 = vld [vmem:[#allocation31 + $0xb48] sm:$0xf0] }
 0x430   :  { %v12523_v18 = vld [vmem:[#allocation31 + $0xd08] sm:$0xf]  ;;  %v16530_v13 = vld [vmem:[#allocation31 + $0xf0c] sm:$0xf] }
 0x431   :  { %v1857_v25 = vld [vmem:[#allocation3] sm:$0xf]  ;;  %v12781_v17 = vld [vmem:[#allocation31 + $0xf48] sm:$0xf0] }
 0x432   :  { %2371 = vst [vmem:[#allocation1] ss:$9 sm:$0xff] %v1857_v25  ;;  %v10987_v25 = vld [vmem:[#allocation31 + $0x108] sm:$0xf]  ;;  %v16258_v29 = vld [vmem:[#allocation31 + $0x68c] sm:$0xf] }
 0x433   :  { %v16474_v33 = vld [vmem:[#allocation31 + $0xd44] sm:$0xf0]  ;;  %v10988_v34 = vor.u32 %v16090_v26, %v10987_v25  ;;  %v16130_v25 = vld [vmem:[#allocation31 + $0x28c] sm:$0xf] }
 0x434   :  { %v12524_v39 = vor.u32 %v16474_v33, %v12523_v18  ;;  %v11435_v40 = vld [vmem:[#allocation31 + $0x488] sm:$0xf]  ;;  %v11181_v26 = vld [vmem:[#allocation31 + $0x2c8] sm:$0xf0] }
 0x435   :  { %v16202_v41 = vld [vmem:[#allocation31 + $0x4c4] sm:$0xf0]  ;;  %v11693_v30 = vld [vmem:[#allocation31 + $0x6c8] sm:$0xf0] }
 0x436   :  { %v16458_v20 = vld [vmem:[#allocation31 + $0xcc4] sm:$0xf0]  ;;  %v11436_v50 = vor.u32 %v16202_v41, %v11435_v40  ;;  %v16514_v18 = vld [vmem:[#allocation31 + $0xe8c] sm:$0xf] }
 0x437   :  { %v16058_v51 = vld [vmem:[#allocation31 + $0x44] sm:$0xf0]  ;;  %v12717_v33 = vld [vmem:[#allocation31 + $0xec8] sm:$0xf0] }
 0x438   :  { %v11883_v55 = vld [vmem:[#allocation31 + $0x808] sm:$0xf]  ;;  %v16242_v40 = vld [vmem:[#allocation31 + $0x60c] sm:$0xf] }
 0x439   :  { %v17576_v42 = vld [vmem:[#allocation1] sm:$0xff]  ;;  %v17578_v43 = vld [vmem:[#allocation1 + $0x9] sm:$0xff]  ;;  %v17580_v44 = vld [vmem:[#allocation1 + $0x12] sm:$0xff] }
 0x43a   :  { %v17582_v47 = vld [vmem:[#allocation1 + $0x1b] sm:$0xff]  ;;  %4948 = vmatmul.bf16.vlgmr.msra.gmra.mxu2 %v17576_v42  ;;  %4961 = vmatmul.bf16.vlgmr.msra.gmra.mxu3 %v17578_v43  ;;  %v16314_v23 = vld [vmem:[#allocation31 + $0x844] sm:$0xf0]  ;;  %v11629_v41 = vld [vmem:[#allocation31 + $0x648] sm:$0xf0] }
 0x43b   :  { %5773 = vst [vmem:[#allocation1] ss:$9 sm:$0xff] %v1344_v14  ;;  %4974 = vmatmul.bf16.vlgmr.msrb.gmra.mxu0 %v17580_v44  ;;  %4987 = vmatmul.bf16.vlgmr.msrb.gmra.mxu1 %v17582_v47  ;;  %v12459_v14 = vld [vmem:[#allocation31 + $0xc88] sm:$0xf]  ;;  %v11884_v3 = vor.u32 %v16314_v23, %v11883_v55  ;;  %v16354_v55 = vld [vmem:[#allocation31 + $0x98c] sm:$0xf] }
 0x43c   :  { %5044 = vmatpush.bf16.msra.mxu2 %v11308_v37  ;;  %5057 = vmatpush.bf16.msra.mxu3 %v11820_v38  ;;  %v16074_v37 = vld [vmem:[#allocation31 + $0xc4] sm:$0xf0]  ;;  %v12012_v38 = vor.u32 %v16346_v32, %v12011_v31  ;;  %v12460_v54 = vor.u32 %v16458_v20, %v12459_v14  ;;  %v16386_v31 = vld [vmem:[#allocation31 + $0xa8c] sm:$0xf] }
 0x43d   :  { %5070 = vmatpush.bf16.msrb.mxu0 %v12332_v45  ;;  %5083 = vmatpush.bf16.msrb.mxu1 %v12844_v46  ;;  %v11947_v45 = vld [vmem:[#allocation31 + $0x888] sm:$0xf]  ;;  %v12205_v32 = vld [vmem:[#allocation31 + $0xac8] sm:$0xf0] }
 0x43e   :  { %v16330_v46 = vld [vmem:[#allocation31 + $0x8c4] sm:$0xf0]  ;;  %v16498_v14 = vld [vmem:[#allocation31 + $0xe0c] sm:$0xf] }
 0x43f   :  { %v11948_v24 = vor.u32 %v16330_v46, %v11947_v45  ;;  %v12395_v56 = vld [vmem:[#allocation31 + $0xc08] sm:$0xf]  ;;  %v16370_v45 = vld [vmem:[#allocation31 + $0xa0c] sm:$0xf] }
 0x440   :  { %5045 = vmatpush.bf16.msra.mxu2 %v11244_v48  ;;  %5058 = vmatpush.bf16.msra.mxu3 %v11756_v49  ;;  %v10859_v48 = vld [vmem:[#allocation31 + $0x8] sm:$0xf]  ;;  %v10924_v49 = vor.u32 %v16074_v37, %v10923_v36  ;;  %v16114_v36 = vld [vmem:[#allocation31 + $0x20c] sm:$0xf] }
 0x441   :  { %5071 = vmatpush.bf16.msrb.mxu0 %v12268_v52  ;;  %5084 = vmatpush.bf16.msrb.mxu1 %v12780_v53  ;;  %v11371_v52 = vld [vmem:[#allocation31 + $0x408] sm:$0xf]  ;;  %v11117_v37 = vld [vmem:[#allocation31 + $0x248] sm:$0xf0] }
 0x442   :  { %v16186_v53 = vld [vmem:[#allocation31 + $0x444] sm:$0xf0]  ;;  %v12141_v46 = vld [vmem:[#allocation31 + $0xa48] sm:$0xf0] }
 0x443   :  { %v16442_v57 = vld [vmem:[#allocation31 + $0xc44] sm:$0xf0]  ;;  %v11372_v0 = vor.u32 %v16186_v53, %v11371_v52  ;;  %v12653_v20 = vld [vmem:[#allocation31 + $0xe48] sm:$0xf0]  ;;  %v12144_v52 = vor.u32 %v16370_v45, %v12141_v46  ;;  %v12851_v45 = vld [vmem:[#allocation31 + $0xf90] sm:$0xf] }
 0x444   :  { %5046 = vmatpush.bf16.msra.mxu2 %v11180_v58  ;;  %5059 = vmatpush.bf16.msra.mxu3 %v11692_v59  ;;  %v16162_v58 = vld [vmem:[#allocation31 + $0x38c] sm:$0xf]  ;;  %v12396_v4 = vor.u32 %v16442_v57, %v12395_v56  ;;  %v12656_v53 = vor.u32 %v16498_v14, %v12653_v20  ;;  %v16555_v46 = vld [vmem:[#allocation31 + $0xfcc] sm:$0xf0] }
 0x445   :  { %5072 = vmatpush.bf16.msrb.mxu0 %v12204_v62  ;;  %5085 = vmatpush.bf16.msrb.mxu1 %v12716_v63  ;;  %v11309_v59 = vld [vmem:[#allocation31 + $0x3c8] sm:$0xf0]  ;;  %v10860_v63 = vor.u32 %v16058_v51, %v10859_v48  ;;  %v11120_v48 = vor.u32 %v16114_v36, %v11117_v37  ;;  %v11827_v36 = vld [vmem:[#allocation31 + $0x790] sm:$0xf] }
 0x446   :  { %v16418_v62 = vld [vmem:[#allocation31 + $0xb8c] sm:$0xf]  ;;  %v16299_v37 = vld [vmem:[#allocation31 + $0x7cc] sm:$0xf0] }
 0x447   :  { %v11053_v51 = vld [vmem:[#allocation31 + $0x1c8] sm:$0xf0] }
 0x448   :  { %5047 = vmatpush.bf16.msra.mxu2 %v11116_v5  ;;  %5060 = vmatpush.bf16.msra.mxu3 %v11628_v16  ;;  %v11312_v5 = vor.u32 %v16162_v58, %v11309_v59  ;;  %v11824_v16 = vor.u32 %v16290_v60, %v11821_v61  ;;  %v12077_v23 = vld [vmem:[#allocation31 + $0x9c8] sm:$0xf0] }
 0x449   :  { %5073 = vmatpush.bf16.msrb.mxu0 %v12140_v8  ;;  %5086 = vmatpush.bf16.msrb.mxu1 %v12652_v19  ;;  %v12336_v8 = vor.u32 %v16418_v62, %v12333_v1  ;;  %v12848_v19 = vor.u32 %v16546_v15, %v12845_v2  ;;  %v16482_v56 = vld [vmem:[#allocation31 + $0xd8c] sm:$0xf]  ;;  %v12080_v62 = vor.u32 %v16354_v55, %v12077_v23  ;;  %v12275_v55 = vld [vmem:[#allocation31 + $0xb10] sm:$0xf] }
 0x44a   :  { %5000 = vmatmul.bf16.vlgmr.msrb.gmra.mxu2 %v17576_v42  ;;  %5013 = vmatmul.bf16.vlgmr.msrb.gmra.mxu3 %v17578_v43  ;;  %v12589_v57 = vld [vmem:[#allocation31 + $0xdc8] sm:$0xf0]  ;;  %v16411_v23 = vld [vmem:[#allocation31 + $0xb4c] sm:$0xf0] }
 0x44b   :  { %5026 = vmatmul.bf16.vlgmr.msra.gmra.mxu0 %v17580_v44  ;;  %5039 = vmatmul.bf16.vlgmr.msra.gmra.mxu1 %v17582_v47  ;;  %v16082_v60 = vld [vmem:[#allocation31 + $0x10c] sm:$0xf] }
 0x44c   :  { %5048 = vmatpush.bf16.msra.mxu2 %v11052_v21  ;;  %5061 = vmatpush.bf16.msra.mxu3 %v11564_v22  ;;  %v11248_v21 = vor.u32 %v16146_v6, %v11245_v7  ;;  %v11760_v22 = vor.u32 %v16274_v9, %v11757_v10  ;;  %v10989_v61 = vld [vmem:[#allocation31 + $0x148] sm:$0xf0] }
 0x44d   :  { %5074 = vmatpush.bf16.msrb.mxu0 %v12076_v27  ;;  %5087 = vmatpush.bf16.msrb.mxu1 %v12588_v28  ;;  %v12272_v27 = vor.u32 %v16402_v11, %v12269_v12  ;;  %v12784_v28 = vor.u32 %v16530_v13, %v12781_v17  ;;  %v11501_v1 = vld [vmem:[#allocation31 + $0x548] sm:$0xf0] }
 0x44e   :  { %v16338_v15 = vld [vmem:[#allocation31 + $0x90c] sm:$0xf] }
 0x44f   :  { %v12013_v2 = vld [vmem:[#allocation31 + $0x948] sm:$0xf0] }
 0x450   :  { %5049 = vmatpush.bf16.msra.mxu2 %v10988_v34  ;;  %5062 = vmatpush.bf16.msra.mxu3 %v11500_v35  ;;  %v11184_v34 = vor.u32 %v16130_v25, %v11181_v26  ;;  %v11696_v35 = vor.u32 %v16258_v29, %v11693_v30  ;;  %v16066_v6 = vld [vmem:[#allocation31 + $0x8c] sm:$0xf] }
 0x451   :  { %5075 = vmatpush.bf16.msrb.mxu0 %v12012_v38  ;;  %5088 = vmatpush.bf16.msrb.mxu1 %v12524_v39  ;;  %v12208_v38 = vor.u32 %v16386_v31, %v12205_v32  ;;  %v12720_v39 = vor.u32 %v16514_v18, %v12717_v33  ;;  %v10925_v7 = vld [vmem:[#allocation31 + $0xc8] sm:$0xf0] }
 0x452   :  { %v16194_v9 = vld [vmem:[#allocation31 + $0x48c] sm:$0xf] }
 0x453   :  { %v11437_v10 = vld [vmem:[#allocation31 + $0x4c8] sm:$0xf0] }
 0x454   :  { %5050 = vmatpush.bf16.msra.mxu2 %v10924_v49  ;;  %5063 = vmatpush.bf16.msra.mxu3 %v11436_v50  ;;  %v11632_v49 = vor.u32 %v16242_v40, %v11629_v41  ;;  %v16098_v50 = vld [vmem:[#allocation31 + $0x18c] sm:$0xf]  ;;  %v11440_v25 = vor.u32 %v16194_v9, %v11437_v10  ;;  %v16427_v41 = vld [vmem:[#allocation31 + $0xbcc] sm:$0xf0] }
 0x455   :  { %5076 = vmatpush.bf16.msrb.mxu0 %v11948_v24  ;;  %5089 = vmatpush.bf16.msrb.mxu1 %v12460_v54  ;;  %v16226_v24 = vld [vmem:[#allocation31 + $0x58c] sm:$0xf]  ;;  %v11056_v58 = vor.u32 %v16098_v50, %v11053_v51  ;;  %v11251_v50 = vld [vmem:[#allocation31 + $0x310] sm:$0xf] }
 0x456   :  { %v11565_v54 = vld [vmem:[#allocation31 + $0x5c8] sm:$0xf0]  ;;  %v16155_v51 = vld [vmem:[#allocation31 + $0x34c] sm:$0xf0] }
 0x457   :  { %v11568_v59 = vor.u32 %v16226_v24, %v11565_v54  ;;  %v16322_v11 = vld [vmem:[#allocation31 + $0x88c] sm:$0xf]  ;;  %v11763_v24 = vld [vmem:[#allocation31 + $0x710] sm:$0xf] }
 0x458   :  { %5051 = vmatpush.bf16.msra.mxu2 %v10860_v63  ;;  %5064 = vmatpush.bf16.msra.mxu3 %v11372_v0  ;;  %v12592_v63 = vor.u32 %v16482_v56, %v12589_v57  ;;  %v16210_v0 = vld [vmem:[#allocation31 + $0x50c] sm:$0xf]  ;;  %v16283_v54 = vld [vmem:[#allocation31 + $0x74c] sm:$0xf0] }
 0x459   :  { %5077 = vmatpush.bf16.msrb.mxu0 %v11884_v3  ;;  %5090 = vmatpush.bf16.msrb.mxu1 %v12396_v4  ;;  %v16466_v3 = vld [vmem:[#allocation31 + $0xd0c] sm:$0xf]  ;;  %v12787_v56 = vld [vmem:[#allocation31 + $0xf10] sm:$0xf] }
 0x45a   :  { %v12525_v4 = vld [vmem:[#allocation31 + $0xd48] sm:$0xf0]  ;;  %v16539_v57 = vld [vmem:[#allocation31 + $0xf4c] sm:$0xf0] }
 0x45b   :  { %5052 = vmatmul.bf16.vlgmr.msra.gmra.mxu2 %v17576_v42  ;;  %5065 = vmatmul.bf16.vlgmr.msra.gmra.mxu3 %v17578_v43  ;;  %v11949_v12 = vld [vmem:[#allocation31 + $0x8c8] sm:$0xf0]  ;;  %v11635_v9 = vld [vmem:[#allocation31 + $0x610] sm:$0xf] }
 0x45c   :  { %5096 = vmatpush.bf16.msrb.mxu2 %v11312_v5  ;;  %5109 = vmatpush.bf16.msrb.mxu3 %v11824_v16  ;;  %v10992_v5 = vor.u32 %v16082_v60, %v10989_v61  ;;  %v11504_v16 = vor.u32 %v16210_v0, %v11501_v1  ;;  %v16450_v13 = vld [vmem:[#allocation31 + $0xc8c] sm:$0xf]  ;;  %v11952_v29 = vor.u32 %v16322_v11, %v11949_v12  ;;  %v11187_v60 = vld [vmem:[#allocation31 + $0x290] sm:$0xf] }
 0x45d   :  { %5122 = vmatpush.bf16.msra.mxu0 %v12336_v8  ;;  %5135 = vmatpush.bf16.msra.mxu1 %v12848_v19  ;;  %v12016_v8 = vor.u32 %v16338_v15, %v12013_v2  ;;  %v12528_v19 = vor.u32 %v16466_v3, %v12525_v4  ;;  %v12461_v17 = vld [vmem:[#allocation31 + $0xcc8] sm:$0xf0]  ;;  %v16139_v61 = vld [vmem:[#allocation31 + $0x2cc] sm:$0xf0] }
 0x45e   :  { %5078 = vmatmul.bf16.vlgmr.msrb.gmra.mxu0 %v17580_v44  ;;  %5091 = vmatmul.bf16.vlgmr.msrb.gmra.mxu1 %v17582_v47  ;;  %v10861_v26 = vld [vmem:[#allocation31 + $0x48] sm:$0xf0]  ;;  %v12464_v30 = vor.u32 %v16450_v13, %v12461_v17  ;;  %v11699_v0 = vld [vmem:[#allocation31 + $0x690] sm:$0xf] }
 0x45f   :  { %v16306_v31 = vld [vmem:[#allocation31 + $0x80c] sm:$0xf]  ;;  %v16267_v1 = vld [vmem:[#allocation31 + $0x6cc] sm:$0xf0] }
 0x460   :  { %5097 = vmatpush.bf16.msrb.mxu2 %v11248_v21  ;;  %5110 = vmatpush.bf16.msrb.mxu3 %v11760_v22  ;;  %v16050_v21 = vld [vmem:[#allocation31 + $0xc] sm:$0xf]  ;;  %v10928_v22 = vor.u32 %v16066_v6, %v10925_v7  ;;  %v12211_v15 = vld [vmem:[#allocation31 + $0xa90] sm:$0xf] }
 0x461   :  { %5123 = vmatpush.bf16.msra.mxu0 %v12272_v27  ;;  %5136 = vmatpush.bf16.msra.mxu1 %v12784_v28  ;;  %v16178_v27 = vld [vmem:[#allocation31 + $0x40c] sm:$0xf]  ;;  %v16395_v2 = vld [vmem:[#allocation31 + $0xacc] sm:$0xf0] }
 0x462   :  { %v11373_v28 = vld [vmem:[#allocation31 + $0x448] sm:$0xf0]  ;;  %v12723_v3 = vld [vmem:[#allocation31 + $0xe90] sm:$0xf] }
 0x463   :  { %v11885_v32 = vld [vmem:[#allocation31 + $0x848] sm:$0xf0]  ;;  %v11376_v40 = vor.u32 %v16178_v27, %v11373_v28  ;;  %v16523_v4 = vld [vmem:[#allocation31 + $0xecc] sm:$0xf0] }
 0x464   :  { %5098 = vmatpush.bf16.msrb.mxu2 %v11184_v34  ;;  %5111 = vmatpush.bf16.msrb.mxu3 %v11696_v35  ;;  %v16434_v18 = vld [vmem:[#allocation31 + $0xc0c] sm:$0xf]  ;;  %v11315_v34 = vld [vmem:[#allocation31 + $0x390] sm:$0xf]  ;;  %v11888_v14 = vor.u32 %v16306_v31, %v11885_v32 }
 0x465   :  { %5124 = vmatpush.bf16.msra.mxu0 %v12208_v38  ;;  %5137 = vmatpush.bf16.msra.mxu1 %v12720_v39  ;;  %v12397_v33 = vld [vmem:[#allocation31 + $0xc48] sm:$0xf0]  ;;  %v16171_v35 = vld [vmem:[#allocation31 + $0x3cc] sm:$0xf0]  ;;  %v10864_v39 = vor.u32 %v16050_v21, %v10861_v26 }
 0x466   :  { %v12339_v38 = vld [vmem:[#allocation31 + $0xb90] sm:$0xf]  ;;  %v12400_v20 = vor.u32 %v16434_v18, %v12397_v33 }
 0x467   :  { %v11123_v6 = vld [vmem:[#allocation31 + $0x210] sm:$0xf] }
 0x468   :  { %5099 = vmatpush.bf16.msrb.mxu2 %v11120_v48  ;;  %5112 = vmatpush.bf16.msrb.mxu3 %v11632_v49  ;;  %v11316_v48 = vor.u32 %v16171_v35, %v11315_v34  ;;  %v11828_v49 = vor.u32 %v16299_v37, %v11827_v36  ;;  %v16123_v7 = vld [vmem:[#allocation31 + $0x24c] sm:$0xf0] }
 0x469   :  { %5125 = vmatpush.bf16.msra.mxu0 %v12144_v52  ;;  %5138 = vmatpush.bf16.msra.mxu1 %v12656_v53  ;;  %v12340_v52 = vor.u32 %v16427_v41, %v12339_v38  ;;  %v12852_v53 = vor.u32 %v16555_v46, %v12851_v45  ;;  %v16251_v10 = vld [vmem:[#allocation31 + $0x64c] sm:$0xf0]  ;;  %v11124_v21 = vor.u32 %v16123_v7, %v11123_v6  ;;  %v16291_v6 = vld [vmem:[#allocation31 + $0x794] sm:$0xf] }
 0x46a   :  { %v12147_v11 = vld [vmem:[#allocation31 + $0xa10] sm:$0xf]  ;;  %v11829_v7 = vld [vmem:[#allocation31 + $0x7d0] sm:$0xf0] }
 0x46b   :  { %v16379_v12 = vld [vmem:[#allocation31 + $0xa4c] sm:$0xf0] }
 0x46c   :  { %5100 = vmatpush.bf16.msrb.mxu2 %v11056_v58  ;;  %5113 = vmatpush.bf16.msrb.mxu3 %v11568_v59  ;;  %v11252_v58 = vor.u32 %v16155_v51, %v11251_v50  ;;  %v11764_v59 = vor.u32 %v16283_v54, %v11763_v24  ;;  %v12659_v13 = vld [vmem:[#allocation31 + $0xe10] sm:$0xf]  ;;  %v12148_v27 = vor.u32 %v16379_v12, %v12147_v11  ;;  %v16547_v11 = vld [vmem:[#allocation31 + $0xf94] sm:$0xf] }
 0x46d   :  { %5126 = vmatpush.bf16.msra.mxu0 %v12080_v62  ;;  %5139 = vmatpush.bf16.msra.mxu1 %v12592_v63  ;;  %v12276_v62 = vor.u32 %v16411_v23, %v12275_v55  ;;  %v12788_v63 = vor.u32 %v16539_v57, %v12787_v56  ;;  %v16507_v17 = vld [vmem:[#allocation31 + $0xe4c] sm:$0xf0]  ;;  %v12853_v12 = vld [vmem:[#allocation31 + $0xfd0] sm:$0xf0] }
 0x46e   :  { %v16107_v26 = vld [vmem:[#allocation31 + $0x1cc] sm:$0xf0]  ;;  %v12660_v28 = vor.u32 %v16507_v17, %v12659_v13 }
 0x46f   :  { %v12083_v31 = vld [vmem:[#allocation31 + $0x990] sm:$0xf] }
 0x470   :  { %5101 = vmatpush.bf16.msrb.mxu2 %v10992_v5  ;;  %5114 = vmatpush.bf16.msrb.mxu3 %v11504_v16  ;;  %v11188_v5 = vor.u32 %v16139_v61, %v11187_v60  ;;  %v11700_v16 = vor.u32 %v16267_v1, %v11699_v0  ;;  %v16363_v32 = vld [vmem:[#allocation31 + $0x9cc] sm:$0xf0] }
 0x471   :  { %5127 = vmatpush.bf16.msra.mxu0 %v12016_v8  ;;  %5140 = vmatpush.bf16.msra.mxu1 %v12528_v19  ;;  %v12212_v8 = vor.u32 %v16395_v2, %v12211_v15  ;;  %v12724_v19 = vor.u32 %v16523_v4, %v12723_v3  ;;  %v12595_v18 = vld [vmem:[#allocation31 + $0xd90] sm:$0xf]  ;;  %v12084_v38 = vor.u32 %v16363_v32, %v12083_v31  ;;  %v16403_v31 = vld [vmem:[#allocation31 + $0xb14] sm:$0xf] }
 0x472   :  { %v16491_v33 = vld [vmem:[#allocation31 + $0xdcc] sm:$0xf0]  ;;  %v12277_v32 = vld [vmem:[#allocation31 + $0xb50] sm:$0xf0] }
 0x473   :  { %v10995_v36 = vld [vmem:[#allocation31 + $0x110] sm:$0xf] }
 0x474   :  { %5102 = vmatpush.bf16.msrb.mxu2 %v10928_v22  ;;  %5115 = vmatpush.bf16.msrb.mxu3 %v11440_v25  ;;  %v11636_v22 = vor.u32 %v16251_v10, %v11635_v9  ;;  %v11059_v25 = vld [vmem:[#allocation31 + $0x190] sm:$0xf]  ;;  %v12341_v10 = vld [vmem:[#allocation31 + $0xbd0] sm:$0xf0] }
 0x475   :  { %5128 = vmatpush.bf16.msra.mxu0 %v11952_v29  ;;  %5141 = vmatpush.bf16.msra.mxu1 %v12464_v30  ;;  %v11571_v29 = vld [vmem:[#allocation31 + $0x590] sm:$0xf]  ;;  %v11060_v34 = vor.u32 %v16107_v26, %v11059_v25  ;;  %v16147_v25 = vld [vmem:[#allocation31 + $0x314] sm:$0xf] }
 0x476   :  { %v16235_v30 = vld [vmem:[#allocation31 + $0x5cc] sm:$0xf0]  ;;  %v11253_v26 = vld [vmem:[#allocation31 + $0x350] sm:$0xf0] }
 0x477   :  { %v11572_v35 = vor.u32 %v16235_v30, %v11571_v29  ;;  %v16091_v37 = vld [vmem:[#allocation31 + $0x14c] sm:$0xf0]  ;;  %v16275_v29 = vld [vmem:[#allocation31 + $0x714] sm:$0xf] }
 0x478   :  { %5103 = vmatpush.bf16.msrb.mxu2 %v10864_v39  ;;  %5116 = vmatpush.bf16.msrb.mxu3 %v11376_v40  ;;  %v12596_v39 = vor.u32 %v16491_v33, %v12595_v18  ;;  %v11507_v40 = vld [vmem:[#allocation31 + $0x510] sm:$0xf]  ;;  %v11765_v30 = vld [vmem:[#allocation31 + $0x750] sm:$0xf0] }
 0x479   :  { %5129 = vmatpush.bf16.msra.mxu0 %v11888_v14  ;;  %5142 = vmatpush.bf16.msra.mxu1 %v12400_v20  ;;  %v16219_v41 = vld [vmem:[#allocation31 + $0x54c] sm:$0xf0]  ;;  %v16531_v18 = vld [vmem:[#allocation31 + $0xf14] sm:$0xf] }
 0x47a   :  { %v12019_v45 = vld [vmem:[#allocation31 + $0x910] sm:$0xf]  ;;  %v12789_v33 = vld [vmem:[#allocation31 + $0xf50] sm:$0xf0] }
 0x47b   :  { %5104 = vmatmul.bf16.vlgmr.msrb.gmra.mxu2 %v17576_v42  ;;  %5117 = vmatmul.bf16.vlgmr.msrb.gmra.mxu3 %v17578_v43  ;;  %v16347_v46 = vld [vmem:[#allocation31 + $0x94c] sm:$0xf0] }
 0x47c   :  { %5148 = vmatpush.bf16.msra.mxu2 %v11316_v48  ;;  %5161 = vmatpush.bf16.msra.mxu3 %v11828_v49  ;;  %v12531_v14 = vld [vmem:[#allocation31 + $0xd10] sm:$0xf]  ;;  %v10996_v48 = vor.u32 %v16091_v37, %v10995_v36  ;;  %v11508_v49 = vor.u32 %v16219_v41, %v11507_v40  ;;  %v16131_v36 = vld [vmem:[#allocation31 + $0x294] sm:$0xf] }
 0x47d   :  { %5174 = vmatpush.bf16.msrb.mxu0 %v12340_v52  ;;  %5187 = vmatpush.bf16.msrb.mxu1 %v12852_v53  ;;  %v16475_v20 = vld [vmem:[#allocation31 + $0xd4c] sm:$0xf0]  ;;  %v12020_v52 = vor.u32 %v16347_v46, %v12019_v45  ;;  %v11189_v37 = vld [vmem:[#allocation31 + $0x2d0] sm:$0xf0] }
 0x47e   :  { %5130 = vmatmul.bf16.vlgmr.msra.gmra.mxu0 %v17580_v44  ;;  %5143 = vmatmul.bf16.vlgmr.msra.gmra.mxu1 %v17582_v47  ;;  %v10931_v50 = vld [vmem:[#allocation31 + $0x90] sm:$0xf]  ;;  %v12532_v53 = vor.u32 %v16475_v20, %v12531_v14  ;;  %v16259_v40 = vld [vmem:[#allocation31 + $0x694] sm:$0xf] }
 0x47f   :  { %v16075_v51 = vld [vmem:[#allocation31 + $0xcc] sm:$0xf0]  ;;  %v11701_v41 = vld [vmem:[#allocation31 + $0x6d0] sm:$0xf0] }
 0x480   :  { %5149 = vmatpush.bf16.msra.mxu2 %v11252_v58  ;;  %5162 = vmatpush.bf16.msra.mxu3 %v11764_v59  ;;  %v11443_v24 = vld [vmem:[#allocation31 + $0x490] sm:$0xf]  ;;  %v10932_v59 = vor.u32 %v16075_v51, %v10931_v50  ;;  %v16387_v45 = vld [vmem:[#allocation31 + $0xa94] sm:$0xf] }
 0x481   :  { %5175 = vmatpush.bf16.msrb.mxu0 %v12276_v62  ;;  %5188 = vmatpush.bf16.msrb.mxu1 %v12788_v63  ;;  %v16203_v54 = vld [vmem:[#allocation31 + $0x4cc] sm:$0xf0]  ;;  %v12213_v46 = vld [vmem:[#allocation31 + $0xad0] sm:$0xf0] }
 0x482   :  { %v11955_v55 = vld [vmem:[#allocation31 + $0x890] sm:$0xf]  ;;  %v11444_v60 = vor.u32 %v16203_v54, %v11443_v24  ;;  %v16515_v14 = vld [vmem:[#allocation31 + $0xe94] sm:$0xf] }
 0x483   :  { %v16331_v23 = vld [vmem:[#allocation31 + $0x8cc] sm:$0xf0]  ;;  %v12725_v20 = vld [vmem:[#allocation31 + $0xed0] sm:$0xf0] }
 0x484   :  { %5150 = vmatpush.bf16.msra.mxu2 %v11188_v5  ;;  %5163 = vmatpush.bf16.msra.mxu3 %v11700_v16  ;;  %v12467_v56 = vld [vmem:[#allocation31 + $0xc90] sm:$0xf]  ;;  %v11956_v0 = vor.u32 %v16331_v23, %v11955_v55  ;;  %v16163_v5 = vld [vmem:[#allocation31 + $0x394] sm:$0xf] }
 0x485   :  { %5176 = vmatpush.bf16.msrb.mxu0 %v12212_v8  ;;  %5189 = vmatpush.bf16.msrb.mxu1 %v12724_v19  ;;  %v16459_v57 = vld [vmem:[#allocation31 + $0xccc] sm:$0xf0]  ;;  %v11317_v16 = vld [vmem:[#allocation31 + $0x3d0] sm:$0xf0] }
 0x486   :  { %v10867_v58 = vld [vmem:[#allocation31 + $0x10] sm:$0xf]  ;;  %v12468_v1 = vor.u32 %v16459_v57, %v12467_v56  ;;  %v16419_v8 = vld [vmem:[#allocation31 + $0xb94] sm:$0xf] }
 0x487   :  { %v16059_v61 = vld [vmem:[#allocation31 + $0x4c] sm:$0xf0]  ;;  %v16115_v50 = vld [vmem:[#allocation31 + $0x214] sm:$0xf] }
 0x488   :  { %5151 = vmatpush.bf16.msra.mxu2 %v11124_v21  ;;  %5164 = vmatpush.bf16.msra.mxu3 %v11636_v22  ;;  %v11379_v62 = vld [vmem:[#allocation31 + $0x410] sm:$0xf]  ;;  %v10868_v19 = vor.u32 %v16059_v61, %v10867_v58  ;;  %v11320_v21 = vor.u32 %v16163_v5, %v11317_v16  ;;  %v11832_v22 = vor.u32 %v16291_v6, %v11829_v7  ;;  %v11125_v51 = vld [vmem:[#allocation31 + $0x250] sm:$0xf0] }
 0x489   :  { %5177 = vmatpush.bf16.msrb.mxu0 %v12148_v27  ;;  %5190 = vmatpush.bf16.msrb.mxu1 %v12660_v28  ;;  %v16187_v63 = vld [vmem:[#allocation31 + $0x44c] sm:$0xf0]  ;;  %v12344_v27 = vor.u32 %v16419_v8, %v12341_v10  ;;  %v12856_v28 = vor.u32 %v16547_v11, %v12853_v12  ;;  %v16243_v24 = vld [vmem:[#allocation31 + $0x614] sm:$0xf]  ;;  %v11128_v58 = vor.u32 %v16115_v50, %v11125_v51  ;;  %v11835_v50 = vld [vmem:[#allocation31 + $0x798] sm:$0xf] }
 0x48a   :  { %v11891_v15 = vld [vmem:[#allocation31 + $0x810] sm:$0xf]  ;;  %v11380_v9 = vor.u32 %v16187_v63, %v11379_v62  ;;  %v11637_v54 = vld [vmem:[#allocation31 + $0x650] sm:$0xf0]  ;;  %v16300_v51 = vld [vmem:[#allocation31 + $0x7d4] sm:$0xf0] }
 0x48b   :  { %v16315_v2 = vld [vmem:[#allocation31 + $0x84c] sm:$0xf0]  ;;  %v16371_v55 = vld [vmem:[#allocation31 + $0xa14] sm:$0xf] }
 0x48c   :  { %5152 = vmatpush.bf16.msra.mxu2 %v11060_v34  ;;  %5165 = vmatpush.bf16.msra.mxu3 %v11572_v35  ;;  %v12403_v3 = vld [vmem:[#allocation31 + $0xc10] sm:$0xf]  ;;  %v11892_v13 = vor.u32 %v16315_v2, %v11891_v15  ;;  %v11256_v34 = vor.u32 %v16147_v25, %v11253_v26  ;;  %v11768_v35 = vor.u32 %v16275_v29, %v11765_v30  ;;  %v12149_v23 = vld [vmem:[#allocation31 + $0xa50] sm:$0xf0] }
 0x48d   :  { %5178 = vmatpush.bf16.msrb.mxu0 %v12084_v38  ;;  %5191 = vmatpush.bf16.msrb.mxu1 %v12596_v39  ;;  %v16443_v4 = vld [vmem:[#allocation31 + $0xc4c] sm:$0xf0]  ;;  %v12280_v38 = vor.u32 %v16403_v31, %v12277_v32  ;;  %v12792_v39 = vor.u32 %v16531_v18, %v12789_v33  ;;  %v16499_v56 = vld [vmem:[#allocation31 + $0xe14] sm:$0xf]  ;;  %v12152_v62 = vor.u32 %v16371_v55, %v12149_v23  ;;  %v12859_v55 = vld [vmem:[#allocation31 + $0xf98] sm:$0xf] }
 0x48e   :  { %v12404_v17 = vor.u32 %v16443_v4, %v12403_v3  ;;  %v12661_v57 = vld [vmem:[#allocation31 + $0xe50] sm:$0xf0]  ;;  %v16556_v23 = vld [vmem:[#allocation31 + $0xfd4] sm:$0xf0] }
 0x48f   :  { %v11061_v61 = vld [vmem:[#allocation31 + $0x1d0] sm:$0xf0]  ;;  %v12664_v63 = vor.u32 %v16499_v56, %v12661_v57 }
 0x490   :  { %5153 = vmatpush.bf16.msra.mxu2 %v10996_v48  ;;  %5166 = vmatpush.bf16.msra.mxu3 %v11508_v49  ;;  %v11192_v48 = vor.u32 %v16131_v36, %v11189_v37  ;;  %v11704_v49 = vor.u32 %v16259_v40, %v11701_v41  ;;  %v16355_v15 = vld [vmem:[#allocation31 + $0x994] sm:$0xf] }
 0x491   :  { %5179 = vmatpush.bf16.msrb.mxu0 %v12020_v52  ;;  %5192 = vmatpush.bf16.msrb.mxu1 %v12532_v53  ;;  %v12216_v52 = vor.u32 %v16387_v45, %v12213_v46  ;;  %v12728_v53 = vor.u32 %v16515_v14, %v12725_v20  ;;  %v12085_v2 = vld [vmem:[#allocation31 + $0x9d0] sm:$0xf0] }
 0x492   :  { %v16483_v3 = vld [vmem:[#allocation31 + $0xd94] sm:$0xf]  ;;  %v12088_v8 = vor.u32 %v16355_v15, %v12085_v2  ;;  %v12283_v15 = vld [vmem:[#allocation31 + $0xb18] sm:$0xf] }
 0x493   :  { %v12597_v4 = vld [vmem:[#allocation31 + $0xdd0] sm:$0xf0]  ;;  %v16412_v2 = vld [vmem:[#allocation31 + $0xb54] sm:$0xf0] }
 0x494   :  { %5154 = vmatpush.bf16.msra.mxu2 %v10932_v59  ;;  %5167 = vmatpush.bf16.msra.mxu3 %v11444_v60  ;;  %v11640_v59 = vor.u32 %v16243_v24, %v11637_v54  ;;  %v16099_v60 = vld [vmem:[#allocation31 + $0x194] sm:$0xf]  ;;  %v16428_v54 = vld [vmem:[#allocation31 + $0xbd4] sm:$0xf0] }
 0x495   :  { %5180 = vmatpush.bf16.msrb.mxu0 %v11956_v0  ;;  %5193 = vmatpush.bf16.msrb.mxu1 %v12468_v1  ;;  %v16227_v0 = vld [vmem:[#allocation31 + $0x594] sm:$0xf]  ;;  %v11064_v5 = vor.u32 %v16099_v60, %v11061_v61  ;;  %v11259_v60 = vld [vmem:[#allocation31 + $0x318] sm:$0xf] }
 0x496   :  { %v11573_v1 = vld [vmem:[#allocation31 + $0x5d0] sm:$0xf0]  ;;  %v16156_v61 = vld [vmem:[#allocation31 + $0x354] sm:$0xf0] }
 0x497   :  { %v11576_v16 = vor.u32 %v16227_v0, %v11573_v1  ;;  %v16083_v6 = vld [vmem:[#allocation31 + $0x114] sm:$0xf]  ;;  %v11771_v0 = vld [vmem:[#allocation31 + $0x718] sm:$0xf] }
 0x498   :  { %5155 = vmatpush.bf16.msra.mxu2 %v10868_v19  ;;  %5168 = vmatpush.bf16.msra.mxu3 %v11380_v9  ;;  %v10997_v7 = vld [vmem:[#allocation31 + $0x150] sm:$0xf0]  ;;  %v12600_v19 = vor.u32 %v16483_v3, %v12597_v4  ;;  %v16284_v1 = vld [vmem:[#allocation31 + $0x754] sm:$0xf0] }
 0x499   :  { %5181 = vmatpush.bf16.msrb.mxu0 %v11892_v13  ;;  %5194 = vmatpush.bf16.msrb.mxu1 %v12404_v17  ;;  %v16211_v9 = vld [vmem:[#allocation31 + $0x514] sm:$0xf]  ;;  %v12795_v3 = vld [vmem:[#allocation31 + $0xf18] sm:$0xf] }
 0x49a   :  { %v11509_v10 = vld [vmem:[#allocation31 + $0x550] sm:$0xf0]  ;;  %v16540_v4 = vld [vmem:[#allocation31 + $0xf54] sm:$0xf0] }
 0x49b   :  { %5156 = vmatmul.bf16.vlgmr.msra.gmra.mxu2 %v17576_v42  ;;  %5169 = vmatmul.bf16.vlgmr.msra.gmra.mxu3 %v17578_v43  ;;  %v16339_v11 = vld [vmem:[#allocation31 + $0x914] sm:$0xf] }
 0x49c   :  { %5200 = vmatpush.bf16.msrb.mxu2 %v11320_v21  ;;  %5213 = vmatpush.bf16.msrb.mxu3 %v11832_v22  ;;  %v12021_v12 = vld [vmem:[#allocation31 + $0x950] sm:$0xf0]  ;;  %v11000_v21 = vor.u32 %v16083_v6, %v10997_v7  ;;  %v11512_v22 = vor.u32 %v16211_v9, %v11509_v10  ;;  %v11195_v6 = vld [vmem:[#allocation31 + $0x298] sm:$0xf] }
 0x49d   :  { %5226 = vmatpush.bf16.msra.mxu0 %v12344_v27  ;;  %5239 = vmatpush.bf16.msra.mxu1 %v12856_v28  ;;  %v16467_v13 = vld [vmem:[#allocation31 + $0xd14] sm:$0xf]  ;;  %v12024_v27 = vor.u32 %v16339_v11, %v12021_v12  ;;  %v16140_v7 = vld [vmem:[#allocation31 + $0x2d4] sm:$0xf0] }
 0x49e   :  { %5182 = vmatmul.bf16.vlgmr.msrb.gmra.mxu0 %v17580_v44  ;;  %5195 = vmatmul.bf16.vlgmr.msrb.gmra.mxu1 %v17582_v47  ;;  %v12533_v17 = vld [vmem:[#allocation31 + $0xd50] sm:$0xf0]  ;;  %v11707_v9 = vld [vmem:[#allocation31 + $0x698] sm:$0xf] }
 0x49f   :  { %v16067_v25 = vld [vmem:[#allocation31 + $0x94] sm:$0xf]  ;;  %v12536_v28 = vor.u32 %v16467_v13, %v12533_v17  ;;  %v16268_v10 = vld [vmem:[#allocation31 + $0x6d4] sm:$0xf0] }
 0x4a0   :  { %5201 = vmatpush.bf16.msrb.mxu2 %v11256_v34  ;;  %5214 = vmatpush.bf16.msrb.mxu3 %v11768_v35  ;;  %v10933_v26 = vld [vmem:[#allocation31 + $0xd0] sm:$0xf0]  ;;  %v12219_v11 = vld [vmem:[#allocation31 + $0xa98] sm:$0xf] }
 0x4a1   :  { %5227 = vmatpush.bf16.msra.mxu0 %v12280_v38  ;;  %5240 = vmatpush.bf16.msra.mxu1 %v12792_v39  ;;  %v16195_v29 = vld [vmem:[#allocation31 + $0x494] sm:$0xf]  ;;  %v10936_v35 = vor.u32 %v16067_v25, %v10933_v26  ;;  %v16396_v12 = vld [vmem:[#allocation31 + $0xad4] sm:$0xf0] }
 0x4a2   :  { %v11445_v30 = vld [vmem:[#allocation31 + $0x4d0] sm:$0xf0]  ;;  %v12731_v13 = vld [vmem:[#allocation31 + $0xe98] sm:$0xf] }
 0x4a3   :  { %v16323_v31 = vld [vmem:[#allocation31 + $0x894] sm:$0xf]  ;;  %v11448_v36 = vor.u32 %v16195_v29, %v11445_v30  ;;  %v16524_v17 = vld [vmem:[#allocation31 + $0xed4] sm:$0xf0]  ;;  %v12220_v29 = vor.u32 %v16396_v12, %v12219_v11 }
 0x4a4   :  { %5202 = vmatpush.bf16.msrb.mxu2 %v11192_v48  ;;  %5215 = vmatpush.bf16.msrb.mxu3 %v11704_v49  ;;  %v11957_v32 = vld [vmem:[#allocation31 + $0x8d0] sm:$0xf0]  ;;  %v11323_v48 = vld [vmem:[#allocation31 + $0x398] sm:$0xf]  ;;  %v12732_v30 = vor.u32 %v16524_v17, %v12731_v13 }
 0x4a5   :  { %5228 = vmatpush.bf16.msra.mxu0 %v12216_v52  ;;  %5241 = vmatpush.bf16.msra.mxu1 %v12728_v53  ;;  %v16451_v18 = vld [vmem:[#allocation31 + $0xc94] sm:$0xf]  ;;  %v11960_v40 = vor.u32 %v16323_v31, %v11957_v32  ;;  %v16172_v49 = vld [vmem:[#allocation31 + $0x3d4] sm:$0xf0] }
 0x4a6   :  { %v12469_v33 = vld [vmem:[#allocation31 + $0xcd0] sm:$0xf0]  ;;  %v12347_v52 = vld [vmem:[#allocation31 + $0xb98] sm:$0xf] }
 0x4a7   :  { %v16051_v34 = vld [vmem:[#allocation31 + $0x14] sm:$0xf]  ;;  %v12472_v41 = vor.u32 %v16451_v18, %v12469_v33  ;;  %v11643_v31 = vld [vmem:[#allocation31 + $0x618] sm:$0xf] }
 0x4a8   :  { %5203 = vmatpush.bf16.msrb.mxu2 %v11128_v58  ;;  %5216 = vmatpush.bf16.msrb.mxu3 %v11640_v59  ;;  %v10869_v37 = vld [vmem:[#allocation31 + $0x50] sm:$0xf0]  ;;  %v11324_v58 = vor.u32 %v16172_v49, %v11323_v48  ;;  %v11836_v59 = vor.u32 %v16300_v51, %v11835_v50  ;;  %v16252_v32 = vld [vmem:[#allocation31 + $0x654] sm:$0xf0] }
 0x4a9   :  { %5229 = vmatpush.bf16.msra.mxu0 %v12152_v62  ;;  %5242 = vmatpush.bf16.msra.mxu1 %v12664_v63  ;;  %v16179_v38 = vld [vmem:[#allocation31 + $0x414] sm:$0xf]  ;;  %v10872_v53 = vor.u32 %v16051_v34, %v10869_v37  ;;  %v12348_v62 = vor.u32 %v16428_v54, %v12347_v52  ;;  %v12860_v63 = vor.u32 %v16556_v23, %v12859_v55  ;;  %v12155_v18 = vld [vmem:[#allocation31 + $0xa18] sm:$0xf] }
 0x4aa   :  { %v11381_v39 = vld [vmem:[#allocation31 + $0x450] sm:$0xf0]  ;;  %v16380_v33 = vld [vmem:[#allocation31 + $0xa54] sm:$0xf0]  ;;  %v11644_v37 = vor.u32 %v16252_v32, %v11643_v31 }
 0x4ab   :  { %v16307_v45 = vld [vmem:[#allocation31 + $0x814] sm:$0xf]  ;;  %v11384_v24 = vor.u32 %v16179_v38, %v11381_v39  ;;  %v12667_v34 = vld [vmem:[#allocation31 + $0xe18] sm:$0xf] }
 0x4ac   :  { %5204 = vmatpush.bf16.msrb.mxu2 %v11064_v5  ;;  %5217 = vmatpush.bf16.msrb.mxu3 %v11576_v16  ;;  %v11893_v46 = vld [vmem:[#allocation31 + $0x850] sm:$0xf0]  ;;  %v11260_v5 = vor.u32 %v16156_v61, %v11259_v60  ;;  %v11772_v16 = vor.u32 %v16284_v1, %v11771_v0  ;;  %v11067_v38 = vld [vmem:[#allocation31 + $0x198] sm:$0xf] }
 0x4ad   :  { %5230 = vmatpush.bf16.msra.mxu0 %v12088_v8  ;;  %5243 = vmatpush.bf16.msra.mxu1 %v12600_v19  ;;  %v16435_v14 = vld [vmem:[#allocation31 + $0xc14] sm:$0xf]  ;;  %v11896_v56 = vor.u32 %v16307_v45, %v11893_v46  ;;  %v12284_v8 = vor.u32 %v16412_v2, %v12283_v15  ;;  %v12796_v19 = vor.u32 %v16540_v4, %v12795_v3  ;;  %v16108_v39 = vld [vmem:[#allocation31 + $0x1d4] sm:$0xf0] }
 0x4ae   :  { %v12405_v20 = vld [vmem:[#allocation31 + $0xc50] sm:$0xf0]  ;;  %v12091_v48 = vld [vmem:[#allocation31 + $0x998] sm:$0xf] }
 0x4af   :  { %v12408_v57 = vor.u32 %v16435_v14, %v12405_v20  ;;  %v11579_v14 = vld [vmem:[#allocation31 + $0x598] sm:$0xf] }
 0x4b0   :  { %5205 = vmatpush.bf16.msrb.mxu2 %v11000_v21  ;;  %5218 = vmatpush.bf16.msrb.mxu3 %v11512_v22  ;;  %v11196_v21 = vor.u32 %v16140_v7, %v11195_v6  ;;  %v11708_v22 = vor.u32 %v16268_v10, %v11707_v9  ;;  %v16236_v20 = vld [vmem:[#allocation31 + $0x5d4] sm:$0xf0] }
 0x4b1   :  { %5231 = vmatpush.bf16.msra.mxu0 %v12024_v27  ;;  %5244 = vmatpush.bf16.msra.mxu1 %v12536_v28  ;;  %v11131_v27 = vld [vmem:[#allocation31 + $0x218] sm:$0xf]  ;;  %v11580_v54 = vor.u32 %v16236_v20, %v11579_v14  ;;  %v12861_v14 = vld [vmem:[#allocation31 + $0xfd8] sm:$0xf0] }
 0x4b2   :  { %v16124_v28 = vld [vmem:[#allocation31 + $0x254] sm:$0xf0] }
 0x4b3   :  { %v16364_v50 = vld [vmem:[#allocation31 + $0x9d4] sm:$0xf0] }
 0x4b4   :  { %5206 = vmatpush.bf16.msrb.mxu2 %v10936_v35  ;;  %5219 = vmatpush.bf16.msrb.mxu3 %v11448_v36  ;;  %v16508_v35 = vld [vmem:[#allocation31 + $0xe54] sm:$0xf0]  ;;  %v11132_v36 = vor.u32 %v16124_v28, %v11131_v27 }
 0x4b5   :  { %5232 = vmatpush.bf16.msra.mxu0 %v11960_v40  ;;  %5245 = vmatpush.bf16.msra.mxu1 %v12472_v41  ;;  %v12156_v40 = vor.u32 %v16380_v33, %v12155_v18  ;;  %v12668_v41 = vor.u32 %v16508_v35, %v12667_v34  ;;  %v12603_v51 = vld [vmem:[#allocation31 + $0xd98] sm:$0xf]  ;;  %v16164_v35 = vld [vmem:[#allocation31 + $0x39c] sm:$0xf] }
 0x4b6   :  { %v16492_v52 = vld [vmem:[#allocation31 + $0xdd4] sm:$0xf0] }
 0x4b7   :  { %v11515_v60 = vld [vmem:[#allocation31 + $0x518] sm:$0xf] }
 0x4b8   :  { %5207 = vmatpush.bf16.msrb.mxu2 %v10872_v53  ;;  %5220 = vmatpush.bf16.msrb.mxu3 %v11384_v24  ;;  %v4975_v25 = vpop.f32.mrf.mxu0  ;;  %v4988_v26 = vpop.f32.mrf.mxu1  ;;  %v11068_v24 = vor.u32 %v16108_v39, %v11067_v38  ;;  %v16220_v61 = vld [vmem:[#allocation31 + $0x554] sm:$0xf0]  ;;  %v11837_v38 = vld [vmem:[#allocation31 + $0x7d8] sm:$0xf0] }
 0x4b9   :  { %5233 = vmatpush.bf16.msra.mxu0 %v11896_v56  ;;  %5246 = vmatpush.bf16.msra.mxu1 %v12408_v57  ;;  %v11003_v56 = vld [vmem:[#allocation31 + $0x118] sm:$0xf]  ;;  %v11516_v3 = vor.u32 %v16220_v61, %v11515_v60  ;;  %v16420_v39 = vld [vmem:[#allocation31 + $0xb9c] sm:$0xf] }
 0x4ba   :  { %v16092_v57 = vld [vmem:[#allocation31 + $0x154] sm:$0xf0] }
 0x4bb   :  { %5208 = vmatmul.bf16.vlgmr.msrb.gmra.mxu2 %v17576_v42  ;;  %5221 = vmatmul.bf16.vlgmr.msrb.gmra.mxu3 %v17578_v43  ;;  %v12539_v0 = vld [vmem:[#allocation31 + $0xd18] sm:$0xf]  ;;  %v11004_v2 = vor.u32 %v16092_v57, %v11003_v56  ;;  %v16276_v56 = vld [vmem:[#allocation31 + $0x71c] sm:$0xf] }
 0x4bc   :  { %5252 = vmatpush.bf16.msra.mxu2 %v11324_v58  ;;  %5265 = vmatpush.bf16.msra.mxu3 %v11836_v59  ;;  %v12092_v58 = vor.u32 %v16364_v50, %v12091_v48  ;;  %v12604_v59 = vor.u32 %v16492_v52, %v12603_v51  ;;  %v16476_v1 = vld [vmem:[#allocation31 + $0xd54] sm:$0xf0]  ;;  %v11773_v57 = vld [vmem:[#allocation31 + $0x758] sm:$0xf0] }
 0x4bd   :  { %5278 = vmatpush.bf16.msrb.mxu0 %v12348_v62  ;;  %5291 = vmatpush.bf16.msrb.mxu1 %v12860_v63  ;;  %v4949_v45 = vpop.f32.mrf.mxu2  ;;  %v4962_v46 = vpop.f32.mrf.mxu3  ;;  %v12027_v62 = vld [vmem:[#allocation31 + $0x918] sm:$0xf]  ;;  %v12540_v6 = vor.u32 %v16476_v1, %v12539_v0  ;;  %v12797_v0 = vld [vmem:[#allocation31 + $0xf58] sm:$0xf0] }
 0x4be   :  { %5234 = vmatmul.bf16.vlgmr.msra.gmra.mxu0 %v17580_v44  ;;  %5247 = vmatmul.bf16.vlgmr.msra.gmra.mxu1 %v17582_v47  ;;  %v4963_v49 = vadd.f32 %v4962_v46, %v4949_v45  ;;  %v16348_v63 = vld [vmem:[#allocation31 + $0x954] sm:$0xf0]  ;;  %v12349_v45 = vld [vmem:[#allocation31 + $0xbd8] sm:$0xf0] }
 0x4bf   :  { %v10939_v4 = vld [vmem:[#allocation31 + $0x98] sm:$0xf]  ;;  %v16548_v46 = vld [vmem:[#allocation31 + $0xf9c] sm:$0xf] }
 0x4c0   :  { %5253 = vmatpush.bf16.msra.mxu2 %v11260_v5  ;;  %5266 = vmatpush.bf16.msra.mxu3 %v11772_v16  ;;  %v4976_v53 = vadd.f32 %v4975_v25, %v4963_v49  ;;  %v4977_v55 = vpop.f32.mrf.mxu0  ;;  %v4990_v23 = vpop.f32.mrf.mxu1  ;;  %v16076_v5 = vld [vmem:[#allocation31 + $0xd4] sm:$0xf0]  ;;  %v12028_v16 = vor.u32 %v16348_v63, %v12027_v62  ;;  %v12285_v62 = vld [vmem:[#allocation31 + $0xb58] sm:$0xf0] }
 0x4c1   :  { %5279 = vmatpush.bf16.msrb.mxu0 %v12284_v8  ;;  %5292 = vmatpush.bf16.msrb.mxu1 %v12796_v19  ;;  %v11451_v19 = vld [vmem:[#allocation31 + $0x498] sm:$0xf]  ;;  %v12352_v55 = vor.u32 %v16420_v39, %v12349_v45  ;;  %v12864_v23 = vor.u32 %v16548_v46, %v12861_v14  ;;  %v16532_v63 = vld [vmem:[#allocation31 + $0xf1c] sm:$0xf] }
 0x4c2   :  { %v17608_v15 = vadd.f32 %v4988_v26, %v4976_v53  ;;  %v16204_v9 = vld [vmem:[#allocation31 + $0x4d4] sm:$0xf0]  ;;  %v11581_v45 = vld [vmem:[#allocation31 + $0x5d8] sm:$0xf0] }
 0x4c3   :  { %v11963_v10 = vld [vmem:[#allocation31 + $0x898] sm:$0xf]  ;;  %v16356_v46 = vld [vmem:[#allocation31 + $0x99c] sm:$0xf] }
 0x4c4   :  { %5254 = vmatpush.bf16.msra.mxu2 %v11196_v21  ;;  %5267 = vmatpush.bf16.msra.mxu3 %v11708_v22  ;;  %v16332_v11 = vld [vmem:[#allocation31 + $0x8d4] sm:$0xf0]  ;;  %v10940_v21 = vor.u32 %v16076_v5, %v10939_v4  ;;  %v11452_v22 = vor.u32 %v16204_v9, %v11451_v19  ;;  %v11197_v4 = vld [vmem:[#allocation31 + $0x2d8] sm:$0xf0] }
 0x4c5   :  { %5280 = vmatpush.bf16.msrb.mxu0 %v12220_v29  ;;  %5293 = vmatpush.bf16.msrb.mxu1 %v12732_v30  ;;  %v4951_v7 = vpop.f32.mrf.mxu2  ;;  %v4964_v8 = vpop.f32.mrf.mxu3  ;;  %v12475_v12 = vld [vmem:[#allocation31 + $0xc98] sm:$0xf]  ;;  %v11964_v30 = vor.u32 %v16332_v11, %v11963_v10  ;;  %v16388_v19 = vld [vmem:[#allocation31 + $0xa9c] sm:$0xf] }
 0x4c6   :  { %v16460_v13 = vld [vmem:[#allocation31 + $0xcd4] sm:$0xf0]  ;;  %v16260_v7 = vld [vmem:[#allocation31 + $0x69c] sm:$0xf] }
 0x4c7   :  { %v10875_v17 = vld [vmem:[#allocation31 + $0x18] sm:$0xf]  ;;  %v12476_v31 = vor.u32 %v16460_v13, %v12475_v12  ;;  %v11709_v8 = vld [vmem:[#allocation31 + $0x6d8] sm:$0xf0] }
 0x4c8   :  { %5255 = vmatpush.bf16.msra.mxu2 %v11132_v36  ;;  %5268 = vmatpush.bf16.msra.mxu3 %v11644_v37  ;;  %v5027_v25 = vpop.f32.mrf.mxu0  ;;  %v5040_v26 = vpop.f32.mrf.mxu1  ;;  %v16060_v27 = vld [vmem:[#allocation31 + $0x54] sm:$0xf0]  ;;  %v11325_v36 = vld [vmem:[#allocation31 + $0x3d8] sm:$0xf0] }
 0x4c9   :  { %5281 = vmatpush.bf16.msrb.mxu0 %v12156_v40  ;;  %5294 = vmatpush.bf16.msrb.mxu1 %v12668_v41  ;;  %v11387_v28 = vld [vmem:[#allocation31 + $0x418] sm:$0xf]  ;;  %v16292_v37 = vld [vmem:[#allocation31 + $0x79c] sm:$0xf]  ;;  %v10876_v40 = vor.u32 %v16060_v27, %v10875_v17  ;;  %v11328_v51 = vor.u32 %v16164_v35, %v11325_v36 }
 0x4ca   :  { %v16188_v29 = vld [vmem:[#allocation31 + $0x454] sm:$0xf0]  ;;  %v11840_v52 = vor.u32 %v16292_v37, %v11837_v38  ;;  %v12221_v9 = vld [vmem:[#allocation31 + $0xad8] sm:$0xf0] }
 0x4cb   :  { %v11899_v32 = vld [vmem:[#allocation31 + $0x818] sm:$0xf]  ;;  %v11388_v41 = vor.u32 %v16188_v29, %v11387_v28  ;;  %v16516_v10 = vld [vmem:[#allocation31 + $0xe9c] sm:$0xf] }
 0x4cc   :  { %5256 = vmatpush.bf16.msra.mxu2 %v11068_v24  ;;  %5269 = vmatpush.bf16.msra.mxu3 %v11580_v54  ;;  %v16316_v18 = vld [vmem:[#allocation31 + $0x854] sm:$0xf0]  ;;  %v16148_v24 = vld [vmem:[#allocation31 + $0x31c] sm:$0xf] }
 0x4cd   :  { %5282 = vmatpush.bf16.msrb.mxu0 %v12092_v58  ;;  %5295 = vmatpush.bf16.msrb.mxu1 %v12604_v59  ;;  %v12411_v33 = vld [vmem:[#allocation31 + $0xc18] sm:$0xf]  ;;  %v11900_v20 = vor.u32 %v16316_v18, %v11899_v32  ;;  %v5001_v49 = vpop.f32.mrf.mxu2  ;;  %v5014_v50 = vpop.f32.mrf.mxu3  ;;  %v11261_v54 = vld [vmem:[#allocation31 + $0x358] sm:$0xf0] }
 0x4ce   :  { %v16444_v34 = vld [vmem:[#allocation31 + $0xc54] sm:$0xf0]  ;;  %v5015_v53 = vadd.f32 %v5014_v50, %v5001_v49  ;;  %v16404_v58 = vld [vmem:[#allocation31 + $0xb1c] sm:$0xf]  ;;  %v11264_v1 = vor.u32 %v16148_v24, %v11261_v54 }
 0x4cf   :  { %v12412_v48 = vor.u32 %v16444_v34, %v12411_v33  ;;  %v12733_v11 = vld [vmem:[#allocation31 + $0xed8] sm:$0xf0] }
 0x4d0   :  { %5257 = vmatpush.bf16.msra.mxu2 %v11004_v2  ;;  %5270 = vmatpush.bf16.msra.mxu3 %v11516_v3  ;;  %v5028_v59 = vadd.f32 %v5027_v25, %v5015_v53  ;;  %v5029_v60 = vpop.f32.mrf.mxu0  ;;  %v5042_v61 = vpop.f32.mrf.mxu1  ;;  %v11776_v2 = vor.u32 %v16276_v56, %v11773_v57  ;;  %v16132_v3 = vld [vmem:[#allocation31 + $0x29c] sm:$0xf]  ;;  %v12736_v27 = vor.u32 %v16516_v10, %v12733_v11 }
 0x4d1   :  { %5283 = vmatpush.bf16.msrb.mxu0 %v12028_v16  ;;  %5296 = vmatpush.bf16.msrb.mxu1 %v12540_v6  ;;  %v12288_v16 = vor.u32 %v16404_v58, %v12285_v62  ;;  %v12800_v6 = vor.u32 %v16532_v63, %v12797_v0  ;;  %v11200_v17 = vor.u32 %v16132_v3, %v11197_v4  ;;  %v11133_v25 = vld [vmem:[#allocation31 + $0x258] sm:$0xf0] }
 0x4d2   :  { %v17610_v5 = vadd.f32 %v5040_v26, %v5028_v59  ;;  %v12224_v26 = vor.u32 %v16388_v19, %v12221_v9  ;;  %v16244_v28 = vld [vmem:[#allocation31 + $0x61c] sm:$0xf] }
 0x4d3   :  { %v11645_v29 = vld [vmem:[#allocation31 + $0x658] sm:$0xf0] }
 0x4d4   :  { %5258 = vmatpush.bf16.msra.mxu2 %v10940_v21  ;;  %5271 = vmatpush.bf16.msra.mxu3 %v11452_v22  ;;  %v11712_v21 = vor.u32 %v16260_v7, %v11709_v8  ;;  %v16116_v22 = vld [vmem:[#allocation31 + $0x21c] sm:$0xf]  ;;  %v11648_v36 = vor.u32 %v16244_v28, %v11645_v29 }
 0x4d5   :  { %5284 = vmatpush.bf16.msrb.mxu0 %v11964_v30  ;;  %5297 = vmatpush.bf16.msrb.mxu1 %v12476_v31  ;;  %v5003_v12 = vpop.f32.mrf.mxu2  ;;  %v5016_v13 = vpop.f32.mrf.mxu3  ;;  %v16372_v30 = vld [vmem:[#allocation31 + $0xa1c] sm:$0xf]  ;;  %v11136_v35 = vor.u32 %v16116_v22, %v11133_v25 }
 0x4d6   :  { %v12157_v31 = vld [vmem:[#allocation31 + $0xa58] sm:$0xf0] }
 0x4d7   :  { %v16500_v32 = vld [vmem:[#allocation31 + $0xe1c] sm:$0xf]  ;;  %v12160_v39 = vor.u32 %v16372_v30, %v12157_v31 }
 0x4d8   :  { %5259 = vmatpush.bf16.msra.mxu2 %v10876_v40  ;;  %5272 = vmatpush.bf16.msra.mxu3 %v11388_v41  ;;  %v12669_v18 = vld [vmem:[#allocation31 + $0xe58] sm:$0xf0] }
 0x4d9   :  { %5285 = vmatpush.bf16.msrb.mxu0 %v11900_v20  ;;  %5298 = vmatpush.bf16.msrb.mxu1 %v12412_v48  ;;  %v16100_v37 = vld [vmem:[#allocation31 + $0x19c] sm:$0xf]  ;;  %v12672_v40 = vor.u32 %v16500_v32, %v12669_v18 }
 0x4da   :  { %v11069_v38 = vld [vmem:[#allocation31 + $0x1d8] sm:$0xf0] }
 0x4db   :  { %5260 = vmatmul.bf16.vlgmr.msra.gmra.mxu2 %v17576_v42  ;;  %5273 = vmatmul.bf16.vlgmr.msra.gmra.mxu3 %v17578_v43  ;;  %v5079_v33 = vpop.f32.mrf.mxu0  ;;  %v5092_v34 = vpop.f32.mrf.mxu1  ;;  %v16228_v41 = vld [vmem:[#allocation31 + $0x59c] sm:$0xf]  ;;  %v11072_v49 = vor.u32 %v16100_v37, %v11069_v38  ;;  %v16301_v37 = vld [vmem:[#allocation31 + $0x7dc] sm:$0xf0] }
 0x4dc   :  { %5304 = vmatpush.bf16.msrb.mxu2 %v11328_v51  ;;  %5317 = vmatpush.bf16.msrb.mxu3 %v11840_v52  ;;  %v12093_v14 = vld [vmem:[#allocation31 + $0x9d8] sm:$0xf0]  ;;  %v11584_v50 = vor.u32 %v16228_v41, %v11581_v45  ;;  %v12355_v38 = vld [vmem:[#allocation31 + $0xba0] sm:$0xf] }
 0x4dd   :  { %5330 = vmatpush.bf16.msra.mxu0 %v12352_v55  ;;  %5343 = vmatpush.bf16.msra.mxu1 %v12864_v23  ;;  %v16484_v20 = vld [vmem:[#allocation31 + $0xd9c] sm:$0xf]  ;;  %v12096_v53 = vor.u32 %v16356_v46, %v12093_v14  ;;  %v16429_v41 = vld [vmem:[#allocation31 + $0xbdc] sm:$0xf0] }
 0x4de   :  { %5286 = vmatmul.bf16.vlgmr.msrb.gmra.mxu0 %v17580_v44  ;;  %5299 = vmatmul.bf16.vlgmr.msrb.gmra.mxu1 %v17582_v47  ;;  %v12605_v48 = vld [vmem:[#allocation31 + $0xdd8] sm:$0xf0]  ;;  %v5053_v54 = vpop.f32.mrf.mxu2  ;;  %v5066_v55 = vpop.f32.mrf.mxu3  ;;  %v12867_v45 = vld [vmem:[#allocation31 + $0xfa0] sm:$0xf] }
 0x4df   :  { %v16084_v51 = vld [vmem:[#allocation31 + $0x11c] sm:$0xf]  ;;  %v12608_v24 = vor.u32 %v16484_v20, %v12605_v48  ;;  %v5067_v58 = vadd.f32 %v5066_v55, %v5053_v54  ;;  %v16557_v46 = vld [vmem:[#allocation31 + $0xfdc] sm:$0xf0] }
 0x4e0   :  { %5305 = vmatpush.bf16.msrb.mxu2 %v11264_v1  ;;  %5318 = vmatpush.bf16.msrb.mxu3 %v11776_v2  ;;  %v11005_v52 = vld [vmem:[#allocation31 + $0x158] sm:$0xf0]  ;;  %v16285_v54 = vld [vmem:[#allocation31 + $0x75c] sm:$0xf0] }
 0x4e1   :  { %5331 = vmatpush.bf16.msra.mxu0 %v12288_v16  ;;  %5344 = vmatpush.bf16.msra.mxu1 %v12800_v6  ;;  %v16212_v23 = vld [vmem:[#allocation31 + $0x51c] sm:$0xf]  ;;  %v5080_v62 = vadd.f32 %v5079_v33, %v5067_v58  ;;  %v11008_v1 = vor.u32 %v16084_v51, %v11005_v52  ;;  %v16157_v51 = vld [vmem:[#allocation31 + $0x35c] sm:$0xf0]  ;;  %v12356_v52 = vor.u32 %v16429_v41, %v12355_v38 }
 0x4e2   :  { %v11517_v56 = vld [vmem:[#allocation31 + $0x558] sm:$0xf0]  ;;  %v12291_v55 = vld [vmem:[#allocation31 + $0xb20] sm:$0xf] }
 0x4e3   :  { %v16340_v57 = vld [vmem:[#allocation31 + $0x91c] sm:$0xf]  ;;  %v5081_v63 = vpop.f32.mrf.mxu0  ;;  %v5094_v0 = vpop.f32.mrf.mxu1  ;;  %v11520_v2 = vor.u32 %v16212_v23, %v11517_v56  ;;  %v17616_v12 = vadd.f32 %v5092_v34, %v5080_v62  ;;  %v11331_v34 = vld [vmem:[#allocation31 + $0x3a0] sm:$0xf] }
 0x4e4   :  { %5306 = vmatpush.bf16.msrb.mxu2 %v11200_v17  ;;  %5319 = vmatpush.bf16.msrb.mxu3 %v11712_v21  ;;  %v12029_v59 = vld [vmem:[#allocation31 + $0x958] sm:$0xf0]  ;;  %v16413_v23 = vld [vmem:[#allocation31 + $0xb5c] sm:$0xf0] }
 0x4e5   :  { %5332 = vmatpush.bf16.msra.mxu0 %v12224_v26  ;;  %5345 = vmatpush.bf16.msra.mxu1 %v12736_v27  ;;  %v16468_v60 = vld [vmem:[#allocation31 + $0xd1c] sm:$0xf]  ;;  %v12032_v16 = vor.u32 %v16340_v57, %v12029_v59  ;;  %v12803_v56 = vld [vmem:[#allocation31 + $0xf20] sm:$0xf]  ;;  %v12292_v62 = vor.u32 %v16413_v23, %v12291_v55 }
 0x4e6   :  { %v12541_v61 = vld [vmem:[#allocation31 + $0xd58] sm:$0xf0]  ;;  %v5055_v29 = vpop.f32.mrf.mxu2  ;;  %v5068_v30 = vpop.f32.mrf.mxu3  ;;  %v16541_v57 = vld [vmem:[#allocation31 + $0xf5c] sm:$0xf0] }
 0x4e7   :  { %v16068_v3 = vld [vmem:[#allocation31 + $0x9c] sm:$0xf]  ;;  %v12544_v6 = vor.u32 %v16468_v60, %v12541_v61  ;;  %v11203_v60 = vld [vmem:[#allocation31 + $0x2a0] sm:$0xf]  ;;  %v12804_v63 = vor.u32 %v16541_v57, %v12803_v56 }
 0x4e8   :  { %5307 = vmatpush.bf16.msrb.mxu2 %v11136_v35  ;;  %5320 = vmatpush.bf16.msrb.mxu3 %v11648_v36  ;;  %v10941_v4 = vld [vmem:[#allocation31 + $0xd8] sm:$0xf0]  ;;  %v16173_v35 = vld [vmem:[#allocation31 + $0x3dc] sm:$0xf0] }
 0x4e9   :  { %5333 = vmatpush.bf16.msra.mxu0 %v12160_v39  ;;  %5346 = vmatpush.bf16.msra.mxu1 %v12672_v40  ;;  %v16196_v7 = vld [vmem:[#allocation31 + $0x49c] sm:$0xf]  ;;  %v10944_v17 = vor.u32 %v16068_v3, %v10941_v4  ;;  %v11843_v36 = vld [vmem:[#allocation31 + $0x7a0] sm:$0xf]  ;;  %v11332_v48 = vor.u32 %v16173_v35, %v11331_v34 }
 0x4ea   :  { %v11453_v8 = vld [vmem:[#allocation31 + $0x4d8] sm:$0xf0]  ;;  %v16141_v61 = vld [vmem:[#allocation31 + $0x2dc] sm:$0xf0] }
 0x4eb   :  { %v16324_v19 = vld [vmem:[#allocation31 + $0x89c] sm:$0xf]  ;;  %v11456_v21 = vor.u32 %v16196_v7, %v11453_v8  ;;  %v11715_v0 = vld [vmem:[#allocation31 + $0x6a0] sm:$0xf] }
 0x4ec   :  { %5308 = vmatpush.bf16.msrb.mxu2 %v11072_v49  ;;  %5321 = vmatpush.bf16.msrb.mxu3 %v11584_v50  ;;  %v11965_v9 = vld [vmem:[#allocation31 + $0x8d8] sm:$0xf0]  ;;  %v11844_v49 = vor.u32 %v16301_v37, %v11843_v36  ;;  %v11267_v50 = vld [vmem:[#allocation31 + $0x320] sm:$0xf] }
 0x4ed   :  { %5334 = vmatpush.bf16.msra.mxu0 %v12096_v53  ;;  %5347 = vmatpush.bf16.msra.mxu1 %v12608_v24  ;;  %v16452_v10 = vld [vmem:[#allocation31 + $0xc9c] sm:$0xf]  ;;  %v11968_v27 = vor.u32 %v16324_v19, %v11965_v9  ;;  %v12868_v53 = vor.u32 %v16557_v46, %v12867_v45  ;;  %v11779_v24 = vld [vmem:[#allocation31 + $0x720] sm:$0xf]  ;;  %v11268_v58 = vor.u32 %v16157_v51, %v11267_v50 }
 0x4ee   :  { %v12477_v11 = vld [vmem:[#allocation31 + $0xcd8] sm:$0xf0]  ;;  %v11780_v59 = vor.u32 %v16285_v54, %v11779_v24  ;;  %v16397_v3 = vld [vmem:[#allocation31 + $0xadc] sm:$0xf0] }
 0x4ef   :  { %v16052_v13 = vld [vmem:[#allocation31 + $0x1c] sm:$0xf]  ;;  %v12480_v28 = vor.u32 %v16452_v10, %v12477_v11  ;;  %v12739_v4 = vld [vmem:[#allocation31 + $0xea0] sm:$0xf] }
 0x4f0   :  { %5309 = vmatpush.bf16.msrb.mxu2 %v11008_v1  ;;  %5322 = vmatpush.bf16.msrb.mxu3 %v11520_v2  ;;  %v10877_v22 = vld [vmem:[#allocation31 + $0x58] sm:$0xf0]  ;;  %v16269_v1 = vld [vmem:[#allocation31 + $0x6dc] sm:$0xf0] }
 0x4f1   :  { %v16180_v25 = vld [vmem:[#allocation31 + $0x41c] sm:$0xf]  ;;  %5335 = vmatpush.bf16.msra.mxu0 %v12032_v16  ;;  %5348 = vmatpush.bf16.msra.mxu1 %v12544_v6  ;;  %v10880_v39 = vor.u32 %v16052_v13, %v10877_v22  ;;  %v12227_v2 = vld [vmem:[#allocation31 + $0xaa0] sm:$0xf]  ;;  %v11204_v6 = vor.u32 %v16141_v61, %v11203_v60  ;;  %v11716_v7 = vor.u32 %v16269_v1, %v11715_v0 }
 0x4f2   :  { %v11389_v26 = vld [vmem:[#allocation31 + $0x458] sm:$0xf0]  ;;  %v16525_v16 = vld [vmem:[#allocation31 + $0xedc] sm:$0xf0]  ;;  %v12228_v9 = vor.u32 %v16397_v3, %v12227_v2 }
 0x4f3   :  { %v16308_v31 = vld [vmem:[#allocation31 + $0x81c] sm:$0xf]  ;;  %v11392_v40 = vor.u32 %v16180_v25, %v11389_v26  ;;  %v11139_v8 = vld [vmem:[#allocation31 + $0x220] sm:$0xf]  ;;  %v12740_v10 = vor.u32 %v16525_v16, %v12739_v4 }
 0x4f4   :  { %v11901_v32 = vld [vmem:[#allocation31 + $0x858] sm:$0xf0]  ;;  %5310 = vmatpush.bf16.msrb.mxu2 %v10944_v17  ;;  %5323 = vmatpush.bf16.msrb.mxu3 %v11456_v21  ;;  %v16125_v19 = vld [vmem:[#allocation31 + $0x25c] sm:$0xf0] }
 0x4f5   :  { %v16436_v18 = vld [vmem:[#allocation31 + $0xc1c] sm:$0xf]  ;;  %5336 = vmatpush.bf16.msra.mxu0 %v11968_v27  ;;  %5349 = vmatpush.bf16.msra.mxu1 %v12480_v28  ;;  %v11904_v14 = vor.u32 %v16308_v31, %v11901_v32  ;;  %v11651_v11 = vld [vmem:[#allocation31 + $0x620] sm:$0xf]  ;;  %v11140_v28 = vor.u32 %v16125_v19, %v11139_v8 }
 0x4f6   :  { %v12413_v33 = vld [vmem:[#allocation31 + $0xc58] sm:$0xf0]  ;;  %v16253_v13 = vld [vmem:[#allocation31 + $0x65c] sm:$0xf0] }
 0x4f7   :  { %v12416_v20 = vor.u32 %v16436_v18, %v12413_v33  ;;  %v12163_v17 = vld [vmem:[#allocation31 + $0xa20] sm:$0xf]  ;;  %v11652_v29 = vor.u32 %v16253_v13, %v11651_v11 }
 0x4f8   :  { %5311 = vmatpush.bf16.msrb.mxu2 %v10880_v39  ;;  %5324 = vmatpush.bf16.msrb.mxu3 %v11392_v40  ;;  %v16381_v21 = vld [vmem:[#allocation31 + $0xa5c] sm:$0xf0] }
 0x4f9   :  { %5337 = vmatpush.bf16.msra.mxu0 %v11904_v14  ;;  %5350 = vmatpush.bf16.msra.mxu1 %v12416_v20  ;;  %v12675_v22 = vld [vmem:[#allocation31 + $0xe20] sm:$0xf]  ;;  %v12164_v32 = vor.u32 %v16381_v21, %v12163_v17 }
 0x4fa   :  { %v16509_v25 = vld [vmem:[#allocation31 + $0xe5c] sm:$0xf0] }
 0x4fb   :  { %5312 = vmatmul.bf16.vlgmr.msrb.gmra.mxu2 %v17576_v42  ;;  %5325 = vmatmul.bf16.vlgmr.msrb.gmra.mxu3 %v17578_v43  ;;  %v5131_v26 = vpop.f32.mrf.mxu0  ;;  %v5144_v27 = vpop.f32.mrf.mxu1  ;;  %v11075_v30 = vld [vmem:[#allocation31 + $0x1a0] sm:$0xf]  ;;  %v12676_v18 = vor.u32 %v16509_v25, %v12675_v22 }
 0x4fc   :  { %5356 = vmatpush.bf16.msra.mxu2 %v11332_v48  ;;  %5369 = vmatpush.bf16.msra.mxu3 %v11844_v49  ;;  %v16109_v31 = vld [vmem:[#allocation31 + $0x1dc] sm:$0xf0] }
 0x4fd   :  { %5382 = vmatpush.bf16.msrb.mxu0 %v12356_v52  ;;  %5395 = vmatpush.bf16.msrb.mxu1 %v12868_v53  ;;  %v11587_v33 = vld [vmem:[#allocation31 + $0x5a0] sm:$0xf]  ;;  %v11076_v39 = vor.u32 %v16109_v31, %v11075_v30  ;;  %v16293_v30 = vld [vmem:[#allocation31 + $0x7a4] sm:$0xf] }
 0x4fe   :  { %5338 = vmatmul.bf16.vlgmr.msra.gmra.mxu0 %v17580_v44  ;;  %5351 = vmatmul.bf16.vlgmr.msra.gmra.mxu1 %v17582_v47  ;;  %v16237_v34 = vld [vmem:[#allocation31 + $0x5dc] sm:$0xf0]  ;;  %v5105_v20 = vpop.f32.mrf.mxu2  ;;  %v5118_v48 = vpop.f32.mrf.mxu3  ;;  %v11845_v31 = vld [vmem:[#allocation31 + $0x7e0] sm:$0xf0] }
 0x4ff   :  { %v12099_v35 = vld [vmem:[#allocation31 + $0x9a0] sm:$0xf]  ;;  %v11588_v40 = vor.u32 %v16237_v34, %v11587_v33  ;;  %v5119_v52 = vadd.f32 %v5118_v48, %v5105_v20  ;;  %v12357_v34 = vld [vmem:[#allocation31 + $0xbe0] sm:$0xf0] }
 0x500   :  { %5357 = vmatpush.bf16.msra.mxu2 %v11268_v58  ;;  %5370 = vmatpush.bf16.msra.mxu3 %v11780_v59  ;;  %v16365_v36 = vld [vmem:[#allocation31 + $0x9dc] sm:$0xf0]  ;;  %v16277_v20 = vld [vmem:[#allocation31 + $0x724] sm:$0xf] }
 0x501   :  { %5383 = vmatpush.bf16.msrb.mxu0 %v12292_v62  ;;  %5396 = vmatpush.bf16.msrb.mxu1 %v12804_v63  ;;  %v12611_v37 = vld [vmem:[#allocation31 + $0xda0] sm:$0xf]  ;;  %v12100_v46 = vor.u32 %v16365_v36, %v12099_v35  ;;  %v5132_v55 = vadd.f32 %v5131_v26, %v5119_v52  ;;  %v16549_v35 = vld [vmem:[#allocation31 + $0xfa4] sm:$0xf] }
 0x502   :  { %v16493_v38 = vld [vmem:[#allocation31 + $0xddc] sm:$0xf0]  ;;  %v12869_v36 = vld [vmem:[#allocation31 + $0xfe0] sm:$0xf0] }
 0x503   :  { %v11011_v41 = vld [vmem:[#allocation31 + $0x120] sm:$0xf]  ;;  %v12612_v14 = vor.u32 %v16493_v38, %v12611_v37  ;;  %v5133_v23 = vpop.f32.mrf.mxu0  ;;  %v5146_v56 = vpop.f32.mrf.mxu1  ;;  %v17622_v16 = vadd.f32 %v5144_v27, %v5132_v55  ;;  %v16165_v27 = vld [vmem:[#allocation31 + $0x3a4] sm:$0xf] }
 0x504   :  { %5358 = vmatpush.bf16.msra.mxu2 %v11204_v6  ;;  %5371 = vmatpush.bf16.msra.mxu3 %v11716_v7  ;;  %v16093_v45 = vld [vmem:[#allocation31 + $0x15c] sm:$0xf0]  ;;  %v11781_v48 = vld [vmem:[#allocation31 + $0x760] sm:$0xf0] }
 0x505   :  { %5384 = vmatpush.bf16.msrb.mxu0 %v12228_v9  ;;  %5397 = vmatpush.bf16.msrb.mxu1 %v12740_v10  ;;  %v11523_v49 = vld [vmem:[#allocation31 + $0x520] sm:$0xf]  ;;  %v11012_v57 = vor.u32 %v16093_v45, %v11011_v41  ;;  %v16149_v41 = vld [vmem:[#allocation31 + $0x324] sm:$0xf] }
 0x506   :  { %v16221_v50 = vld [vmem:[#allocation31 + $0x55c] sm:$0xf0]  ;;  %v5107_v17 = vpop.f32.mrf.mxu2  ;;  %v5120_v21 = vpop.f32.mrf.mxu3  ;;  %v11269_v45 = vld [vmem:[#allocation31 + $0x360] sm:$0xf0] }
 0x507   :  { %v12035_v51 = vld [vmem:[#allocation31 + $0x920] sm:$0xf]  ;;  %v11524_v58 = vor.u32 %v16221_v50, %v11523_v49  ;;  %v16405_v49 = vld [vmem:[#allocation31 + $0xb24] sm:$0xf] }
 0x508   :  { %5359 = vmatpush.bf16.msra.mxu2 %v11140_v28  ;;  %5372 = vmatpush.bf16.msra.mxu3 %v11652_v29  ;;  %v16349_v53 = vld [vmem:[#allocation31 + $0x95c] sm:$0xf0]  ;;  %v11333_v29 = vld [vmem:[#allocation31 + $0x3e0] sm:$0xf0] }
 0x509   :  { %5385 = vmatpush.bf16.msrb.mxu0 %v12164_v32  ;;  %5398 = vmatpush.bf16.msrb.mxu1 %v12676_v18  ;;  %v12547_v24 = vld [vmem:[#allocation31 + $0xd20] sm:$0xf]  ;;  %v12036_v61 = vor.u32 %v16349_v53, %v12035_v51  ;;  %v16421_v32 = vld [vmem:[#allocation31 + $0xba4] sm:$0xf]  ;;  %v11272_v53 = vor.u32 %v16149_v41, %v11269_v45 }
 0x50a   :  { %v16477_v54 = vld [vmem:[#allocation31 + $0xd5c] sm:$0xf0]  ;;  %v12293_v50 = vld [vmem:[#allocation31 + $0xb60] sm:$0xf0] }
 0x50b   :  { %v10947_v59 = vld [vmem:[#allocation31 + $0xa0] sm:$0xf]  ;;  %v12548_v62 = vor.u32 %v16477_v54, %v12547_v24  ;;  %v16533_v51 = vld [vmem:[#allocation31 + $0xf24] sm:$0xf]  ;;  %v11784_v24 = vor.u32 %v16277_v20, %v11781_v48  ;;  %v12296_v23 = vor.u32 %v16405_v49, %v12293_v50 }
 0x50c   :  { %5360 = vmatpush.bf16.msra.mxu2 %v11076_v39  ;;  %5373 = vmatpush.bf16.msra.mxu3 %v11588_v40  ;;  %v16077_v60 = vld [vmem:[#allocation31 + $0xdc] sm:$0xf0]  ;;  %v11336_v39 = vor.u32 %v16165_v27, %v11333_v29  ;;  %v11848_v40 = vor.u32 %v16293_v30, %v11845_v31  ;;  %v12805_v52 = vld [vmem:[#allocation31 + $0xf60] sm:$0xf0] }
 0x50d   :  { %5386 = vmatpush.bf16.msrb.mxu0 %v12100_v46  ;;  %5399 = vmatpush.bf16.msrb.mxu1 %v12612_v14  ;;  %v11459_v63 = vld [vmem:[#allocation31 + $0x4a0] sm:$0xf]  ;;  %v10948_v7 = vor.u32 %v16077_v60, %v10947_v59  ;;  %v12360_v46 = vor.u32 %v16421_v32, %v12357_v34  ;;  %v12872_v14 = vor.u32 %v16549_v35, %v12869_v36  ;;  %v16133_v54 = vld [vmem:[#allocation31 + $0x2a4] sm:$0xf] }
 0x50e   :  { %v16205_v0 = vld [vmem:[#allocation31 + $0x4dc] sm:$0xf0]  ;;  %v11205_v55 = vld [vmem:[#allocation31 + $0x2e0] sm:$0xf0]  ;;  %v12808_v56 = vor.u32 %v16533_v51, %v12805_v52 }
 0x50f   :  { %v11971_v1 = vld [vmem:[#allocation31 + $0x8a0] sm:$0xf]  ;;  %v11460_v8 = vor.u32 %v16205_v0, %v11459_v63  ;;  %v16389_v59 = vld [vmem:[#allocation31 + $0xaa4] sm:$0xf]  ;;  %v11208_v63 = vor.u32 %v16133_v54, %v11205_v55 }
 0x510   :  { %v16333_v2 = vld [vmem:[#allocation31 + $0x8dc] sm:$0xf0]  ;;  %5361 = vmatpush.bf16.msra.mxu2 %v11012_v57  ;;  %5374 = vmatpush.bf16.msra.mxu3 %v11524_v58  ;;  %v16261_v57 = vld [vmem:[#allocation31 + $0x6a4] sm:$0xf] }
 0x511   :  { %v12483_v3 = vld [vmem:[#allocation31 + $0xca0] sm:$0xf]  ;;  %5387 = vmatpush.bf16.msrb.mxu0 %v12036_v61  ;;  %5400 = vmatpush.bf16.msrb.mxu1 %v12548_v62  ;;  %v11972_v11 = vor.u32 %v16333_v2, %v11971_v1  ;;  %v11717_v58 = vld [vmem:[#allocation31 + $0x6e0] sm:$0xf0] }
 0x512   :  { %v16461_v4 = vld [vmem:[#allocation31 + $0xcdc] sm:$0xf0]  ;;  %v12229_v60 = vld [vmem:[#allocation31 + $0xae0] sm:$0xf0]  ;;  %v11720_v0 = vor.u32 %v16261_v57, %v11717_v58 }
 0x513   :  { %v10883_v6 = vld [vmem:[#allocation31 + $0x20] sm:$0xf]  ;;  %v12484_v13 = vor.u32 %v16461_v4, %v12483_v3  ;;  %v16517_v61 = vld [vmem:[#allocation31 + $0xea4] sm:$0xf]  ;;  %v12232_v3 = vor.u32 %v16389_v59, %v12229_v60 }
 0x514   :  { %v16061_v19 = vld [vmem:[#allocation31 + $0x5c] sm:$0xf0]  ;;  %5362 = vmatpush.bf16.msra.mxu2 %v10948_v7  ;;  %5375 = vmatpush.bf16.msra.mxu3 %v11460_v8  ;;  %v12741_v62 = vld [vmem:[#allocation31 + $0xee0] sm:$0xf0] }
 0x515   :  { %v11395_v9 = vld [vmem:[#allocation31 + $0x420] sm:$0xf]  ;;  %v10884_v18 = vor.u32 %v16061_v19, %v10883_v6  ;;  %5388 = vmatpush.bf16.msrb.mxu0 %v11972_v11  ;;  %5401 = vmatpush.bf16.msrb.mxu1 %v12484_v13  ;;  %v16117_v1 = vld [vmem:[#allocation31 + $0x224] sm:$0xf]  ;;  %v12744_v4 = vor.u32 %v16517_v61, %v12741_v62 }
 0x516   :  { %v16189_v10 = vld [vmem:[#allocation31 + $0x45c] sm:$0xf0]  ;;  %v11141_v2 = vld [vmem:[#allocation31 + $0x260] sm:$0xf0] }
 0x517   :  { %v11907_v22 = vld [vmem:[#allocation31 + $0x820] sm:$0xf]  ;;  %v11396_v33 = vor.u32 %v16189_v10, %v11395_v9  ;;  %v16245_v6 = vld [vmem:[#allocation31 + $0x624] sm:$0xf]  ;;  %v11144_v17 = vor.u32 %v16117_v1, %v11141_v2 }
 0x518   :  { %v16317_v25 = vld [vmem:[#allocation31 + $0x85c] sm:$0xf0]  ;;  %5363 = vmatpush.bf16.msra.mxu2 %v10884_v18  ;;  %v11653_v7 = vld [vmem:[#allocation31 + $0x660] sm:$0xf0] }
 0x519   :  { %v12419_v26 = vld [vmem:[#allocation31 + $0xc20] sm:$0xf]  ;;  %v11908_v37 = vor.u32 %v16317_v25, %v11907_v22  ;;  %5376 = vmatpush.bf16.msra.mxu3 %v11396_v33  ;;  %v16373_v8 = vld [vmem:[#allocation31 + $0xa24] sm:$0xf]  ;;  %v11656_v21 = vor.u32 %v16245_v6, %v11653_v7 }
 0x51a   :  { %v16445_v28 = vld [vmem:[#allocation31 + $0xc5c] sm:$0xf0]  ;;  %v12165_v19 = vld [vmem:[#allocation31 + $0xa60] sm:$0xf0] }
 0x51b   :  { %v12420_v38 = vor.u32 %v16445_v28, %v12419_v26  ;;  %5389 = vmatpush.bf16.msrb.mxu0 %v11908_v37  ;;  %5364 = vmatmul.bf16.vlgmr.msra.gmra.mxu2 %v17576_v42  ;;  %v16501_v9 = vld [vmem:[#allocation31 + $0xe24] sm:$0xf]  ;;  %v5183_v11 = vpop.f32.mrf.mxu0  ;;  %v5196_v13 = vpop.f32.mrf.mxu1  ;;  %v12168_v26 = vor.u32 %v16373_v8, %v12165_v19 }
 0x51c   :  { %5408 = vmatpush.bf16.msrb.mxu2 %v11336_v39  ;;  %5377 = vmatmul.bf16.vlgmr.msra.gmra.mxu3 %v17578_v43  ;;  %v12677_v10 = vld [vmem:[#allocation31 + $0xe60] sm:$0xf0] }
 0x51d   :  { %5402 = vmatpush.bf16.msrb.mxu1 %v12420_v38  ;;  %5421 = vmatpush.bf16.msrb.mxu3 %v11848_v40  ;;  %v16101_v22 = vld [vmem:[#allocation31 + $0x1a4] sm:$0xf]  ;;  %v12680_v28 = vor.u32 %v16501_v9, %v12677_v10 }
 0x51e   :  { %5390 = vmatmul.bf16.vlgmr.msrb.gmra.mxu0 %v17580_v44  ;;  %v11077_v25 = vld [vmem:[#allocation31 + $0x1e0] sm:$0xf0]  ;;  %v5157_v39 = vpop.f32.mrf.mxu2  ;;  %v5170_v40 = vpop.f32.mrf.mxu3 }
 0x51f   :  { %5434 = vmatpush.bf16.msra.mxu0 %v12360_v46  ;;  %v16229_v27 = vld [vmem:[#allocation31 + $0x5a4] sm:$0xf]  ;;  %v11080_v33 = vor.u32 %v16101_v22, %v11077_v25  ;;  %v16174_v22 = vld [vmem:[#allocation31 + $0x3e4] sm:$0xf0] }
 0x520   :  { %5403 = vmatmul.bf16.vlgmr.msrb.gmra.mxu1 %v17582_v47  ;;  %5409 = vmatpush.bf16.msrb.mxu2 %v11272_v53  ;;  %v11589_v29 = vld [vmem:[#allocation31 + $0x5e0] sm:$0xf0]  ;;  %v11851_v25 = vld [vmem:[#allocation31 + $0x7a8] sm:$0xf] }
 0x521   :  { %5447 = vmatpush.bf16.msra.mxu1 %v12872_v14  ;;  %5422 = vmatpush.bf16.msrb.mxu3 %v11784_v24  ;;  %v16357_v30 = vld [vmem:[#allocation31 + $0x9a4] sm:$0xf]  ;;  %v11592_v34 = vor.u32 %v16229_v27, %v11589_v29  ;;  %v5171_v14 = vadd.f32 %v5170_v40, %v5157_v39  ;;  %v11787_v40 = vld [vmem:[#allocation31 + $0x728] sm:$0xf] }
 0x522   :  { %v12101_v31 = vld [vmem:[#allocation31 + $0x9e0] sm:$0xf0] }
 0x523   :  { %5435 = vmatpush.bf16.msra.mxu0 %v12296_v23  ;;  %v16485_v32 = vld [vmem:[#allocation31 + $0xda4] sm:$0xf]  ;;  %v12104_v37 = vor.u32 %v16357_v30, %v12101_v31  ;;  %v5184_v50 = vadd.f32 %v5183_v11, %v5171_v14  ;;  %v5185_v51 = vpop.f32.mrf.mxu0  ;;  %v5198_v52 = vpop.f32.mrf.mxu1  ;;  %v16430_v30 = vld [vmem:[#allocation31 + $0xbe4] sm:$0xf0] }
 0x524   :  { %5410 = vmatpush.bf16.msrb.mxu2 %v11208_v63  ;;  %v12613_v18 = vld [vmem:[#allocation31 + $0xde0] sm:$0xf0]  ;;  %v12875_v31 = vld [vmem:[#allocation31 + $0xfa8] sm:$0xf] }
 0x525   :  { %5448 = vmatpush.bf16.msra.mxu1 %v12808_v56  ;;  %5423 = vmatpush.bf16.msrb.mxu3 %v11720_v0  ;;  %v16085_v35 = vld [vmem:[#allocation31 + $0x124] sm:$0xf]  ;;  %v12616_v38 = vor.u32 %v16485_v32, %v12613_v18  ;;  %v17628_v63 = vadd.f32 %v5196_v13, %v5184_v50  ;;  %v11339_v13 = vld [vmem:[#allocation31 + $0x3a8] sm:$0xf] }
 0x526   :  { %v11013_v36 = vld [vmem:[#allocation31 + $0x160] sm:$0xf0]  ;;  %v5159_v19 = vpop.f32.mrf.mxu2  ;;  %v5172_v9 = vpop.f32.mrf.mxu3  ;;  %v16558_v32 = vld [vmem:[#allocation31 + $0xfe4] sm:$0xf0] }
 0x527   :  { %5436 = vmatpush.bf16.msra.mxu0 %v12232_v3  ;;  %v16213_v41 = vld [vmem:[#allocation31 + $0x524] sm:$0xf]  ;;  %v11016_v53 = vor.u32 %v16085_v35, %v11013_v36  ;;  %v11275_v36 = vld [vmem:[#allocation31 + $0x328] sm:$0xf]  ;;  %v12876_v39 = vor.u32 %v16558_v32, %v12875_v31 }
 0x528   :  { %5411 = vmatpush.bf16.msrb.mxu2 %v11144_v17  ;;  %v11525_v45 = vld [vmem:[#allocation31 + $0x560] sm:$0xf0]  ;;  %v12811_v14 = vld [vmem:[#allocation31 + $0xf28] sm:$0xf] }
 0x529   :  { %5449 = vmatpush.bf16.msra.mxu1 %v12744_v4  ;;  %5424 = vmatpush.bf16.msrb.mxu3 %v11656_v21  ;;  %v16341_v46 = vld [vmem:[#allocation31 + $0x924] sm:$0xf]  ;;  %v11528_v24 = vor.u32 %v16213_v41, %v11525_v45  ;;  %v16286_v41 = vld [vmem:[#allocation31 + $0x764] sm:$0xf0] }
 0x52a   :  { %v12037_v20 = vld [vmem:[#allocation31 + $0x960] sm:$0xf0]  ;;  %v12299_v45 = vld [vmem:[#allocation31 + $0xb28] sm:$0xf] }
 0x52b   :  { %5437 = vmatpush.bf16.msra.mxu0 %v12168_v26  ;;  %v16469_v48 = vld [vmem:[#allocation31 + $0xd24] sm:$0xf]  ;;  %v12040_v23 = vor.u32 %v16341_v46, %v12037_v20  ;;  %v16302_v26 = vld [vmem:[#allocation31 + $0x7e4] sm:$0xf0] }
 0x52c   :  { %v12549_v49 = vld [vmem:[#allocation31 + $0xd60] sm:$0xf0]  ;;  %5412 = vmatpush.bf16.msrb.mxu2 %v11080_v33  ;;  %v11852_v35 = vor.u32 %v16302_v26, %v11851_v25  ;;  %v16414_v46 = vld [vmem:[#allocation31 + $0xb64] sm:$0xf0] }
 0x52d   :  { %5450 = vmatpush.bf16.msra.mxu1 %v12680_v28  ;;  %5425 = vmatpush.bf16.msrb.mxu3 %v11592_v34  ;;  %v16069_v54 = vld [vmem:[#allocation31 + $0xa4] sm:$0xf]  ;;  %v12552_v56 = vor.u32 %v16469_v48, %v12549_v49  ;;  %v12363_v28 = vld [vmem:[#allocation31 + $0xba8] sm:$0xf]  ;;  %v11340_v34 = vor.u32 %v16174_v22, %v11339_v13  ;;  %v11788_v49 = vor.u32 %v16286_v41, %v11787_v40 }
 0x52e   :  { %v10949_v55 = vld [vmem:[#allocation31 + $0xe0] sm:$0xf0]  ;;  %v16542_v20 = vld [vmem:[#allocation31 + $0xf64] sm:$0xf0]  ;;  %v12300_v52 = vor.u32 %v16414_v46, %v12299_v45 }
 0x52f   :  { %5438 = vmatpush.bf16.msra.mxu0 %v12104_v37  ;;  %v16197_v57 = vld [vmem:[#allocation31 + $0x4a4] sm:$0xf]  ;;  %v10952_v1 = vor.u32 %v16069_v54, %v10949_v55  ;;  %v16158_v37 = vld [vmem:[#allocation31 + $0x364] sm:$0xf0] }
 0x530   :  { %v11461_v58 = vld [vmem:[#allocation31 + $0x4e0] sm:$0xf0]  ;;  %5413 = vmatpush.bf16.msrb.mxu2 %v11016_v53  ;;  %v11276_v48 = vor.u32 %v16158_v37, %v11275_v36  ;;  %v11211_v50 = vld [vmem:[#allocation31 + $0x2a8] sm:$0xf]  ;;  %v12812_v53 = vor.u32 %v16542_v20, %v12811_v14 }
 0x531   :  { %5451 = vmatpush.bf16.msra.mxu1 %v12616_v38  ;;  %v16325_v59 = vld [vmem:[#allocation31 + $0x8a4] sm:$0xf]  ;;  %5426 = vmatpush.bf16.msrb.mxu3 %v11528_v24  ;;  %v11464_v2 = vor.u32 %v16197_v57, %v11461_v58  ;;  %v12364_v38 = vor.u32 %v16430_v30, %v12363_v28  ;;  %v16142_v51 = vld [vmem:[#allocation31 + $0x2e4] sm:$0xf0] }
 0x532   :  { %v11973_v60 = vld [vmem:[#allocation31 + $0x8e0] sm:$0xf0]  ;;  %v11723_v24 = vld [vmem:[#allocation31 + $0x6a8] sm:$0xf]  ;;  %v11212_v58 = vor.u32 %v16142_v51, %v11211_v50 }
 0x533   :  { %v16453_v61 = vld [vmem:[#allocation31 + $0xca4] sm:$0xf]  ;;  %5439 = vmatpush.bf16.msra.mxu0 %v12040_v23  ;;  %v11976_v7 = vor.u32 %v16325_v59, %v11973_v60  ;;  %v16270_v54 = vld [vmem:[#allocation31 + $0x6e4] sm:$0xf0] }
 0x534   :  { %v12485_v62 = vld [vmem:[#allocation31 + $0xce0] sm:$0xf0]  ;;  %5414 = vmatpush.bf16.msrb.mxu2 %v10952_v1  ;;  %v12235_v55 = vld [vmem:[#allocation31 + $0xaa8] sm:$0xf]  ;;  %v11724_v59 = vor.u32 %v16270_v54, %v11723_v24 }
 0x535   :  { %v16053_v0 = vld [vmem:[#allocation31 + $0x24] sm:$0xf]  ;;  %5452 = vmatpush.bf16.msra.mxu1 %v12552_v56  ;;  %v12488_v8 = vor.u32 %v16453_v61, %v12485_v62  ;;  %5427 = vmatpush.bf16.msrb.mxu3 %v11464_v2  ;;  %v16398_v23 = vld [vmem:[#allocation31 + $0xae4] sm:$0xf0] }
 0x536   :  { %v10885_v3 = vld [vmem:[#allocation31 + $0x60] sm:$0xf0]  ;;  %v12747_v56 = vld [vmem:[#allocation31 + $0xea8] sm:$0xf]  ;;  %v12236_v62 = vor.u32 %v16398_v23, %v12235_v55 }
 0x537   :  { %v16181_v4 = vld [vmem:[#allocation31 + $0x424] sm:$0xf]  ;;  %v10888_v27 = vor.u32 %v16053_v0, %v10885_v3  ;;  %5440 = vmatpush.bf16.msra.mxu0 %v11976_v7  ;;  %v16526_v57 = vld [vmem:[#allocation31 + $0xee4] sm:$0xf0] }
 0x538   :  { %v11397_v6 = vld [vmem:[#allocation31 + $0x460] sm:$0xf0]  ;;  %v11147_v60 = vld [vmem:[#allocation31 + $0x228] sm:$0xf]  ;;  %v12748_v0 = vor.u32 %v16526_v57, %v12747_v56 }
 0x539   :  { %v16309_v10 = vld [vmem:[#allocation31 + $0x824] sm:$0xf]  ;;  %v11400_v29 = vor.u32 %v16181_v4, %v11397_v6  ;;  %5453 = vmatpush.bf16.msra.mxu1 %v12488_v8  ;;  %5415 = vmatpush.bf16.msrb.mxu2 %v10888_v27  ;;  %v16126_v61 = vld [vmem:[#allocation31 + $0x264] sm:$0xf0] }
 0x53a   :  { %v11909_v11 = vld [vmem:[#allocation31 + $0x860] sm:$0xf0]  ;;  %v11659_v1 = vld [vmem:[#allocation31 + $0x628] sm:$0xf]  ;;  %v11148_v9 = vor.u32 %v16126_v61, %v11147_v60 }
 0x53b   :  { %v16437_v17 = vld [vmem:[#allocation31 + $0xc24] sm:$0xf]  ;;  %v11912_v18 = vor.u32 %v16309_v10, %v11909_v11  ;;  %5428 = vmatpush.bf16.msrb.mxu3 %v11400_v29  ;;  %v16254_v2 = vld [vmem:[#allocation31 + $0x664] sm:$0xf0]  ;;  %v5235_v8 = vpop.f32.mrf.mxu0  ;;  %v5248_v19 = vpop.f32.mrf.mxu1 }
 0x53c   :  { %v12421_v21 = vld [vmem:[#allocation31 + $0xc60] sm:$0xf0]  ;;  %5416 = vmatmul.bf16.vlgmr.msrb.gmra.mxu2 %v17576_v42  ;;  %v12171_v3 = vld [vmem:[#allocation31 + $0xa28] sm:$0xf]  ;;  %v11660_v10 = vor.u32 %v16254_v2, %v11659_v1 }
 0x53d   :  { %v12424_v33 = vor.u32 %v16437_v17, %v12421_v21  ;;  %5441 = vmatpush.bf16.msra.mxu0 %v11912_v18  ;;  %5460 = vmatpush.bf16.msra.mxu2 %v11340_v34  ;;  %v16382_v4 = vld [vmem:[#allocation31 + $0xa64] sm:$0xf0] }
 0x53e   :  { %5429 = vmatmul.bf16.vlgmr.msrb.gmra.mxu3 %v17578_v43  ;;  %v12683_v6 = vld [vmem:[#allocation31 + $0xe28] sm:$0xf]  ;;  %v12172_v21 = vor.u32 %v16382_v4, %v12171_v3  ;;  %v5222_v36 = vpop.f32.mrf.mxu3 }
 0x53f   :  { %5454 = vmatpush.bf16.msra.mxu1 %v12424_v33  ;;  %5473 = vmatpush.bf16.msra.mxu3 %v11852_v35  ;;  %v16510_v7 = vld [vmem:[#allocation31 + $0xe64] sm:$0xf0]  ;;  %v5209_v35 = vpop.f32.mrf.mxu2 }
 0x540   :  { %5442 = vmatmul.bf16.vlgmr.msra.gmra.mxu0 %v17580_v44  ;;  %v11083_v11 = vld [vmem:[#allocation31 + $0x1a8] sm:$0xf]  ;;  %v12684_v13 = vor.u32 %v16510_v7, %v12683_v6  ;;  %v5223_v40 = vadd.f32 %v5222_v36, %v5209_v35 }
 0x541   :  { %5486 = vmatpush.bf16.msrb.mxu0 %v12364_v38  ;;  %5461 = vmatpush.bf16.msra.mxu2 %v11276_v48  ;;  %v16110_v17 = vld [vmem:[#allocation31 + $0x1e4] sm:$0xf0] }
 0x542   :  { %5455 = vmatmul.bf16.vlgmr.msra.gmra.mxu1 %v17582_v47  ;;  %v11595_v22 = vld [vmem:[#allocation31 + $0x5a8] sm:$0xf]  ;;  %v11084_v30 = vor.u32 %v16110_v17, %v11083_v11  ;;  %v5236_v14 = vadd.f32 %v5235_v8, %v5223_v40  ;;  %v11341_v17 = vld [vmem:[#allocation31 + $0x3e8] sm:$0xf0] }
 0x543   :  { %5499 = vmatpush.bf16.msrb.mxu1 %v12876_v39  ;;  %5474 = vmatpush.bf16.msra.mxu3 %v11788_v49  ;;  %v16238_v25 = vld [vmem:[#allocation31 + $0x5e4] sm:$0xf0]  ;;  %v5237_v20 = vpop.f32.mrf.mxu0  ;;  %v5250_v48 = vpop.f32.mrf.mxu1  ;;  %v12301_v40 = vld [vmem:[#allocation31 + $0xb68] sm:$0xf0] }
 0x544   :  { %v12107_v26 = vld [vmem:[#allocation31 + $0x9a8] sm:$0xf]  ;;  %v11596_v31 = vor.u32 %v16238_v25, %v11595_v22  ;;  %v16422_v22 = vld [vmem:[#allocation31 + $0xbac] sm:$0xf] }
 0x545   :  { %5487 = vmatpush.bf16.msrb.mxu0 %v12300_v52  ;;  %5462 = vmatpush.bf16.msra.mxu2 %v11212_v58  ;;  %v16366_v28 = vld [vmem:[#allocation31 + $0x9e4] sm:$0xf0]  ;;  %v16134_v20 = vld [vmem:[#allocation31 + $0x2ac] sm:$0xf] }
 0x546   :  { %v12619_v27 = vld [vmem:[#allocation31 + $0xda8] sm:$0xf]  ;;  %v12108_v33 = vor.u32 %v16366_v28, %v12107_v26  ;;  %v5224_v7 = vpop.f32.mrf.mxu3  ;;  %v12365_v28 = vld [vmem:[#allocation31 + $0xbe8] sm:$0xf0] }
 0x547   :  { %5500 = vmatpush.bf16.msrb.mxu1 %v12812_v53  ;;  %5475 = vmatpush.bf16.msra.mxu3 %v11724_v59  ;;  %v16494_v29 = vld [vmem:[#allocation31 + $0xde4] sm:$0xf0]  ;;  %v17634_v59 = vadd.f32 %v5248_v19, %v5236_v14  ;;  %v5211_v6 = vpop.f32.mrf.mxu2  ;;  %v16166_v19 = vld [vmem:[#allocation31 + $0x3ac] sm:$0xf]  ;;  %v12368_v35 = vor.u32 %v16422_v22, %v12365_v28 }
 0x548   :  { %v11019_v32 = vld [vmem:[#allocation31 + $0x128] sm:$0xf]  ;;  %v12620_v34 = vor.u32 %v16494_v29, %v12619_v27  ;;  %v16550_v27 = vld [vmem:[#allocation31 + $0xfac] sm:$0xf] }
 0x549   :  { %5488 = vmatpush.bf16.msrb.mxu0 %v12236_v62  ;;  %5463 = vmatpush.bf16.msra.mxu2 %v11148_v9  ;;  %v16094_v18 = vld [vmem:[#allocation31 + $0x164] sm:$0xf0]  ;;  %v12877_v29 = vld [vmem:[#allocation31 + $0xfe8] sm:$0xf0] }
 0x54a   :  { %v11531_v37 = vld [vmem:[#allocation31 + $0x528] sm:$0xf]  ;;  %v11020_v49 = vor.u32 %v16094_v18, %v11019_v32  ;;  %v11344_v32 = vor.u32 %v16166_v19, %v11341_v17  ;;  %v12880_v36 = vor.u32 %v16550_v27, %v12877_v29  ;;  %v11213_v48 = vld [vmem:[#allocation31 + $0x2e8] sm:$0xf0] }
 0x54b   :  { %5501 = vmatpush.bf16.msrb.mxu1 %v12748_v0  ;;  %5476 = vmatpush.bf16.msra.mxu3 %v11660_v10  ;;  %v16222_v38 = vld [vmem:[#allocation31 + $0x564] sm:$0xf0]  ;;  %v16358_v22 = vld [vmem:[#allocation31 + $0x9ac] sm:$0xf] }
 0x54c   :  { %v12043_v39 = vld [vmem:[#allocation31 + $0x928] sm:$0xf]  ;;  %v11532_v50 = vor.u32 %v16222_v38, %v11531_v37  ;;  %v16278_v37 = vld [vmem:[#allocation31 + $0x72c] sm:$0xf] }
 0x54d   :  { %5489 = vmatpush.bf16.msrb.mxu0 %v12172_v21  ;;  %v16350_v41 = vld [vmem:[#allocation31 + $0x964] sm:$0xf0]  ;;  %5464 = vmatpush.bf16.msra.mxu2 %v11084_v30  ;;  %v16294_v21 = vld [vmem:[#allocation31 + $0x7ac] sm:$0xf] }
 0x54e   :  { %v12555_v45 = vld [vmem:[#allocation31 + $0xd28] sm:$0xf]  ;;  %v12044_v53 = vor.u32 %v16350_v41, %v12043_v39  ;;  %v11789_v38 = vld [vmem:[#allocation31 + $0x768] sm:$0xf0] }
 0x54f   :  { %5502 = vmatpush.bf16.msrb.mxu1 %v12684_v13  ;;  %v16478_v46 = vld [vmem:[#allocation31 + $0xd64] sm:$0xf0]  ;;  %5477 = vmatpush.bf16.msra.mxu3 %v11596_v31  ;;  %v11853_v13 = vld [vmem:[#allocation31 + $0x7e8] sm:$0xf0]  ;;  %v11792_v14 = vor.u32 %v16278_v37, %v11789_v38 }
 0x550   :  { %v10955_v51 = vld [vmem:[#allocation31 + $0xa8] sm:$0xf]  ;;  %v12556_v24 = vor.u32 %v16478_v46, %v12555_v45  ;;  %v11856_v18 = vor.u32 %v16294_v21, %v11853_v13  ;;  %v16406_v39 = vld [vmem:[#allocation31 + $0xb2c] sm:$0xf] }
 0x551   :  { %v16078_v52 = vld [vmem:[#allocation31 + $0xe4] sm:$0xf0]  ;;  %5490 = vmatpush.bf16.msrb.mxu0 %v12108_v33  ;;  %5465 = vmatpush.bf16.msra.mxu2 %v11020_v49  ;;  %v16150_v33 = vld [vmem:[#allocation31 + $0x32c] sm:$0xf]  ;;  %v12304_v49 = vor.u32 %v16406_v39, %v12301_v40 }
 0x552   :  { %v11467_v54 = vld [vmem:[#allocation31 + $0x4a8] sm:$0xf]  ;;  %v10956_v61 = vor.u32 %v16078_v52, %v10955_v51  ;;  %v16534_v41 = vld [vmem:[#allocation31 + $0xf2c] sm:$0xf] }
 0x553   :  { %5503 = vmatpush.bf16.msrb.mxu1 %v12620_v34  ;;  %v16206_v55 = vld [vmem:[#allocation31 + $0x4e4] sm:$0xf0]  ;;  %5478 = vmatpush.bf16.msra.mxu3 %v11532_v50  ;;  %v11277_v34 = vld [vmem:[#allocation31 + $0x368] sm:$0xf0] }
 0x554   :  { %v11979_v23 = vld [vmem:[#allocation31 + $0x8a8] sm:$0xf]  ;;  %v11468_v62 = vor.u32 %v16206_v55, %v11467_v54  ;;  %v12813_v45 = vld [vmem:[#allocation31 + $0xf68] sm:$0xf0]  ;;  %v11280_v46 = vor.u32 %v16150_v33, %v11277_v34 }
 0x555   :  { %v16334_v56 = vld [vmem:[#allocation31 + $0x8e4] sm:$0xf0]  ;;  %5491 = vmatpush.bf16.msrb.mxu0 %v12044_v53  ;;  %5466 = vmatpush.bf16.msra.mxu2 %v10956_v61  ;;  %v12816_v50 = vor.u32 %v16534_v41, %v12813_v45  ;;  %v16262_v51 = vld [vmem:[#allocation31 + $0x6ac] sm:$0xf] }
 0x556   :  { %v12491_v57 = vld [vmem:[#allocation31 + $0xca8] sm:$0xf]  ;;  %v11980_v3 = vor.u32 %v16334_v56, %v11979_v23  ;;  %v11725_v52 = vld [vmem:[#allocation31 + $0x6e8] sm:$0xf0]  ;;  %v11216_v23 = vor.u32 %v16134_v20, %v11213_v48 }
 0x557   :  { %v16462_v58 = vld [vmem:[#allocation31 + $0xce4] sm:$0xf0]  ;;  %5504 = vmatpush.bf16.msrb.mxu1 %v12556_v24  ;;  %5479 = vmatpush.bf16.msra.mxu3 %v11468_v62  ;;  %v16390_v53 = vld [vmem:[#allocation31 + $0xaac] sm:$0xf]  ;;  %v11728_v56 = vor.u32 %v16262_v51, %v11725_v52 }
 0x558   :  { %v10891_v60 = vld [vmem:[#allocation31 + $0x28] sm:$0xf]  ;;  %v12492_v4 = vor.u32 %v16462_v58, %v12491_v57  ;;  %v12237_v24 = vld [vmem:[#allocation31 + $0xae8] sm:$0xf0] }
 0x559   :  { %v16062_v0 = vld [vmem:[#allocation31 + $0x64] sm:$0xf0]  ;;  %5492 = vmatpush.bf16.msrb.mxu0 %v11980_v3  ;;  %v16518_v54 = vld [vmem:[#allocation31 + $0xeac] sm:$0xf] }
 0x55a   :  { %v11403_v1 = vld [vmem:[#allocation31 + $0x428] sm:$0xf]  ;;  %v10892_v25 = vor.u32 %v16062_v0, %v10891_v60  ;;  %v12749_v55 = vld [vmem:[#allocation31 + $0xee8] sm:$0xf0]  ;;  %v12240_v60 = vor.u32 %v16390_v53, %v12237_v24 }
 0x55b   :  { %v16190_v2 = vld [vmem:[#allocation31 + $0x464] sm:$0xf0]  ;;  %5505 = vmatpush.bf16.msrb.mxu1 %v12492_v4  ;;  %v16118_v57 = vld [vmem:[#allocation31 + $0x22c] sm:$0xf]  ;;  %v12752_v61 = vor.u32 %v16518_v54, %v12749_v55  ;;  %v5287_v6 = vpop.f32.mrf.mxu0  ;;  %v5300_v7 = vpop.f32.mrf.mxu1 }
 0x55c   :  { %v11915_v8 = vld [vmem:[#allocation31 + $0x828] sm:$0xf]  ;;  %v11404_v26 = vor.u32 %v16190_v2, %v11403_v1  ;;  %5467 = vmatpush.bf16.msra.mxu2 %v10892_v25  ;;  %v11149_v58 = vld [vmem:[#allocation31 + $0x268] sm:$0xf0] }
 0x55d   :  { %v16318_v9 = vld [vmem:[#allocation31 + $0x864] sm:$0xf0]  ;;  %v16246_v62 = vld [vmem:[#allocation31 + $0x62c] sm:$0xf] }
 0x55e   :  { %v12427_v10 = vld [vmem:[#allocation31 + $0xc28] sm:$0xf]  ;;  %v11916_v30 = vor.u32 %v16318_v9, %v11915_v8  ;;  %5480 = vmatpush.bf16.msra.mxu3 %v11404_v26  ;;  %v11661_v0 = vld [vmem:[#allocation31 + $0x668] sm:$0xf0]  ;;  %v11152_v8 = vor.u32 %v16118_v57, %v11149_v58  ;;  %v5261_v33 = vpop.f32.mrf.mxu2  ;;  %v5274_v34 = vpop.f32.mrf.mxu3 }
 0x55f   :  { %v16446_v11 = vld [vmem:[#allocation31 + $0xc64] sm:$0xf0]  ;;  %5468 = vmatmul.bf16.vlgmr.msra.gmra.mxu2 %v17576_v42  ;;  %v16374_v1 = vld [vmem:[#allocation31 + $0xa2c] sm:$0xf]  ;;  %v11664_v9 = vor.u32 %v16246_v62, %v11661_v0  ;;  %v5275_v38 = vadd.f32 %v5274_v34, %v5261_v33  ;;  %v16159_v33 = vld [vmem:[#allocation31 + $0x36c] sm:$0xf0] }
 0x560   :  { %v12428_v31 = vor.u32 %v16446_v11, %v12427_v10  ;;  %5493 = vmatpush.bf16.msrb.mxu0 %v11916_v30  ;;  %5512 = vmatpush.bf16.msrb.mxu2 %v11344_v32  ;;  %v12173_v2 = vld [vmem:[#allocation31 + $0xa68] sm:$0xf0] }
 0x561   :  { %5481 = vmatmul.bf16.vlgmr.msra.gmra.mxu3 %v17578_v43  ;;  %v16502_v3 = vld [vmem:[#allocation31 + $0xe2c] sm:$0xf]  ;;  %v12176_v19 = vor.u32 %v16374_v1, %v12173_v2  ;;  %v5288_v45 = vadd.f32 %v5287_v6, %v5275_v38  ;;  %v12307_v38 = vld [vmem:[#allocation31 + $0xb30] sm:$0xf] }
 0x562   :  { %5506 = vmatpush.bf16.msrb.mxu1 %v12428_v31  ;;  %5525 = vmatpush.bf16.msrb.mxu3 %v11856_v18  ;;  %v12685_v4 = vld [vmem:[#allocation31 + $0xe68] sm:$0xf0] }
 0x563   :  { %5494 = vmatmul.bf16.vlgmr.msrb.gmra.mxu0 %v17580_v44  ;;  %v16102_v10 = vld [vmem:[#allocation31 + $0x1ac] sm:$0xf]  ;;  %v12688_v17 = vor.u32 %v16502_v3, %v12685_v4  ;;  %v17640_v57 = vadd.f32 %v5300_v7, %v5288_v45  ;;  %v11347_v7 = vld [vmem:[#allocation31 + $0x3b0] sm:$0xf] }
 0x564   :  { %5538 = vmatpush.bf16.msra.mxu0 %v12368_v35  ;;  %5513 = vmatpush.bf16.msrb.mxu2 %v11280_v46  ;;  %v11085_v11 = vld [vmem:[#allocation31 + $0x1e8] sm:$0xf0]  ;;  %v5289_v46 = vpop.f32.mrf.mxu0 }
 0x565   :  { %5507 = vmatmul.bf16.vlgmr.msrb.gmra.mxu1 %v17582_v47  ;;  %v16230_v21 = vld [vmem:[#allocation31 + $0x5ac] sm:$0xf]  ;;  %v11088_v27 = vor.u32 %v16102_v10, %v11085_v11 }
 0x566   :  { %5551 = vmatpush.bf16.msra.mxu1 %v12880_v36  ;;  %5526 = vmatpush.bf16.msrb.mxu3 %v11792_v14  ;;  %v11597_v13 = vld [vmem:[#allocation31 + $0x5e8] sm:$0xf0]  ;;  %v5302_v14 = vpop.f32.mrf.mxu1  ;;  %v5263_v4 = vpop.f32.mrf.mxu2 }
 0x567   :  { %v12109_v25 = vld [vmem:[#allocation31 + $0x9e8] sm:$0xf0]  ;;  %v11600_v29 = vor.u32 %v16230_v21, %v11597_v13  ;;  %v5276_v6 = vpop.f32.mrf.mxu3  ;;  %v16303_v21 = vld [vmem:[#allocation31 + $0x7ec] sm:$0xf0] }
 0x568   :  { %5539 = vmatpush.bf16.msra.mxu0 %v12304_v49  ;;  %5514 = vmatpush.bf16.msrb.mxu2 %v11216_v23  ;;  %v16486_v26 = vld [vmem:[#allocation31 + $0xdac] sm:$0xf]  ;;  %v12112_v32 = vor.u32 %v16358_v22, %v12109_v25  ;;  %v12371_v13 = vld [vmem:[#allocation31 + $0xbb0] sm:$0xf] }
 0x569   :  { %v12621_v28 = vld [vmem:[#allocation31 + $0xde8] sm:$0xf0]  ;;  %v11219_v14 = vld [vmem:[#allocation31 + $0x2b0] sm:$0xf] }
 0x56a   :  { %5552 = vmatpush.bf16.msra.mxu1 %v12816_v50  ;;  %5527 = vmatpush.bf16.msrb.mxu3 %v11728_v56  ;;  %v16086_v30 = vld [vmem:[#allocation31 + $0x12c] sm:$0xf]  ;;  %v12624_v18 = vor.u32 %v16486_v26, %v12621_v28  ;;  %v16431_v26 = vld [vmem:[#allocation31 + $0xbec] sm:$0xf0] }
 0x56b   :  { %v11021_v31 = vld [vmem:[#allocation31 + $0x168] sm:$0xf0]  ;;  %v12883_v28 = vld [vmem:[#allocation31 + $0xfb0] sm:$0xf]  ;;  %v12372_v34 = vor.u32 %v16431_v26, %v12371_v13 }
 0x56c   :  { %5540 = vmatpush.bf16.msra.mxu0 %v12240_v60  ;;  %5515 = vmatpush.bf16.msrb.mxu2 %v11152_v8  ;;  %v16214_v35 = vld [vmem:[#allocation31 + $0x52c] sm:$0xf]  ;;  %v11024_v20 = vor.u32 %v16086_v30, %v11021_v31  ;;  %v16511_v4 = vld [vmem:[#allocation31 + $0xe6c] sm:$0xf0] }
 0x56d   :  { %v11533_v36 = vld [vmem:[#allocation31 + $0x568] sm:$0xf0]  ;;  %v16239_v13 = vld [vmem:[#allocation31 + $0x5ec] sm:$0xf0] }
 0x56e   :  { %5553 = vmatpush.bf16.msra.mxu1 %v12752_v61  ;;  %5528 = vmatpush.bf16.msrb.mxu3 %v11664_v9  ;;  %v16342_v37 = vld [vmem:[#allocation31 + $0x92c] sm:$0xf]  ;;  %v11536_v48 = vor.u32 %v16214_v35, %v11533_v36  ;;  %v11795_v36 = vld [vmem:[#allocation31 + $0x730] sm:$0xf] }
 0x56f   :  { %v12045_v39 = vld [vmem:[#allocation31 + $0x968] sm:$0xf0]  ;;  %v12627_v26 = vld [vmem:[#allocation31 + $0xdb0] sm:$0xf] }
 0x570   :  { %5541 = vmatpush.bf16.msra.mxu0 %v12176_v19  ;;  %v16470_v40 = vld [vmem:[#allocation31 + $0xd2c] sm:$0xf]  ;;  %5516 = vmatpush.bf16.msrb.mxu2 %v11088_v27  ;;  %v12048_v51 = vor.u32 %v16342_v37, %v12045_v39  ;;  %v16175_v19 = vld [vmem:[#allocation31 + $0x3ec] sm:$0xf0] }
 0x571   :  { %v12557_v41 = vld [vmem:[#allocation31 + $0xd68] sm:$0xf0]  ;;  %v16559_v27 = vld [vmem:[#allocation31 + $0xfec] sm:$0xf0]  ;;  %v11348_v31 = vor.u32 %v16175_v19, %v11347_v7 }
 0x572   :  { %5554 = vmatpush.bf16.msra.mxu1 %v12688_v17  ;;  %5529 = vmatpush.bf16.msrb.mxu3 %v11600_v29  ;;  %v16070_v49 = vld [vmem:[#allocation31 + $0xac] sm:$0xf]  ;;  %v12560_v52 = vor.u32 %v16470_v40, %v12557_v41  ;;  %v11859_v17 = vld [vmem:[#allocation31 + $0x7b0] sm:$0xf]  ;;  %v12884_v35 = vor.u32 %v16559_v27, %v12883_v28 }
 0x573   :  { %v10957_v50 = vld [vmem:[#allocation31 + $0xe8] sm:$0xf0]  ;;  %v16287_v37 = vld [vmem:[#allocation31 + $0x76c] sm:$0xf0] }
 0x574   :  { %5542 = vmatpush.bf16.msra.mxu0 %v12112_v32  ;;  %v16198_v53 = vld [vmem:[#allocation31 + $0x4ac] sm:$0xf]  ;;  %5517 = vmatpush.bf16.msrb.mxu2 %v11024_v20  ;;  %v10960_v60 = vor.u32 %v16070_v49, %v10957_v50  ;;  %v11860_v32 = vor.u32 %v16303_v21, %v11859_v17  ;;  %v16415_v39 = vld [vmem:[#allocation31 + $0xb6c] sm:$0xf0]  ;;  %v11796_v46 = vor.u32 %v16287_v37, %v11795_v36 }
 0x575   :  { %v11469_v24 = vld [vmem:[#allocation31 + $0x4e8] sm:$0xf0]  ;;  %v12819_v40 = vld [vmem:[#allocation31 + $0xf30] sm:$0xf] }
 0x576   :  { %5555 = vmatpush.bf16.msra.mxu1 %v12624_v18  ;;  %v16326_v54 = vld [vmem:[#allocation31 + $0x8ac] sm:$0xf]  ;;  %5530 = vmatpush.bf16.msrb.mxu3 %v11536_v48  ;;  %v11472_v61 = vor.u32 %v16198_v53, %v11469_v24  ;;  %v11283_v18 = vld [vmem:[#allocation31 + $0x330] sm:$0xf]  ;;  %v12308_v48 = vor.u32 %v16415_v39, %v12307_v38 }
 0x577   :  { %v11981_v55 = vld [vmem:[#allocation31 + $0x8e8] sm:$0xf0]  ;;  %v16543_v41 = vld [vmem:[#allocation31 + $0xf6c] sm:$0xf0]  ;;  %v11284_v45 = vor.u32 %v16159_v33, %v11283_v18 }
 0x578   :  { %v16454_v23 = vld [vmem:[#allocation31 + $0xcac] sm:$0xf]  ;;  %5543 = vmatpush.bf16.msra.mxu0 %v12048_v51  ;;  %v11984_v2 = vor.u32 %v16326_v54, %v11981_v55  ;;  %5518 = vmatpush.bf16.msrb.mxu2 %v10960_v60  ;;  %v16143_v20 = vld [vmem:[#allocation31 + $0x2ec] sm:$0xf0]  ;;  %v12820_v49 = vor.u32 %v16543_v41, %v12819_v40 }
 0x579   :  { %v12493_v56 = vld [vmem:[#allocation31 + $0xce8] sm:$0xf0]  ;;  %v11731_v50 = vld [vmem:[#allocation31 + $0x6b0] sm:$0xf]  ;;  %v11220_v55 = vor.u32 %v16143_v20, %v11219_v14 }
 0x57a   :  { %v16054_v58 = vld [vmem:[#allocation31 + $0x2c] sm:$0xf]  ;;  %5556 = vmatpush.bf16.msra.mxu1 %v12560_v52  ;;  %v12496_v3 = vor.u32 %v16454_v23, %v12493_v56  ;;  %5531 = vmatpush.bf16.msrb.mxu3 %v11472_v61  ;;  %v16271_v51 = vld [vmem:[#allocation31 + $0x6ec] sm:$0xf0] }
 0x57b   :  { %v10893_v62 = vld [vmem:[#allocation31 + $0x68] sm:$0xf0]  ;;  %v12243_v52 = vld [vmem:[#allocation31 + $0xab0] sm:$0xf]  ;;  %v11732_v23 = vor.u32 %v16271_v51, %v11731_v50  ;;  %v5339_v6 = vpop.f32.mrf.mxu0 }
 0x57c   :  { %v16182_v0 = vld [vmem:[#allocation31 + $0x42c] sm:$0xf]  ;;  %v10896_v22 = vor.u32 %v16054_v58, %v10893_v62  ;;  %5544 = vmatpush.bf16.msra.mxu0 %v11984_v2  ;;  %v16399_v53 = vld [vmem:[#allocation31 + $0xaec] sm:$0xf0] }
 0x57d   :  { %v11405_v1 = vld [vmem:[#allocation31 + $0x468] sm:$0xf0]  ;;  %v12755_v24 = vld [vmem:[#allocation31 + $0xeb0] sm:$0xf]  ;;  %v12244_v60 = vor.u32 %v16399_v53, %v12243_v52 }
 0x57e   :  { %v16310_v8 = vld [vmem:[#allocation31 + $0x82c] sm:$0xf]  ;;  %v11408_v25 = vor.u32 %v16182_v0, %v11405_v1  ;;  %5557 = vmatpush.bf16.msra.mxu1 %v12496_v3  ;;  %5519 = vmatpush.bf16.msrb.mxu2 %v10896_v22  ;;  %v16527_v54 = vld [vmem:[#allocation31 + $0xeec] sm:$0xf0]  ;;  %v5313_v33 = vpop.f32.mrf.mxu2 }
 0x57f   :  { %v11917_v9 = vld [vmem:[#allocation31 + $0x868] sm:$0xf0]  ;;  %v11155_v56 = vld [vmem:[#allocation31 + $0x230] sm:$0xf]  ;;  %v12756_v61 = vor.u32 %v16527_v54, %v12755_v24 }
 0x580   :  { %v16438_v10 = vld [vmem:[#allocation31 + $0xc2c] sm:$0xf]  ;;  %v11920_v29 = vor.u32 %v16310_v8, %v11917_v9  ;;  %5532 = vmatpush.bf16.msrb.mxu3 %v11408_v25  ;;  %v16127_v58 = vld [vmem:[#allocation31 + $0x26c] sm:$0xf0]  ;;  %v5352_v8 = vpop.f32.mrf.mxu1 }
 0x581   :  { %v12429_v11 = vld [vmem:[#allocation31 + $0xc68] sm:$0xf0]  ;;  %5520 = vmatmul.bf16.vlgmr.msrb.gmra.mxu2 %v17576_v42  ;;  %v11667_v62 = vld [vmem:[#allocation31 + $0x630] sm:$0xf]  ;;  %v11156_v9 = vor.u32 %v16127_v58, %v11155_v56 }
 0x582   :  { %v12432_v30 = vor.u32 %v16438_v10, %v12429_v11  ;;  %5545 = vmatpush.bf16.msra.mxu0 %v11920_v29  ;;  %5564 = vmatpush.bf16.msra.mxu2 %v11348_v31  ;;  %v16255_v0 = vld [vmem:[#allocation31 + $0x66c] sm:$0xf0] }
 0x583   :  { %5533 = vmatmul.bf16.vlgmr.msrb.gmra.mxu3 %v17578_v43  ;;  %v12179_v1 = vld [vmem:[#allocation31 + $0xa30] sm:$0xf]  ;;  %v11668_v10 = vor.u32 %v16255_v0, %v11667_v62 }
 0x584   :  { %5558 = vmatpush.bf16.msra.mxu1 %v12432_v30  ;;  %5577 = vmatpush.bf16.msra.mxu3 %v11860_v32  ;;  %v16383_v2 = vld [vmem:[#allocation31 + $0xa6c] sm:$0xf0] }
 0x585   :  { %5546 = vmatmul.bf16.vlgmr.msra.gmra.mxu0 %v17580_v44  ;;  %v12691_v3 = vld [vmem:[#allocation31 + $0xe30] sm:$0xf]  ;;  %v12180_v19 = vor.u32 %v16383_v2, %v12179_v1 }
 0x586   :  { %5590 = vmatpush.bf16.msrb.mxu0 %v12372_v34  ;;  %5565 = vmatpush.bf16.msra.mxu2 %v11284_v45  ;;  %v11091_v11 = vld [vmem:[#allocation31 + $0x1b0] sm:$0xf]  ;;  %v12692_v17 = vor.u32 %v16511_v4, %v12691_v3  ;;  %v5326_v34 = vpop.f32.mrf.mxu3 }
 0x587   :  { %5559 = vmatmul.bf16.vlgmr.msra.gmra.mxu1 %v17582_v47  ;;  %v16111_v7 = vld [vmem:[#allocation31 + $0x1ec] sm:$0xf0]  ;;  %v5327_v38 = vadd.f32 %v5326_v34, %v5313_v33  ;;  %v16151_v33 = vld [vmem:[#allocation31 + $0x334] sm:$0xf] }
 0x588   :  { %5603 = vmatpush.bf16.msrb.mxu1 %v12884_v35  ;;  %5578 = vmatpush.bf16.msra.mxu3 %v11796_v46  ;;  %v11603_v21 = vld [vmem:[#allocation31 + $0x5b0] sm:$0xf]  ;;  %v11092_v27 = vor.u32 %v16111_v7, %v11091_v11  ;;  %v5341_v46 = vpop.f32.mrf.mxu0  ;;  %v5354_v14 = vpop.f32.mrf.mxu1  ;;  %v11285_v34 = vld [vmem:[#allocation31 + $0x370] sm:$0xf0] }
 0x589   :  { %v12115_v22 = vld [vmem:[#allocation31 + $0x9b0] sm:$0xf]  ;;  %v11604_v29 = vor.u32 %v16239_v13, %v11603_v21  ;;  %v5340_v45 = vadd.f32 %v5339_v6, %v5327_v38  ;;  %v5315_v6 = vpop.f32.mrf.mxu2  ;;  %v16295_v21 = vld [vmem:[#allocation31 + $0x7b4] sm:$0xf]  ;;  %v11288_v46 = vor.u32 %v16151_v33, %v11285_v34 }
 0x58a   :  { %5591 = vmatpush.bf16.msrb.mxu0 %v12308_v48  ;;  %5566 = vmatpush.bf16.msra.mxu2 %v11220_v55  ;;  %v16367_v25 = vld [vmem:[#allocation31 + $0x9ec] sm:$0xf0]  ;;  %v11861_v13 = vld [vmem:[#allocation31 + $0x7f0] sm:$0xf0] }
 0x58b   :  { %v16495_v28 = vld [vmem:[#allocation31 + $0xdec] sm:$0xf0]  ;;  %v12116_v32 = vor.u32 %v16367_v25, %v12115_v22  ;;  %v17646_v58 = vadd.f32 %v5352_v8, %v5340_v45  ;;  %v16167_v8 = vld [vmem:[#allocation31 + $0x3b4] sm:$0xf] }
 0x58c   :  { %5604 = vmatpush.bf16.msrb.mxu1 %v12820_v49  ;;  %5579 = vmatpush.bf16.msra.mxu3 %v11732_v23  ;;  %v11027_v30 = vld [vmem:[#allocation31 + $0x130] sm:$0xf]  ;;  %v12628_v18 = vor.u32 %v16495_v28, %v12627_v26  ;;  %v16423_v22 = vld [vmem:[#allocation31 + $0xbb4] sm:$0xf] }
 0x58d   :  { %v16095_v31 = vld [vmem:[#allocation31 + $0x16c] sm:$0xf0]  ;;  %v12373_v28 = vld [vmem:[#allocation31 + $0xbf0] sm:$0xf0] }
 0x58e   :  { %5592 = vmatpush.bf16.msrb.mxu0 %v12244_v60  ;;  %5567 = vmatpush.bf16.msra.mxu2 %v11156_v9  ;;  %v11539_v35 = vld [vmem:[#allocation31 + $0x530] sm:$0xf]  ;;  %v11028_v20 = vor.u32 %v16095_v31, %v11027_v30  ;;  %v5328_v9 = vpop.f32.mrf.mxu3  ;;  %v11797_v38 = vld [vmem:[#allocation31 + $0x770] sm:$0xf0] }
 0x58f   :  { %v16223_v36 = vld [vmem:[#allocation31 + $0x56c] sm:$0xf0]  ;;  %v12821_v45 = vld [vmem:[#allocation31 + $0xf70] sm:$0xf0] }
 0x590   :  { %5605 = vmatpush.bf16.msrb.mxu1 %v12756_v61  ;;  %5580 = vmatpush.bf16.msra.mxu3 %v11668_v10  ;;  %v12051_v37 = vld [vmem:[#allocation31 + $0x930] sm:$0xf]  ;;  %v11540_v48 = vor.u32 %v16223_v36, %v11539_v35  ;;  %v12376_v35 = vor.u32 %v16423_v22, %v12373_v28  ;;  %v16503_v6 = vld [vmem:[#allocation31 + $0xe34] sm:$0xf] }
 0x591   :  { %v16351_v39 = vld [vmem:[#allocation31 + $0x96c] sm:$0xf0]  ;;  %v12693_v9 = vld [vmem:[#allocation31 + $0xe70] sm:$0xf0] }
 0x592   :  { %5593 = vmatpush.bf16.msrb.mxu0 %v12180_v19  ;;  %v12563_v40 = vld [vmem:[#allocation31 + $0xd30] sm:$0xf]  ;;  %5568 = vmatpush.bf16.msra.mxu2 %v11092_v27  ;;  %v12052_v51 = vor.u32 %v16351_v39, %v12051_v37  ;;  %v16551_v27 = vld [vmem:[#allocation31 + $0xfb4] sm:$0xf] }
 0x593   :  { %v16479_v41 = vld [vmem:[#allocation31 + $0xd6c] sm:$0xf0]  ;;  %v16279_v37 = vld [vmem:[#allocation31 + $0x734] sm:$0xf] }
 0x594   :  { %5606 = vmatpush.bf16.msrb.mxu1 %v12692_v17  ;;  %5581 = vmatpush.bf16.msra.mxu3 %v11604_v29  ;;  %v10963_v49 = vld [vmem:[#allocation31 + $0xb0] sm:$0xf]  ;;  %v12564_v52 = vor.u32 %v16479_v41, %v12563_v40  ;;  %v11349_v17 = vld [vmem:[#allocation31 + $0x3f0] sm:$0xf0]  ;;  %v11800_v14 = vor.u32 %v16279_v37, %v11797_v38 }
 0x595   :  { %v16079_v50 = vld [vmem:[#allocation31 + $0xec] sm:$0xf0]  ;;  %v12885_v29 = vld [vmem:[#allocation31 + $0xff0] sm:$0xf0] }
 0x596   :  { %5594 = vmatpush.bf16.msrb.mxu0 %v12116_v32  ;;  %v11475_v53 = vld [vmem:[#allocation31 + $0x4b0] sm:$0xf]  ;;  %5569 = vmatpush.bf16.msra.mxu2 %v11028_v20  ;;  %v10964_v61 = vor.u32 %v16079_v50, %v10963_v49  ;;  %v11352_v32 = vor.u32 %v16167_v8, %v11349_v17  ;;  %v12888_v36 = vor.u32 %v16551_v27, %v12885_v29  ;;  %v16407_v39 = vld [vmem:[#allocation31 + $0xb34] sm:$0xf] }
 0x597   :  { %v16207_v24 = vld [vmem:[#allocation31 + $0x4ec] sm:$0xf0]  ;;  %v12309_v40 = vld [vmem:[#allocation31 + $0xb70] sm:$0xf0] }
 0x598   :  { %5607 = vmatpush.bf16.msrb.mxu1 %v12628_v18  ;;  %v11987_v54 = vld [vmem:[#allocation31 + $0x8b0] sm:$0xf]  ;;  %5582 = vmatpush.bf16.msra.mxu3 %v11540_v48  ;;  %v11476_v62 = vor.u32 %v16207_v24, %v11475_v53  ;;  %v11864_v18 = vor.u32 %v16295_v21, %v11861_v13  ;;  %v16535_v41 = vld [vmem:[#allocation31 + $0xf34] sm:$0xf]  ;;  %v12312_v49 = vor.u32 %v16407_v39, %v12309_v40 }
 0x599   :  { %v16335_v55 = vld [vmem:[#allocation31 + $0x8ec] sm:$0xf0]  ;;  %v16135_v20 = vld [vmem:[#allocation31 + $0x2b4] sm:$0xf]  ;;  %v12824_v50 = vor.u32 %v16535_v41, %v12821_v45  ;;  %v12696_v13 = vor.u32 %v16503_v6, %v12693_v9 }
 0x59a   :  { %v12499_v23 = vld [vmem:[#allocation31 + $0xcb0] sm:$0xf]  ;;  %5595 = vmatpush.bf16.msrb.mxu0 %v12052_v51  ;;  %v11988_v3 = vor.u32 %v16335_v55, %v11987_v54  ;;  %5570 = vmatpush.bf16.msra.mxu2 %v10964_v61  ;;  %v11221_v48 = vld [vmem:[#allocation31 + $0x2f0] sm:$0xf0] }
 0x59b   :  { %v16463_v56 = vld [vmem:[#allocation31 + $0xcec] sm:$0xf0]  ;;  %v16263_v51 = vld [vmem:[#allocation31 + $0x6b4] sm:$0xf] }
 0x59c   :  { %v10899_v60 = vld [vmem:[#allocation31 + $0x30] sm:$0xf]  ;;  %5608 = vmatpush.bf16.msrb.mxu1 %v12564_v52  ;;  %v12500_v4 = vor.u32 %v16463_v56, %v12499_v23  ;;  %5583 = vmatpush.bf16.msra.mxu3 %v11476_v62  ;;  %v11733_v52 = vld [vmem:[#allocation31 + $0x6f0] sm:$0xf0]  ;;  %v11224_v23 = vor.u32 %v16135_v20, %v11221_v48 }
 0x59d   :  { %v16063_v0 = vld [vmem:[#allocation31 + $0x6c] sm:$0xf0]  ;;  %v16391_v53 = vld [vmem:[#allocation31 + $0xab4] sm:$0xf]  ;;  %v11736_v56 = vor.u32 %v16263_v51, %v11733_v52 }
 0x59e   :  { %v11411_v1 = vld [vmem:[#allocation31 + $0x430] sm:$0xf]  ;;  %v10900_v25 = vor.u32 %v16063_v0, %v10899_v60  ;;  %5596 = vmatpush.bf16.msrb.mxu0 %v11988_v3  ;;  %v12245_v24 = vld [vmem:[#allocation31 + $0xaf0] sm:$0xf0] }
 0x59f   :  { %v16191_v2 = vld [vmem:[#allocation31 + $0x46c] sm:$0xf0]  ;;  %v16519_v54 = vld [vmem:[#allocation31 + $0xeb4] sm:$0xf]  ;;  %v12248_v62 = vor.u32 %v16391_v53, %v12245_v24 }
 0x5a0   :  { %v11923_v10 = vld [vmem:[#allocation31 + $0x830] sm:$0xf]  ;;  %v11412_v26 = vor.u32 %v16191_v2, %v11411_v1  ;;  %5609 = vmatpush.bf16.msrb.mxu1 %v12500_v4  ;;  %5571 = vmatpush.bf16.msra.mxu2 %v10900_v25  ;;  %v12757_v55 = vld [vmem:[#allocation31 + $0xef0] sm:$0xf0] }
 0x5a1   :  { %v16319_v11 = vld [vmem:[#allocation31 + $0x86c] sm:$0xf0]  ;;  %v16119_v60 = vld [vmem:[#allocation31 + $0x234] sm:$0xf]  ;;  %v12760_v0 = vor.u32 %v16519_v54, %v12757_v55 }
 0x5a2   :  { %v12435_v7 = vld [vmem:[#allocation31 + $0xc30] sm:$0xf]  ;;  %v11924_v30 = vor.u32 %v16319_v11, %v11923_v10  ;;  %5584 = vmatpush.bf16.msra.mxu3 %v11412_v26  ;;  %v11157_v61 = vld [vmem:[#allocation31 + $0x270] sm:$0xf0]  ;;  %v5391_v10 = vpop.f32.mrf.mxu0  ;;  %v5404_v11 = vpop.f32.mrf.mxu1 }
 0x5a3   :  { %v16447_v19 = vld [vmem:[#allocation31 + $0xc6c] sm:$0xf0]  ;;  %5572 = vmatmul.bf16.vlgmr.msra.gmra.mxu2 %v17576_v42  ;;  %v16247_v1 = vld [vmem:[#allocation31 + $0x634] sm:$0xf] }
 0x5a4   :  { %v12436_v31 = vor.u32 %v16447_v19, %v12435_v7  ;;  %5597 = vmatpush.bf16.msrb.mxu0 %v11924_v30  ;;  %5616 = vmatpush.bf16.msrb.mxu2 %v11352_v32  ;;  %v11669_v2 = vld [vmem:[#allocation31 + $0x670] sm:$0xf0]  ;;  %v11160_v7 = vor.u32 %v16119_v60, %v11157_v61 }
 0x5a5   :  { %5585 = vmatmul.bf16.vlgmr.msra.gmra.mxu3 %v17578_v43  ;;  %v16375_v3 = vld [vmem:[#allocation31 + $0xa34] sm:$0xf]  ;;  %v11672_v19 = vor.u32 %v16247_v1, %v11669_v2 }
 0x5a6   :  { %5610 = vmatpush.bf16.msrb.mxu1 %v12436_v31  ;;  %5629 = vmatpush.bf16.msrb.mxu3 %v11864_v18  ;;  %v12181_v4 = vld [vmem:[#allocation31 + $0xa70] sm:$0xf0] }
 0x5a7   :  { %5598 = vmatmul.bf16.vlgmr.msrb.gmra.mxu0 %v17580_v44  ;;  %v16103_v8 = vld [vmem:[#allocation31 + $0x1b4] sm:$0xf]  ;;  %v12184_v21 = vor.u32 %v16375_v3, %v12181_v4 }
 0x5a8   :  { %5642 = vmatpush.bf16.msra.mxu0 %v12376_v35  ;;  %5617 = vmatpush.bf16.msrb.mxu2 %v11288_v46  ;;  %v11093_v17 = vld [vmem:[#allocation31 + $0x1f0] sm:$0xf0]  ;;  %v5365_v35 = vpop.f32.mrf.mxu2 }
 0x5a9   :  { %5611 = vmatmul.bf16.vlgmr.msrb.gmra.mxu1 %v17582_v47  ;;  %v16231_v22 = vld [vmem:[#allocation31 + $0x5b4] sm:$0xf]  ;;  %v11096_v30 = vor.u32 %v16103_v8, %v11093_v17 }
 0x5aa   :  { %5655 = vmatpush.bf16.msra.mxu1 %v12888_v36  ;;  %5630 = vmatpush.bf16.msrb.mxu3 %v11800_v14  ;;  %v11605_v25 = vld [vmem:[#allocation31 + $0x5f0] sm:$0xf0]  ;;  %v5378_v36 = vpop.f32.mrf.mxu3  ;;  %v5393_v20 = vpop.f32.mrf.mxu0 }
 0x5ab   :  { %v16359_v26 = vld [vmem:[#allocation31 + $0x9b4] sm:$0xf]  ;;  %v11608_v31 = vor.u32 %v16231_v22, %v11605_v25  ;;  %v5379_v40 = vadd.f32 %v5378_v36, %v5365_v35  ;;  %v5406_v48 = vpop.f32.mrf.mxu1  ;;  %v16176_v22 = vld [vmem:[#allocation31 + $0x3f4] sm:$0xf0] }
 0x5ac   :  { %5643 = vmatpush.bf16.msra.mxu0 %v12312_v49  ;;  %5618 = vmatpush.bf16.msrb.mxu2 %v11224_v23  ;;  %v12117_v28 = vld [vmem:[#allocation31 + $0x9f0] sm:$0xf0]  ;;  %v11867_v25 = vld [vmem:[#allocation31 + $0x7b8] sm:$0xf] }
 0x5ad   :  { %v16487_v27 = vld [vmem:[#allocation31 + $0xdb4] sm:$0xf]  ;;  %v12120_v33 = vor.u32 %v16359_v26, %v12117_v28  ;;  %v5392_v14 = vadd.f32 %v5391_v10, %v5379_v40  ;;  %v16304_v26 = vld [vmem:[#allocation31 + $0x7f4] sm:$0xf0] }
 0x5ae   :  { %5656 = vmatpush.bf16.msra.mxu1 %v12824_v50  ;;  %5631 = vmatpush.bf16.msrb.mxu3 %v11736_v56  ;;  %v12629_v29 = vld [vmem:[#allocation31 + $0xdf0] sm:$0xf0]  ;;  %v12379_v28 = vld [vmem:[#allocation31 + $0xbb8] sm:$0xf]  ;;  %v11868_v35 = vor.u32 %v16304_v26, %v11867_v25 }
 0x5af   :  { %v16087_v32 = vld [vmem:[#allocation31 + $0x134] sm:$0xf]  ;;  %v12632_v34 = vor.u32 %v16487_v27, %v12629_v29  ;;  %v11291_v36 = vld [vmem:[#allocation31 + $0x338] sm:$0xf] }
 0x5b0   :  { %5644 = vmatpush.bf16.msra.mxu0 %v12248_v62  ;;  %5619 = vmatpush.bf16.msrb.mxu2 %v11160_v7  ;;  %v11029_v18 = vld [vmem:[#allocation31 + $0x170] sm:$0xf0]  ;;  %v17652_v62 = vadd.f32 %v5404_v11, %v5392_v14  ;;  %v5367_v7 = vpop.f32.mrf.mxu2  ;;  %v11355_v11 = vld [vmem:[#allocation31 + $0x3b8] sm:$0xf] }
 0x5b1   :  { %v16215_v37 = vld [vmem:[#allocation31 + $0x534] sm:$0xf]  ;;  %v11032_v49 = vor.u32 %v16087_v32, %v11029_v18  ;;  %v16560_v32 = vld [vmem:[#allocation31 + $0xff4] sm:$0xf0] }
 0x5b2   :  { %5657 = vmatpush.bf16.msra.mxu1 %v12760_v0  ;;  %5632 = vmatpush.bf16.msrb.mxu3 %v11672_v19  ;;  %v11541_v38 = vld [vmem:[#allocation31 + $0x570] sm:$0xf0]  ;;  %v5380_v19 = vpop.f32.mrf.mxu3  ;;  %v11803_v40 = vld [vmem:[#allocation31 + $0x738] sm:$0xf] }
 0x5b3   :  { %v16343_v39 = vld [vmem:[#allocation31 + $0x934] sm:$0xf]  ;;  %v11544_v50 = vor.u32 %v16215_v37, %v11541_v38  ;;  %v16160_v37 = vld [vmem:[#allocation31 + $0x374] sm:$0xf0] }
 0x5b4   :  { %5645 = vmatpush.bf16.msra.mxu0 %v12184_v21  ;;  %v12053_v41 = vld [vmem:[#allocation31 + $0x970] sm:$0xf0]  ;;  %5620 = vmatpush.bf16.msrb.mxu2 %v11096_v30  ;;  %v16432_v30 = vld [vmem:[#allocation31 + $0xbf4] sm:$0xf0]  ;;  %v11292_v48 = vor.u32 %v16160_v37, %v11291_v36 }
 0x5b5   :  { %v16471_v45 = vld [vmem:[#allocation31 + $0xd34] sm:$0xf]  ;;  %v12056_v53 = vor.u32 %v16343_v39, %v12053_v41  ;;  %v12380_v38 = vor.u32 %v16432_v30, %v12379_v28  ;;  %v16288_v41 = vld [vmem:[#allocation31 + $0x774] sm:$0xf0] }
 0x5b6   :  { %5658 = vmatpush.bf16.msra.mxu1 %v12696_v13  ;;  %v12565_v46 = vld [vmem:[#allocation31 + $0xd70] sm:$0xf0]  ;;  %5633 = vmatpush.bf16.msrb.mxu3 %v11608_v31  ;;  %v12891_v31 = vld [vmem:[#allocation31 + $0xfb8] sm:$0xf] }
 0x5b7   :  { %v16071_v51 = vld [vmem:[#allocation31 + $0xb4] sm:$0xf]  ;;  %v12568_v24 = vor.u32 %v16471_v45, %v12565_v46  ;;  %v12892_v39 = vor.u32 %v16560_v32, %v12891_v31  ;;  %v12315_v45 = vld [vmem:[#allocation31 + $0xb38] sm:$0xf] }
 0x5b8   :  { %v10965_v52 = vld [vmem:[#allocation31 + $0xf0] sm:$0xf0]  ;;  %5646 = vmatpush.bf16.msra.mxu0 %v12120_v33  ;;  %5621 = vmatpush.bf16.msrb.mxu2 %v11032_v49  ;;  %v16416_v46 = vld [vmem:[#allocation31 + $0xb74] sm:$0xf0]  ;;  %v11804_v49 = vor.u32 %v16288_v41, %v11803_v40 }
 0x5b9   :  { %v16199_v54 = vld [vmem:[#allocation31 + $0x4b4] sm:$0xf]  ;;  %v10968_v1 = vor.u32 %v16071_v51, %v10965_v52  ;;  %v12827_v14 = vld [vmem:[#allocation31 + $0xf38] sm:$0xf]  ;;  %v12316_v52 = vor.u32 %v16416_v46, %v12315_v45 }
 0x5ba   :  { %5659 = vmatpush.bf16.msra.mxu1 %v12632_v34  ;;  %v11477_v55 = vld [vmem:[#allocation31 + $0x4f0] sm:$0xf0]  ;;  %5634 = vmatpush.bf16.msrb.mxu3 %v11544_v50  ;;  %v11356_v34 = vor.u32 %v16176_v22, %v11355_v11  ;;  %v16544_v20 = vld [vmem:[#allocation31 + $0xf74] sm:$0xf0] }
 0x5bb   :  { %v16327_v23 = vld [vmem:[#allocation31 + $0x8b4] sm:$0xf]  ;;  %v11480_v2 = vor.u32 %v16199_v54, %v11477_v55  ;;  %v11227_v50 = vld [vmem:[#allocation31 + $0x2b8] sm:$0xf] }
 0x5bc   :  { %v11989_v56 = vld [vmem:[#allocation31 + $0x8f0] sm:$0xf0]  ;;  %5647 = vmatpush.bf16.msra.mxu0 %v12056_v53  ;;  %5622 = vmatpush.bf16.msrb.mxu2 %v10968_v1  ;;  %v16144_v51 = vld [vmem:[#allocation31 + $0x2f4] sm:$0xf0]  ;;  %v12828_v53 = vor.u32 %v16544_v20, %v12827_v14 }
 0x5bd   :  { %v16455_v60 = vld [vmem:[#allocation31 + $0xcb4] sm:$0xf]  ;;  %v11992_v9 = vor.u32 %v16327_v23, %v11989_v56  ;;  %v16272_v54 = vld [vmem:[#allocation31 + $0x6f4] sm:$0xf0] }
 0x5be   :  { %v12501_v61 = vld [vmem:[#allocation31 + $0xcf0] sm:$0xf0]  ;;  %5660 = vmatpush.bf16.msra.mxu1 %v12568_v24  ;;  %5635 = vmatpush.bf16.msrb.mxu3 %v11480_v2  ;;  %v11739_v24 = vld [vmem:[#allocation31 + $0x6b8] sm:$0xf] }
 0x5bf   :  { %v16055_v0 = vld [vmem:[#allocation31 + $0x34] sm:$0xf]  ;;  %v12504_v10 = vor.u32 %v16455_v60, %v12501_v61  ;;  %v12251_v55 = vld [vmem:[#allocation31 + $0xab8] sm:$0xf]  ;;  %v11228_v61 = vor.u32 %v16144_v51, %v11227_v50 }
 0x5c0   :  { %v10901_v3 = vld [vmem:[#allocation31 + $0x70] sm:$0xf0]  ;;  %5648 = vmatpush.bf16.msra.mxu0 %v11992_v9  ;;  %v16400_v23 = vld [vmem:[#allocation31 + $0xaf4] sm:$0xf0] }
 0x5c1   :  { %v16183_v4 = vld [vmem:[#allocation31 + $0x434] sm:$0xf]  ;;  %v10904_v27 = vor.u32 %v16055_v0, %v10901_v3  ;;  %v12763_v56 = vld [vmem:[#allocation31 + $0xeb8] sm:$0xf]  ;;  %v11740_v0 = vor.u32 %v16272_v54, %v11739_v24  ;;  %v12252_v3 = vor.u32 %v16400_v23, %v12251_v55  ;;  %v5430_v40 = vpop.f32.mrf.mxu3 }
 0x5c2   :  { %v11413_v6 = vld [vmem:[#allocation31 + $0x470] sm:$0xf0]  ;;  %5661 = vmatpush.bf16.msra.mxu1 %v12504_v10  ;;  %v16528_v60 = vld [vmem:[#allocation31 + $0xef4] sm:$0xf0] }
 0x5c3   :  { %v16311_v8 = vld [vmem:[#allocation31 + $0x834] sm:$0xf]  ;;  %v11416_v29 = vor.u32 %v16183_v4, %v11413_v6  ;;  %5623 = vmatpush.bf16.msrb.mxu2 %v10904_v27  ;;  %v11163_v1 = vld [vmem:[#allocation31 + $0x238] sm:$0xf]  ;;  %v12764_v4 = vor.u32 %v16528_v60, %v12763_v56 }
 0x5c4   :  { %v11925_v17 = vld [vmem:[#allocation31 + $0x870] sm:$0xf0]  ;;  %v16128_v2 = vld [vmem:[#allocation31 + $0x274] sm:$0xf0] }
 0x5c5   :  { %v16439_v21 = vld [vmem:[#allocation31 + $0xc34] sm:$0xf]  ;;  %v11928_v18 = vor.u32 %v16311_v8, %v11925_v17  ;;  %5636 = vmatpush.bf16.msrb.mxu3 %v11416_v29  ;;  %v11675_v6 = vld [vmem:[#allocation31 + $0x638] sm:$0xf]  ;;  %v5443_v17 = vpop.f32.mrf.mxu0 }
 0x5c6   :  { %v12437_v13 = vld [vmem:[#allocation31 + $0xc70] sm:$0xf0]  ;;  %5624 = vmatmul.bf16.vlgmr.msrb.gmra.mxu2 %v17576_v42  ;;  %v16256_v9 = vld [vmem:[#allocation31 + $0x674] sm:$0xf0] }
 0x5c7   :  { %v12440_v33 = vor.u32 %v16439_v21, %v12437_v13  ;;  %5649 = vmatpush.bf16.msra.mxu0 %v11928_v18  ;;  %5668 = vmatpush.bf16.msra.mxu2 %v11356_v34  ;;  %v12187_v10 = vld [vmem:[#allocation31 + $0xa38] sm:$0xf]  ;;  %v5456_v21 = vpop.f32.mrf.mxu1  ;;  %v11164_v13 = vor.u32 %v16128_v2, %v11163_v1  ;;  %v11676_v11 = vor.u32 %v16256_v9, %v11675_v6 }
 0x5c8   :  { %5637 = vmatmul.bf16.vlgmr.msrb.gmra.mxu3 %v17578_v43  ;;  %v16384_v7 = vld [vmem:[#allocation31 + $0xa74] sm:$0xf0] }
 0x5c9   :  { %5662 = vmatpush.bf16.msra.mxu1 %v12440_v33  ;;  %5681 = vmatpush.bf16.msra.mxu3 %v11868_v35  ;;  %v12699_v19 = vld [vmem:[#allocation31 + $0xe38] sm:$0xf]  ;;  %v12188_v26 = vor.u32 %v16384_v7, %v12187_v10 }
 0x5ca   :  { %5650 = vmatmul.bf16.vlgmr.msra.gmra.mxu0 %v17580_v44  ;;  %v16512_v8 = vld [vmem:[#allocation31 + $0xe74] sm:$0xf0] }
 0x5cb   :  { %5694 = vmatpush.bf16.msrb.mxu0 %v12380_v38  ;;  %5669 = vmatpush.bf16.msra.mxu2 %v11292_v48  ;;  %v11099_v22 = vld [vmem:[#allocation31 + $0x1b8] sm:$0xf]  ;;  %v12700_v28 = vor.u32 %v16512_v8, %v12699_v19 }
 0x5cc   :  { %5663 = vmatmul.bf16.vlgmr.msra.gmra.mxu1 %v17582_v47  ;;  %v16112_v25 = vld [vmem:[#allocation31 + $0x1f4] sm:$0xf0] }
 0x5cd   :  { %5707 = vmatpush.bf16.msrb.mxu1 %v12892_v39  ;;  %5682 = vmatpush.bf16.msra.mxu3 %v11804_v49  ;;  %v11611_v27 = vld [vmem:[#allocation31 + $0x5b8] sm:$0xf]  ;;  %v11100_v33 = vor.u32 %v16112_v25, %v11099_v22  ;;  %v5417_v39 = vpop.f32.mrf.mxu2  ;;  %v5445_v51 = vpop.f32.mrf.mxu0 }
 0x5ce   :  { %v16240_v29 = vld [vmem:[#allocation31 + $0x5f4] sm:$0xf0]  ;;  %v5431_v14 = vadd.f32 %v5430_v40, %v5417_v39  ;;  %v5432_v22 = vpop.f32.mrf.mxu3  ;;  %v16536_v51 = vld [vmem:[#allocation31 + $0xf3c] sm:$0xf] }
 0x5cf   :  { %5695 = vmatpush.bf16.msrb.mxu0 %v12316_v52  ;;  %5670 = vmatpush.bf16.msra.mxu2 %v11228_v61  ;;  %v12123_v30 = vld [vmem:[#allocation31 + $0x9b8] sm:$0xf]  ;;  %v11612_v34 = vor.u32 %v16240_v29, %v11611_v27  ;;  %v5458_v52 = vpop.f32.mrf.mxu1  ;;  %v11357_v29 = vld [vmem:[#allocation31 + $0x3f8] sm:$0xf0] }
 0x5d0   :  { %v16368_v31 = vld [vmem:[#allocation31 + $0x9f4] sm:$0xf0]  ;;  %v5444_v50 = vadd.f32 %v5443_v17, %v5431_v14  ;;  %v12829_v52 = vld [vmem:[#allocation31 + $0xf78] sm:$0xf0] }
 0x5d1   :  { %5708 = vmatpush.bf16.msrb.mxu1 %v12828_v53  ;;  %5683 = vmatpush.bf16.msra.mxu3 %v11740_v0  ;;  %v12635_v32 = vld [vmem:[#allocation31 + $0xdb8] sm:$0xf]  ;;  %v12124_v37 = vor.u32 %v16368_v31, %v12123_v30  ;;  %v16296_v30 = vld [vmem:[#allocation31 + $0x7bc] sm:$0xf] }
 0x5d2   :  { %v16496_v18 = vld [vmem:[#allocation31 + $0xdf4] sm:$0xf0]  ;;  %v11869_v31 = vld [vmem:[#allocation31 + $0x7f8] sm:$0xf0] }
 0x5d3   :  { %5696 = vmatpush.bf16.msrb.mxu0 %v12252_v3  ;;  %5671 = vmatpush.bf16.msra.mxu2 %v11164_v13  ;;  %v11035_v35 = vld [vmem:[#allocation31 + $0x138] sm:$0xf]  ;;  %v12636_v38 = vor.u32 %v16496_v18, %v12635_v32  ;;  %v16424_v32 = vld [vmem:[#allocation31 + $0xbbc] sm:$0xf]  ;;  %v11872_v40 = vor.u32 %v16296_v30, %v11869_v31 }
 0x5d4   :  { %v16096_v36 = vld [vmem:[#allocation31 + $0x174] sm:$0xf0]  ;;  %v12189_v22 = vld [vmem:[#allocation31 + $0xa78] sm:$0xf0] }
 0x5d5   :  { %5709 = vmatpush.bf16.msrb.mxu1 %v12764_v4  ;;  %5684 = vmatpush.bf16.msra.mxu3 %v11676_v11  ;;  %v11547_v41 = vld [vmem:[#allocation31 + $0x538] sm:$0xf]  ;;  %v11036_v53 = vor.u32 %v16096_v36, %v11035_v35  ;;  %v17658_v4 = vadd.f32 %v5456_v21, %v5444_v50  ;;  %v5419_v11 = vpop.f32.mrf.mxu2  ;;  %v16168_v21 = vld [vmem:[#allocation31 + $0x3bc] sm:$0xf] }
 0x5d6   :  { %v16224_v45 = vld [vmem:[#allocation31 + $0x574] sm:$0xf0]  ;;  %v16552_v35 = vld [vmem:[#allocation31 + $0xfbc] sm:$0xf]  ;;  %v11360_v39 = vor.u32 %v16168_v21, %v11357_v29 }
 0x5d7   :  { %5697 = vmatpush.bf16.msrb.mxu0 %v12188_v26  ;;  %v12059_v46 = vld [vmem:[#allocation31 + $0x938] sm:$0xf]  ;;  %5672 = vmatpush.bf16.msra.mxu2 %v11100_v33  ;;  %v11548_v24 = vor.u32 %v16224_v45, %v11547_v41  ;;  %v12893_v36 = vld [vmem:[#allocation31 + $0xff8] sm:$0xf0] }
 0x5d8   :  { %v16352_v20 = vld [vmem:[#allocation31 + $0x974] sm:$0xf0]  ;;  %v16152_v41 = vld [vmem:[#allocation31 + $0x33c] sm:$0xf]  ;;  %v12896_v14 = vor.u32 %v16552_v35, %v12893_v36 }
 0x5d9   :  { %5710 = vmatpush.bf16.msrb.mxu1 %v12700_v28  ;;  %v12571_v48 = vld [vmem:[#allocation31 + $0xd38] sm:$0xf]  ;;  %5685 = vmatpush.bf16.msra.mxu3 %v11612_v34  ;;  %v12060_v23 = vor.u32 %v16352_v20, %v12059_v46  ;;  %v12381_v34 = vld [vmem:[#allocation31 + $0xbf8] sm:$0xf0] }
 0x5da   :  { %v16480_v49 = vld [vmem:[#allocation31 + $0xd74] sm:$0xf0]  ;;  %v11293_v45 = vld [vmem:[#allocation31 + $0x378] sm:$0xf0]  ;;  %v12384_v46 = vor.u32 %v16424_v32, %v12381_v34 }
 0x5db   :  { %v10971_v54 = vld [vmem:[#allocation31 + $0xb8] sm:$0xf]  ;;  %5698 = vmatpush.bf16.msrb.mxu0 %v12124_v37  ;;  %v12572_v56 = vor.u32 %v16480_v49, %v12571_v48  ;;  %5673 = vmatpush.bf16.msra.mxu2 %v11036_v53  ;;  %v16280_v20 = vld [vmem:[#allocation31 + $0x73c] sm:$0xf]  ;;  %v11296_v53 = vor.u32 %v16152_v41, %v11293_v45 }
 0x5dc   :  { %v16080_v55 = vld [vmem:[#allocation31 + $0xf4] sm:$0xf0]  ;;  %v11805_v48 = vld [vmem:[#allocation31 + $0x778] sm:$0xf0] }
 0x5dd   :  { %5711 = vmatpush.bf16.msrb.mxu1 %v12636_v38  ;;  %v11483_v60 = vld [vmem:[#allocation31 + $0x4b8] sm:$0xf]  ;;  %5686 = vmatpush.bf16.msra.mxu3 %v11548_v24  ;;  %v10972_v9 = vor.u32 %v16080_v55, %v10971_v54  ;;  %v16408_v49 = vld [vmem:[#allocation31 + $0xb3c] sm:$0xf]  ;;  %v11808_v24 = vor.u32 %v16280_v20, %v11805_v48 }
 0x5de   :  { %v16208_v61 = vld [vmem:[#allocation31 + $0x4f4] sm:$0xf0]  ;;  %v12317_v50 = vld [vmem:[#allocation31 + $0xb78] sm:$0xf0] }
 0x5df   :  { %v11995_v0 = vld [vmem:[#allocation31 + $0x8b8] sm:$0xf]  ;;  %v11484_v10 = vor.u32 %v16208_v61, %v11483_v60  ;;  %5699 = vmatpush.bf16.msrb.mxu0 %v12060_v23  ;;  %5674 = vmatpush.bf16.msra.mxu2 %v10972_v9  ;;  %v16136_v54 = vld [vmem:[#allocation31 + $0x2bc] sm:$0xf]  ;;  %v12320_v23 = vor.u32 %v16408_v49, %v12317_v50 }
 0x5e0   :  { %v16336_v1 = vld [vmem:[#allocation31 + $0x8f4] sm:$0xf0]  ;;  %v11229_v55 = vld [vmem:[#allocation31 + $0x2f8] sm:$0xf0] }
 0x5e1   :  { %v12507_v2 = vld [vmem:[#allocation31 + $0xcb8] sm:$0xf]  ;;  %5712 = vmatpush.bf16.msrb.mxu1 %v12572_v56  ;;  %v11996_v17 = vor.u32 %v16336_v1, %v11995_v0  ;;  %5687 = vmatpush.bf16.msra.mxu3 %v11484_v10  ;;  %v12832_v56 = vor.u32 %v16536_v51, %v12829_v52  ;;  %v16264_v60 = vld [vmem:[#allocation31 + $0x6bc] sm:$0xf] }
 0x5e2   :  { %v16464_v3 = vld [vmem:[#allocation31 + $0xcf4] sm:$0xf0]  ;;  %v11741_v61 = vld [vmem:[#allocation31 + $0x6f8] sm:$0xf0]  ;;  %v5469_v20 = vpop.f32.mrf.mxu2 }
 0x5e3   :  { %v10907_v6 = vld [vmem:[#allocation31 + $0x38] sm:$0xf]  ;;  %v12508_v13 = vor.u32 %v16464_v3, %v12507_v2  ;;  %5700 = vmatpush.bf16.msrb.mxu0 %v11996_v17  ;;  %v16392_v0 = vld [vmem:[#allocation31 + $0xabc] sm:$0xf]  ;;  %v11744_v9 = vor.u32 %v16264_v60, %v11741_v61 }
 0x5e4   :  { %v16064_v7 = vld [vmem:[#allocation31 + $0x74] sm:$0xf0]  ;;  %v12253_v1 = vld [vmem:[#allocation31 + $0xaf8] sm:$0xf0]  ;;  %v5482_v48 = vpop.f32.mrf.mxu3 }
 0x5e5   :  { %v11419_v19 = vld [vmem:[#allocation31 + $0x438] sm:$0xf]  ;;  %v10908_v18 = vor.u32 %v16064_v7, %v10907_v6  ;;  %5713 = vmatpush.bf16.msrb.mxu1 %v12508_v13  ;;  %v16520_v2 = vld [vmem:[#allocation31 + $0xebc] sm:$0xf]  ;;  %v11232_v6 = vor.u32 %v16136_v54, %v11229_v55  ;;  %v5483_v52 = vadd.f32 %v5482_v48, %v5469_v20 }
 0x5e6   :  { %v16192_v8 = vld [vmem:[#allocation31 + $0x474] sm:$0xf0]  ;;  %v12765_v3 = vld [vmem:[#allocation31 + $0xef8] sm:$0xf0] }
 0x5e7   :  { %v11931_v25 = vld [vmem:[#allocation31 + $0x838] sm:$0xf]  ;;  %v11420_v33 = vor.u32 %v16192_v8, %v11419_v19  ;;  %5675 = vmatpush.bf16.msra.mxu2 %v10908_v18  ;;  %v16120_v10 = vld [vmem:[#allocation31 + $0x23c] sm:$0xf]  ;;  %v12256_v19 = vor.u32 %v16392_v0, %v12253_v1  ;;  %v12768_v8 = vor.u32 %v16520_v2, %v12765_v3 }
 0x5e8   :  { %v16320_v26 = vld [vmem:[#allocation31 + $0x874] sm:$0xf0]  ;;  %v11165_v7 = vld [vmem:[#allocation31 + $0x278] sm:$0xf0] }
 0x5e9   :  { %v12443_v28 = vld [vmem:[#allocation31 + $0xc38] sm:$0xf]  ;;  %v11932_v37 = vor.u32 %v16320_v26, %v11931_v25  ;;  %5688 = vmatpush.bf16.msra.mxu3 %v11420_v33  ;;  %v16248_v17 = vld [vmem:[#allocation31 + $0x63c] sm:$0xf]  ;;  %v11168_v21 = vor.u32 %v16120_v10, %v11165_v7 }
 0x5ea   :  { %v16448_v27 = vld [vmem:[#allocation31 + $0xc74] sm:$0xf0]  ;;  %5676 = vmatmul.bf16.vlgmr.msra.gmra.mxu2 %v17576_v42  ;;  %v11677_v13 = vld [vmem:[#allocation31 + $0x678] sm:$0xf0] }
 0x5eb   :  { %v12444_v38 = vor.u32 %v16448_v27, %v12443_v28  ;;  %5701 = vmatpush.bf16.msrb.mxu0 %v11932_v37  ;;  %5720 = vmatpush.bf16.msrb.mxu2 %v11360_v39  ;;  %v16376_v11 = vld [vmem:[#allocation31 + $0xa3c] sm:$0xf]  ;;  %v5495_v28 = vpop.f32.mrf.mxu0  ;;  %v5508_v27 = vpop.f32.mrf.mxu1  ;;  %v11680_v29 = vor.u32 %v16248_v17, %v11677_v13 }
 0x5ec   :  { %5689 = vmatmul.bf16.vlgmr.msra.gmra.mxu3 %v17578_v43  ;;  %v16504_v25 = vld [vmem:[#allocation31 + $0xe3c] sm:$0xf]  ;;  %v12192_v32 = vor.u32 %v16376_v11, %v12189_v22  ;;  %v5496_v55 = vadd.f32 %v5495_v28, %v5483_v52 }
 0x5ed   :  { %5714 = vmatpush.bf16.msrb.mxu1 %v12444_v38  ;;  %5733 = vmatpush.bf16.msrb.mxu3 %v11872_v40  ;;  %v12701_v26 = vld [vmem:[#allocation31 + $0xe78] sm:$0xf0] }
 0x5ee   :  { %5702 = vmatmul.bf16.vlgmr.msrb.gmra.mxu0 %v17580_v44  ;;  %v16104_v30 = vld [vmem:[#allocation31 + $0x1bc] sm:$0xf]  ;;  %v12704_v18 = vor.u32 %v16504_v25, %v12701_v26  ;;  %v17664_v17 = vadd.f32 %v5508_v27, %v5496_v55  ;;  %v13347_v27 = vld [vmem:[#allocation30 + $0x380] sm:$0xf] }
 0x5ef   :  { %5746 = vmatpush.bf16.msra.mxu0 %v12384_v46  ;;  %5721 = vmatpush.bf16.msrb.mxu2 %v11296_v53  ;;  %v11101_v31 = vld [vmem:[#allocation31 + $0x1f8] sm:$0xf0]  ;;  %v14307_v55 = vld [vmem:[#allocation30 + $0xb00] sm:$0xf] }
 0x5f0   :  { %5715 = vmatmul.bf16.vlgmr.msrb.gmra.mxu1 %v17582_v47  ;;  %v16232_v33 = vld [vmem:[#allocation31 + $0x5bc] sm:$0xf]  ;;  %v11104_v39 = vor.u32 %v16104_v30, %v11101_v31  ;;  %v5471_v30 = vpop.f32.mrf.mxu2  ;;  %v5484_v31 = vpop.f32.mrf.mxu3 }
 0x5f1   :  { %5759 = vmatpush.bf16.msra.mxu1 %v12896_v14  ;;  %5734 = vmatpush.bf16.msrb.mxu3 %v11808_v24  ;;  %v11613_v34 = vld [vmem:[#allocation31 + $0x5f8] sm:$0xf0]  ;;  %v15865_v30 = vld [vmem:[#allocation30 + $0xa3c] sm:$0xf0] }
 0x5f2   :  { %v16360_v35 = vld [vmem:[#allocation31 + $0x9bc] sm:$0xf]  ;;  %v11616_v40 = vor.u32 %v16232_v33, %v11613_v34  ;;  %v14691_v31 = vld [vmem:[#allocation30 + $0xe00] sm:$0xf] }
 0x5f3   :  { %5747 = vmatpush.bf16.msra.mxu0 %v12320_v23  ;;  %5722 = vmatpush.bf16.msrb.mxu2 %v11232_v6  ;;  %v12125_v36 = vld [vmem:[#allocation31 + $0x9f8] sm:$0xf0]  ;;  %v5497_v23 = vpop.f32.mrf.mxu0 }
 0x5f4   :  { %v16488_v37 = vld [vmem:[#allocation31 + $0xdbc] sm:$0xf]  ;;  %v12128_v46 = vor.u32 %v16360_v35, %v12125_v36  ;;  %v15657_v35 = vld [vmem:[#allocation30 + $0x3bc] sm:$0xf0] }
 0x5f5   :  { %5760 = vmatpush.bf16.msra.mxu1 %v12832_v56  ;;  %5735 = vmatpush.bf16.msrb.mxu3 %v11744_v9  ;;  %v12637_v38 = vld [vmem:[#allocation31 + $0xdf8] sm:$0xf0]  ;;  %v5510_v56 = vpop.f32.mrf.mxu1  ;;  %v13859_v36 = vld [vmem:[#allocation30 + $0x780] sm:$0xf]  ;;  %v13348_v48 = vor.u32 %v15657_v35, %v13347_v27 }
 0x5f6   :  { %v16088_v41 = vld [vmem:[#allocation31 + $0x13c] sm:$0xf]  ;;  %v12640_v14 = vor.u32 %v16488_v37, %v12637_v38  ;;  %v15785_v37 = vld [vmem:[#allocation30 + $0x7bc] sm:$0xf0] }
 0x5f7   :  { %5748 = vmatpush.bf16.msra.mxu0 %v12256_v19  ;;  %5723 = vmatpush.bf16.msrb.mxu2 %v11168_v21  ;;  %v11037_v45 = vld [vmem:[#allocation31 + $0x178] sm:$0xf0]  ;;  %v14371_v38 = vld [vmem:[#allocation30 + $0xb80] sm:$0xf] }
 0x5f8   :  { %v16216_v49 = vld [vmem:[#allocation31 + $0x53c] sm:$0xf]  ;;  %v11040_v60 = vor.u32 %v16088_v41, %v11037_v45  ;;  %v15913_v41 = vld [vmem:[#allocation30 + $0xbbc] sm:$0xf0] }
 0x5f9   :  { %5761 = vmatpush.bf16.msra.mxu1 %v12768_v8  ;;  %5736 = vmatpush.bf16.msrb.mxu3 %v11680_v29  ;;  %v11549_v50 = vld [vmem:[#allocation31 + $0x578] sm:$0xf0]  ;;  %v14883_v45 = vld [vmem:[#allocation30 + $0xf80] sm:$0xf]  ;;  %v14372_v52 = vor.u32 %v15913_v41, %v14371_v38 }
 0x5fa   :  { %v16344_v51 = vld [vmem:[#allocation31 + $0x93c] sm:$0xf]  ;;  %v11552_v61 = vor.u32 %v16216_v49, %v11549_v50  ;;  %v13860_v49 = vor.u32 %v15785_v37, %v13859_v36  ;;  %v13283_v50 = vld [vmem:[#allocation30 + $0x300] sm:$0xf] }
 0x5fb   :  { %5749 = vmatpush.bf16.msra.mxu0 %v12192_v32  ;;  %v12061_v53 = vld [vmem:[#allocation31 + $0x978] sm:$0xf0]  ;;  %5724 = vmatpush.bf16.msrb.mxu2 %v11104_v39  ;;  %v15897_v23 = vld [vmem:[#allocation30 + $0xb3c] sm:$0xf0] }
 0x5fc   :  { %v16472_v24 = vld [vmem:[#allocation31 + $0xd3c] sm:$0xf]  ;;  %v12064_v2 = vor.u32 %v16344_v51, %v12061_v53  ;;  %v15641_v51 = vld [vmem:[#allocation30 + $0x33c] sm:$0xf0] }
 0x5fd   :  { %5762 = vmatpush.bf16.msra.mxu1 %v12704_v18  ;;  %v12573_v54 = vld [vmem:[#allocation31 + $0xd78] sm:$0xf0]  ;;  %5737 = vmatpush.bf16.msrb.mxu3 %v11616_v40  ;;  %v14819_v56 = vld [vmem:[#allocation30 + $0xf00] sm:$0xf] }
 0x5fe   :  { %v16072_v0 = vld [vmem:[#allocation31 + $0xbc] sm:$0xf]  ;;  %v12576_v3 = vor.u32 %v16472_v24, %v12573_v54  ;;  %v13795_v24 = vld [vmem:[#allocation30 + $0x700] sm:$0xf] }
 0x5ff   :  { %v10973_v1 = vld [vmem:[#allocation31 + $0xf8] sm:$0xf0]  ;;  %5750 = vmatpush.bf16.msra.mxu0 %v12128_v46  ;;  %5725 = vmatpush.bf16.msrb.mxu2 %v11040_v60  ;;  %v16041_v46 = vld [vmem:[#allocation30 + $0xfbc] sm:$0xf0] }
 0x600   :  { %v16200_v6 = vld [vmem:[#allocation31 + $0x4bc] sm:$0xf]  ;;  %v10976_v11 = vor.u32 %v16072_v0, %v10973_v1  ;;  %v14884_v53 = vor.u32 %v16041_v46, %v14883_v45  ;;  %v15769_v54 = vld [vmem:[#allocation30 + $0x73c] sm:$0xf0] }
 0x601   :  { %5763 = vmatpush.bf16.msra.mxu1 %v12640_v14  ;;  %v11485_v9 = vld [vmem:[#allocation31 + $0x4f8] sm:$0xf0]  ;;  %5738 = vmatpush.bf16.msrb.mxu3 %v11552_v61  ;;  %v16025_v60 = vld [vmem:[#allocation30 + $0xf3c] sm:$0xf0]  ;;  %v13284_v61 = vor.u32 %v15641_v51, %v13283_v50  ;;  %v13796_v0 = vor.u32 %v15769_v54, %v13795_v24 }
 0x602   :  { %v16328_v10 = vld [vmem:[#allocation31 + $0x8bc] sm:$0xf]  ;;  %v11488_v22 = vor.u32 %v16200_v6, %v11485_v9  ;;  %v13219_v1 = vld [vmem:[#allocation30 + $0x280] sm:$0xf]  ;;  %v14820_v6 = vor.u32 %v16025_v60, %v14819_v56 }
 0x603   :  { %v11997_v7 = vld [vmem:[#allocation31 + $0x8f8] sm:$0xf0]  ;;  %5751 = vmatpush.bf16.msra.mxu0 %v12064_v2  ;;  %5726 = vmatpush.bf16.msrb.mxu2 %v10976_v11  ;;  %v15625_v2 = vld [vmem:[#allocation30 + $0x2bc] sm:$0xf0] }
 0x604   :  { %v16456_v19 = vld [vmem:[#allocation31 + $0xcbc] sm:$0xf]  ;;  %v12000_v21 = vor.u32 %v16328_v10, %v11997_v7  ;;  %v13731_v9 = vld [vmem:[#allocation30 + $0x680] sm:$0xf]  ;;  %v13220_v11 = vor.u32 %v15625_v2, %v13219_v1  ;;  %v5521_v51 = vpop.f32.mrf.mxu2 }
 0x605   :  { %v12509_v8 = vld [vmem:[#allocation31 + $0xcf8] sm:$0xf0]  ;;  %5764 = vmatpush.bf16.msra.mxu1 %v12576_v3  ;;  %5739 = vmatpush.bf16.msrb.mxu3 %v11488_v22  ;;  %v14308_v3 = vor.u32 %v15897_v23, %v14307_v55  ;;  %v15753_v10 = vld [vmem:[#allocation30 + $0x6bc] sm:$0xf0] }
 0x606   :  { %v16056_v13 = vld [vmem:[#allocation31 + $0x3c] sm:$0xf]  ;;  %v12512_v29 = vor.u32 %v16456_v19, %v12509_v8  ;;  %v14243_v7 = vld [vmem:[#allocation30 + $0xa80] sm:$0xf]  ;;  %v13732_v22 = vor.u32 %v15753_v10, %v13731_v9 }
 0x607   :  { %v10909_v25 = vld [vmem:[#allocation31 + $0x78] sm:$0xf0]  ;;  %5752 = vmatpush.bf16.msra.mxu0 %v12000_v21  ;;  %v15881_v19 = vld [vmem:[#allocation30 + $0xabc] sm:$0xf0] }
 0x608   :  { %v16184_v26 = vld [vmem:[#allocation31 + $0x43c] sm:$0xf]  ;;  %v10912_v39 = vor.u32 %v16056_v13, %v10909_v25  ;;  %v14755_v8 = vld [vmem:[#allocation30 + $0xe80] sm:$0xf] }
 0x609   :  { %v11421_v28 = vld [vmem:[#allocation31 + $0x478] sm:$0xf0]  ;;  %5765 = vmatpush.bf16.msra.mxu1 %v12512_v29  ;;  %v16009_v13 = vld [vmem:[#allocation30 + $0xebc] sm:$0xf0] }
 0x60a   :  { %v16312_v32 = vld [vmem:[#allocation31 + $0x83c] sm:$0xf]  ;;  %v11424_v40 = vor.u32 %v16184_v26, %v11421_v28  ;;  %5727 = vmatpush.bf16.msrb.mxu2 %v10912_v39  ;;  %v13155_v25 = vld [vmem:[#allocation30 + $0x200] sm:$0xf]  ;;  %v14244_v28 = vor.u32 %v15881_v19, %v14243_v7  ;;  %v14756_v21 = vor.u32 %v16009_v13, %v14755_v8 }
 0x60b   :  { %v11933_v18 = vld [vmem:[#allocation31 + $0x878] sm:$0xf0]  ;;  %v15609_v26 = vld [vmem:[#allocation30 + $0x23c] sm:$0xf0] }
 0x60c   :  { %v16440_v33 = vld [vmem:[#allocation31 + $0xc3c] sm:$0xf]  ;;  %v11936_v14 = vor.u32 %v16312_v32, %v11933_v18  ;;  %5740 = vmatpush.bf16.msrb.mxu3 %v11424_v40  ;;  %v15737_v29 = vld [vmem:[#allocation30 + $0x63c] sm:$0xf0]  ;;  %v13156_v18 = vor.u32 %v15609_v26, %v13155_v25 }
 0x60d   :  { %v12445_v34 = vld [vmem:[#allocation31 + $0xc78] sm:$0xf0]  ;;  %5728 = vmatmul.bf16.vlgmr.msrb.gmra.mxu2 %v17576_v42  ;;  %v13667_v42 = vld [vmem:[#allocation30 + $0x600] sm:$0xf] }
 0x60e   :  { %v12448_v20 = vor.u32 %v16440_v33, %v12445_v34  ;;  %5753 = vmatpush.bf16.msra.mxu0 %v11936_v14  ;;  %8342 = vmatpush.bf16.msra.mxu2 %v13348_v48  ;;  %v15993_v32 = vld [vmem:[#allocation30 + $0xe3c] sm:$0xf0]  ;;  %v13668_v33 = vor.u32 %v15737_v29, %v13667_v42 }
 0x60f   :  { %5741 = vmatmul.bf16.vlgmr.msrb.gmra.mxu3 %v17578_v43  ;;  %v14179_v43 = vld [vmem:[#allocation30 + $0xa00] sm:$0xf]  ;;  %v14692_v36 = vor.u32 %v15993_v32, %v14691_v31 }
 0x610   :  { %5766 = vmatpush.bf16.msra.mxu1 %v12448_v20  ;;  %8355 = vmatpush.bf16.msra.mxu3 %v13860_v49  ;;  %v13091_v34 = vld [vmem:[#allocation30 + $0x180] sm:$0xf]  ;;  %v14180_v35 = vor.u32 %v15865_v30, %v14179_v43 }
 0x611   :  { %5754 = vmatmul.bf16.vlgmr.msra.gmra.mxu0 %v17580_v44  ;;  %v5547_v44 = vpop.f32.mrf.mxu0  ;;  %v15593_v27 = vld [vmem:[#allocation30 + $0x1bc] sm:$0xf0] }
 0x612   :  { %8368 = vmatpush.bf16.msrb.mxu0 %v14372_v52  ;;  %8343 = vmatpush.bf16.msra.mxu2 %v13284_v61  ;;  %v13603_v37 = vld [vmem:[#allocation30 + $0x580] sm:$0xf]  ;;  %v13092_v46 = vor.u32 %v15593_v27, %v13091_v34  ;;  %v5534_v52 = vpop.f32.mrf.mxu3 }
 0x613   :  { %5767 = vmatmul.bf16.vlgmr.msra.gmra.mxu1 %v17582_v47  ;;  %v5560_v47 = vpop.f32.mrf.mxu1  ;;  %v15721_v38 = vld [vmem:[#allocation30 + $0x5bc] sm:$0xf0]  ;;  %v5535_v55 = vadd.f32 %v5534_v52, %v5521_v51  ;;  %v15633_v51 = vld [vmem:[#allocation30 + $0x304] sm:$0xf] }
 0x614   :  { %8381 = vmatpush.bf16.msrb.mxu1 %v14884_v53  ;;  %8356 = vmatpush.bf16.msra.mxu3 %v13796_v0  ;;  %v14115_v39 = vld [vmem:[#allocation30 + $0x980] sm:$0xf]  ;;  %v13604_v14 = vor.u32 %v15721_v38, %v13603_v37  ;;  %v15777_v37 = vld [vmem:[#allocation30 + $0x784] sm:$0xf] }
 0x615   :  { %v15849_v40 = vld [vmem:[#allocation30 + $0x9bc] sm:$0xf0]  ;;  %v5548_v61 = vadd.f32 %v5547_v44, %v5535_v55  ;;  %v5523_v44 = vpop.f32.mrf.mxu2  ;;  %v13861_v38 = vld [vmem:[#allocation30 + $0x7c0] sm:$0xf0] }
 0x616   :  { %8369 = vmatpush.bf16.msrb.mxu0 %v14308_v3  ;;  %8344 = vmatpush.bf16.msra.mxu2 %v13220_v11  ;;  %v14627_v41 = vld [vmem:[#allocation30 + $0xd80] sm:$0xf]  ;;  %v14116_v49 = vor.u32 %v15849_v40, %v14115_v39  ;;  %v15905_v39 = vld [vmem:[#allocation30 + $0xb84] sm:$0xf] }
 0x617   :  { %v15977_v45 = vld [vmem:[#allocation30 + $0xdbc] sm:$0xf0]  ;;  %v17670_v26 = vadd.f32 %v5560_v47, %v5548_v61  ;;  %v15649_v47 = vld [vmem:[#allocation30 + $0x384] sm:$0xf] }
 0x618   :  { %8382 = vmatpush.bf16.msrb.mxu1 %v14820_v6  ;;  %8357 = vmatpush.bf16.msra.mxu3 %v13732_v22  ;;  %v13027_v20 = vld [vmem:[#allocation30 + $0x100] sm:$0xf]  ;;  %v14628_v50 = vor.u32 %v15977_v45, %v14627_v41  ;;  %v14373_v45 = vld [vmem:[#allocation30 + $0xbc0] sm:$0xf0] }
 0x619   :  { %v15577_v48 = vld [vmem:[#allocation30 + $0x13c] sm:$0xf0]  ;;  %v5549_v0 = vpop.f32.mrf.mxu0  ;;  %v13285_v52 = vld [vmem:[#allocation30 + $0x340] sm:$0xf0] }
 0x61a   :  { %8370 = vmatpush.bf16.msrb.mxu0 %v14244_v28  ;;  %8345 = vmatpush.bf16.msra.mxu2 %v13156_v18  ;;  %v13539_v53 = vld [vmem:[#allocation30 + $0x500] sm:$0xf]  ;;  %v13028_v2 = vor.u32 %v15577_v48, %v13027_v20  ;;  %v5536_v18 = vpop.f32.mrf.mxu3  ;;  %v13797_v55 = vld [vmem:[#allocation30 + $0x740] sm:$0xf0] }
 0x61b   :  { %v15705_v24 = vld [vmem:[#allocation30 + $0x53c] sm:$0xf0]  ;;  %v5562_v1 = vpop.f32.mrf.mxu1  ;;  %v14821_v61 = vld [vmem:[#allocation30 + $0xf40] sm:$0xf0] }
 0x61c   :  { %8383 = vmatpush.bf16.msrb.mxu1 %v14756_v21  ;;  %8358 = vmatpush.bf16.msra.mxu3 %v13668_v33  ;;  %v14051_v54 = vld [vmem:[#allocation30 + $0x900] sm:$0xf]  ;;  %v13540_v3 = vor.u32 %v15705_v24, %v13539_v53  ;;  %v14376_v53 = vor.u32 %v15905_v39, %v14373_v45  ;;  %v15729_v44 = vld [vmem:[#allocation30 + $0x604] sm:$0xf] }
 0x61d   :  { %v15833_v23 = vld [vmem:[#allocation30 + $0x93c] sm:$0xf0]  ;;  %v13669_v18 = vld [vmem:[#allocation30 + $0x640] sm:$0xf0] }
 0x61e   :  { %8371 = vmatpush.bf16.msrb.mxu0 %v14180_v35  ;;  %v14563_v56 = vld [vmem:[#allocation30 + $0xd00] sm:$0xf]  ;;  %8346 = vmatpush.bf16.msra.mxu2 %v13092_v46  ;;  %v14052_v10 = vor.u32 %v15833_v23, %v14051_v54  ;;  %v16033_v46 = vld [vmem:[#allocation30 + $0xf84] sm:$0xf] }
 0x61f   :  { %v15961_v60 = vld [vmem:[#allocation30 + $0xd3c] sm:$0xf0]  ;;  %v15761_v54 = vld [vmem:[#allocation30 + $0x704] sm:$0xf] }
 0x620   :  { %8384 = vmatpush.bf16.msrb.mxu1 %v14692_v36  ;;  %8359 = vmatpush.bf16.msra.mxu3 %v13604_v14  ;;  %v12963_v6 = vld [vmem:[#allocation30 + $0x80] sm:$0xf]  ;;  %v14564_v7 = vor.u32 %v15961_v60, %v14563_v56  ;;  %v13349_v36 = vld [vmem:[#allocation30 + $0x3c0] sm:$0xf0] }
 0x621   :  { %v15561_v9 = vld [vmem:[#allocation30 + $0xbc] sm:$0xf0]  ;;  %v14885_v14 = vld [vmem:[#allocation30 + $0xfc0] sm:$0xf0] }
 0x622   :  { %8372 = vmatpush.bf16.msrb.mxu0 %v14116_v49  ;;  %v13475_v19 = vld [vmem:[#allocation30 + $0x480] sm:$0xf]  ;;  %8347 = vmatpush.bf16.msra.mxu2 %v13028_v2  ;;  %v12964_v21 = vor.u32 %v15561_v9, %v12963_v6  ;;  %v13352_v49 = vor.u32 %v15649_v47, %v13349_v36  ;;  %v14888_v24 = vor.u32 %v16033_v46, %v14885_v14  ;;  %v15889_v23 = vld [vmem:[#allocation30 + $0xb04] sm:$0xf]  ;;  %v17676_v2 = vld [vmem:[#allocation1 + $0x12] sm:$0xff] }
 0x623   :  { %v15689_v8 = vld [vmem:[#allocation30 + $0x4bc] sm:$0xf0]  ;;  %v14309_v56 = vld [vmem:[#allocation30 + $0xb40] sm:$0xf0]  ;;  %v13288_v6 = vor.u32 %v15633_v51, %v13285_v52  ;;  %v13800_v9 = vor.u32 %v15761_v54, %v13797_v55 }
 0x624   :  { %8385 = vmatpush.bf16.msrb.mxu1 %v14628_v50  ;;  %v13987_v13 = vld [vmem:[#allocation30 + $0x880] sm:$0xf]  ;;  %8360 = vmatpush.bf16.msra.mxu3 %v13540_v3  ;;  %v13476_v42 = vor.u32 %v15689_v8, %v13475_v19  ;;  %v13864_v50 = vor.u32 %v15777_v37, %v13861_v38  ;;  %v16017_v60 = vld [vmem:[#allocation30 + $0xf04] sm:$0xf]  ;;  %v17678_v3 = vld [vmem:[#allocation1 + $0x1b] sm:$0xff]  ;;  %v14312_v19 = vor.u32 %v15889_v23, %v14309_v56  ;;  %v5599_v47 = vpop.f32.mrf.mxu0 }
 0x625   :  { %v15817_v11 = vld [vmem:[#allocation30 + $0x8bc] sm:$0xf0]  ;;  %v14824_v8 = vor.u32 %v16017_v60, %v14821_v61  ;;  %v13672_v38 = vor.u32 %v15729_v44, %v13669_v18  ;;  %v15585_v39 = vld [vmem:[#allocation30 + $0x184] sm:$0xf] }
 0x626   :  { %v14499_v22 = vld [vmem:[#allocation30 + $0xc80] sm:$0xf]  ;;  %8373 = vmatpush.bf16.msrb.mxu0 %v14052_v10  ;;  %v13988_v31 = vor.u32 %v15817_v11, %v13987_v13  ;;  %8348 = vmatpush.bf16.msra.mxu2 %v12964_v21  ;;  %v15617_v10 = vld [vmem:[#allocation30 + $0x284] sm:$0xf]  ;;  %v5612_v36 = vpop.f32.mrf.mxu1  ;;  %v5573_v23 = vpop.f32.mrf.mxu2 }
 0x627   :  { %v15945_v25 = vld [vmem:[#allocation30 + $0xcbc] sm:$0xf0]  ;;  %v15745_v13 = vld [vmem:[#allocation30 + $0x684] sm:$0xf] }
 0x628   :  { %v12899_v28 = vld [vmem:[#allocation30] sm:$0xf]  ;;  %8386 = vmatpush.bf16.msrb.mxu1 %v14564_v7  ;;  %v14500_v32 = vor.u32 %v15945_v25, %v14499_v22  ;;  %8361 = vmatpush.bf16.msra.mxu3 %v13476_v42  ;;  %v13221_v7 = vld [vmem:[#allocation30 + $0x2c0] sm:$0xf0]  ;;  %v5586_v56 = vpop.f32.mrf.mxu3 }
 0x629   :  { %v15545_v29 = vld [vmem:[#allocation30 + $0x3c] sm:$0xf0]  ;;  %v13733_v11 = vld [vmem:[#allocation30 + $0x6c0] sm:$0xf0]  ;;  %v13224_v42 = vor.u32 %v15617_v10, %v13221_v7 }
 0x62a   :  { %v13411_v43 = vld [vmem:[#allocation30 + $0x400] sm:$0xf]  ;;  %v12900_v40 = vor.u32 %v15545_v29, %v12899_v28  ;;  %8374 = vmatpush.bf16.msrb.mxu0 %v13988_v31  ;;  %v15873_v22 = vld [vmem:[#allocation30 + $0xa84] sm:$0xf]  ;;  %v13736_v29 = vor.u32 %v15745_v13, %v13733_v11 }
 0x62b   :  { %v15673_v30 = vld [vmem:[#allocation30 + $0x43c] sm:$0xf0]  ;;  %v14245_v25 = vld [vmem:[#allocation30 + $0xac0] sm:$0xf0] }
 0x62c   :  { %v13923_v33 = vld [vmem:[#allocation30 + $0x800] sm:$0xf]  ;;  %v13412_v41 = vor.u32 %v15673_v30, %v13411_v43  ;;  %8387 = vmatpush.bf16.msrb.mxu1 %v14500_v32  ;;  %8349 = vmatpush.bf16.msra.mxu2 %v12900_v40  ;;  %v16001_v28 = vld [vmem:[#allocation30 + $0xe84] sm:$0xf]  ;;  %v14248_v31 = vor.u32 %v15873_v22, %v14245_v25  ;;  %v5601_v13 = vpop.f32.mrf.mxu0 }
 0x62d   :  { %v15801_v34 = vld [vmem:[#allocation30 + $0x83c] sm:$0xf0]  ;;  %v14757_v21 = vld [vmem:[#allocation30 + $0xec0] sm:$0xf0]  ;;  %v15770_v13 = vld [vmem:[#allocation30 + $0x744] sm:$0xf0] }
 0x62e   :  { %v14435_v27 = vld [vmem:[#allocation30 + $0xc00] sm:$0xf]  ;;  %v13924_v20 = vor.u32 %v15801_v34, %v13923_v33  ;;  %8362 = vmatpush.bf16.msra.mxu3 %v13412_v41  ;;  %v15601_v43 = vld [vmem:[#allocation30 + $0x204] sm:$0xf]  ;;  %v14760_v32 = vor.u32 %v16001_v28, %v14757_v21  ;;  %v5614_v11 = vpop.f32.mrf.mxu1 }
 0x62f   :  { %v15929_v35 = vld [vmem:[#allocation30 + $0xc3c] sm:$0xf0]  ;;  %v13157_v30 = vld [vmem:[#allocation30 + $0x240] sm:$0xf0]  ;;  %v14315_v11 = vld [vmem:[#allocation30 + $0xb08] sm:$0xf] }
 0x630   :  { %v14436_v48 = vor.u32 %v15929_v35, %v14435_v27  ;;  %8375 = vmatpush.bf16.msrb.mxu0 %v13924_v20  ;;  %v17672_v0 = vld [vmem:[#allocation1] sm:$0xff]  ;;  %v17674_v1 = vld [vmem:[#allocation1 + $0x9] sm:$0xff]  ;;  %8394 = vmatpush.bf16.msrb.mxu2 %v13352_v49  ;;  %v13160_v37 = vor.u32 %v15601_v43, %v13157_v30 }
 0x631   :  { %8350 = vmatmul.bf16.vlgmr.msra.gmra.mxu2 %v17672_v0  ;;  %8363 = vmatmul.bf16.vlgmr.msra.gmra.mxu3 %v17674_v1  ;;  %v15857_v33 = vld [vmem:[#allocation30 + $0xa04] sm:$0xf] }
 0x632   :  { %8388 = vmatpush.bf16.msrb.mxu1 %v14436_v48  ;;  %8407 = vmatpush.bf16.msrb.mxu3 %v13864_v50  ;;  %v14181_v34 = vld [vmem:[#allocation30 + $0xa40] sm:$0xf0] }
 0x633   :  { %8376 = vmatmul.bf16.vlgmr.msrb.gmra.mxu0 %v17676_v2  ;;  %v15985_v27 = vld [vmem:[#allocation30 + $0xe04] sm:$0xf]  ;;  %v14184_v41 = vor.u32 %v15857_v33, %v14181_v34 }
 0x634   :  { %8420 = vmatpush.bf16.msra.mxu0 %v14376_v53  ;;  %8395 = vmatpush.bf16.msrb.mxu2 %v13288_v6  ;;  %v14693_v35 = vld [vmem:[#allocation30 + $0xe40] sm:$0xf0] }
 0x635   :  { %8389 = vmatmul.bf16.vlgmr.msrb.gmra.mxu1 %v17678_v3  ;;  %v13093_v40 = vld [vmem:[#allocation30 + $0x1c0] sm:$0xf0]  ;;  %v14696_v45 = vor.u32 %v15985_v27, %v14693_v35 }
 0x636   :  { %8433 = vmatpush.bf16.msra.mxu1 %v14888_v24  ;;  %8408 = vmatpush.bf16.msrb.mxu3 %v13800_v9  ;;  %v15713_v46 = vld [vmem:[#allocation30 + $0x584] sm:$0xf]  ;;  %v13096_v51 = vor.u32 %v15585_v39, %v13093_v40  ;;  %v5587_v9 = vadd.f32 %v5586_v56, %v5573_v23  ;;  %v16042_v23 = vld [vmem:[#allocation30 + $0xfc4] sm:$0xf0] }
 0x637   :  { %v13605_v14 = vld [vmem:[#allocation30 + $0x5c0] sm:$0xf0] }
 0x638   :  { %8421 = vmatpush.bf16.msra.mxu0 %v14312_v19  ;;  %8396 = vmatpush.bf16.msrb.mxu2 %v13224_v42  ;;  %v15841_v20 = vld [vmem:[#allocation30 + $0x984] sm:$0xf]  ;;  %v13608_v52 = vor.u32 %v15713_v46, %v13605_v14 }
 0x639   :  { %v14117_v48 = vld [vmem:[#allocation30 + $0x9c0] sm:$0xf0] }
 0x63a   :  { %8434 = vmatpush.bf16.msra.mxu1 %v14824_v8  ;;  %8409 = vmatpush.bf16.msrb.mxu3 %v13736_v29  ;;  %v15969_v49 = vld [vmem:[#allocation30 + $0xd84] sm:$0xf]  ;;  %v14120_v54 = vor.u32 %v15841_v20, %v14117_v48  ;;  %v5600_v8 = vadd.f32 %v5599_v47, %v5587_v9  ;;  %v13291_v9 = vld [vmem:[#allocation30 + $0x308] sm:$0xf] }
 0x63b   :  { %v14629_v50 = vld [vmem:[#allocation30 + $0xdc0] sm:$0xf0] }
 0x63c   :  { %8422 = vmatpush.bf16.msra.mxu0 %v14248_v31  ;;  %8397 = vmatpush.bf16.msrb.mxu2 %v13160_v37  ;;  %v15569_v53 = vld [vmem:[#allocation30 + $0x104] sm:$0xf]  ;;  %v14632_v55 = vor.u32 %v15969_v49, %v14629_v50  ;;  %v17684_v33 = vadd.f32 %v5612_v36, %v5600_v8  ;;  %v13355_v36 = vld [vmem:[#allocation30 + $0x388] sm:$0xf] }
 0x63d   :  { %v13029_v24 = vld [vmem:[#allocation30 + $0x140] sm:$0xf0]  ;;  %v15658_v49 = vld [vmem:[#allocation30 + $0x3c4] sm:$0xf0] }
 0x63e   :  { %8435 = vmatpush.bf16.msra.mxu1 %v14760_v32  ;;  %8410 = vmatpush.bf16.msrb.mxu3 %v13672_v38  ;;  %v15697_v60 = vld [vmem:[#allocation30 + $0x504] sm:$0xf]  ;;  %v13032_v22 = vor.u32 %v15569_v53, %v13029_v24  ;;  %v13867_v50 = vld [vmem:[#allocation30 + $0x788] sm:$0xf] }
 0x63f   :  { %v13541_v61 = vld [vmem:[#allocation30 + $0x540] sm:$0xf0]  ;;  %v13803_v8 = vld [vmem:[#allocation30 + $0x708] sm:$0xf] }
 0x640   :  { %8423 = vmatpush.bf16.msra.mxu0 %v14184_v41  ;;  %v15825_v6 = vld [vmem:[#allocation30 + $0x904] sm:$0xf]  ;;  %8398 = vmatpush.bf16.msrb.mxu2 %v13096_v51  ;;  %v13544_v25 = vor.u32 %v15697_v60, %v13541_v61  ;;  %v5575_v41 = vpop.f32.mrf.mxu2  ;;  %v15786_v51 = vld [vmem:[#allocation30 + $0x7c4] sm:$0xf0]  ;;  %v13356_v61 = vor.u32 %v15658_v49, %v13355_v36 }
 0x641   :  { %v14053_v10 = vld [vmem:[#allocation30 + $0x940] sm:$0xf0]  ;;  %v15994_v36 = vld [vmem:[#allocation30 + $0xe44] sm:$0xf0] }
 0x642   :  { %8436 = vmatpush.bf16.msra.mxu1 %v14696_v45  ;;  %v15953_v7 = vld [vmem:[#allocation30 + $0xd04] sm:$0xf]  ;;  %8411 = vmatpush.bf16.msrb.mxu3 %v13608_v52  ;;  %v14056_v42 = vor.u32 %v15825_v6, %v14053_v10  ;;  %v5588_v45 = vpop.f32.mrf.mxu3  ;;  %v14379_v52 = vld [vmem:[#allocation30 + $0xb88] sm:$0xf]  ;;  %v13868_v6 = vor.u32 %v15786_v51, %v13867_v50 }
 0x643   :  { %v14565_v19 = vld [vmem:[#allocation30 + $0xd40] sm:$0xf0]  ;;  %v15642_v10 = vld [vmem:[#allocation30 + $0x344] sm:$0xf0] }
 0x644   :  { %v15553_v28 = vld [vmem:[#allocation30 + $0x84] sm:$0xf]  ;;  %8424 = vmatpush.bf16.msra.mxu0 %v14120_v54  ;;  %v14568_v29 = vor.u32 %v15953_v7, %v14565_v19  ;;  %8399 = vmatpush.bf16.msrb.mxu2 %v13032_v22  ;;  %v15914_v54 = vld [vmem:[#allocation30 + $0xbc4] sm:$0xf0] }
 0x645   :  { %v12965_v21 = vld [vmem:[#allocation30 + $0xc0] sm:$0xf0]  ;;  %v14380_v7 = vor.u32 %v15914_v54, %v14379_v52  ;;  %v15898_v22 = vld [vmem:[#allocation30 + $0xb44] sm:$0xf0] }
 0x646   :  { %8437 = vmatpush.bf16.msra.mxu1 %v14632_v55  ;;  %v15681_v43 = vld [vmem:[#allocation30 + $0x484] sm:$0xf]  ;;  %8412 = vmatpush.bf16.msrb.mxu3 %v13544_v25  ;;  %v12968_v27 = vor.u32 %v15553_v28, %v12965_v21  ;;  %v14891_v55 = vld [vmem:[#allocation30 + $0xf88] sm:$0xf]  ;;  %v13292_v21 = vor.u32 %v15642_v10, %v13291_v9 }
 0x647   :  { %v13477_v30 = vld [vmem:[#allocation30 + $0x4c0] sm:$0xf0]  ;;  %v14892_v19 = vor.u32 %v16042_v23, %v14891_v55  ;;  %v14827_v25 = vld [vmem:[#allocation30 + $0xf08] sm:$0xf]  ;;  %v5651_v49 = vpop.f32.mrf.mxu0 }
 0x648   :  { %v15809_v31 = vld [vmem:[#allocation30 + $0x884] sm:$0xf]  ;;  %v13480_v35 = vor.u32 %v15681_v43, %v13477_v30  ;;  %8425 = vmatpush.bf16.msra.mxu0 %v14056_v42  ;;  %8400 = vmatpush.bf16.msrb.mxu2 %v12968_v27  ;;  %v16026_v28 = vld [vmem:[#allocation30 + $0xf44] sm:$0xf0]  ;;  %v13804_v42 = vor.u32 %v15770_v13, %v13803_v8  ;;  %v14316_v30 = vor.u32 %v15898_v22, %v14315_v11 }
 0x649   :  { %v13989_v32 = vld [vmem:[#allocation30 + $0x8c0] sm:$0xf0]  ;;  %v15626_v43 = vld [vmem:[#allocation30 + $0x2c4] sm:$0xf0]  ;;  %v5664_v50 = vpop.f32.mrf.mxu1  ;;  %v5625_v22 = vpop.f32.mrf.mxu2 }
 0x64a   :  { %v15937_v44 = vld [vmem:[#allocation30 + $0xc84] sm:$0xf]  ;;  %8438 = vmatpush.bf16.msra.mxu1 %v14568_v29  ;;  %v13992_v39 = vor.u32 %v15809_v31, %v13989_v32  ;;  %8413 = vmatpush.bf16.msrb.mxu3 %v13480_v35  ;;  %v13227_v29 = vld [vmem:[#allocation30 + $0x288] sm:$0xf]  ;;  %v14828_v31 = vor.u32 %v16026_v28, %v14827_v25 }
 0x64b   :  { %v14501_v18 = vld [vmem:[#allocation30 + $0xcc0] sm:$0xf0]  ;;  %v13739_v32 = vld [vmem:[#allocation30 + $0x688] sm:$0xf]  ;;  %v5638_v25 = vpop.f32.mrf.mxu3 }
 0x64c   :  { %v15537_v34 = vld [vmem:[#allocation30 + $0x4] sm:$0xf]  ;;  %v14504_v40 = vor.u32 %v15937_v44, %v14501_v18  ;;  %8426 = vmatpush.bf16.msra.mxu0 %v13992_v39  ;;  %v15754_v44 = vld [vmem:[#allocation30 + $0x6c4] sm:$0xf0] }
 0x64d   :  { %v12901_v47 = vld [vmem:[#allocation30 + $0x40] sm:$0xf0]  ;;  %v14251_v18 = vld [vmem:[#allocation30 + $0xa88] sm:$0xf] }
 0x64e   :  { %v15665_v37 = vld [vmem:[#allocation30 + $0x404] sm:$0xf]  ;;  %v12904_v53 = vor.u32 %v15537_v34, %v12901_v47  ;;  %8439 = vmatpush.bf16.msra.mxu1 %v14504_v40  ;;  %v15882_v34 = vld [vmem:[#allocation30 + $0xac4] sm:$0xf0]  ;;  %v13228_v47 = vor.u32 %v15626_v43, %v13227_v29  ;;  %v5639_v29 = vadd.f32 %v5638_v25, %v5625_v22  ;;  %v16034_v22 = vld [vmem:[#allocation30 + $0xf8c] sm:$0xf] }
 0x64f   :  { %v13413_v38 = vld [vmem:[#allocation30 + $0x440] sm:$0xf0]  ;;  %v14763_v27 = vld [vmem:[#allocation30 + $0xe88] sm:$0xf]  ;;  %v14252_v40 = vor.u32 %v15882_v34, %v14251_v18  ;;  %v14893_v25 = vld [vmem:[#allocation30 + $0xfc8] sm:$0xf0] }
 0x650   :  { %v15793_v46 = vld [vmem:[#allocation30 + $0x804] sm:$0xf]  ;;  %v13416_v24 = vor.u32 %v15665_v37, %v13413_v38  ;;  %8401 = vmatpush.bf16.msrb.mxu2 %v12904_v53  ;;  %v16010_v35 = vld [vmem:[#allocation30 + $0xec4] sm:$0xf0]  ;;  %v13740_v37 = vor.u32 %v15754_v44, %v13739_v32  ;;  %v5652_v32 = vadd.f32 %v5651_v49, %v5639_v29  ;;  %v5653_v44 = vpop.f32.mrf.mxu0 }
 0x651   :  { %v13925_v14 = vld [vmem:[#allocation30 + $0x840] sm:$0xf0]  ;;  %v13163_v38 = vld [vmem:[#allocation30 + $0x208] sm:$0xf]  ;;  %v14764_v41 = vor.u32 %v16010_v35, %v14763_v27  ;;  %v5666_v18 = vpop.f32.mrf.mxu1  ;;  %v15762_v44 = vld [vmem:[#allocation30 + $0x70c] sm:$0xf] }
 0x652   :  { %v15921_v20 = vld [vmem:[#allocation30 + $0xc04] sm:$0xf]  ;;  %v13928_v56 = vor.u32 %v15793_v46, %v13925_v14  ;;  %8414 = vmatpush.bf16.msrb.mxu3 %v13416_v24  ;;  %v15610_v39 = vld [vmem:[#allocation30 + $0x244] sm:$0xf0]  ;;  %v13805_v18 = vld [vmem:[#allocation30 + $0x748] sm:$0xf0] }
 0x653   :  { %v14437_v48 = vld [vmem:[#allocation30 + $0xc40] sm:$0xf0]  ;;  %8402 = vmatmul.bf16.vlgmr.msrb.gmra.mxu2 %v17672_v0  ;;  %v13675_v45 = vld [vmem:[#allocation30 + $0x608] sm:$0xf]  ;;  %v13164_v51 = vor.u32 %v15610_v39, %v13163_v38 }
 0x654   :  { %v14440_v60 = vor.u32 %v15921_v20, %v14437_v48  ;;  %8427 = vmatpush.bf16.msra.mxu0 %v13928_v56  ;;  %8446 = vmatpush.bf16.msra.mxu2 %v13356_v61  ;;  %v15738_v46 = vld [vmem:[#allocation30 + $0x644] sm:$0xf0] }
 0x655   :  { %8415 = vmatmul.bf16.vlgmr.msrb.gmra.mxu3 %v17674_v1  ;;  %v14187_v14 = vld [vmem:[#allocation30 + $0xa08] sm:$0xf]  ;;  %v13676_v52 = vor.u32 %v15738_v46, %v13675_v45 }
 0x656   :  { %8440 = vmatpush.bf16.msra.mxu1 %v14440_v60  ;;  %8459 = vmatpush.bf16.msra.mxu3 %v13868_v6  ;;  %v15866_v20 = vld [vmem:[#allocation30 + $0xa44] sm:$0xf0] }
 0x657   :  { %8428 = vmatmul.bf16.vlgmr.msra.gmra.mxu0 %v17676_v2  ;;  %v14699_v48 = vld [vmem:[#allocation30 + $0xe08] sm:$0xf]  ;;  %v14188_v54 = vor.u32 %v15866_v20, %v14187_v14  ;;  %v17690_v20 = vadd.f32 %v5664_v50, %v5652_v32  ;;  %v15650_v50 = vld [vmem:[#allocation30 + $0x38c] sm:$0xf]  ;;  %v14896_v32 = vor.u32 %v16034_v22, %v14893_v25 }
 0x658   :  { %8472 = vmatpush.bf16.msrb.mxu0 %v14380_v7  ;;  %8447 = vmatpush.bf16.msra.mxu2 %v13292_v21  ;;  %v13099_v53 = vld [vmem:[#allocation30 + $0x188] sm:$0xf]  ;;  %v14700_v55 = vor.u32 %v15994_v36, %v14699_v48 }
 0x659   :  { %8441 = vmatmul.bf16.vlgmr.msra.gmra.mxu1 %v17678_v3  ;;  %v15594_v24 = vld [vmem:[#allocation30 + $0x1c4] sm:$0xf0] }
 0x65a   :  { %8485 = vmatpush.bf16.msrb.mxu1 %v14892_v19  ;;  %8460 = vmatpush.bf16.msra.mxu3 %v13804_v42  ;;  %v13611_v23 = vld [vmem:[#allocation30 + $0x588] sm:$0xf]  ;;  %v13100_v10 = vor.u32 %v15594_v24, %v13099_v53 }
 0x65b   :  { %v15722_v56 = vld [vmem:[#allocation30 + $0x5c4] sm:$0xf0] }
 0x65c   :  { %8473 = vmatpush.bf16.msrb.mxu0 %v14316_v30  ;;  %8448 = vmatpush.bf16.msra.mxu2 %v13228_v47  ;;  %v14123_v60 = vld [vmem:[#allocation30 + $0x988] sm:$0xf]  ;;  %v13612_v7 = vor.u32 %v15722_v56, %v13611_v23  ;;  %v5640_v23 = vpop.f32.mrf.mxu3 }
 0x65d   :  { %v15850_v61 = vld [vmem:[#allocation30 + $0x9c4] sm:$0xf0] }
 0x65e   :  { %8486 = vmatpush.bf16.msrb.mxu1 %v14828_v31  ;;  %8461 = vmatpush.bf16.msra.mxu3 %v13740_v37  ;;  %v14635_v6 = vld [vmem:[#allocation30 + $0xd88] sm:$0xf]  ;;  %v14124_v13 = vor.u32 %v15850_v61, %v14123_v60 }
 0x65f   :  { %v15978_v9 = vld [vmem:[#allocation30 + $0xdc4] sm:$0xf0] }
 0x660   :  { %8474 = vmatpush.bf16.msrb.mxu0 %v14252_v40  ;;  %8449 = vmatpush.bf16.msra.mxu2 %v13164_v51  ;;  %v13035_v19 = vld [vmem:[#allocation30 + $0x108] sm:$0xf]  ;;  %v14636_v11 = vor.u32 %v15978_v9, %v14635_v6  ;;  %v13357_v9 = vld [vmem:[#allocation30 + $0x3c8] sm:$0xf0] }
 0x661   :  { %v15578_v8 = vld [vmem:[#allocation30 + $0x144] sm:$0xf0] }
 0x662   :  { %8487 = vmatpush.bf16.msrb.mxu1 %v14764_v41  ;;  %8462 = vmatpush.bf16.msra.mxu3 %v13676_v52  ;;  %v13547_v28 = vld [vmem:[#allocation30 + $0x508] sm:$0xf]  ;;  %v13036_v34 = vor.u32 %v15578_v8, %v13035_v19  ;;  %v15906_v19 = vld [vmem:[#allocation30 + $0xb8c] sm:$0xf] }
 0x663   :  { %v15706_v21 = vld [vmem:[#allocation30 + $0x544] sm:$0xf0] }
 0x664   :  { %8475 = vmatpush.bf16.msrb.mxu0 %v14188_v54  ;;  %v14059_v42 = vld [vmem:[#allocation30 + $0x908] sm:$0xf]  ;;  %8450 = vmatpush.bf16.msra.mxu2 %v13100_v10  ;;  %v13548_v27 = vor.u32 %v15706_v21, %v13547_v28  ;;  %v15778_v10 = vld [vmem:[#allocation30 + $0x78c] sm:$0xf] }
 0x665   :  { %v15834_v43 = vld [vmem:[#allocation30 + $0x944] sm:$0xf0] }
 0x666   :  { %8488 = vmatpush.bf16.msrb.mxu1 %v14700_v55  ;;  %v14571_v30 = vld [vmem:[#allocation30 + $0xd08] sm:$0xf]  ;;  %8463 = vmatpush.bf16.msra.mxu3 %v13612_v7  ;;  %v14060_v37 = vor.u32 %v15834_v43, %v14059_v42  ;;  %v5627_v55 = vpop.f32.mrf.mxu2  ;;  %v13869_v7 = vld [vmem:[#allocation30 + $0x7c8] sm:$0xf0]  ;;  %v13360_v42 = vor.u32 %v15650_v50, %v13357_v9 }
 0x667   :  { %v15962_v31 = vld [vmem:[#allocation30 + $0xd44] sm:$0xf0]  ;;  %v13872_v29 = vor.u32 %v15778_v10, %v13869_v7  ;;  %v15634_v43 = vld [vmem:[#allocation30 + $0x30c] sm:$0xf] }
 0x668   :  { %v12971_v35 = vld [vmem:[#allocation30 + $0x88] sm:$0xf]  ;;  %8476 = vmatpush.bf16.msrb.mxu0 %v14124_v13  ;;  %v14572_v38 = vor.u32 %v15962_v31, %v14571_v30  ;;  %8451 = vmatpush.bf16.msra.mxu2 %v13036_v34  ;;  %v13293_v30 = vld [vmem:[#allocation30 + $0x348] sm:$0xf0] }
 0x669   :  { %v15562_v47 = vld [vmem:[#allocation30 + $0xc4] sm:$0xf0]  ;;  %v15890_v34 = vld [vmem:[#allocation30 + $0xb0c] sm:$0xf] }
 0x66a   :  { %8489 = vmatpush.bf16.msrb.mxu1 %v14636_v11  ;;  %v13483_v39 = vld [vmem:[#allocation30 + $0x488] sm:$0xf]  ;;  %8464 = vmatpush.bf16.msra.mxu3 %v13548_v27  ;;  %v12972_v36 = vor.u32 %v15562_v47, %v12971_v35  ;;  %v14381_v11 = vld [vmem:[#allocation30 + $0xbc8] sm:$0xf0] }
 0x66b   :  { %v15690_v40 = vld [vmem:[#allocation30 + $0x4c4] sm:$0xf0]  ;;  %v14384_v31 = vor.u32 %v15906_v19, %v14381_v11  ;;  %v14317_v27 = vld [vmem:[#allocation30 + $0xb48] sm:$0xf0]  ;;  %v5703_v10 = vpop.f32.mrf.mxu0 }
 0x66c   :  { %v13995_v41 = vld [vmem:[#allocation30 + $0x888] sm:$0xf]  ;;  %v13484_v49 = vor.u32 %v15690_v40, %v13483_v39  ;;  %8477 = vmatpush.bf16.msrb.mxu0 %v14060_v37  ;;  %8452 = vmatpush.bf16.msra.mxu2 %v12972_v36  ;;  %v16018_v35 = vld [vmem:[#allocation30 + $0xf0c] sm:$0xf]  ;;  %v13296_v37 = vor.u32 %v15634_v43, %v13293_v30 }
 0x66d   :  { %v15818_v45 = vld [vmem:[#allocation30 + $0x8c4] sm:$0xf0]  ;;  %v14829_v47 = vld [vmem:[#allocation30 + $0xf48] sm:$0xf0]  ;;  %v5716_v7 = vpop.f32.mrf.mxu1 }
 0x66e   :  { %v14507_v46 = vld [vmem:[#allocation30 + $0xc88] sm:$0xf]  ;;  %8490 = vmatpush.bf16.msrb.mxu1 %v14572_v38  ;;  %v13996_v24 = vor.u32 %v15818_v45, %v13995_v41  ;;  %8465 = vmatpush.bf16.msra.mxu3 %v13484_v49  ;;  %v13808_v38 = vor.u32 %v15762_v44, %v13805_v18  ;;  %v15618_v39 = vld [vmem:[#allocation30 + $0x28c] sm:$0xf]  ;;  %v14320_v41 = vor.u32 %v15890_v34, %v14317_v27 }
 0x66f   :  { %v15946_v14 = vld [vmem:[#allocation30 + $0xcc4] sm:$0xf0]  ;;  %v13229_v40 = vld [vmem:[#allocation30 + $0x2c8] sm:$0xf0]  ;;  %v14832_v45 = vor.u32 %v16018_v35, %v14829_v47  ;;  %v5677_v35 = vpop.f32.mrf.mxu2  ;;  %v5690_v47 = vpop.f32.mrf.mxu3 }
 0x670   :  { %v12907_v48 = vld [vmem:[#allocation30 + $0x8] sm:$0xf]  ;;  %v14508_v54 = vor.u32 %v15946_v14, %v14507_v46  ;;  %8478 = vmatpush.bf16.msrb.mxu0 %v13996_v24  ;;  %v15746_v46 = vld [vmem:[#allocation30 + $0x68c] sm:$0xf] }
 0x671   :  { %v15546_v51 = vld [vmem:[#allocation30 + $0x44] sm:$0xf0]  ;;  %v13741_v14 = vld [vmem:[#allocation30 + $0x6c8] sm:$0xf0] }
 0x672   :  { %v13419_v52 = vld [vmem:[#allocation30 + $0x408] sm:$0xf]  ;;  %v12908_v8 = vor.u32 %v15546_v51, %v12907_v48  ;;  %8491 = vmatpush.bf16.msrb.mxu1 %v14508_v54  ;;  %v15874_v48 = vld [vmem:[#allocation30 + $0xa8c] sm:$0xf] }
 0x673   :  { %v15674_v53 = vld [vmem:[#allocation30 + $0x444] sm:$0xf0]  ;;  %v14253_v36 = vld [vmem:[#allocation30 + $0xac8] sm:$0xf0] }
 0x674   :  { %v13931_v56 = vld [vmem:[#allocation30 + $0x808] sm:$0xf]  ;;  %v13420_v13 = vor.u32 %v15674_v53, %v13419_v52  ;;  %8453 = vmatpush.bf16.msra.mxu2 %v12908_v8  ;;  %v16002_v49 = vld [vmem:[#allocation30 + $0xe8c] sm:$0xf]  ;;  %v13232_v52 = vor.u32 %v15618_v39, %v13229_v40  ;;  %v13744_v53 = vor.u32 %v15746_v46, %v13741_v14  ;;  %v14256_v55 = vor.u32 %v15874_v48, %v14253_v36  ;;  %v5705_v48 = vpop.f32.mrf.mxu0 }
 0x675   :  { %v15802_v60 = vld [vmem:[#allocation30 + $0x844] sm:$0xf0]  ;;  %v14765_v51 = vld [vmem:[#allocation30 + $0xec8] sm:$0xf0]  ;;  %v5691_v40 = vadd.f32 %v5690_v47, %v5677_v35  ;;  %v5718_v36 = vpop.f32.mrf.mxu1  ;;  %v15915_v35 = vld [vmem:[#allocation30 + $0xbcc] sm:$0xf0] }
 0x676   :  { %v14443_v61 = vld [vmem:[#allocation30 + $0xc08] sm:$0xf]  ;;  %v13932_v28 = vor.u32 %v15802_v60, %v13931_v56  ;;  %8466 = vmatpush.bf16.msra.mxu3 %v13420_v13  ;;  %v15602_v24 = vld [vmem:[#allocation30 + $0x20c] sm:$0xf]  ;;  %v14768_v23 = vor.u32 %v16002_v49, %v14765_v51  ;;  %v14899_v47 = vld [vmem:[#allocation30 + $0xf90] sm:$0xf] }
 0x677   :  { %v15930_v6 = vld [vmem:[#allocation30 + $0xc44] sm:$0xf0]  ;;  %8454 = vmatmul.bf16.vlgmr.msra.gmra.mxu2 %v17672_v0  ;;  %v13165_v54 = vld [vmem:[#allocation30 + $0x248] sm:$0xf0]  ;;  %v5704_v14 = vadd.f32 %v5703_v10, %v5691_v40  ;;  %v13811_v36 = vld [vmem:[#allocation30 + $0x710] sm:$0xf] }
 0x678   :  { %v14444_v21 = vor.u32 %v15930_v6, %v14443_v61  ;;  %8479 = vmatpush.bf16.msrb.mxu0 %v13932_v28  ;;  %8498 = vmatpush.bf16.msrb.mxu2 %v13360_v42  ;;  %v15730_v56 = vld [vmem:[#allocation30 + $0x60c] sm:$0xf]  ;;  %v13168_v19 = vor.u32 %v15602_v24, %v13165_v54 }
 0x679   :  { %8467 = vmatmul.bf16.vlgmr.msra.gmra.mxu3 %v17674_v1  ;;  %v13677_v60 = vld [vmem:[#allocation30 + $0x648] sm:$0xf0] }
 0x67a   :  { %8492 = vmatpush.bf16.msrb.mxu1 %v14444_v21  ;;  %8511 = vmatpush.bf16.msrb.mxu3 %v13872_v29  ;;  %v15858_v61 = vld [vmem:[#allocation30 + $0xa0c] sm:$0xf]  ;;  %v13680_v8 = vor.u32 %v15730_v56, %v13677_v60 }
 0x67b   :  { %8480 = vmatmul.bf16.vlgmr.msrb.gmra.mxu0 %v17676_v2  ;;  %v14189_v6 = vld [vmem:[#allocation30 + $0xa48] sm:$0xf0] }
 0x67c   :  { %8524 = vmatpush.bf16.msra.mxu0 %v14384_v31  ;;  %8499 = vmatpush.bf16.msrb.mxu2 %v13296_v37  ;;  %v15986_v50 = vld [vmem:[#allocation30 + $0xe0c] sm:$0xf]  ;;  %v14192_v22 = vor.u32 %v15858_v61, %v14189_v6 }
 0x67d   :  { %8493 = vmatmul.bf16.vlgmr.msrb.gmra.mxu1 %v17678_v3  ;;  %v14701_v9 = vld [vmem:[#allocation30 + $0xe48] sm:$0xf0] }
 0x67e   :  { %8537 = vmatpush.bf16.msra.mxu1 %v14896_v32  ;;  %8512 = vmatpush.bf16.msrb.mxu3 %v13808_v38  ;;  %v15586_v13 = vld [vmem:[#allocation30 + $0x18c] sm:$0xf]  ;;  %v14704_v25 = vor.u32 %v15986_v50, %v14701_v9  ;;  %v17696_v50 = vadd.f32 %v5716_v7, %v5704_v14  ;;  %v13363_v7 = vld [vmem:[#allocation30 + $0x390] sm:$0xf] }
 0x67f   :  { %v13101_v11 = vld [vmem:[#allocation30 + $0x1c8] sm:$0xf0] }
 0x680   :  { %8525 = vmatpush.bf16.msra.mxu0 %v14320_v41  ;;  %8500 = vmatpush.bf16.msrb.mxu2 %v13232_v52  ;;  %v15714_v28 = vld [vmem:[#allocation30 + $0x58c] sm:$0xf]  ;;  %v13104_v31 = vor.u32 %v15586_v13, %v13101_v11 }
 0x681   :  { %v13613_v21 = vld [vmem:[#allocation30 + $0x5c8] sm:$0xf0] }
 0x682   :  { %8538 = vmatpush.bf16.msra.mxu1 %v14832_v45  ;;  %8513 = vmatpush.bf16.msrb.mxu3 %v13744_v53  ;;  %v15842_v42 = vld [vmem:[#allocation30 + $0x98c] sm:$0xf]  ;;  %v13616_v32 = vor.u32 %v15714_v28, %v13613_v21  ;;  %v5679_v28 = vpop.f32.mrf.mxu2  ;;  %v5692_v21 = vpop.f32.mrf.mxu3 }
 0x683   :  { %v14125_v29 = vld [vmem:[#allocation30 + $0x9c8] sm:$0xf0]  ;;  %v15611_v28 = vld [vmem:[#allocation30 + $0x24c] sm:$0xf0] }
 0x684   :  { %8526 = vmatpush.bf16.msra.mxu0 %v14256_v55  ;;  %v15970_v43 = vld [vmem:[#allocation30 + $0xd8c] sm:$0xf]  ;;  %8501 = vmatpush.bf16.msrb.mxu2 %v13168_v19  ;;  %v14128_v34 = vor.u32 %v15842_v42, %v14125_v29 }
 0x685   :  { %v14637_v30 = vld [vmem:[#allocation30 + $0xdc8] sm:$0xf0] }
 0x686   :  { %8539 = vmatpush.bf16.msra.mxu1 %v14768_v23  ;;  %8514 = vmatpush.bf16.msrb.mxu3 %v13680_v8  ;;  %v15570_v44 = vld [vmem:[#allocation30 + $0x10c] sm:$0xf]  ;;  %v14640_v27 = vor.u32 %v15970_v43, %v14637_v30 }
 0x687   :  { %v13037_v18 = vld [vmem:[#allocation30 + $0x148] sm:$0xf0] }
 0x688   :  { %8527 = vmatpush.bf16.msra.mxu0 %v14192_v22  ;;  %v15698_v37 = vld [vmem:[#allocation30 + $0x50c] sm:$0xf]  ;;  %8502 = vmatpush.bf16.msrb.mxu2 %v13104_v31  ;;  %v13040_v49 = vor.u32 %v15570_v44, %v13037_v18  ;;  %v15659_v31 = vld [vmem:[#allocation30 + $0x3cc] sm:$0xf0] }
 0x689   :  { %v13549_v38 = vld [vmem:[#allocation30 + $0x548] sm:$0xf0]  ;;  %v15787_v44 = vld [vmem:[#allocation30 + $0x7cc] sm:$0xf0]  ;;  %v13364_v40 = vor.u32 %v15659_v31, %v13363_v7 }
 0x68a   :  { %8540 = vmatpush.bf16.msra.mxu1 %v14704_v25  ;;  %v15826_v39 = vld [vmem:[#allocation30 + $0x90c] sm:$0xf]  ;;  %8515 = vmatpush.bf16.msrb.mxu3 %v13616_v32  ;;  %v13552_v51 = vor.u32 %v15698_v37, %v13549_v38  ;;  %v13875_v32 = vld [vmem:[#allocation30 + $0x790] sm:$0xf] }
 0x68b   :  { %v14061_v41 = vld [vmem:[#allocation30 + $0x948] sm:$0xf0]  ;;  %v14387_v18 = vld [vmem:[#allocation30 + $0xb90] sm:$0xf] }
 0x68c   :  { %v15954_v45 = vld [vmem:[#allocation30 + $0xd0c] sm:$0xf]  ;;  %8528 = vmatpush.bf16.msra.mxu0 %v14128_v34  ;;  %v14064_v24 = vor.u32 %v15826_v39, %v14061_v41  ;;  %8503 = vmatpush.bf16.msrb.mxu2 %v13040_v49  ;;  %v16043_v37 = vld [vmem:[#allocation30 + $0xfcc] sm:$0xf0]  ;;  %v13876_v41 = vor.u32 %v15787_v44, %v13875_v32  ;;  %v14388_v14 = vor.u32 %v15915_v35, %v14387_v18 }
 0x68d   :  { %v14573_v46 = vld [vmem:[#allocation30 + $0xd48] sm:$0xf0]  ;;  %v14900_v48 = vor.u32 %v16043_v37, %v14899_v47  ;;  %v15771_v49 = vld [vmem:[#allocation30 + $0x74c] sm:$0xf0] }
 0x68e   :  { %v15554_v52 = vld [vmem:[#allocation30 + $0x8c] sm:$0xf]  ;;  %8541 = vmatpush.bf16.msra.mxu1 %v14640_v27  ;;  %v14576_v54 = vor.u32 %v15954_v45, %v14573_v46  ;;  %8516 = vmatpush.bf16.msrb.mxu3 %v13552_v51  ;;  %v13299_v45 = vld [vmem:[#allocation30 + $0x310] sm:$0xf] }
 0x68f   :  { %v12973_v53 = vld [vmem:[#allocation30 + $0xc8] sm:$0xf0]  ;;  %v15643_v46 = vld [vmem:[#allocation30 + $0x34c] sm:$0xf0] }
 0x690   :  { %v15682_v55 = vld [vmem:[#allocation30 + $0x48c] sm:$0xf]  ;;  %v12976_v10 = vor.u32 %v15554_v52, %v12973_v53  ;;  %8529 = vmatpush.bf16.msra.mxu0 %v14064_v24  ;;  %v14323_v51 = vld [vmem:[#allocation30 + $0xb10] sm:$0xf] }
 0x691   :  { %v13485_v23 = vld [vmem:[#allocation30 + $0x4c8] sm:$0xf0]  ;;  %v15899_v52 = vld [vmem:[#allocation30 + $0xb4c] sm:$0xf0] }
 0x692   :  { %v15810_v56 = vld [vmem:[#allocation30 + $0x88c] sm:$0xf]  ;;  %v13488_v19 = vor.u32 %v15682_v55, %v13485_v23  ;;  %8542 = vmatpush.bf16.msra.mxu1 %v14576_v54  ;;  %8504 = vmatpush.bf16.msrb.mxu2 %v12976_v10  ;;  %v14835_v53 = vld [vmem:[#allocation30 + $0xf10] sm:$0xf]  ;;  %v13300_v54 = vor.u32 %v15643_v46, %v13299_v45  ;;  %v13812_v55 = vor.u32 %v15771_v49, %v13811_v36  ;;  %v5729_v49 = vpop.f32.mrf.mxu2 }
 0x693   :  { %v13997_v60 = vld [vmem:[#allocation30 + $0x8c8] sm:$0xf0]  ;;  %v16027_v24 = vld [vmem:[#allocation30 + $0xf4c] sm:$0xf0] }
 0x694   :  { %v15938_v61 = vld [vmem:[#allocation30 + $0xc8c] sm:$0xf]  ;;  %v14000_v22 = vor.u32 %v15810_v56, %v13997_v60  ;;  %8517 = vmatpush.bf16.msrb.mxu3 %v13488_v19  ;;  %v13235_v23 = vld [vmem:[#allocation30 + $0x290] sm:$0xf]  ;;  %v14324_v60 = vor.u32 %v15899_v52, %v14323_v51  ;;  %v5742_v51 = vpop.f32.mrf.mxu3 }
 0x695   :  { %v14509_v6 = vld [vmem:[#allocation30 + $0xcc8] sm:$0xf0]  ;;  %v15627_v56 = vld [vmem:[#allocation30 + $0x2cc] sm:$0xf0] }
 0x696   :  { %v15538_v9 = vld [vmem:[#allocation30 + $0xc] sm:$0xf]  ;;  %v14512_v25 = vor.u32 %v15938_v61, %v14509_v6  ;;  %8530 = vmatpush.bf16.msra.mxu0 %v14000_v22  ;;  %v14836_v61 = vor.u32 %v16027_v24, %v14835_v53  ;;  %v13747_v6 = vld [vmem:[#allocation30 + $0x690] sm:$0xf] }
 0x697   :  { %v12909_v8 = vld [vmem:[#allocation30 + $0x48] sm:$0xf0]  ;;  %v14259_v10 = vld [vmem:[#allocation30 + $0xa90] sm:$0xf] }
 0x698   :  { %v15666_v13 = vld [vmem:[#allocation30 + $0x40c] sm:$0xf]  ;;  %v12912_v34 = vor.u32 %v15538_v9, %v12909_v8  ;;  %8543 = vmatpush.bf16.msra.mxu1 %v14512_v25  ;;  %v15755_v9 = vld [vmem:[#allocation30 + $0x6cc] sm:$0xf0] }
 0x699   :  { %v13421_v11 = vld [vmem:[#allocation30 + $0x448] sm:$0xf0]  ;;  %v15883_v19 = vld [vmem:[#allocation30 + $0xacc] sm:$0xf0]  ;;  %v13748_v22 = vor.u32 %v15755_v9, %v13747_v6 }
 0x69a   :  { %v15794_v42 = vld [vmem:[#allocation30 + $0x80c] sm:$0xf]  ;;  %v13424_v27 = vor.u32 %v15666_v13, %v13421_v11  ;;  %8505 = vmatpush.bf16.msrb.mxu2 %v12912_v34  ;;  %v14771_v8 = vld [vmem:[#allocation30 + $0xe90] sm:$0xf]  ;;  %v13236_v11 = vor.u32 %v15627_v56, %v13235_v23  ;;  %v14260_v21 = vor.u32 %v15883_v19, %v14259_v10 }
 0x69b   :  { %v13933_v29 = vld [vmem:[#allocation30 + $0x848] sm:$0xf0]  ;;  %v16011_v13 = vld [vmem:[#allocation30 + $0xecc] sm:$0xf0] }
 0x69c   :  { %v15922_v43 = vld [vmem:[#allocation30 + $0xc0c] sm:$0xf]  ;;  %v13936_v38 = vor.u32 %v15794_v42, %v13933_v29  ;;  %8518 = vmatpush.bf16.msrb.mxu3 %v13424_v27  ;;  %v13171_v25 = vld [vmem:[#allocation30 + $0x210] sm:$0xf]  ;;  %v14772_v42 = vor.u32 %v16011_v13, %v14771_v8 }
 0x69d   :  { %v14445_v30 = vld [vmem:[#allocation30 + $0xc48] sm:$0xf0]  ;;  %8506 = vmatmul.bf16.vlgmr.msrb.gmra.mxu2 %v17672_v0  ;;  %v13683_v0 = vld [vmem:[#allocation30 + $0x610] sm:$0xf]  ;;  %v13172_v31 = vor.u32 %v15611_v28, %v13171_v25 }
 0x69e   :  { %v14448_v39 = vor.u32 %v15922_v43, %v14445_v30  ;;  %8531 = vmatpush.bf16.msra.mxu0 %v13936_v38  ;;  %8550 = vmatpush.bf16.msra.mxu2 %v13364_v40  ;;  %v15739_v29 = vld [vmem:[#allocation30 + $0x64c] sm:$0xf0] }
 0x69f   :  { %8519 = vmatmul.bf16.vlgmr.msrb.gmra.mxu3 %v17674_v1  ;;  %v14195_v1 = vld [vmem:[#allocation30 + $0xa10] sm:$0xf]  ;;  %v13684_v32 = vor.u32 %v15739_v29, %v13683_v0 }
 0x6a0   :  { %8544 = vmatpush.bf16.msra.mxu1 %v14448_v39  ;;  %8563 = vmatpush.bf16.msra.mxu3 %v13876_v41  ;;  %v15867_v43 = vld [vmem:[#allocation30 + $0xa4c] sm:$0xf0] }
 0x6a1   :  { %8532 = vmatmul.bf16.vlgmr.msra.gmra.mxu0 %v17676_v2  ;;  %v14707_v30 = vld [vmem:[#allocation30 + $0xe10] sm:$0xf]  ;;  %v5755_v2 = vpop.f32.mrf.mxu0  ;;  %v14196_v34 = vor.u32 %v15867_v43, %v14195_v1 }
 0x6a2   :  { %8576 = vmatpush.bf16.msrb.mxu0 %v14388_v14  ;;  %8551 = vmatpush.bf16.msra.mxu2 %v13300_v54  ;;  %v15995_v7 = vld [vmem:[#allocation30 + $0xe4c] sm:$0xf0]  ;;  %v5743_v54 = vadd.f32 %v5742_v51, %v5729_v49 }
 0x6a3   :  { %8545 = vmatmul.bf16.vlgmr.msra.gmra.mxu1 %v17678_v3  ;;  %v5768_v3 = vpop.f32.mrf.mxu1  ;;  %v13107_v44 = vld [vmem:[#allocation30 + $0x190] sm:$0xf]  ;;  %v14708_v27 = vor.u32 %v15995_v7, %v14707_v30 }
 0x6a4   :  { %8589 = vmatpush.bf16.msrb.mxu1 %v14900_v48  ;;  %8564 = vmatpush.bf16.msra.mxu3 %v13812_v55  ;;  %v15595_v18 = vld [vmem:[#allocation30 + $0x1cc] sm:$0xf0] }
 0x6a5   :  { %v13619_v35 = vld [vmem:[#allocation30 + $0x590] sm:$0xf]  ;;  %v13108_v41 = vor.u32 %v15595_v18, %v13107_v44  ;;  %v5731_v18 = vpop.f32.mrf.mxu2 }
 0x6a6   :  { %8577 = vmatpush.bf16.msrb.mxu0 %v14324_v60  ;;  %8552 = vmatpush.bf16.msra.mxu2 %v13236_v11  ;;  %v15723_v47 = vld [vmem:[#allocation30 + $0x5cc] sm:$0xf0]  ;;  %v5756_v60 = vadd.f32 %v5755_v2, %v5743_v54  ;;  %v13301_v54 = vld [vmem:[#allocation30 + $0x350] sm:$0xf0] }
 0x6a7   :  { %v14131_v37 = vld [vmem:[#allocation30 + $0x990] sm:$0xf]  ;;  %v13620_v45 = vor.u32 %v15723_v47, %v13619_v35  ;;  %v15603_v18 = vld [vmem:[#allocation30 + $0x214] sm:$0xf] }
 0x6a8   :  { %8590 = vmatpush.bf16.msrb.mxu1 %v14836_v61  ;;  %8565 = vmatpush.bf16.msra.mxu3 %v13748_v22  ;;  %v15851_v38 = vld [vmem:[#allocation30 + $0x9cc] sm:$0xf0]  ;;  %v17702_v29 = vadd.f32 %v5768_v3, %v5756_v60  ;;  %v15651_v3 = vld [vmem:[#allocation30 + $0x394] sm:$0xf] }
 0x6a9   :  { %v14643_v39 = vld [vmem:[#allocation30 + $0xd90] sm:$0xf]  ;;  %v14132_v48 = vor.u32 %v15851_v38, %v14131_v37  ;;  %v5757_v61 = vpop.f32.mrf.mxu0  ;;  %v13365_v38 = vld [vmem:[#allocation30 + $0x3d0] sm:$0xf0] }
 0x6aa   :  { %8578 = vmatpush.bf16.msrb.mxu0 %v14260_v21  ;;  %v15979_v40 = vld [vmem:[#allocation30 + $0xdcc] sm:$0xf0]  ;;  %8553 = vmatpush.bf16.msra.mxu2 %v13172_v31  ;;  %v13813_v60 = vld [vmem:[#allocation30 + $0x750] sm:$0xf0] }
 0x6ab   :  { %v13043_v46 = vld [vmem:[#allocation30 + $0x110] sm:$0xf]  ;;  %v14644_v36 = vor.u32 %v15979_v40, %v14643_v39  ;;  %v5770_v6 = vpop.f32.mrf.mxu1  ;;  %v15779_v39 = vld [vmem:[#allocation30 + $0x794] sm:$0xf] }
 0x6ac   :  { %8591 = vmatpush.bf16.msrb.mxu1 %v14772_v42  ;;  %8566 = vmatpush.bf16.msra.mxu3 %v13684_v32  ;;  %v15579_v14 = vld [vmem:[#allocation30 + $0x14c] sm:$0xf0]  ;;  %v13877_v40 = vld [vmem:[#allocation30 + $0x7d0] sm:$0xf0] }
 0x6ad   :  { %v13555_v52 = vld [vmem:[#allocation30 + $0x510] sm:$0xf]  ;;  %v13044_v9 = vor.u32 %v15579_v14, %v13043_v46  ;;  %v14389_v14 = vld [vmem:[#allocation30 + $0xbd0] sm:$0xf0] }
 0x6ae   :  { %8579 = vmatpush.bf16.msrb.mxu0 %v14196_v34  ;;  %v15707_v53 = vld [vmem:[#allocation30 + $0x54c] sm:$0xf0]  ;;  %8554 = vmatpush.bf16.msra.mxu2 %v13108_v41  ;;  %v5744_v34 = vpop.f32.mrf.mxu3  ;;  %v15907_v41 = vld [vmem:[#allocation30 + $0xb94] sm:$0xf] }
 0x6af   :  { %v14067_v24 = vld [vmem:[#allocation30 + $0x910] sm:$0xf]  ;;  %v13556_v10 = vor.u32 %v15707_v53, %v13555_v52  ;;  %v13368_v52 = vor.u32 %v15651_v3, %v13365_v38  ;;  %v13880_v53 = vor.u32 %v15779_v39, %v13877_v40  ;;  %v15891_v61 = vld [vmem:[#allocation30 + $0xb14] sm:$0xf] }
 0x6b0   :  { %8592 = vmatpush.bf16.msrb.mxu1 %v14708_v27  ;;  %v15835_v55 = vld [vmem:[#allocation30 + $0x94c] sm:$0xf0]  ;;  %8567 = vmatpush.bf16.msra.mxu3 %v13620_v45  ;;  %v14325_v6 = vld [vmem:[#allocation30 + $0xb50] sm:$0xf0] }
 0x6b1   :  { %v14579_v23 = vld [vmem:[#allocation30 + $0xd10] sm:$0xf]  ;;  %v14068_v13 = vor.u32 %v15835_v55, %v14067_v24  ;;  %v15635_v24 = vld [vmem:[#allocation30 + $0x314] sm:$0xf]  ;;  %v14392_v55 = vor.u32 %v15907_v41, %v14389_v14  ;;  %v8377_v41 = vpop.f32.mrf.mxu0 }
 0x6b2   :  { %v15963_v56 = vld [vmem:[#allocation30 + $0xd4c] sm:$0xf0]  ;;  %8580 = vmatpush.bf16.msrb.mxu0 %v14132_v48  ;;  %8555 = vmatpush.bf16.msra.mxu2 %v13044_v9  ;;  %v16035_v48 = vld [vmem:[#allocation30 + $0xf94] sm:$0xf] }
 0x6b3   :  { %v12979_v19 = vld [vmem:[#allocation30 + $0x90] sm:$0xf]  ;;  %v14580_v11 = vor.u32 %v15963_v56, %v14579_v23  ;;  %v15763_v56 = vld [vmem:[#allocation30 + $0x714] sm:$0xf] }
 0x6b4   :  { %v15563_v8 = vld [vmem:[#allocation30 + $0xcc] sm:$0xf0]  ;;  %8593 = vmatpush.bf16.msrb.mxu1 %v14644_v36  ;;  %8568 = vmatpush.bf16.msra.mxu3 %v13556_v10  ;;  %v14901_v36 = vld [vmem:[#allocation30 + $0xfd0] sm:$0xf0] }
 0x6b5   :  { %v13491_v22 = vld [vmem:[#allocation30 + $0x490] sm:$0xf]  ;;  %v12980_v43 = vor.u32 %v15563_v8, %v12979_v19  ;;  %v14904_v23 = vor.u32 %v16035_v48, %v14901_v36  ;;  %v16019_v9 = vld [vmem:[#allocation30 + $0xf14] sm:$0xf]  ;;  %v13304_v19 = vor.u32 %v15635_v24, %v13301_v54  ;;  %v13816_v8 = vor.u32 %v15763_v56, %v13813_v60 }
 0x6b6   :  { %v15691_v25 = vld [vmem:[#allocation30 + $0x4cc] sm:$0xf0]  ;;  %8581 = vmatpush.bf16.msrb.mxu0 %v14068_v13  ;;  %v14837_v10 = vld [vmem:[#allocation30 + $0xf50] sm:$0xf0] }
 0x6b7   :  { %v14003_v28 = vld [vmem:[#allocation30 + $0x890] sm:$0xf]  ;;  %v13492_v30 = vor.u32 %v15691_v25, %v13491_v22  ;;  %8556 = vmatpush.bf16.msra.mxu2 %v12980_v43  ;;  %v15619_v13 = vld [vmem:[#allocation30 + $0x294] sm:$0xf]  ;;  %v14328_v22 = vor.u32 %v15891_v61, %v14325_v6  ;;  %v14840_v25 = vor.u32 %v16019_v9, %v14837_v10 }
 0x6b8   :  { %v15819_v21 = vld [vmem:[#allocation30 + $0x8cc] sm:$0xf0]  ;;  %8594 = vmatpush.bf16.msrb.mxu1 %v14580_v11  ;;  %v13237_v11 = vld [vmem:[#allocation30 + $0x2d0] sm:$0xf0] }
 0x6b9   :  { %v14515_v42 = vld [vmem:[#allocation30 + $0xc90] sm:$0xf]  ;;  %v14004_v32 = vor.u32 %v15819_v21, %v14003_v28  ;;  %8569 = vmatpush.bf16.msra.mxu3 %v13492_v30  ;;  %v15747_v28 = vld [vmem:[#allocation30 + $0x694] sm:$0xf] }
 0x6ba   :  { %v15947_v0 = vld [vmem:[#allocation30 + $0xccc] sm:$0xf0]  ;;  %v13749_v21 = vld [vmem:[#allocation30 + $0x6d0] sm:$0xf0] }
 0x6bb   :  { %v12915_v1 = vld [vmem:[#allocation30 + $0x10] sm:$0xf]  ;;  %v14516_v44 = vor.u32 %v15947_v0, %v14515_v42  ;;  %8582 = vmatpush.bf16.msrb.mxu0 %v14004_v32  ;;  %v15875_v42 = vld [vmem:[#allocation30 + $0xa94] sm:$0xf]  ;;  %v17704_v0 = vld [vmem:[#allocation1] sm:$0xff]  ;;  %v13240_v32 = vor.u32 %v15619_v13, %v13237_v11 }
 0x6bc   :  { %v15547_v7 = vld [vmem:[#allocation30 + $0x4c] sm:$0xf0]  ;;  %v14261_v43 = vld [vmem:[#allocation30 + $0xad0] sm:$0xf0] }
 0x6bd   :  { %v13427_v2 = vld [vmem:[#allocation30 + $0x410] sm:$0xf]  ;;  %v12916_v45 = vor.u32 %v15547_v7, %v12915_v1  ;;  %8595 = vmatpush.bf16.msrb.mxu1 %v14516_v44  ;;  %v17707_v1 = vld [vmem:[#allocation1 + $0x9] sm:$0xff]  ;;  %v16003_v30 = vld [vmem:[#allocation30 + $0xe94] sm:$0xf]  ;;  %v13752_v44 = vor.u32 %v15747_v28, %v13749_v21 }
 0x6be   :  { %v15675_v31 = vld [vmem:[#allocation30 + $0x44c] sm:$0xf0]  ;;  %v14773_v7 = vld [vmem:[#allocation30 + $0xed0] sm:$0xf0] }
 0x6bf   :  { %v13939_v27 = vld [vmem:[#allocation30 + $0x810] sm:$0xf]  ;;  %v13428_v46 = vor.u32 %v15675_v31, %v13427_v2  ;;  %8557 = vmatpush.bf16.msra.mxu2 %v12916_v45  ;;  %v17713_v31 = vld [vmem:[#allocation1 + $0x1b] sm:$0xff]  ;;  %v8390_v45 = vpop.f32.mrf.mxu1 }
 0x6c0   :  { %v15803_v35 = vld [vmem:[#allocation30 + $0x84c] sm:$0xf0]  ;;  %v13173_v34 = vld [vmem:[#allocation30 + $0x250] sm:$0xf0] }
 0x6c1   :  { %v14451_v47 = vld [vmem:[#allocation30 + $0xc10] sm:$0xf]  ;;  %v13940_v49 = vor.u32 %v15803_v35, %v13939_v27  ;;  %8570 = vmatpush.bf16.msra.mxu3 %v13428_v46  ;;  %v14264_v27 = vor.u32 %v15875_v42, %v14261_v43  ;;  %v14776_v35 = vor.u32 %v16003_v30, %v14773_v7  ;;  %v15859_v3 = vld [vmem:[#allocation30 + $0xa14] sm:$0xf]  ;;  %v13176_v46 = vor.u32 %v15603_v18, %v13173_v34  ;;  %v8379_v30 = vpop.f32.mrf.mxu0 }
 0x6c2   :  { %v15931_v37 = vld [vmem:[#allocation30 + $0xc4c] sm:$0xf0]  ;;  %8558 = vmatmul.bf16.vlgmr.msra.gmra.mxu2 %v17704_v0  ;;  %v14197_v38 = vld [vmem:[#allocation30 + $0xa50] sm:$0xf0]  ;;  %v15644_v30 = vld [vmem:[#allocation30 + $0x354] sm:$0xf0] }
 0x6c3   :  { %v14452_v51 = vor.u32 %v15931_v37, %v14451_v47  ;;  %8583 = vmatpush.bf16.msrb.mxu0 %v13940_v49  ;;  %8602 = vmatpush.bf16.msrb.mxu2 %v13368_v52  ;;  %v17710_v2 = vld [vmem:[#allocation1 + $0x12] sm:$0xff]  ;;  %v15731_v47 = vld [vmem:[#allocation30 + $0x614] sm:$0xf]  ;;  %v14200_v49 = vor.u32 %v15859_v3, %v14197_v38 }
 0x6c4   :  { %8571 = vmatmul.bf16.vlgmr.msra.gmra.mxu3 %v17707_v1  ;;  %v13685_v37 = vld [vmem:[#allocation30 + $0x650] sm:$0xf0] }
 0x6c5   :  { %8596 = vmatpush.bf16.msrb.mxu1 %v14452_v51  ;;  %8615 = vmatpush.bf16.msrb.mxu3 %v13880_v53  ;;  %v15987_v39 = vld [vmem:[#allocation30 + $0xe14] sm:$0xf]  ;;  %v13688_v14 = vor.u32 %v15731_v47, %v13685_v37 }
 0x6c6   :  { %8584 = vmatmul.bf16.vlgmr.msrb.gmra.mxu0 %v17710_v2  ;;  %v14709_v40 = vld [vmem:[#allocation30 + $0xe50] sm:$0xf0] }
 0x6c7   :  { %8628 = vmatpush.bf16.msra.mxu0 %v14392_v55  ;;  %8603 = vmatpush.bf16.msrb.mxu2 %v13304_v19  ;;  %v15587_v48 = vld [vmem:[#allocation30 + $0x194] sm:$0xf]  ;;  %v14712_v51 = vor.u32 %v15987_v39, %v14709_v40  ;;  %v8351_v19 = vpop.f32.mrf.mxu2  ;;  %v8392_v7 = vpop.f32.mrf.mxu1 }
 0x6c8   :  { %8597 = vmatmul.bf16.vlgmr.msrb.gmra.mxu1 %v17713_v31  ;;  %v13109_v36 = vld [vmem:[#allocation30 + $0x1d0] sm:$0xf0] }
 0x6c9   :  { %8641 = vmatpush.bf16.msra.mxu1 %v14904_v23  ;;  %8616 = vmatpush.bf16.msrb.mxu3 %v13816_v8  ;;  %v15715_v52 = vld [vmem:[#allocation30 + $0x594] sm:$0xf]  ;;  %v13112_v56 = vor.u32 %v15587_v48, %v13109_v36  ;;  %v8364_v8 = vpop.f32.mrf.mxu3 }
 0x6ca   :  { %v13621_v53 = vld [vmem:[#allocation30 + $0x5d0] sm:$0xf0] }
 0x6cb   :  { %8629 = vmatpush.bf16.msra.mxu0 %v14328_v22  ;;  %8604 = vmatpush.bf16.msrb.mxu2 %v13240_v32  ;;  %v15843_v24 = vld [vmem:[#allocation30 + $0x994] sm:$0xf]  ;;  %v13624_v60 = vor.u32 %v15715_v52, %v13621_v53 }
 0x6cc   :  { %v14133_v54 = vld [vmem:[#allocation30 + $0x9d0] sm:$0xf0] }
 0x6cd   :  { %8642 = vmatpush.bf16.msra.mxu1 %v14840_v25  ;;  %8617 = vmatpush.bf16.msrb.mxu3 %v13752_v44  ;;  %v15971_v55 = vld [vmem:[#allocation30 + $0xd94] sm:$0xf]  ;;  %v14136_v9 = vor.u32 %v15843_v24, %v14133_v54  ;;  %v8352_v25 = vadd.f32 %v8351_v19, %v17608_v15 }
 0x6ce   :  { %v14645_v23 = vld [vmem:[#allocation30 + $0xdd0] sm:$0xf0] }
 0x6cf   :  { %8630 = vmatpush.bf16.msra.mxu0 %v14264_v27  ;;  %8605 = vmatpush.bf16.msrb.mxu2 %v13176_v46  ;;  %v15571_v61 = vld [vmem:[#allocation30 + $0x114] sm:$0xf]  ;;  %v14648_v10 = vor.u32 %v15971_v55, %v14645_v23  ;;  %v8365_v43 = vadd.f32 %v8364_v8, %v8352_v25  ;;  %v8353_v54 = vpop.f32.mrf.mxu2 }
 0x6d0   :  { %v13045_v6 = vld [vmem:[#allocation30 + $0x150] sm:$0xf0]  ;;  %v13179_v54 = vld [vmem:[#allocation30 + $0x218] sm:$0xf] }
 0x6d1   :  { %8643 = vmatpush.bf16.msra.mxu1 %v14776_v35  ;;  %8618 = vmatpush.bf16.msrb.mxu3 %v13688_v14  ;;  %v15699_v13 = vld [vmem:[#allocation30 + $0x514] sm:$0xf]  ;;  %v13048_v32 = vor.u32 %v15571_v61, %v13045_v6  ;;  %v8378_v15 = vadd.f32 %v8377_v41, %v8365_v43  ;;  %v8366_v55 = vpop.f32.mrf.mxu3  ;;  %v13371_v61 = vld [vmem:[#allocation30 + $0x398] sm:$0xf] }
 0x6d2   :  { %v13557_v11 = vld [vmem:[#allocation30 + $0x550] sm:$0xf0]  ;;  %v13883_v6 = vld [vmem:[#allocation30 + $0x798] sm:$0xf] }
 0x6d3   :  { %8631 = vmatpush.bf16.msra.mxu0 %v14200_v49  ;;  %v15827_v22 = vld [vmem:[#allocation30 + $0x914] sm:$0xf]  ;;  %8606 = vmatpush.bf16.msrb.mxu2 %v13112_v56  ;;  %v13560_v44 = vor.u32 %v15699_v13, %v13557_v11  ;;  %v17717_v14 = vadd.f32 %v8390_v45, %v8378_v15  ;;  %v15660_v45 = vld [vmem:[#allocation30 + $0x3d4] sm:$0xf0] }
 0x6d4   :  { %v14069_v28 = vld [vmem:[#allocation30 + $0x950] sm:$0xf0]  ;;  %v15916_v13 = vld [vmem:[#allocation30 + $0xbd4] sm:$0xf0] }
 0x6d5   :  { %8644 = vmatpush.bf16.msra.mxu1 %v14712_v51  ;;  %v15955_v21 = vld [vmem:[#allocation30 + $0xd14] sm:$0xf]  ;;  %8619 = vmatpush.bf16.msrb.mxu3 %v13624_v60  ;;  %v14072_v27 = vor.u32 %v15827_v22, %v14069_v28  ;;  %v14907_v11 = vld [vmem:[#allocation30 + $0xf98] sm:$0xf] }
 0x6d6   :  { %v14581_v42 = vld [vmem:[#allocation30 + $0xd50] sm:$0xf0]  ;;  %v16044_v22 = vld [vmem:[#allocation30 + $0xfd4] sm:$0xf0] }
 0x6d7   :  { %v15555_v18 = vld [vmem:[#allocation30 + $0x94] sm:$0xf]  ;;  %8632 = vmatpush.bf16.msra.mxu0 %v14136_v9  ;;  %v14584_v35 = vor.u32 %v15955_v21, %v14581_v42  ;;  %8607 = vmatpush.bf16.msrb.mxu2 %v13048_v32  ;;  %v15788_v9 = vld [vmem:[#allocation30 + $0x7d4] sm:$0xf0]  ;;  %v13372_v21 = vor.u32 %v15660_v45, %v13371_v61  ;;  %v14908_v32 = vor.u32 %v16044_v22, %v14907_v11 }
 0x6d8   :  { %v12981_v34 = vld [vmem:[#allocation30 + $0xd0] sm:$0xf0]  ;;  %v13884_v42 = vor.u32 %v15788_v9, %v13883_v6  ;;  %v13307_v43 = vld [vmem:[#allocation30 + $0x318] sm:$0xf] }
 0x6d9   :  { %8645 = vmatpush.bf16.msra.mxu1 %v14648_v10  ;;  %v15683_v47 = vld [vmem:[#allocation30 + $0x494] sm:$0xf]  ;;  %8620 = vmatpush.bf16.msrb.mxu3 %v13560_v44  ;;  %v12984_v48 = vor.u32 %v15555_v18, %v12981_v34  ;;  %v14395_v10 = vld [vmem:[#allocation30 + $0xb98] sm:$0xf] }
 0x6da   :  { %v13493_v37 = vld [vmem:[#allocation30 + $0x4d0] sm:$0xf0]  ;;  %v14396_v7 = vor.u32 %v15916_v13, %v14395_v10  ;;  %v13819_v44 = vld [vmem:[#allocation30 + $0x718] sm:$0xf]  ;;  %v8429_v10 = vpop.f32.mrf.mxu0 }
 0x6db   :  { %v15811_v3 = vld [vmem:[#allocation30 + $0x894] sm:$0xf]  ;;  %v13496_v36 = vor.u32 %v15683_v47, %v13493_v37  ;;  %8633 = vmatpush.bf16.msra.mxu0 %v14072_v27  ;;  %8608 = vmatpush.bf16.msrb.mxu2 %v12984_v48  ;;  %v15772_v18 = vld [vmem:[#allocation30 + $0x754] sm:$0xf0]  ;;  %v13308_v37 = vor.u32 %v15644_v30, %v13307_v43 }
 0x6dc   :  { %v14005_v38 = vld [vmem:[#allocation30 + $0x8d0] sm:$0xf0]  ;;  %v14331_v34 = vld [vmem:[#allocation30 + $0xb18] sm:$0xf] }
 0x6dd   :  { %v15939_v39 = vld [vmem:[#allocation30 + $0xc94] sm:$0xf]  ;;  %8646 = vmatpush.bf16.msra.mxu1 %v14584_v35  ;;  %v14008_v53 = vor.u32 %v15811_v3, %v14005_v38  ;;  %8621 = vmatpush.bf16.msrb.mxu3 %v13496_v36  ;;  %v15900_v27 = vld [vmem:[#allocation30 + $0xb54] sm:$0xf0]  ;;  %v13820_v3 = vor.u32 %v15772_v18, %v13819_v44 }
 0x6de   :  { %v14517_v40 = vld [vmem:[#allocation30 + $0xcd0] sm:$0xf0]  ;;  %v14843_v35 = vld [vmem:[#allocation30 + $0xf18] sm:$0xf] }
 0x6df   :  { %v15539_v46 = vld [vmem:[#allocation30 + $0x14] sm:$0xf]  ;;  %v14520_v24 = vor.u32 %v15939_v39, %v14517_v40  ;;  %8634 = vmatpush.bf16.msra.mxu0 %v14008_v53  ;;  %v16028_v47 = vld [vmem:[#allocation30 + $0xf54] sm:$0xf0]  ;;  %v14332_v39 = vor.u32 %v15900_v27, %v14331_v34 }
 0x6e0   :  { %v12917_v49 = vld [vmem:[#allocation30 + $0x50] sm:$0xf0]  ;;  %v13243_v15 = vld [vmem:[#allocation30 + $0x298] sm:$0xf]  ;;  %v14844_v40 = vor.u32 %v16028_v47, %v14843_v35 }
 0x6e1   :  { %v15667_v51 = vld [vmem:[#allocation30 + $0x414] sm:$0xf]  ;;  %v12920_v19 = vor.u32 %v15539_v46, %v12917_v49  ;;  %8647 = vmatpush.bf16.msra.mxu1 %v14520_v24  ;;  %v15628_v38 = vld [vmem:[#allocation30 + $0x2d4] sm:$0xf0] }
 0x6e2   :  { %v13429_v52 = vld [vmem:[#allocation30 + $0x450] sm:$0xf0]  ;;  %v13755_v46 = vld [vmem:[#allocation30 + $0x698] sm:$0xf]  ;;  %v13244_v53 = vor.u32 %v15628_v38, %v13243_v15 }
 0x6e3   :  { %v15795_v41 = vld [vmem:[#allocation30 + $0x814] sm:$0xf]  ;;  %v13432_v8 = vor.u32 %v15667_v51, %v13429_v52  ;;  %8609 = vmatpush.bf16.msrb.mxu2 %v12920_v19  ;;  %v15756_v48 = vld [vmem:[#allocation30 + $0x6d4] sm:$0xf0]  ;;  %v8442_v19 = vpop.f32.mrf.mxu1 }
 0x6e4   :  { %v13941_v23 = vld [vmem:[#allocation30 + $0x850] sm:$0xf0]  ;;  %v14267_v36 = vld [vmem:[#allocation30 + $0xa98] sm:$0xf]  ;;  %v13756_v24 = vor.u32 %v15756_v48, %v13755_v46 }
 0x6e5   :  { %v15923_v56 = vld [vmem:[#allocation30 + $0xc14] sm:$0xf]  ;;  %v13944_v25 = vor.u32 %v15795_v41, %v13941_v23  ;;  %8622 = vmatpush.bf16.msrb.mxu3 %v13432_v8  ;;  %v15884_v49 = vld [vmem:[#allocation30 + $0xad4] sm:$0xf0] }
 0x6e6   :  { %v14453_v60 = vld [vmem:[#allocation30 + $0xc50] sm:$0xf0]  ;;  %8610 = vmatmul.bf16.vlgmr.msrb.gmra.mxu2 %v17704_v0  ;;  %v14779_v51 = vld [vmem:[#allocation30 + $0xe98] sm:$0xf]  ;;  %v14268_v41 = vor.u32 %v15884_v49, %v14267_v36 }
 0x6e7   :  { %v14456_v28 = vor.u32 %v15923_v56, %v14453_v60  ;;  %8635 = vmatpush.bf16.msra.mxu0 %v13944_v25  ;;  %8654 = vmatpush.bf16.msra.mxu2 %v13372_v21  ;;  %v16012_v52 = vld [vmem:[#allocation30 + $0xed4] sm:$0xf0] }
 0x6e8   :  { %8623 = vmatmul.bf16.vlgmr.msrb.gmra.mxu3 %v17707_v1  ;;  %v15612_v55 = vld [vmem:[#allocation30 + $0x254] sm:$0xf0]  ;;  %v14780_v23 = vor.u32 %v16012_v52, %v14779_v51  ;;  %v8431_v51 = vpop.f32.mrf.mxu0 }
 0x6e9   :  { %8648 = vmatpush.bf16.msra.mxu1 %v14456_v28  ;;  %8667 = vmatpush.bf16.msra.mxu3 %v13884_v42  ;;  %v13691_v56 = vld [vmem:[#allocation30 + $0x618] sm:$0xf]  ;;  %v13180_v8 = vor.u32 %v15612_v55, %v13179_v54  ;;  %v13309_v51 = vld [vmem:[#allocation30 + $0x358] sm:$0xf0] }
 0x6ea   :  { %8636 = vmatmul.bf16.vlgmr.msra.gmra.mxu0 %v17710_v2  ;;  %v15740_v60 = vld [vmem:[#allocation30 + $0x654] sm:$0xf0] }
 0x6eb   :  { %8680 = vmatpush.bf16.msrb.mxu0 %v14396_v7  ;;  %8655 = vmatpush.bf16.msra.mxu2 %v13308_v37  ;;  %v14203_v61 = vld [vmem:[#allocation30 + $0xa18] sm:$0xf]  ;;  %v13692_v13 = vor.u32 %v15740_v60, %v13691_v56  ;;  %v8403_v37 = vpop.f32.mrf.mxu2  ;;  %v8444_v52 = vpop.f32.mrf.mxu1 }
 0x6ec   :  { %8649 = vmatmul.bf16.vlgmr.msra.gmra.mxu1 %v17713_v31  ;;  %v15868_v45 = vld [vmem:[#allocation30 + $0xa54] sm:$0xf0] }
 0x6ed   :  { %8693 = vmatpush.bf16.msrb.mxu1 %v14908_v32  ;;  %8668 = vmatpush.bf16.msra.mxu3 %v13820_v3  ;;  %v14715_v6 = vld [vmem:[#allocation30 + $0xe18] sm:$0xf]  ;;  %v14204_v25 = vor.u32 %v15868_v45, %v14203_v61  ;;  %v8416_v3 = vpop.f32.mrf.mxu3 }
 0x6ee   :  { %v15996_v9 = vld [vmem:[#allocation30 + $0xe54] sm:$0xf0] }
 0x6ef   :  { %8681 = vmatpush.bf16.msrb.mxu0 %v14332_v39  ;;  %8656 = vmatpush.bf16.msra.mxu2 %v13244_v53  ;;  %v13115_v11 = vld [vmem:[#allocation30 + $0x198] sm:$0xf]  ;;  %v14716_v28 = vor.u32 %v15996_v9, %v14715_v6 }
 0x6f0   :  { %v15596_v22 = vld [vmem:[#allocation30 + $0x1d4] sm:$0xf0] }
 0x6f1   :  { %8694 = vmatpush.bf16.msrb.mxu1 %v14844_v40  ;;  %8669 = vmatpush.bf16.msra.mxu3 %v13756_v24  ;;  %v13627_v21 = vld [vmem:[#allocation30 + $0x598] sm:$0xf]  ;;  %v13116_v44 = vor.u32 %v15596_v22, %v13115_v11  ;;  %v8404_v40 = vadd.f32 %v8403_v37, %v17610_v5 }
 0x6f2   :  { %v15724_v42 = vld [vmem:[#allocation30 + $0x5d4] sm:$0xf0] }
 0x6f3   :  { %8682 = vmatpush.bf16.msrb.mxu0 %v14268_v41  ;;  %v14139_v43 = vld [vmem:[#allocation30 + $0x998] sm:$0xf]  ;;  %8657 = vmatpush.bf16.msra.mxu2 %v13180_v8  ;;  %v13628_v18 = vor.u32 %v15724_v42, %v13627_v21  ;;  %v8417_v49 = vadd.f32 %v8416_v3, %v8404_v40 }
 0x6f4   :  { %v15852_v30 = vld [vmem:[#allocation30 + $0x9d4] sm:$0xf0] }
 0x6f5   :  { %8695 = vmatpush.bf16.msrb.mxu1 %v14780_v23  ;;  %v14651_v7 = vld [vmem:[#allocation30 + $0xd98] sm:$0xf]  ;;  %8670 = vmatpush.bf16.msra.mxu3 %v13692_v13  ;;  %v14140_v35 = vor.u32 %v15852_v30, %v14139_v43  ;;  %v8430_v5 = vadd.f32 %v8429_v10, %v8417_v49  ;;  %v8405_v30 = vpop.f32.mrf.mxu2  ;;  %v15636_v49 = vld [vmem:[#allocation30 + $0x31c] sm:$0xf] }
 0x6f6   :  { %v15980_v32 = vld [vmem:[#allocation30 + $0xdd4] sm:$0xf0]  ;;  %v15604_v30 = vld [vmem:[#allocation30 + $0x21c] sm:$0xf] }
 0x6f7   :  { %v13051_v34 = vld [vmem:[#allocation30 + $0x118] sm:$0xf]  ;;  %8683 = vmatpush.bf16.msrb.mxu0 %v14204_v25  ;;  %v14652_v47 = vor.u32 %v15980_v32, %v14651_v7  ;;  %8658 = vmatpush.bf16.msra.mxu2 %v13116_v44  ;;  %v17724_v13 = vadd.f32 %v8442_v19, %v8430_v5  ;;  %v8418_v7 = vpop.f32.mrf.mxu3  ;;  %v13373_v19 = vld [vmem:[#allocation30 + $0x3d8] sm:$0xf0] }
 0x6f8   :  { %v15580_v27 = vld [vmem:[#allocation30 + $0x154] sm:$0xf0]  ;;  %v15620_v5 = vld [vmem:[#allocation30 + $0x29c] sm:$0xf] }
 0x6f9   :  { %8696 = vmatpush.bf16.msrb.mxu1 %v14716_v28  ;;  %v13563_v15 = vld [vmem:[#allocation30 + $0x518] sm:$0xf]  ;;  %8671 = vmatpush.bf16.msra.mxu3 %v13628_v18  ;;  %v13052_v53 = vor.u32 %v15580_v27, %v13051_v34  ;;  %v15652_v34 = vld [vmem:[#allocation30 + $0x39c] sm:$0xf] }
 0x6fa   :  { %v15708_v38 = vld [vmem:[#allocation30 + $0x554] sm:$0xf0]  ;;  %v15780_v27 = vld [vmem:[#allocation30 + $0x79c] sm:$0xf] }
 0x6fb   :  { %v14075_v39 = vld [vmem:[#allocation30 + $0x918] sm:$0xf]  ;;  %v13564_v24 = vor.u32 %v15708_v38, %v13563_v15  ;;  %8684 = vmatpush.bf16.msrb.mxu0 %v14140_v35  ;;  %8659 = vmatpush.bf16.msra.mxu2 %v13052_v53  ;;  %v13885_v35 = vld [vmem:[#allocation30 + $0x7d8] sm:$0xf0] }
 0x6fc   :  { %v15836_v46 = vld [vmem:[#allocation30 + $0x954] sm:$0xf0]  ;;  %v14397_v15 = vld [vmem:[#allocation30 + $0xbd8] sm:$0xf0] }
 0x6fd   :  { %v14587_v48 = vld [vmem:[#allocation30 + $0xd18] sm:$0xf]  ;;  %8697 = vmatpush.bf16.msrb.mxu1 %v14652_v47  ;;  %v14076_v41 = vor.u32 %v15836_v46, %v14075_v39  ;;  %8672 = vmatpush.bf16.msra.mxu3 %v13564_v24  ;;  %v15908_v47 = vld [vmem:[#allocation30 + $0xb9c] sm:$0xf] }
 0x6fe   :  { %v15964_v36 = vld [vmem:[#allocation30 + $0xd54] sm:$0xf0]  ;;  %v16036_v38 = vld [vmem:[#allocation30 + $0xf9c] sm:$0xf]  ;;  %v14400_v52 = vor.u32 %v15908_v47, %v14397_v15  ;;  %v8481_v47 = vpop.f32.mrf.mxu0 }
 0x6ff   :  { %v12987_v54 = vld [vmem:[#allocation30 + $0x98] sm:$0xf]  ;;  %v14588_v23 = vor.u32 %v15964_v36, %v14587_v48  ;;  %8685 = vmatpush.bf16.msrb.mxu0 %v14076_v41  ;;  %v14909_v39 = vld [vmem:[#allocation30 + $0xfd8] sm:$0xf0]  ;;  %v13376_v48 = vor.u32 %v15652_v34, %v13373_v19  ;;  %v13888_v36 = vor.u32 %v15780_v27, %v13885_v35 }
 0x700   :  { %v15564_v55 = vld [vmem:[#allocation30 + $0xd4] sm:$0xf0]  ;;  %v14912_v53 = vor.u32 %v16036_v38, %v14909_v39  ;;  %v15764_v24 = vld [vmem:[#allocation30 + $0x71c] sm:$0xf] }
 0x701   :  { %v13499_v56 = vld [vmem:[#allocation30 + $0x498] sm:$0xf]  ;;  %v12988_v11 = vor.u32 %v15564_v55, %v12987_v54  ;;  %8698 = vmatpush.bf16.msrb.mxu1 %v14588_v23  ;;  %v13821_v54 = vld [vmem:[#allocation30 + $0x758] sm:$0xf0] }
 0x702   :  { %v15692_v60 = vld [vmem:[#allocation30 + $0x4d4] sm:$0xf0]  ;;  %v15892_v55 = vld [vmem:[#allocation30 + $0xb1c] sm:$0xf] }
 0x703   :  { %v14011_v61 = vld [vmem:[#allocation30 + $0x898] sm:$0xf]  ;;  %v13500_v22 = vor.u32 %v15692_v60, %v13499_v56  ;;  %8660 = vmatpush.bf16.msra.mxu2 %v12988_v11  ;;  %v14333_v41 = vld [vmem:[#allocation30 + $0xb58] sm:$0xf0]  ;;  %v13312_v60 = vor.u32 %v15636_v49, %v13309_v51 }
 0x704   :  { %v15820_v45 = vld [vmem:[#allocation30 + $0x8d4] sm:$0xf0]  ;;  %v16020_v23 = vld [vmem:[#allocation30 + $0xf1c] sm:$0xf] }
 0x705   :  { %v14523_v6 = vld [vmem:[#allocation30 + $0xc98] sm:$0xf]  ;;  %v14012_v42 = vor.u32 %v15820_v45, %v14011_v61  ;;  %8673 = vmatpush.bf16.msra.mxu3 %v13500_v22  ;;  %v14845_v56 = vld [vmem:[#allocation30 + $0xf58] sm:$0xf0]  ;;  %v13824_v61 = vor.u32 %v15764_v24, %v13821_v54 }
 0x706   :  { %v15948_v9 = vld [vmem:[#allocation30 + $0xcd4] sm:$0xf0]  ;;  %v13245_v45 = vld [vmem:[#allocation30 + $0x2d8] sm:$0xf0] }
 0x707   :  { %v12923_v8 = vld [vmem:[#allocation30 + $0x18] sm:$0xf]  ;;  %v14524_v43 = vor.u32 %v15948_v9, %v14523_v6  ;;  %8686 = vmatpush.bf16.msrb.mxu0 %v14012_v42  ;;  %v14336_v6 = vor.u32 %v15892_v55, %v14333_v41  ;;  %v14848_v9 = vor.u32 %v16020_v23, %v14845_v56  ;;  %v13757_v11 = vld [vmem:[#allocation30 + $0x6d8] sm:$0xf0]  ;;  %v13248_v42 = vor.u32 %v15620_v5, %v13245_v45 }
 0x708   :  { %v15548_v25 = vld [vmem:[#allocation30 + $0x54] sm:$0xf0]  ;;  %v15876_v22 = vld [vmem:[#allocation30 + $0xa9c] sm:$0xf] }
 0x709   :  { %v13435_v28 = vld [vmem:[#allocation30 + $0x418] sm:$0xf]  ;;  %v12924_v37 = vor.u32 %v15548_v25, %v12923_v8  ;;  %8699 = vmatpush.bf16.msrb.mxu1 %v14524_v43  ;;  %v15748_v8 = vld [vmem:[#allocation30 + $0x69c] sm:$0xf] }
 0x70a   :  { %v15676_v21 = vld [vmem:[#allocation30 + $0x454] sm:$0xf0]  ;;  %v14269_v25 = vld [vmem:[#allocation30 + $0xad8] sm:$0xf0]  ;;  %v13760_v43 = vor.u32 %v15748_v8, %v13757_v11 }
 0x70b   :  { %v13947_v10 = vld [vmem:[#allocation30 + $0x818] sm:$0xf]  ;;  %v13436_v3 = vor.u32 %v15676_v21, %v13435_v28  ;;  %8661 = vmatpush.bf16.msra.mxu2 %v12924_v37  ;;  %v16004_v28 = vld [vmem:[#allocation30 + $0xe9c] sm:$0xf]  ;;  %v8494_v37 = vpop.f32.mrf.mxu1 }
 0x70c   :  { %v15804_v32 = vld [vmem:[#allocation30 + $0x854] sm:$0xf0]  ;;  %v14781_v21 = vld [vmem:[#allocation30 + $0xed8] sm:$0xf0] }
 0x70d   :  { %v14459_v44 = vld [vmem:[#allocation30 + $0xc18] sm:$0xf]  ;;  %v13948_v40 = vor.u32 %v15804_v32, %v13947_v10  ;;  %8674 = vmatpush.bf16.msra.mxu3 %v13436_v3  ;;  %v13181_v7 = vld [vmem:[#allocation30 + $0x258] sm:$0xf0]  ;;  %v14272_v10 = vor.u32 %v15876_v22, %v14269_v25  ;;  %v14784_v32 = vor.u32 %v16004_v28, %v14781_v21  ;;  %v8483_v28 = vpop.f32.mrf.mxu0 }
 0x70e   :  { %v15932_v18 = vld [vmem:[#allocation30 + $0xc54] sm:$0xf0]  ;;  %8662 = vmatmul.bf16.vlgmr.msra.gmra.mxu2 %v17704_v0  ;;  %v15860_v34 = vld [vmem:[#allocation30 + $0xa1c] sm:$0xf]  ;;  %v13184_v3 = vor.u32 %v15604_v30, %v13181_v7  ;;  %v15645_v28 = vld [vmem:[#allocation30 + $0x35c] sm:$0xf0] }
 0x70f   :  { %v14460_v46 = vor.u32 %v15932_v18, %v14459_v44  ;;  %8687 = vmatpush.bf16.msrb.mxu0 %v13948_v40  ;;  %8706 = vmatpush.bf16.msrb.mxu2 %v13376_v48  ;;  %v15732_v44 = vld [vmem:[#allocation30 + $0x61c] sm:$0xf] }
 0x710   :  { %8675 = vmatmul.bf16.vlgmr.msra.gmra.mxu3 %v17707_v1  ;;  %v13693_v18 = vld [vmem:[#allocation30 + $0x658] sm:$0xf0] }
 0x711   :  { %8700 = vmatpush.bf16.msrb.mxu1 %v14460_v46  ;;  %8719 = vmatpush.bf16.msrb.mxu3 %v13888_v36  ;;  %v14205_v19 = vld [vmem:[#allocation30 + $0xa58] sm:$0xf0]  ;;  %v13696_v15 = vor.u32 %v15732_v44, %v13693_v18 }
 0x712   :  { %8688 = vmatmul.bf16.vlgmr.msrb.gmra.mxu0 %v17710_v2  ;;  %v15988_v27 = vld [vmem:[#allocation30 + $0xe1c] sm:$0xf]  ;;  %v14208_v40 = vor.u32 %v15860_v34, %v14205_v19 }
 0x713   :  { %8732 = vmatpush.bf16.msra.mxu0 %v14400_v52  ;;  %8707 = vmatpush.bf16.msrb.mxu2 %v13312_v60  ;;  %v14717_v35 = vld [vmem:[#allocation30 + $0xe58] sm:$0xf0]  ;;  %v8455_v60 = vpop.f32.mrf.mxu2  ;;  %v8496_v21 = vpop.f32.mrf.mxu1 }
 0x714   :  { %8701 = vmatmul.bf16.vlgmr.msrb.gmra.mxu1 %v17713_v31  ;;  %v15588_v38 = vld [vmem:[#allocation30 + $0x19c] sm:$0xf]  ;;  %v14720_v46 = vor.u32 %v15988_v27, %v14717_v35 }
 0x715   :  { %8745 = vmatpush.bf16.msra.mxu1 %v14912_v53  ;;  %8720 = vmatpush.bf16.msrb.mxu3 %v13824_v61  ;;  %v13117_v39 = vld [vmem:[#allocation30 + $0x1d8] sm:$0xf0]  ;;  %v8468_v61 = vpop.f32.mrf.mxu3 }
 0x716   :  { %v15716_v48 = vld [vmem:[#allocation30 + $0x59c] sm:$0xf]  ;;  %v13120_v24 = vor.u32 %v15588_v38, %v13117_v39 }
 0x717   :  { %8733 = vmatpush.bf16.msra.mxu0 %v14336_v6  ;;  %8708 = vmatpush.bf16.msrb.mxu2 %v13248_v42  ;;  %v13629_v36 = vld [vmem:[#allocation30 + $0x5d8] sm:$0xf0] }
 0x718   :  { %v15844_v49 = vld [vmem:[#allocation30 + $0x99c] sm:$0xf]  ;;  %v13632_v54 = vor.u32 %v15716_v48, %v13629_v36 }
 0x719   :  { %8746 = vmatpush.bf16.msra.mxu1 %v14848_v9  ;;  %8721 = vmatpush.bf16.msrb.mxu3 %v13760_v43  ;;  %v14141_v51 = vld [vmem:[#allocation30 + $0x9d8] sm:$0xf0]  ;;  %v8456_v9 = vadd.f32 %v8455_v60, %v17616_v12 }
 0x71a   :  { %v15972_v52 = vld [vmem:[#allocation30 + $0xd9c] sm:$0xf]  ;;  %v14144_v23 = vor.u32 %v15844_v49, %v14141_v51 }
 0x71b   :  { %8734 = vmatpush.bf16.msra.mxu0 %v14272_v10  ;;  %v14653_v53 = vld [vmem:[#allocation30 + $0xdd8] sm:$0xf0]  ;;  %8709 = vmatpush.bf16.msrb.mxu2 %v13184_v3  ;;  %v8469_v25 = vadd.f32 %v8468_v61, %v8456_v9  ;;  %v8457_v51 = vpop.f32.mrf.mxu2 }
 0x71c   :  { %v15572_v55 = vld [vmem:[#allocation30 + $0x11c] sm:$0xf]  ;;  %v14656_v56 = vor.u32 %v15972_v52, %v14653_v53  ;;  %v13187_v51 = vld [vmem:[#allocation30 + $0x220] sm:$0xf] }
 0x71d   :  { %8747 = vmatpush.bf16.msra.mxu1 %v14784_v32  ;;  %8722 = vmatpush.bf16.msrb.mxu3 %v13696_v15  ;;  %v13053_v41 = vld [vmem:[#allocation30 + $0x158] sm:$0xf0]  ;;  %v8482_v12 = vadd.f32 %v8481_v47, %v8469_v25  ;;  %v8470_v52 = vpop.f32.mrf.mxu3  ;;  %v13315_v25 = vld [vmem:[#allocation30 + $0x320] sm:$0xf] }
 0x71e   :  { %v15700_v5 = vld [vmem:[#allocation30 + $0x51c] sm:$0xf]  ;;  %v13056_v42 = vor.u32 %v15572_v55, %v13053_v41  ;;  %v13379_v55 = vld [vmem:[#allocation30 + $0x3a0] sm:$0xf] }
 0x71f   :  { %8735 = vmatpush.bf16.msra.mxu0 %v14208_v40  ;;  %v13565_v45 = vld [vmem:[#allocation30 + $0x558] sm:$0xf0]  ;;  %8710 = vmatpush.bf16.msrb.mxu2 %v13120_v24  ;;  %v17731_v15 = vadd.f32 %v8494_v37, %v8482_v12  ;;  %v15661_v37 = vld [vmem:[#allocation30 + $0x3dc] sm:$0xf0] }
 0x720   :  { %v15828_v6 = vld [vmem:[#allocation30 + $0x91c] sm:$0xf]  ;;  %v13568_v43 = vor.u32 %v15700_v5, %v13565_v45  ;;  %v13891_v41 = vld [vmem:[#allocation30 + $0x7a0] sm:$0xf] }
 0x721   :  { %8748 = vmatpush.bf16.msra.mxu1 %v14720_v46  ;;  %v14077_v8 = vld [vmem:[#allocation30 + $0x958] sm:$0xf0]  ;;  %8723 = vmatpush.bf16.msrb.mxu3 %v13632_v54  ;;  %v15917_v5 = vld [vmem:[#allocation30 + $0xbdc] sm:$0xf0] }
 0x722   :  { %v15956_v11 = vld [vmem:[#allocation30 + $0xd1c] sm:$0xf]  ;;  %v14080_v10 = vor.u32 %v15828_v6, %v14077_v8  ;;  %v14915_v45 = vld [vmem:[#allocation30 + $0xfa0] sm:$0xf] }
 0x723   :  { %v14589_v22 = vld [vmem:[#allocation30 + $0xd58] sm:$0xf0]  ;;  %8736 = vmatpush.bf16.msra.mxu0 %v14144_v23  ;;  %8711 = vmatpush.bf16.msrb.mxu2 %v13056_v42  ;;  %v15789_v23 = vld [vmem:[#allocation30 + $0x7dc] sm:$0xf0] }
 0x724   :  { %v15556_v30 = vld [vmem:[#allocation30 + $0x9c] sm:$0xf]  ;;  %v14592_v32 = vor.u32 %v15956_v11, %v14589_v22  ;;  %v16045_v6 = vld [vmem:[#allocation30 + $0xfdc] sm:$0xf0]  ;;  %v13380_v11 = vor.u32 %v15661_v37, %v13379_v55  ;;  %v13892_v22 = vor.u32 %v15789_v23, %v13891_v41 }
 0x725   :  { %v12989_v7 = vld [vmem:[#allocation30 + $0xd8] sm:$0xf0]  ;;  %8749 = vmatpush.bf16.msra.mxu1 %v14656_v56  ;;  %8724 = vmatpush.bf16.msrb.mxu3 %v13568_v43  ;;  %v14403_v56 = vld [vmem:[#allocation30 + $0xba0] sm:$0xf]  ;;  %v14916_v42 = vor.u32 %v16045_v6, %v14915_v45 }
 0x726   :  { %v15684_v44 = vld [vmem:[#allocation30 + $0x49c] sm:$0xf]  ;;  %v12992_v38 = vor.u32 %v15556_v30, %v12989_v7  ;;  %v14404_v21 = vor.u32 %v15917_v5, %v14403_v56  ;;  %v13827_v43 = vld [vmem:[#allocation30 + $0x720] sm:$0xf] }
 0x727   :  { %v13501_v18 = vld [vmem:[#allocation30 + $0x4d8] sm:$0xf0]  ;;  %8737 = vmatpush.bf16.msra.mxu0 %v14080_v10  ;;  %v15773_v30 = vld [vmem:[#allocation30 + $0x75c] sm:$0xf0] }
 0x728   :  { %v15812_v34 = vld [vmem:[#allocation30 + $0x89c] sm:$0xf]  ;;  %v13504_v39 = vor.u32 %v15684_v44, %v13501_v18  ;;  %8712 = vmatpush.bf16.msrb.mxu2 %v12992_v38  ;;  %v14339_v7 = vld [vmem:[#allocation30 + $0xb20] sm:$0xf]  ;;  %v13316_v18 = vor.u32 %v15645_v28, %v13315_v25 }
 0x729   :  { %v14013_v19 = vld [vmem:[#allocation30 + $0x8d8] sm:$0xf0]  ;;  %8750 = vmatpush.bf16.msra.mxu1 %v14592_v32  ;;  %v15901_v10 = vld [vmem:[#allocation30 + $0xb5c] sm:$0xf0] }
 0x72a   :  { %v15940_v27 = vld [vmem:[#allocation30 + $0xc9c] sm:$0xf]  ;;  %v14016_v36 = vor.u32 %v15812_v34, %v14013_v19  ;;  %8725 = vmatpush.bf16.msrb.mxu3 %v13504_v39  ;;  %v14851_v32 = vld [vmem:[#allocation30 + $0xf20] sm:$0xf]  ;;  %v13828_v34 = vor.u32 %v15773_v30, %v13827_v43 }
 0x72b   :  { %v14525_v35 = vld [vmem:[#allocation30 + $0xcd8] sm:$0xf0]  ;;  %v16029_v44 = vld [vmem:[#allocation30 + $0xf5c] sm:$0xf0] }
 0x72c   :  { %v15540_v3 = vld [vmem:[#allocation30 + $0x1c] sm:$0xf]  ;;  %v14528_v49 = vor.u32 %v15940_v27, %v14525_v35  ;;  %8738 = vmatpush.bf16.msra.mxu0 %v14016_v36  ;;  %v13251_v12 = vld [vmem:[#allocation30 + $0x2a0] sm:$0xf]  ;;  %v14340_v27 = vor.u32 %v15901_v10, %v14339_v7  ;;  %v14852_v35 = vor.u32 %v16029_v44, %v14851_v32  ;;  %v8507_v7 = vpop.f32.mrf.mxu2  ;;  %v8520_v10 = vpop.f32.mrf.mxu3 }
 0x72d   :  { %v12925_v40 = vld [vmem:[#allocation30 + $0x58] sm:$0xf0]  ;;  %v15629_v19 = vld [vmem:[#allocation30 + $0x2dc] sm:$0xf0] }
 0x72e   :  { %v15668_v46 = vld [vmem:[#allocation30 + $0x41c] sm:$0xf]  ;;  %v12928_v60 = vor.u32 %v15540_v3, %v12925_v40  ;;  %8751 = vmatpush.bf16.msra.mxu1 %v14528_v49  ;;  %v13763_v3 = vld [vmem:[#allocation30 + $0x6a0] sm:$0xf]  ;;  %v13252_v36 = vor.u32 %v15629_v19, %v13251_v12 }
 0x72f   :  { %v13437_v48 = vld [vmem:[#allocation30 + $0x458] sm:$0xf0]  ;;  %v15757_v38 = vld [vmem:[#allocation30 + $0x6dc] sm:$0xf0] }
 0x730   :  { %v15796_v47 = vld [vmem:[#allocation30 + $0x81c] sm:$0xf]  ;;  %v13440_v61 = vor.u32 %v15668_v46, %v13437_v48  ;;  %8713 = vmatpush.bf16.msrb.mxu2 %v12928_v60  ;;  %v14275_v39 = vld [vmem:[#allocation30 + $0xaa0] sm:$0xf]  ;;  %v13764_v49 = vor.u32 %v15757_v38, %v13763_v3 }
 0x731   :  { %v13949_v53 = vld [vmem:[#allocation30 + $0x858] sm:$0xf0]  ;;  %v15885_v40 = vld [vmem:[#allocation30 + $0xadc] sm:$0xf0] }
 0x732   :  { %v15924_v24 = vld [vmem:[#allocation30 + $0xc1c] sm:$0xf]  ;;  %v13952_v9 = vor.u32 %v15796_v47, %v13949_v53  ;;  %8726 = vmatpush.bf16.msrb.mxu3 %v13440_v61  ;;  %v14787_v46 = vld [vmem:[#allocation30 + $0xea0] sm:$0xf]  ;;  %v14276_v47 = vor.u32 %v15885_v40, %v14275_v39 }
 0x733   :  { %v14461_v54 = vld [vmem:[#allocation30 + $0xc58] sm:$0xf0]  ;;  %8714 = vmatmul.bf16.vlgmr.msrb.gmra.mxu2 %v17704_v0  ;;  %v16013_v48 = vld [vmem:[#allocation30 + $0xedc] sm:$0xf0] }
 0x734   :  { %v14464_v8 = vor.u32 %v15924_v24, %v14461_v54  ;;  %8739 = vmatpush.bf16.msra.mxu0 %v13952_v9  ;;  %8758 = vmatpush.bf16.msra.mxu2 %v13380_v11  ;;  %v15613_v52 = vld [vmem:[#allocation30 + $0x25c] sm:$0xf0]  ;;  %v14788_v53 = vor.u32 %v16013_v48, %v14787_v46 }
 0x735   :  { %8727 = vmatmul.bf16.vlgmr.msrb.gmra.mxu3 %v17707_v1  ;;  %v13699_v0 = vld [vmem:[#allocation30 + $0x620] sm:$0xf]  ;;  %v13188_v41 = vor.u32 %v15613_v52, %v13187_v51 }
 0x736   :  { %8752 = vmatpush.bf16.msra.mxu1 %v14464_v8  ;;  %8771 = vmatpush.bf16.msra.mxu3 %v13892_v22  ;;  %v15741_v24 = vld [vmem:[#allocation30 + $0x65c] sm:$0xf0] }
 0x737   :  { %8740 = vmatmul.bf16.vlgmr.msra.gmra.mxu0 %v17710_v2  ;;  %v14211_v1 = vld [vmem:[#allocation30 + $0xa20] sm:$0xf]  ;;  %v8533_v2 = vpop.f32.mrf.mxu0  ;;  %v13700_v23 = vor.u32 %v15741_v24, %v13699_v0 }
 0x738   :  { %8784 = vmatpush.bf16.msrb.mxu0 %v14404_v21  ;;  %8759 = vmatpush.bf16.msra.mxu2 %v13316_v18  ;;  %v15869_v54 = vld [vmem:[#allocation30 + $0xa5c] sm:$0xf0] }
 0x739   :  { %8753 = vmatmul.bf16.vlgmr.msra.gmra.mxu1 %v17713_v31  ;;  %v14723_v55 = vld [vmem:[#allocation30 + $0xe20] sm:$0xf]  ;;  %v8546_v31 = vpop.f32.mrf.mxu1  ;;  %v14212_v61 = vor.u32 %v15869_v54, %v14211_v1 }
 0x73a   :  { %8797 = vmatpush.bf16.msrb.mxu1 %v14916_v42  ;;  %8772 = vmatpush.bf16.msra.mxu3 %v13828_v34  ;;  %v15997_v37 = vld [vmem:[#allocation30 + $0xe5c] sm:$0xf0]  ;;  %v8508_v34 = vadd.f32 %v8507_v7, %v17622_v16  ;;  %v14917_v7 = vld [vmem:[#allocation30 + $0xfe0] sm:$0xf0] }
 0x73b   :  { %v13123_v56 = vld [vmem:[#allocation30 + $0x1a0] sm:$0xf]  ;;  %v14724_v5 = vor.u32 %v15997_v37, %v14723_v55 }
 0x73c   :  { %8785 = vmatpush.bf16.msrb.mxu0 %v14340_v27  ;;  %8760 = vmatpush.bf16.msra.mxu2 %v13252_v36  ;;  %v15597_v60 = vld [vmem:[#allocation30 + $0x1dc] sm:$0xf0] }
 0x73d   :  { %v13635_v45 = vld [vmem:[#allocation30 + $0x5a0] sm:$0xf]  ;;  %v13124_v25 = vor.u32 %v15597_v60, %v13123_v56 }
 0x73e   :  { %8798 = vmatpush.bf16.msrb.mxu1 %v14852_v35  ;;  %8773 = vmatpush.bf16.msra.mxu3 %v13764_v49  ;;  %v15725_v6 = vld [vmem:[#allocation30 + $0x5dc] sm:$0xf0]  ;;  %v8521_v35 = vadd.f32 %v8520_v10, %v8508_v34  ;;  %v15637_v34 = vld [vmem:[#allocation30 + $0x324] sm:$0xf] }
 0x73f   :  { %v14147_v9 = vld [vmem:[#allocation30 + $0x9a0] sm:$0xf]  ;;  %v13636_v28 = vor.u32 %v15725_v6, %v13635_v45  ;;  %v8535_v3 = vpop.f32.mrf.mxu0  ;;  %v8522_v45 = vpop.f32.mrf.mxu3 }
 0x740   :  { %8786 = vmatpush.bf16.msrb.mxu0 %v14276_v47  ;;  %v15853_v8 = vld [vmem:[#allocation30 + $0x9dc] sm:$0xf0]  ;;  %8761 = vmatpush.bf16.msra.mxu2 %v13188_v41  ;;  %v8534_v16 = vadd.f32 %v8533_v2, %v8521_v35  ;;  %v15765_v35 = vld [vmem:[#allocation30 + $0x724] sm:$0xf] }
 0x741   :  { %v14659_v11 = vld [vmem:[#allocation30 + $0xda0] sm:$0xf]  ;;  %v14148_v43 = vor.u32 %v15853_v8, %v14147_v9  ;;  %v8548_v38 = vpop.f32.mrf.mxu1  ;;  %v13829_v3 = vld [vmem:[#allocation30 + $0x760] sm:$0xf0] }
 0x742   :  { %8799 = vmatpush.bf16.msrb.mxu1 %v14788_v53  ;;  %v15981_v22 = vld [vmem:[#allocation30 + $0xddc] sm:$0xf0]  ;;  %8774 = vmatpush.bf16.msra.mxu3 %v13700_v23  ;;  %v17738_v54 = vadd.f32 %v8546_v31, %v8534_v16  ;;  %v13381_v31 = vld [vmem:[#allocation30 + $0x3e0] sm:$0xf0] }
 0x743   :  { %v13059_v21 = vld [vmem:[#allocation30 + $0x120] sm:$0xf]  ;;  %v14660_v30 = vor.u32 %v15981_v22, %v14659_v11  ;;  %v15653_v11 = vld [vmem:[#allocation30 + $0x3a4] sm:$0xf] }
 0x744   :  { %v15581_v42 = vld [vmem:[#allocation30 + $0x15c] sm:$0xf0]  ;;  %8787 = vmatpush.bf16.msrb.mxu0 %v14212_v61  ;;  %8762 = vmatpush.bf16.msra.mxu2 %v13124_v25  ;;  %v15781_v22 = vld [vmem:[#allocation30 + $0x7a4] sm:$0xf] }
 0x745   :  { %v13571_v32 = vld [vmem:[#allocation30 + $0x520] sm:$0xf]  ;;  %v13060_v39 = vor.u32 %v15581_v42, %v13059_v21  ;;  %v13893_v25 = vld [vmem:[#allocation30 + $0x7e0] sm:$0xf0] }
 0x746   :  { %8800 = vmatpush.bf16.msrb.mxu1 %v14724_v5  ;;  %v15709_v44 = vld [vmem:[#allocation30 + $0x55c] sm:$0xf0]  ;;  %8775 = vmatpush.bf16.msra.mxu3 %v13636_v28  ;;  %v8509_v5 = vpop.f32.mrf.mxu2  ;;  %v15909_v28 = vld [vmem:[#allocation30 + $0xba4] sm:$0xf] }
 0x747   :  { %v14083_v18 = vld [vmem:[#allocation30 + $0x920] sm:$0xf]  ;;  %v13572_v40 = vor.u32 %v15709_v44, %v13571_v32  ;;  %v13384_v44 = vor.u32 %v15653_v11, %v13381_v31  ;;  %v15893_v38 = vld [vmem:[#allocation30 + $0xb24] sm:$0xf] }
 0x748   :  { %v15837_v12 = vld [vmem:[#allocation30 + $0x95c] sm:$0xf0]  ;;  %8788 = vmatpush.bf16.msrb.mxu0 %v14148_v43  ;;  %8763 = vmatpush.bf16.msra.mxu2 %v13060_v39  ;;  %v14405_v43 = vld [vmem:[#allocation30 + $0xbe0] sm:$0xf0] }
 0x749   :  { %v14595_v19 = vld [vmem:[#allocation30 + $0xd20] sm:$0xf]  ;;  %v14084_v36 = vor.u32 %v15837_v12, %v14083_v18  ;;  %v13896_v18 = vor.u32 %v15781_v22, %v13893_v25  ;;  %v13317_v12 = vld [vmem:[#allocation30 + $0x360] sm:$0xf0] }
 0x74a   :  { %v15965_v27 = vld [vmem:[#allocation30 + $0xd5c] sm:$0xf0]  ;;  %8801 = vmatpush.bf16.msrb.mxu1 %v14660_v30  ;;  %8776 = vmatpush.bf16.msra.mxu3 %v13572_v40  ;;  %v16037_v30 = vld [vmem:[#allocation30 + $0xfa4] sm:$0xf] }
 0x74b   :  { %v12995_v46 = vld [vmem:[#allocation30 + $0xa0] sm:$0xf]  ;;  %v14596_v49 = vor.u32 %v15965_v27, %v14595_v19  ;;  %v14408_v19 = vor.u32 %v15909_v28, %v14405_v43  ;;  %v14920_v27 = vor.u32 %v16037_v30, %v14917_v7  ;;  %v14341_v39 = vld [vmem:[#allocation30 + $0xb60] sm:$0xf0]  ;;  %v8585_v28 = vpop.f32.mrf.mxu0 }
 0x74c   :  { %v15565_v48 = vld [vmem:[#allocation30 + $0xdc] sm:$0xf0]  ;;  %8789 = vmatpush.bf16.msrb.mxu0 %v14084_v36  ;;  %v16021_v40 = vld [vmem:[#allocation30 + $0xf24] sm:$0xf]  ;;  %v13832_v36 = vor.u32 %v15765_v35, %v13829_v3 }
 0x74d   :  { %v13507_v51 = vld [vmem:[#allocation30 + $0x4a0] sm:$0xf]  ;;  %v12996_v55 = vor.u32 %v15565_v48, %v12995_v46  ;;  %v14853_v46 = vld [vmem:[#allocation30 + $0xf60] sm:$0xf0]  ;;  %v13320_v48 = vor.u32 %v15637_v34, %v13317_v12 }
 0x74e   :  { %v15693_v52 = vld [vmem:[#allocation30 + $0x4dc] sm:$0xf0]  ;;  %8802 = vmatpush.bf16.msrb.mxu1 %v14596_v49  ;;  %v15621_v49 = vld [vmem:[#allocation30 + $0x2a4] sm:$0xf] }
 0x74f   :  { %v14019_v47 = vld [vmem:[#allocation30 + $0x8a0] sm:$0xf]  ;;  %v13508_v37 = vor.u32 %v15693_v52, %v13507_v51  ;;  %8764 = vmatpush.bf16.msra.mxu2 %v12996_v55  ;;  %v13253_v51 = vld [vmem:[#allocation30 + $0x2e0] sm:$0xf0]  ;;  %v14344_v52 = vor.u32 %v15893_v38, %v14341_v39 }
 0x750   :  { %v15821_v53 = vld [vmem:[#allocation30 + $0x8dc] sm:$0xf0]  ;;  %v15749_v16 = vld [vmem:[#allocation30 + $0x6a4] sm:$0xf] }
 0x751   :  { %v14531_v0 = vld [vmem:[#allocation30 + $0xca0] sm:$0xf]  ;;  %v14020_v60 = vor.u32 %v15821_v53, %v14019_v47  ;;  %8777 = vmatpush.bf16.msra.mxu3 %v13508_v37  ;;  %v14856_v47 = vor.u32 %v16021_v40, %v14853_v46  ;;  %v13765_v53 = vld [vmem:[#allocation30 + $0x6e0] sm:$0xf0] }
 0x752   :  { %v15949_v24 = vld [vmem:[#allocation30 + $0xcdc] sm:$0xf0]  ;;  %v14277_v55 = vld [vmem:[#allocation30 + $0xae0] sm:$0xf0] }
 0x753   :  { %v12931_v1 = vld [vmem:[#allocation30 + $0x20] sm:$0xf]  ;;  %v14532_v61 = vor.u32 %v15949_v24, %v14531_v0  ;;  %8790 = vmatpush.bf16.msrb.mxu0 %v14020_v60  ;;  %v15877_v0 = vld [vmem:[#allocation30 + $0xaa4] sm:$0xf]  ;;  %v13256_v60 = vor.u32 %v15621_v49, %v13253_v51 }
 0x754   :  { %v15549_v41 = vld [vmem:[#allocation30 + $0x5c] sm:$0xf0]  ;;  %v16005_v37 = vld [vmem:[#allocation30 + $0xea4] sm:$0xf] }
 0x755   :  { %v13443_v23 = vld [vmem:[#allocation30 + $0x420] sm:$0xf]  ;;  %v12932_v21 = vor.u32 %v15549_v41, %v12931_v1  ;;  %8803 = vmatpush.bf16.msrb.mxu1 %v14532_v61  ;;  %v14789_v41 = vld [vmem:[#allocation30 + $0xee0] sm:$0xf0]  ;;  %v13768_v61 = vor.u32 %v15749_v16, %v13765_v53 }
 0x756   :  { %v15677_v56 = vld [vmem:[#allocation30 + $0x45c] sm:$0xf0]  ;;  %v15605_v5 = vld [vmem:[#allocation30 + $0x224] sm:$0xf] }
 0x757   :  { %v13955_v2 = vld [vmem:[#allocation30 + $0x820] sm:$0xf]  ;;  %v13444_v42 = vor.u32 %v15677_v56, %v13443_v23  ;;  %8765 = vmatpush.bf16.msra.mxu2 %v12932_v21  ;;  %v17746_v23 = vld [vmem:[#allocation1 + $0x12] sm:$0xff]  ;;  %v17749_v56 = vld [vmem:[#allocation1 + $0x1b] sm:$0xff]  ;;  %v8598_v21 = vpop.f32.mrf.mxu1 }
 0x758   :  { %v15805_v6 = vld [vmem:[#allocation30 + $0x85c] sm:$0xf0]  ;;  %v13189_v45 = vld [vmem:[#allocation30 + $0x260] sm:$0xf0] }
 0x759   :  { %v14467_v9 = vld [vmem:[#allocation30 + $0xc20] sm:$0xf]  ;;  %v13956_v10 = vor.u32 %v15805_v6, %v13955_v2  ;;  %8778 = vmatpush.bf16.msra.mxu3 %v13444_v42  ;;  %v14280_v2 = vor.u32 %v15877_v0, %v14277_v55  ;;  %v14792_v6 = vor.u32 %v16005_v37, %v14789_v41  ;;  %v15861_v11 = vld [vmem:[#allocation30 + $0xa24] sm:$0xf]  ;;  %v13192_v42 = vor.u32 %v15605_v5, %v13189_v45  ;;  %v8587_v37 = vpop.f32.mrf.mxu0 }
 0x75a   :  { %v15933_v8 = vld [vmem:[#allocation30 + $0xc5c] sm:$0xf0]  ;;  %v14213_v31 = vld [vmem:[#allocation30 + $0xa60] sm:$0xf0]  ;;  %v15646_v37 = vld [vmem:[#allocation30 + $0x364] sm:$0xf0] }
 0x75b   :  { %v14468_v32 = vor.u32 %v15933_v8, %v14467_v9  ;;  %8791 = vmatpush.bf16.msrb.mxu0 %v13956_v10  ;;  %8810 = vmatpush.bf16.msrb.mxu2 %v13384_v44  ;;  %v17740_v24 = vld [vmem:[#allocation1] sm:$0xff]  ;;  %v17743_v1 = vld [vmem:[#allocation1 + $0x9] sm:$0xff]  ;;  %v14216_v10 = vor.u32 %v15861_v11, %v14213_v31 }
 0x75c   :  { %8766 = vmatmul.bf16.vlgmr.msra.gmra.mxu2 %v17740_v24  ;;  %8779 = vmatmul.bf16.vlgmr.msra.gmra.mxu3 %v17743_v1  ;;  %v15733_v9 = vld [vmem:[#allocation30 + $0x624] sm:$0xf] }
 0x75d   :  { %8804 = vmatpush.bf16.msrb.mxu1 %v14468_v32  ;;  %8823 = vmatpush.bf16.msrb.mxu3 %v13896_v18  ;;  %v13701_v8 = vld [vmem:[#allocation30 + $0x660] sm:$0xf0] }
 0x75e   :  { %8792 = vmatmul.bf16.vlgmr.msrb.gmra.mxu0 %v17746_v23  ;;  %v15989_v22 = vld [vmem:[#allocation30 + $0xe24] sm:$0xf]  ;;  %v13704_v43 = vor.u32 %v15733_v9, %v13701_v8 }
 0x75f   :  { %8836 = vmatpush.bf16.msra.mxu0 %v14408_v19  ;;  %8811 = vmatpush.bf16.msrb.mxu2 %v13320_v48  ;;  %v14725_v25 = vld [vmem:[#allocation30 + $0xe60] sm:$0xf0]  ;;  %v8559_v48 = vpop.f32.mrf.mxu2  ;;  %v8600_v41 = vpop.f32.mrf.mxu1 }
 0x760   :  { %8805 = vmatmul.bf16.vlgmr.msrb.gmra.mxu1 %v17749_v56  ;;  %v15589_v30 = vld [vmem:[#allocation30 + $0x1a4] sm:$0xf]  ;;  %v14728_v32 = vor.u32 %v15989_v22, %v14725_v25 }
 0x761   :  { %8849 = vmatpush.bf16.msra.mxu1 %v14920_v27  ;;  %8824 = vmatpush.bf16.msrb.mxu3 %v13832_v36  ;;  %v13125_v7 = vld [vmem:[#allocation30 + $0x1e0] sm:$0xf0]  ;;  %v8572_v36 = vpop.f32.mrf.mxu3 }
 0x762   :  { %v15717_v44 = vld [vmem:[#allocation30 + $0x5a4] sm:$0xf]  ;;  %v13128_v35 = vor.u32 %v15589_v30, %v13125_v7 }
 0x763   :  { %8837 = vmatpush.bf16.msra.mxu0 %v14344_v52  ;;  %8812 = vmatpush.bf16.msrb.mxu2 %v13256_v60  ;;  %v13637_v18 = vld [vmem:[#allocation30 + $0x5e0] sm:$0xf0] }
 0x764   :  { %v15845_v34 = vld [vmem:[#allocation30 + $0x9a4] sm:$0xf]  ;;  %v13640_v3 = vor.u32 %v15717_v44, %v13637_v18 }
 0x765   :  { %8850 = vmatpush.bf16.msra.mxu1 %v14856_v47  ;;  %8825 = vmatpush.bf16.msrb.mxu3 %v13768_v61  ;;  %v14149_v12 = vld [vmem:[#allocation30 + $0x9e0] sm:$0xf0]  ;;  %v8560_v47 = vadd.f32 %v8559_v48, %v17628_v63 }
 0x766   :  { %v15973_v19 = vld [vmem:[#allocation30 + $0xda4] sm:$0xf]  ;;  %v14152_v40 = vor.u32 %v15845_v34, %v14149_v12 }
 0x767   :  { %8838 = vmatpush.bf16.msra.mxu0 %v14280_v2  ;;  %v14661_v27 = vld [vmem:[#allocation30 + $0xde0] sm:$0xf0]  ;;  %8813 = vmatpush.bf16.msrb.mxu2 %v13192_v42  ;;  %v8573_v55 = vadd.f32 %v8572_v36, %v8560_v47  ;;  %v8561_v12 = vpop.f32.mrf.mxu2 }
 0x768   :  { %v15573_v38 = vld [vmem:[#allocation30 + $0x124] sm:$0xf]  ;;  %v14664_v46 = vor.u32 %v15973_v19, %v14661_v27  ;;  %v13195_v12 = vld [vmem:[#allocation30 + $0x228] sm:$0xf] }
 0x769   :  { %8851 = vmatpush.bf16.msra.mxu1 %v14792_v6  ;;  %8826 = vmatpush.bf16.msrb.mxu3 %v13704_v43  ;;  %v13061_v39 = vld [vmem:[#allocation30 + $0x160] sm:$0xf0]  ;;  %v8586_v63 = vadd.f32 %v8585_v28, %v8573_v55  ;;  %v8574_v19 = vpop.f32.mrf.mxu3  ;;  %v13323_v55 = vld [vmem:[#allocation30 + $0x328] sm:$0xf] }
 0x76a   :  { %v15701_v49 = vld [vmem:[#allocation30 + $0x524] sm:$0xf]  ;;  %v13064_v60 = vor.u32 %v15573_v38, %v13061_v39  ;;  %v13387_v38 = vld [vmem:[#allocation30 + $0x3a8] sm:$0xf] }
 0x76b   :  { %8839 = vmatpush.bf16.msra.mxu0 %v14216_v10  ;;  %v13573_v51 = vld [vmem:[#allocation30 + $0x560] sm:$0xf0]  ;;  %8814 = vmatpush.bf16.msrb.mxu2 %v13128_v35  ;;  %v17753_v43 = vadd.f32 %v8598_v21, %v8586_v63  ;;  %v15662_v21 = vld [vmem:[#allocation30 + $0x3e4] sm:$0xf0] }
 0x76c   :  { %v15829_v52 = vld [vmem:[#allocation30 + $0x924] sm:$0xf]  ;;  %v13576_v61 = vor.u32 %v15701_v49, %v13573_v51  ;;  %v13899_v39 = vld [vmem:[#allocation30 + $0x7a8] sm:$0xf] }
 0x76d   :  { %8852 = vmatpush.bf16.msra.mxu1 %v14728_v32  ;;  %v14085_v16 = vld [vmem:[#allocation30 + $0x960] sm:$0xf0]  ;;  %8827 = vmatpush.bf16.msrb.mxu3 %v13640_v3  ;;  %v15918_v49 = vld [vmem:[#allocation30 + $0xbe4] sm:$0xf0] }
 0x76e   :  { %v15957_v53 = vld [vmem:[#allocation30 + $0xd24] sm:$0xf]  ;;  %v14088_v2 = vor.u32 %v15829_v52, %v14085_v16  ;;  %v14923_v51 = vld [vmem:[#allocation30 + $0xfa8] sm:$0xf] }
 0x76f   :  { %v14597_v0 = vld [vmem:[#allocation30 + $0xd60] sm:$0xf0]  ;;  %8840 = vmatpush.bf16.msra.mxu0 %v14152_v40  ;;  %8815 = vmatpush.bf16.msrb.mxu2 %v13064_v60  ;;  %v15790_v40 = vld [vmem:[#allocation30 + $0x7e4] sm:$0xf0] }
 0x770   :  { %v15557_v5 = vld [vmem:[#allocation30 + $0xa4] sm:$0xf]  ;;  %v14600_v6 = vor.u32 %v15957_v53, %v14597_v0  ;;  %v16046_v52 = vld [vmem:[#allocation30 + $0xfe4] sm:$0xf0]  ;;  %v13388_v53 = vor.u32 %v15662_v21, %v13387_v38  ;;  %v13900_v0 = vor.u32 %v15790_v40, %v13899_v39 }
 0x771   :  { %v12997_v45 = vld [vmem:[#allocation30 + $0xe0] sm:$0xf0]  ;;  %8853 = vmatpush.bf16.msra.mxu1 %v14664_v46  ;;  %8828 = vmatpush.bf16.msrb.mxu3 %v13576_v61  ;;  %v14411_v46 = vld [vmem:[#allocation30 + $0xba8] sm:$0xf]  ;;  %v14924_v60 = vor.u32 %v16046_v52, %v14923_v51 }
 0x772   :  { %v15685_v9 = vld [vmem:[#allocation30 + $0x4a4] sm:$0xf]  ;;  %v13000_v30 = vor.u32 %v15557_v5, %v12997_v45  ;;  %v14412_v41 = vor.u32 %v15918_v49, %v14411_v46  ;;  %v13835_v61 = vld [vmem:[#allocation30 + $0x728] sm:$0xf]  ;;  %v8637_v46 = vpop.f32.mrf.mxu0 }
 0x773   :  { %v13509_v8 = vld [vmem:[#allocation30 + $0x4e0] sm:$0xf0]  ;;  %8841 = vmatpush.bf16.msra.mxu0 %v14088_v2  ;;  %v15774_v5 = vld [vmem:[#allocation30 + $0x764] sm:$0xf0] }
 0x774   :  { %v15813_v11 = vld [vmem:[#allocation30 + $0x8a4] sm:$0xf]  ;;  %v13512_v7 = vor.u32 %v15685_v9, %v13509_v8  ;;  %8816 = vmatpush.bf16.msrb.mxu2 %v13000_v30  ;;  %v14347_v45 = vld [vmem:[#allocation30 + $0xb28] sm:$0xf]  ;;  %v13324_v8 = vor.u32 %v15646_v37, %v13323_v55 }
 0x775   :  { %v14021_v31 = vld [vmem:[#allocation30 + $0x8e0] sm:$0xf0]  ;;  %8854 = vmatpush.bf16.msra.mxu1 %v14600_v6  ;;  %v15902_v2 = vld [vmem:[#allocation30 + $0xb64] sm:$0xf0] }
 0x776   :  { %v15941_v22 = vld [vmem:[#allocation30 + $0xca4] sm:$0xf]  ;;  %v14024_v18 = vor.u32 %v15813_v11, %v14021_v31  ;;  %8829 = vmatpush.bf16.msrb.mxu3 %v13512_v7  ;;  %v14859_v6 = vld [vmem:[#allocation30 + $0xf28] sm:$0xf]  ;;  %v13836_v11 = vor.u32 %v15774_v5, %v13835_v61 }
 0x777   :  { %v14533_v25 = vld [vmem:[#allocation30 + $0xce0] sm:$0xf0]  ;;  %v16030_v9 = vld [vmem:[#allocation30 + $0xf64] sm:$0xf0] }
 0x778   :  { %v15541_v42 = vld [vmem:[#allocation30 + $0x24] sm:$0xf]  ;;  %v14536_v34 = vor.u32 %v15941_v22, %v14533_v25  ;;  %8842 = vmatpush.bf16.msra.mxu0 %v14024_v18  ;;  %v13259_v63 = vld [vmem:[#allocation30 + $0x2a8] sm:$0xf]  ;;  %v14348_v22 = vor.u32 %v15902_v2, %v14347_v45  ;;  %v14860_v25 = vor.u32 %v16030_v9, %v14859_v6 }
 0x779   :  { %v12933_v10 = vld [vmem:[#allocation30 + $0x60] sm:$0xf0]  ;;  %v15630_v31 = vld [vmem:[#allocation30 + $0x2e4] sm:$0xf0] }
 0x77a   :  { %v15669_v32 = vld [vmem:[#allocation30 + $0x424] sm:$0xf]  ;;  %v12936_v48 = vor.u32 %v15541_v42, %v12933_v10  ;;  %8855 = vmatpush.bf16.msra.mxu1 %v14536_v34  ;;  %v13771_v42 = vld [vmem:[#allocation30 + $0x6a8] sm:$0xf]  ;;  %v13260_v18 = vor.u32 %v15630_v31, %v13259_v63 }
 0x77b   :  { %v13445_v44 = vld [vmem:[#allocation30 + $0x460] sm:$0xf0]  ;;  %v15758_v30 = vld [vmem:[#allocation30 + $0x6e4] sm:$0xf0] }
 0x77c   :  { %v15797_v28 = vld [vmem:[#allocation30 + $0x824] sm:$0xf]  ;;  %v13448_v36 = vor.u32 %v15669_v32, %v13445_v44  ;;  %8817 = vmatpush.bf16.msrb.mxu2 %v12936_v48  ;;  %v14283_v7 = vld [vmem:[#allocation30 + $0xaa8] sm:$0xf]  ;;  %v13772_v34 = vor.u32 %v15758_v30, %v13771_v42  ;;  %v8650_v48 = vpop.f32.mrf.mxu1 }
 0x77d   :  { %v13957_v27 = vld [vmem:[#allocation30 + $0x860] sm:$0xf0]  ;;  %v15886_v10 = vld [vmem:[#allocation30 + $0xae4] sm:$0xf0] }
 0x77e   :  { %v15925_v35 = vld [vmem:[#allocation30 + $0xc24] sm:$0xf]  ;;  %v13960_v47 = vor.u32 %v15797_v28, %v13957_v27  ;;  %8830 = vmatpush.bf16.msrb.mxu3 %v13448_v36  ;;  %v14795_v32 = vld [vmem:[#allocation30 + $0xea8] sm:$0xf]  ;;  %v14284_v28 = vor.u32 %v15886_v10, %v14283_v7 }
 0x77f   :  { %v14469_v3 = vld [vmem:[#allocation30 + $0xc60] sm:$0xf0]  ;;  %8818 = vmatmul.bf16.vlgmr.msrb.gmra.mxu2 %v17740_v24  ;;  %v16014_v44 = vld [vmem:[#allocation30 + $0xee4] sm:$0xf0] }
 0x780   :  { %v14472_v16 = vor.u32 %v15925_v35, %v14469_v3  ;;  %8843 = vmatpush.bf16.msra.mxu0 %v13960_v47  ;;  %8862 = vmatpush.bf16.msra.mxu2 %v13388_v53  ;;  %v15614_v19 = vld [vmem:[#allocation30 + $0x264] sm:$0xf0]  ;;  %v14796_v27 = vor.u32 %v16014_v44, %v14795_v32  ;;  %v8639_v32 = vpop.f32.mrf.mxu0 }
 0x781   :  { %8831 = vmatmul.bf16.vlgmr.msrb.gmra.mxu3 %v17743_v1  ;;  %v13707_v35 = vld [vmem:[#allocation30 + $0x628] sm:$0xf]  ;;  %v13196_v36 = vor.u32 %v15614_v19, %v13195_v12  ;;  %v13325_v32 = vld [vmem:[#allocation30 + $0x368] sm:$0xf0] }
 0x782   :  { %8856 = vmatpush.bf16.msra.mxu1 %v14472_v16  ;;  %8875 = vmatpush.bf16.msra.mxu3 %v13900_v0  ;;  %v15742_v3 = vld [vmem:[#allocation30 + $0x664] sm:$0xf0] }
 0x783   :  { %8844 = vmatmul.bf16.vlgmr.msra.gmra.mxu0 %v17746_v23  ;;  %v14219_v38 = vld [vmem:[#allocation30 + $0xa28] sm:$0xf]  ;;  %v13708_v49 = vor.u32 %v15742_v3, %v13707_v35 }
 0x784   :  { %8888 = vmatpush.bf16.msrb.mxu0 %v14412_v41  ;;  %8863 = vmatpush.bf16.msra.mxu2 %v13324_v8  ;;  %v15870_v21 = vld [vmem:[#allocation30 + $0xa64] sm:$0xf0]  ;;  %v8611_v8 = vpop.f32.mrf.mxu2  ;;  %v8652_v44 = vpop.f32.mrf.mxu1 }
 0x785   :  { %8857 = vmatmul.bf16.vlgmr.msra.gmra.mxu1 %v17749_v56  ;;  %v14731_v39 = vld [vmem:[#allocation30 + $0xe28] sm:$0xf]  ;;  %v14220_v47 = vor.u32 %v15870_v21, %v14219_v38 }
 0x786   :  { %8901 = vmatpush.bf16.msrb.mxu1 %v14924_v60  ;;  %8876 = vmatpush.bf16.msra.mxu3 %v13836_v11  ;;  %v15998_v40 = vld [vmem:[#allocation30 + $0xe64] sm:$0xf0]  ;;  %v8624_v11 = vpop.f32.mrf.mxu3 }
 0x787   :  { %v13131_v51 = vld [vmem:[#allocation30 + $0x1a8] sm:$0xf]  ;;  %v14732_v16 = vor.u32 %v15998_v40, %v14731_v39 }
 0x788   :  { %8889 = vmatpush.bf16.msrb.mxu0 %v14348_v22  ;;  %8864 = vmatpush.bf16.msra.mxu2 %v13260_v18  ;;  %v15598_v52 = vld [vmem:[#allocation30 + $0x1e4] sm:$0xf0] }
 0x789   :  { %v13643_v53 = vld [vmem:[#allocation30 + $0x5a8] sm:$0xf]  ;;  %v13132_v61 = vor.u32 %v15598_v52, %v13131_v51 }
 0x78a   :  { %8902 = vmatpush.bf16.msrb.mxu1 %v14860_v25  ;;  %8877 = vmatpush.bf16.msra.mxu3 %v13772_v34  ;;  %v15726_v0 = vld [vmem:[#allocation30 + $0x5e4] sm:$0xf0]  ;;  %v8612_v25 = vadd.f32 %v8611_v8, %v17634_v59 }
 0x78b   :  { %v14155_v55 = vld [vmem:[#allocation30 + $0x9a8] sm:$0xf]  ;;  %v13644_v5 = vor.u32 %v15726_v0, %v13643_v53 }
 0x78c   :  { %8890 = vmatpush.bf16.msrb.mxu0 %v14284_v28  ;;  %v15854_v37 = vld [vmem:[#allocation30 + $0x9e4] sm:$0xf0]  ;;  %8865 = vmatpush.bf16.msra.mxu2 %v13196_v36  ;;  %v8625_v10 = vadd.f32 %v8624_v11, %v8612_v25 }
 0x78d   :  { %v14667_v41 = vld [vmem:[#allocation30 + $0xda8] sm:$0xf]  ;;  %v14156_v6 = vor.u32 %v15854_v37, %v14155_v55  ;;  %v8613_v37 = vpop.f32.mrf.mxu2 }
 0x78e   :  { %8903 = vmatpush.bf16.msrb.mxu1 %v14796_v27  ;;  %v15982_v60 = vld [vmem:[#allocation30 + $0xde4] sm:$0xf0]  ;;  %8878 = vmatpush.bf16.msra.mxu3 %v13708_v49  ;;  %v8638_v59 = vadd.f32 %v8637_v46, %v8625_v10  ;;  %v15638_v10 = vld [vmem:[#allocation30 + $0x32c] sm:$0xf] }
 0x78f   :  { %v13067_v45 = vld [vmem:[#allocation30 + $0x128] sm:$0xf]  ;;  %v14668_v9 = vor.u32 %v15982_v60, %v14667_v41  ;;  %v8626_v41 = vpop.f32.mrf.mxu3  ;;  %v15606_v37 = vld [vmem:[#allocation30 + $0x22c] sm:$0xf] }
 0x790   :  { %v15582_v2 = vld [vmem:[#allocation30 + $0x164] sm:$0xf0]  ;;  %8891 = vmatpush.bf16.msrb.mxu0 %v14220_v47  ;;  %8866 = vmatpush.bf16.msra.mxu2 %v13132_v61  ;;  %v17760_v49 = vadd.f32 %v8650_v48, %v8638_v59  ;;  %v13389_v48 = vld [vmem:[#allocation30 + $0x3e8] sm:$0xf0] }
 0x791   :  { %v13579_v63 = vld [vmem:[#allocation30 + $0x528] sm:$0xf]  ;;  %v13068_v18 = vor.u32 %v15582_v2, %v13067_v45  ;;  %v15654_v45 = vld [vmem:[#allocation30 + $0x3ac] sm:$0xf] }
 0x792   :  { %8904 = vmatpush.bf16.msrb.mxu1 %v14732_v16  ;;  %v15710_v31 = vld [vmem:[#allocation30 + $0x564] sm:$0xf0]  ;;  %8879 = vmatpush.bf16.msra.mxu3 %v13644_v5  ;;  %v15782_v2 = vld [vmem:[#allocation30 + $0x7ac] sm:$0xf] }
 0x793   :  { %v14091_v22 = vld [vmem:[#allocation30 + $0x928] sm:$0xf]  ;;  %v13580_v34 = vor.u32 %v15710_v31, %v13579_v63  ;;  %v14413_v63 = vld [vmem:[#allocation30 + $0xbe8] sm:$0xf0] }
 0x794   :  { %v15838_v42 = vld [vmem:[#allocation30 + $0x964] sm:$0xf0]  ;;  %8892 = vmatpush.bf16.msrb.mxu0 %v14156_v6  ;;  %8867 = vmatpush.bf16.msra.mxu2 %v13068_v18  ;;  %v13901_v6 = vld [vmem:[#allocation30 + $0x7e8] sm:$0xf0] }
 0x795   :  { %v14603_v30 = vld [vmem:[#allocation30 + $0xd28] sm:$0xf]  ;;  %v14092_v28 = vor.u32 %v15838_v42, %v14091_v22  ;;  %v16038_v31 = vld [vmem:[#allocation30 + $0xfac] sm:$0xf] }
 0x796   :  { %v15966_v7 = vld [vmem:[#allocation30 + $0xd64] sm:$0xf0]  ;;  %8905 = vmatpush.bf16.msrb.mxu1 %v14668_v9  ;;  %8880 = vmatpush.bf16.msra.mxu3 %v13580_v34  ;;  %v15910_v9 = vld [vmem:[#allocation30 + $0xbac] sm:$0xf] }
 0x797   :  { %v13003_v12 = vld [vmem:[#allocation30 + $0xa8] sm:$0xf]  ;;  %v14604_v27 = vor.u32 %v15966_v7, %v14603_v30  ;;  %v14925_v22 = vld [vmem:[#allocation30 + $0xfe8] sm:$0xf0]  ;;  %v13392_v30 = vor.u32 %v15654_v45, %v13389_v48  ;;  %v13904_v7 = vor.u32 %v15782_v2, %v13901_v6  ;;  %v14416_v44 = vor.u32 %v15910_v9, %v14413_v63  ;;  %v8689_v9 = vpop.f32.mrf.mxu0 }
 0x798   :  { %v15566_v19 = vld [vmem:[#allocation30 + $0xe4] sm:$0xf0]  ;;  %8893 = vmatpush.bf16.msrb.mxu0 %v14092_v28  ;;  %v14928_v18 = vor.u32 %v16038_v31, %v14925_v22  ;;  %v15766_v34 = vld [vmem:[#allocation30 + $0x72c] sm:$0xf] }
 0x799   :  { %v13515_v35 = vld [vmem:[#allocation30 + $0x4a8] sm:$0xf]  ;;  %v13004_v51 = vor.u32 %v15566_v19, %v13003_v12  ;;  %v13837_v12 = vld [vmem:[#allocation30 + $0x768] sm:$0xf0] }
 0x79a   :  { %v15694_v3 = vld [vmem:[#allocation30 + $0x4e4] sm:$0xf0]  ;;  %8906 = vmatpush.bf16.msrb.mxu1 %v14604_v27  ;;  %v15894_v19 = vld [vmem:[#allocation30 + $0xb2c] sm:$0xf] }
 0x79b   :  { %v14027_v38 = vld [vmem:[#allocation30 + $0x8a8] sm:$0xf]  ;;  %v13516_v52 = vor.u32 %v15694_v3, %v13515_v35  ;;  %8868 = vmatpush.bf16.msra.mxu2 %v13004_v51  ;;  %v14349_v28 = vld [vmem:[#allocation30 + $0xb68] sm:$0xf0]  ;;  %v13328_v3 = vor.u32 %v15638_v10, %v13325_v32 }
 0x79c   :  { %v15822_v21 = vld [vmem:[#allocation30 + $0x8e4] sm:$0xf0]  ;;  %v16022_v27 = vld [vmem:[#allocation30 + $0xf2c] sm:$0xf] }
 0x79d   :  { %v14539_v39 = vld [vmem:[#allocation30 + $0xca8] sm:$0xf]  ;;  %v14028_v0 = vor.u32 %v15822_v21, %v14027_v38  ;;  %8881 = vmatpush.bf16.msra.mxu3 %v13516_v52  ;;  %v14861_v35 = vld [vmem:[#allocation30 + $0xf68] sm:$0xf0]  ;;  %v13840_v38 = vor.u32 %v15766_v34, %v13837_v12 }
 0x79e   :  { %v15950_v40 = vld [vmem:[#allocation30 + $0xce4] sm:$0xf0]  ;;  %v15622_v59 = vld [vmem:[#allocation30 + $0x2ac] sm:$0xf] }
 0x79f   :  { %v12939_v36 = vld [vmem:[#allocation30 + $0x28] sm:$0xf]  ;;  %v14540_v55 = vor.u32 %v15950_v40, %v14539_v39  ;;  %8894 = vmatpush.bf16.msrb.mxu0 %v14028_v0  ;;  %v13261_v21 = vld [vmem:[#allocation30 + $0x2e8] sm:$0xf0]  ;;  %v14352_v39 = vor.u32 %v15894_v19, %v14349_v28  ;;  %v14864_v40 = vor.u32 %v16022_v27, %v14861_v35 }
 0x7a0   :  { %v15550_v47 = vld [vmem:[#allocation30 + $0x64] sm:$0xf0]  ;;  %v13773_v51 = vld [vmem:[#allocation30 + $0x6e8] sm:$0xf0]  ;;  %v13264_v0 = vor.u32 %v15622_v59, %v13261_v21 }
 0x7a1   :  { %v13451_v16 = vld [vmem:[#allocation30 + $0x428] sm:$0xf]  ;;  %v12940_v8 = vor.u32 %v15550_v47, %v12939_v36  ;;  %8907 = vmatpush.bf16.msrb.mxu1 %v14540_v55  ;;  %v15750_v36 = vld [vmem:[#allocation30 + $0x6ac] sm:$0xf] }
 0x7a2   :  { %v15678_v53 = vld [vmem:[#allocation30 + $0x464] sm:$0xf0]  ;;  %v15878_v52 = vld [vmem:[#allocation30 + $0xaac] sm:$0xf]  ;;  %v13776_v55 = vor.u32 %v15750_v36, %v13773_v51 }
 0x7a3   :  { %v13963_v46 = vld [vmem:[#allocation30 + $0x828] sm:$0xf]  ;;  %v13452_v11 = vor.u32 %v15678_v53, %v13451_v16  ;;  %8869 = vmatpush.bf16.msra.mxu2 %v12940_v8  ;;  %v14285_v47 = vld [vmem:[#allocation30 + $0xae8] sm:$0xf0]  ;;  %v8702_v8 = vpop.f32.mrf.mxu1 }
 0x7a4   :  { %v15806_v60 = vld [vmem:[#allocation30 + $0x864] sm:$0xf0]  ;;  %v16006_v16 = vld [vmem:[#allocation30 + $0xeac] sm:$0xf] }
 0x7a5   :  { %v14475_v61 = vld [vmem:[#allocation30 + $0xc28] sm:$0xf]  ;;  %v13964_v25 = vor.u32 %v15806_v60, %v13963_v46  ;;  %8882 = vmatpush.bf16.msra.mxu3 %v13452_v11  ;;  %v14797_v53 = vld [vmem:[#allocation30 + $0xee8] sm:$0xf0]  ;;  %v14288_v46 = vor.u32 %v15878_v52, %v14285_v47 }
 0x7a6   :  { %v15934_v5 = vld [vmem:[#allocation30 + $0xc64] sm:$0xf0]  ;;  %8870 = vmatmul.bf16.vlgmr.msra.gmra.mxu2 %v17740_v24  ;;  %v13197_v41 = vld [vmem:[#allocation30 + $0x268] sm:$0xf0]  ;;  %v14800_v60 = vor.u32 %v16006_v16, %v14797_v53  ;;  %v8691_v16 = vpop.f32.mrf.mxu0 }
 0x7a7   :  { %v14476_v42 = vor.u32 %v15934_v5, %v14475_v61  ;;  %8895 = vmatpush.bf16.msrb.mxu0 %v13964_v25  ;;  %8914 = vmatpush.bf16.msrb.mxu2 %v13392_v30  ;;  %v15734_v61 = vld [vmem:[#allocation30 + $0x62c] sm:$0xf]  ;;  %v13200_v11 = vor.u32 %v15606_v37, %v13197_v41  ;;  %v15647_v16 = vld [vmem:[#allocation30 + $0x36c] sm:$0xf0] }
 0x7a8   :  { %8883 = vmatmul.bf16.vlgmr.msra.gmra.mxu3 %v17743_v1  ;;  %v13709_v5 = vld [vmem:[#allocation30 + $0x668] sm:$0xf0] }
 0x7a9   :  { %8908 = vmatpush.bf16.msrb.mxu1 %v14476_v42  ;;  %8927 = vmatpush.bf16.msrb.mxu3 %v13904_v7  ;;  %v15862_v45 = vld [vmem:[#allocation30 + $0xa2c] sm:$0xf]  ;;  %v13712_v63 = vor.u32 %v15734_v61, %v13709_v5 }
 0x7aa   :  { %8896 = vmatmul.bf16.vlgmr.msrb.gmra.mxu0 %v17746_v23  ;;  %v14221_v48 = vld [vmem:[#allocation30 + $0xa68] sm:$0xf0] }
 0x7ab   :  { %8940 = vmatpush.bf16.msra.mxu0 %v14416_v44  ;;  %8915 = vmatpush.bf16.msrb.mxu2 %v13328_v3  ;;  %v15990_v2 = vld [vmem:[#allocation30 + $0xe2c] sm:$0xf]  ;;  %v14224_v25 = vor.u32 %v15862_v45, %v14221_v48  ;;  %v8663_v3 = vpop.f32.mrf.mxu2  ;;  %v8704_v53 = vpop.f32.mrf.mxu1 }
 0x7ac   :  { %8909 = vmatmul.bf16.vlgmr.msrb.gmra.mxu1 %v17749_v56  ;;  %v14733_v6 = vld [vmem:[#allocation30 + $0xe68] sm:$0xf0] }
 0x7ad   :  { %8953 = vmatpush.bf16.msra.mxu1 %v14928_v18  ;;  %8928 = vmatpush.bf16.msrb.mxu3 %v13840_v38  ;;  %v15590_v31 = vld [vmem:[#allocation30 + $0x1ac] sm:$0xf]  ;;  %v14736_v42 = vor.u32 %v15990_v2, %v14733_v6  ;;  %v8676_v38 = vpop.f32.mrf.mxu3 }
 0x7ae   :  { %v13133_v22 = vld [vmem:[#allocation30 + $0x1e8] sm:$0xf0] }
 0x7af   :  { %8941 = vmatpush.bf16.msra.mxu0 %v14352_v39  ;;  %8916 = vmatpush.bf16.msrb.mxu2 %v13264_v0  ;;  %v15718_v30 = vld [vmem:[#allocation30 + $0x5ac] sm:$0xf]  ;;  %v13136_v34 = vor.u32 %v15590_v31, %v13133_v22 }
 0x7b0   :  { %v13645_v7 = vld [vmem:[#allocation30 + $0x5e8] sm:$0xf0] }
 0x7b1   :  { %8954 = vmatpush.bf16.msra.mxu1 %v14864_v40  ;;  %8929 = vmatpush.bf16.msrb.mxu3 %v13776_v55  ;;  %v15846_v10 = vld [vmem:[#allocation30 + $0x9ac] sm:$0xf]  ;;  %v13648_v12 = vor.u32 %v15718_v30, %v13645_v7  ;;  %v8664_v40 = vadd.f32 %v8663_v3, %v17640_v57 }
 0x7b2   :  { %v14157_v32 = vld [vmem:[#allocation30 + $0x9e8] sm:$0xf0] }
 0x7b3   :  { %8942 = vmatpush.bf16.msra.mxu0 %v14288_v46  ;;  %v15974_v44 = vld [vmem:[#allocation30 + $0xdac] sm:$0xf]  ;;  %8917 = vmatpush.bf16.msrb.mxu2 %v13200_v11  ;;  %v14160_v27 = vor.u32 %v15846_v10, %v14157_v32  ;;  %v8677_v47 = vadd.f32 %v8676_v38, %v8664_v40  ;;  %v8665_v32 = vpop.f32.mrf.mxu2 }
 0x7b4   :  { %v14669_v18 = vld [vmem:[#allocation30 + $0xde8] sm:$0xf0]  ;;  %v13203_v32 = vld [vmem:[#allocation30 + $0x230] sm:$0xf] }
 0x7b5   :  { %8955 = vmatpush.bf16.msra.mxu1 %v14800_v60  ;;  %8930 = vmatpush.bf16.msrb.mxu3 %v13712_v63  ;;  %v15574_v19 = vld [vmem:[#allocation30 + $0x12c] sm:$0xf]  ;;  %v14672_v35 = vor.u32 %v15974_v44, %v14669_v18  ;;  %v8690_v57 = vadd.f32 %v8689_v9, %v8677_v47  ;;  %v8678_v44 = vpop.f32.mrf.mxu3  ;;  %v13331_v47 = vld [vmem:[#allocation30 + $0x330] sm:$0xf] }
 0x7b6   :  { %v13069_v28 = vld [vmem:[#allocation30 + $0x168] sm:$0xf0]  ;;  %v15615_v44 = vld [vmem:[#allocation30 + $0x26c] sm:$0xf0] }
 0x7b7   :  { %8943 = vmatpush.bf16.msra.mxu0 %v14224_v25  ;;  %v15702_v59 = vld [vmem:[#allocation30 + $0x52c] sm:$0xf]  ;;  %8918 = vmatpush.bf16.msrb.mxu2 %v13136_v34  ;;  %v13072_v0 = vor.u32 %v15574_v19, %v13069_v28  ;;  %v17767_v63 = vadd.f32 %v8702_v8, %v8690_v57  ;;  %v13395_v19 = vld [vmem:[#allocation30 + $0x3b0] sm:$0xf] }
 0x7b8   :  { %v13581_v21 = vld [vmem:[#allocation30 + $0x568] sm:$0xf0]  ;;  %v15663_v8 = vld [vmem:[#allocation30 + $0x3ec] sm:$0xf0] }
 0x7b9   :  { %8956 = vmatpush.bf16.msra.mxu1 %v14736_v42  ;;  %v15830_v39 = vld [vmem:[#allocation30 + $0x92c] sm:$0xf]  ;;  %8931 = vmatpush.bf16.msrb.mxu3 %v13648_v12  ;;  %v13584_v55 = vor.u32 %v15702_v59, %v13581_v21  ;;  %v13907_v28 = vld [vmem:[#allocation30 + $0x7b0] sm:$0xf] }
 0x7ba   :  { %v14093_v36 = vld [vmem:[#allocation30 + $0x968] sm:$0xf0]  ;;  %v15919_v59 = vld [vmem:[#allocation30 + $0xbec] sm:$0xf0] }
 0x7bb   :  { %v15958_v51 = vld [vmem:[#allocation30 + $0xd2c] sm:$0xf]  ;;  %8944 = vmatpush.bf16.msra.mxu0 %v14160_v27  ;;  %v14096_v46 = vor.u32 %v15830_v39, %v14093_v36  ;;  %8919 = vmatpush.bf16.msrb.mxu2 %v13072_v0  ;;  %v15791_v27 = vld [vmem:[#allocation30 + $0x7ec] sm:$0xf0] }
 0x7bc   :  { %v14605_v52 = vld [vmem:[#allocation30 + $0xd68] sm:$0xf0]  ;;  %v14931_v21 = vld [vmem:[#allocation30 + $0xfb0] sm:$0xf] }
 0x7bd   :  { %v15558_v37 = vld [vmem:[#allocation30 + $0xac] sm:$0xf]  ;;  %8957 = vmatpush.bf16.msra.mxu1 %v14672_v35  ;;  %v14608_v60 = vor.u32 %v15958_v51, %v14605_v52  ;;  %8932 = vmatpush.bf16.msrb.mxu3 %v13584_v55  ;;  %v14419_v35 = vld [vmem:[#allocation30 + $0xbb0] sm:$0xf]  ;;  %v13396_v51 = vor.u32 %v15663_v8, %v13395_v19  ;;  %v13908_v52 = vor.u32 %v15791_v27, %v13907_v28 }
 0x7be   :  { %v13005_v41 = vld [vmem:[#allocation30 + $0xe8] sm:$0xf0]  ;;  %v16047_v39 = vld [vmem:[#allocation30 + $0xfec] sm:$0xf0]  ;;  %v14420_v53 = vor.u32 %v15919_v59, %v14419_v35  ;;  %v13204_v28 = vor.u32 %v15615_v44, %v13203_v32 }
 0x7bf   :  { %v15686_v61 = vld [vmem:[#allocation30 + $0x4ac] sm:$0xf]  ;;  %v13008_v31 = vor.u32 %v15558_v37, %v13005_v41  ;;  %8945 = vmatpush.bf16.msra.mxu0 %v14096_v46  ;;  %v14932_v0 = vor.u32 %v16047_v39, %v14931_v21  ;;  %v13843_v55 = vld [vmem:[#allocation30 + $0x730] sm:$0xf] }
 0x7c0   :  { %v13517_v5 = vld [vmem:[#allocation30 + $0x4e8] sm:$0xf0]  ;;  %v15775_v37 = vld [vmem:[#allocation30 + $0x76c] sm:$0xf0] }
 0x7c1   :  { %v15814_v45 = vld [vmem:[#allocation30 + $0x8ac] sm:$0xf]  ;;  %v13520_v22 = vor.u32 %v15686_v61, %v13517_v5  ;;  %8958 = vmatpush.bf16.msra.mxu1 %v14608_v60  ;;  %8920 = vmatpush.bf16.msrb.mxu2 %v13008_v31  ;;  %v14355_v41 = vld [vmem:[#allocation30 + $0xb30] sm:$0xf]  ;;  %v13332_v5 = vor.u32 %v15647_v16, %v13331_v47 }
 0x7c2   :  { %v14029_v48 = vld [vmem:[#allocation30 + $0x8e8] sm:$0xf0]  ;;  %v15903_v46 = vld [vmem:[#allocation30 + $0xb6c] sm:$0xf0] }
 0x7c3   :  { %v15942_v2 = vld [vmem:[#allocation30 + $0xcac] sm:$0xf]  ;;  %v14032_v7 = vor.u32 %v15814_v45, %v14029_v48  ;;  %8933 = vmatpush.bf16.msrb.mxu3 %v13520_v22  ;;  %v14867_v60 = vld [vmem:[#allocation30 + $0xf30] sm:$0xf]  ;;  %v13844_v45 = vor.u32 %v15775_v37, %v13843_v55 }
 0x7c4   :  { %v14541_v6 = vld [vmem:[#allocation30 + $0xce8] sm:$0xf0]  ;;  %v16031_v61 = vld [vmem:[#allocation30 + $0xf6c] sm:$0xf0] }
 0x7c5   :  { %v15542_v11 = vld [vmem:[#allocation30 + $0x2c] sm:$0xf]  ;;  %v14544_v10 = vor.u32 %v15942_v2, %v14541_v6  ;;  %8946 = vmatpush.bf16.msra.mxu0 %v14032_v7  ;;  %v13267_v57 = vld [vmem:[#allocation30 + $0x2b0] sm:$0xf]  ;;  %v14356_v2 = vor.u32 %v15903_v46, %v14355_v41  ;;  %v14868_v6 = vor.u32 %v16031_v61, %v14867_v60  ;;  %v8715_v41 = vpop.f32.mrf.mxu2  ;;  %v8728_v46 = vpop.f32.mrf.mxu3 }
 0x7c6   :  { %v12941_v25 = vld [vmem:[#allocation30 + $0x68] sm:$0xf0]  ;;  %v15631_v48 = vld [vmem:[#allocation30 + $0x2ec] sm:$0xf0] }
 0x7c7   :  { %v15670_v42 = vld [vmem:[#allocation30 + $0x42c] sm:$0xf]  ;;  %v12944_v3 = vor.u32 %v15542_v11, %v12941_v25  ;;  %8959 = vmatpush.bf16.msra.mxu1 %v14544_v10  ;;  %v13779_v11 = vld [vmem:[#allocation30 + $0x6b0] sm:$0xf]  ;;  %v13268_v7 = vor.u32 %v15631_v48, %v13267_v57 }
 0x7c8   :  { %v13453_v30 = vld [vmem:[#allocation30 + $0x468] sm:$0xf0]  ;;  %v15759_v31 = vld [vmem:[#allocation30 + $0x6ec] sm:$0xf0] }
 0x7c9   :  { %v15798_v9 = vld [vmem:[#allocation30 + $0x82c] sm:$0xf]  ;;  %v13456_v38 = vor.u32 %v15670_v42, %v13453_v30  ;;  %8921 = vmatpush.bf16.msrb.mxu2 %v12944_v3  ;;  %v14291_v22 = vld [vmem:[#allocation30 + $0xab0] sm:$0xf]  ;;  %v13780_v10 = vor.u32 %v15759_v31, %v13779_v11 }
 0x7ca   :  { %v13965_v18 = vld [vmem:[#allocation30 + $0x868] sm:$0xf0]  ;;  %v15887_v25 = vld [vmem:[#allocation30 + $0xaec] sm:$0xf0] }
 0x7cb   :  { %v15926_v34 = vld [vmem:[#allocation30 + $0xc2c] sm:$0xf]  ;;  %v13968_v40 = vor.u32 %v15798_v9, %v13965_v18  ;;  %8934 = vmatpush.bf16.msrb.mxu3 %v13456_v38  ;;  %v14803_v42 = vld [vmem:[#allocation30 + $0xeb0] sm:$0xf]  ;;  %v14292_v9 = vor.u32 %v15887_v25, %v14291_v22 }
 0x7cc   :  { %v14477_v12 = vld [vmem:[#allocation30 + $0xc68] sm:$0xf0]  ;;  %8922 = vmatmul.bf16.vlgmr.msrb.gmra.mxu2 %v17740_v24  ;;  %v16015_v30 = vld [vmem:[#allocation30 + $0xeec] sm:$0xf0] }
 0x7cd   :  { %v14480_v36 = vor.u32 %v15926_v34, %v14477_v12  ;;  %8947 = vmatpush.bf16.msra.mxu0 %v13968_v40  ;;  %8966 = vmatpush.bf16.msra.mxu2 %v13396_v51  ;;  %v14804_v18 = vor.u32 %v16015_v30, %v14803_v42  ;;  %v13715_v24 = vld [vmem:[#allocation30 + $0x630] sm:$0xf] }
 0x7ce   :  { %8935 = vmatmul.bf16.vlgmr.msrb.gmra.mxu3 %v17743_v1  ;;  %v15743_v34 = vld [vmem:[#allocation30 + $0x66c] sm:$0xf0] }
 0x7cf   :  { %8960 = vmatpush.bf16.msra.mxu1 %v14480_v36  ;;  %8979 = vmatpush.bf16.msra.mxu3 %v13908_v52  ;;  %v14227_v1 = vld [vmem:[#allocation30 + $0xa30] sm:$0xf]  ;;  %v13716_v27 = vor.u32 %v15743_v34, %v13715_v24 }
 0x7d0   :  { %8948 = vmatmul.bf16.vlgmr.msra.gmra.mxu0 %v17746_v23  ;;  %v15871_v12 = vld [vmem:[#allocation30 + $0xa6c] sm:$0xf0]  ;;  %v8741_v23 = vpop.f32.mrf.mxu0 }
 0x7d1   :  { %8992 = vmatpush.bf16.msrb.mxu0 %v14420_v53  ;;  %8967 = vmatpush.bf16.msra.mxu2 %v13332_v5  ;;  %v14739_v19 = vld [vmem:[#allocation30 + $0xe30] sm:$0xf]  ;;  %v14228_v38 = vor.u32 %v15871_v12, %v14227_v1 }
 0x7d2   :  { %8961 = vmatmul.bf16.vlgmr.msra.gmra.mxu1 %v17749_v56  ;;  %v15999_v8 = vld [vmem:[#allocation30 + $0xe6c] sm:$0xf0]  ;;  %v8754_v56 = vpop.f32.mrf.mxu1 }
 0x7d3   :  { %9005 = vmatpush.bf16.msrb.mxu1 %v14932_v0  ;;  %8980 = vmatpush.bf16.msra.mxu3 %v13844_v45  ;;  %v13139_v35 = vld [vmem:[#allocation30 + $0x1b0] sm:$0xf]  ;;  %v14740_v59 = vor.u32 %v15999_v8, %v14739_v19  ;;  %v8716_v45 = vadd.f32 %v8715_v41, %v17646_v58  ;;  %v14933_v41 = vld [vmem:[#allocation30 + $0xff0] sm:$0xf0] }
 0x7d4   :  { %v15599_v3 = vld [vmem:[#allocation30 + $0x1ec] sm:$0xf0] }
 0x7d5   :  { %8993 = vmatpush.bf16.msrb.mxu0 %v14356_v2  ;;  %8968 = vmatpush.bf16.msra.mxu2 %v13268_v7  ;;  %v13651_v21 = vld [vmem:[#allocation30 + $0x5b0] sm:$0xf]  ;;  %v13140_v47 = vor.u32 %v15599_v3, %v13139_v35 }
 0x7d6   :  { %v15727_v39 = vld [vmem:[#allocation30 + $0x5ec] sm:$0xf0] }
 0x7d7   :  { %9006 = vmatpush.bf16.msrb.mxu1 %v14868_v6  ;;  %8981 = vmatpush.bf16.msra.mxu3 %v13780_v10  ;;  %v14163_v40 = vld [vmem:[#allocation30 + $0x9b0] sm:$0xf]  ;;  %v13652_v16 = vor.u32 %v15727_v39, %v13651_v21  ;;  %v8729_v6 = vadd.f32 %v8728_v46, %v8716_v45  ;;  %v8730_v21 = vpop.f32.mrf.mxu3  ;;  %v15639_v45 = vld [vmem:[#allocation30 + $0x334] sm:$0xf] }
 0x7d8   :  { %v15855_v36 = vld [vmem:[#allocation30 + $0x9ec] sm:$0xf0]  ;;  %v8743_v11 = vpop.f32.mrf.mxu0  ;;  %v13205_v21 = vld [vmem:[#allocation30 + $0x270] sm:$0xf0] }
 0x7d9   :  { %8994 = vmatpush.bf16.msrb.mxu0 %v14292_v9  ;;  %v14675_v51 = vld [vmem:[#allocation30 + $0xdb0] sm:$0xf]  ;;  %8969 = vmatpush.bf16.msra.mxu2 %v13204_v28  ;;  %v14164_v55 = vor.u32 %v15855_v36, %v14163_v40  ;;  %v8742_v58 = vadd.f32 %v8741_v23, %v8729_v6  ;;  %v15767_v6 = vld [vmem:[#allocation30 + $0x734] sm:$0xf] }
 0x7da   :  { %v15983_v52 = vld [vmem:[#allocation30 + $0xdec] sm:$0xf0]  ;;  %v8756_v31 = vpop.f32.mrf.mxu1  ;;  %v13845_v11 = vld [vmem:[#allocation30 + $0x770] sm:$0xf0] }
 0x7db   :  { %9007 = vmatpush.bf16.msrb.mxu1 %v14804_v18  ;;  %8982 = vmatpush.bf16.msra.mxu3 %v13716_v27  ;;  %v13075_v53 = vld [vmem:[#allocation30 + $0x130] sm:$0xf]  ;;  %v14676_v37 = vor.u32 %v15983_v52, %v14675_v51  ;;  %v17774_v12 = vadd.f32 %v8754_v56, %v8742_v58  ;;  %v15655_v51 = vld [vmem:[#allocation30 + $0x3b4] sm:$0xf] }
 0x7dc   :  { %v15583_v0 = vld [vmem:[#allocation30 + $0x16c] sm:$0xf0]  ;;  %v13397_v56 = vld [vmem:[#allocation30 + $0x3f0] sm:$0xf0] }
 0x7dd   :  { %8995 = vmatpush.bf16.msrb.mxu0 %v14228_v38  ;;  %v13587_v60 = vld [vmem:[#allocation30 + $0x530] sm:$0xf]  ;;  %8970 = vmatpush.bf16.msra.mxu2 %v13140_v47  ;;  %v13076_v22 = vor.u32 %v15583_v0, %v13075_v53  ;;  %v15783_v52 = vld [vmem:[#allocation30 + $0x7b4] sm:$0xf] }
 0x7de   :  { %v15711_v61 = vld [vmem:[#allocation30 + $0x56c] sm:$0xf0]  ;;  %v13909_v47 = vld [vmem:[#allocation30 + $0x7f0] sm:$0xf0] }
 0x7df   :  { %9008 = vmatpush.bf16.msrb.mxu1 %v14740_v59  ;;  %v14099_v5 = vld [vmem:[#allocation30 + $0x930] sm:$0xf]  ;;  %8983 = vmatpush.bf16.msra.mxu3 %v13652_v16  ;;  %v13588_v25 = vor.u32 %v15711_v61, %v13587_v60  ;;  %v8717_v59 = vpop.f32.mrf.mxu2  ;;  %v15911_v16 = vld [vmem:[#allocation30 + $0xbb4] sm:$0xf]  ;;  %v13400_v61 = vor.u32 %v15655_v51, %v13397_v56 }
 0x7e0   :  { %v15839_v57 = vld [vmem:[#allocation30 + $0x96c] sm:$0xf0]  ;;  %v15895_v31 = vld [vmem:[#allocation30 + $0xb34] sm:$0xf] }
 0x7e1   :  { %v14611_v48 = vld [vmem:[#allocation30 + $0xd30] sm:$0xf]  ;;  %8996 = vmatpush.bf16.msrb.mxu0 %v14164_v55  ;;  %v14100_v7 = vor.u32 %v15839_v57, %v14099_v5  ;;  %8971 = vmatpush.bf16.msra.mxu2 %v13076_v22  ;;  %v14421_v55 = vld [vmem:[#allocation30 + $0xbf0] sm:$0xf0]  ;;  %v13912_v5 = vor.u32 %v15783_v52, %v13909_v47 }
 0x7e2   :  { %v15967_v2 = vld [vmem:[#allocation30 + $0xd6c] sm:$0xf0]  ;;  %v13333_v57 = vld [vmem:[#allocation30 + $0x370] sm:$0xf0] }
 0x7e3   :  { %v13011_v42 = vld [vmem:[#allocation30 + $0xb0] sm:$0xf]  ;;  %9009 = vmatpush.bf16.msrb.mxu1 %v14676_v37  ;;  %v14612_v10 = vor.u32 %v15967_v2, %v14611_v48  ;;  %8984 = vmatpush.bf16.msra.mxu3 %v13588_v25  ;;  %v16039_v37 = vld [vmem:[#allocation30 + $0xfb4] sm:$0xf]  ;;  %v14424_v48 = vor.u32 %v15911_v16, %v14421_v55  ;;  %v8793_v16 = vpop.f32.mrf.mxu0 }
 0x7e4   :  { %v15567_v30 = vld [vmem:[#allocation30 + $0xec] sm:$0xf0]  ;;  %v14936_v2 = vor.u32 %v16039_v37, %v14933_v41  ;;  %v14357_v22 = vld [vmem:[#allocation30 + $0xb70] sm:$0xf0] }
 0x7e5   :  { %v13523_v32 = vld [vmem:[#allocation30 + $0x4b0] sm:$0xf]  ;;  %v13012_v19 = vor.u32 %v15567_v30, %v13011_v42  ;;  %8997 = vmatpush.bf16.msrb.mxu0 %v14100_v7  ;;  %v16023_v25 = vld [vmem:[#allocation30 + $0xf34] sm:$0xf]  ;;  %v13336_v30 = vor.u32 %v15639_v45, %v13333_v57  ;;  %v13848_v7 = vor.u32 %v15767_v6, %v13845_v11 }
 0x7e6   :  { %v15695_v44 = vld [vmem:[#allocation30 + $0x4ec] sm:$0xf0]  ;;  %v14869_v42 = vld [vmem:[#allocation30 + $0xf70] sm:$0xf0] }
 0x7e7   :  { %v14035_v9 = vld [vmem:[#allocation30 + $0x8b0] sm:$0xf]  ;;  %v13524_v8 = vor.u32 %v15695_v44, %v13523_v32  ;;  %9010 = vmatpush.bf16.msrb.mxu1 %v14612_v10  ;;  %8972 = vmatpush.bf16.msra.mxu2 %v13012_v19  ;;  %v15623_v10 = vld [vmem:[#allocation30 + $0x2b4] sm:$0xf]  ;;  %v14360_v44 = vor.u32 %v15895_v31, %v14357_v22 }
 0x7e8   :  { %v15823_v18 = vld [vmem:[#allocation30 + $0x8ec] sm:$0xf0]  ;;  %v13269_v32 = vld [vmem:[#allocation30 + $0x2f0] sm:$0xf0] }
 0x7e9   :  { %v14547_v24 = vld [vmem:[#allocation30 + $0xcb0] sm:$0xf]  ;;  %v14036_v3 = vor.u32 %v15823_v18, %v14035_v9  ;;  %8985 = vmatpush.bf16.msra.mxu3 %v13524_v8  ;;  %v14872_v9 = vor.u32 %v16023_v25, %v14869_v42  ;;  %v15751_v58 = vld [vmem:[#allocation30 + $0x6b4] sm:$0xf] }
 0x7ea   :  { %v15951_v34 = vld [vmem:[#allocation30 + $0xcec] sm:$0xf0]  ;;  %v13781_v18 = vld [vmem:[#allocation30 + $0x6f0] sm:$0xf0] }
 0x7eb   :  { %v12947_v1 = vld [vmem:[#allocation30 + $0x30] sm:$0xf]  ;;  %v14548_v38 = vor.u32 %v15951_v34, %v14547_v24  ;;  %8998 = vmatpush.bf16.msrb.mxu0 %v14036_v3  ;;  %v15879_v24 = vld [vmem:[#allocation30 + $0xab4] sm:$0xf]  ;;  %v17776_v34 = vld [vmem:[#allocation1] sm:$0xff]  ;;  %v13272_v3 = vor.u32 %v15623_v10, %v13269_v32 }
 0x7ec   :  { %v15551_v28 = vld [vmem:[#allocation30 + $0x6c] sm:$0xf0]  ;;  %v14293_v19 = vld [vmem:[#allocation30 + $0xaf0] sm:$0xf0] }
 0x7ed   :  { %v13459_v27 = vld [vmem:[#allocation30 + $0x430] sm:$0xf]  ;;  %v12948_v53 = vor.u32 %v15551_v28, %v12947_v1  ;;  %9011 = vmatpush.bf16.msrb.mxu1 %v14548_v38  ;;  %v17779_v1 = vld [vmem:[#allocation1 + $0x9] sm:$0xff]  ;;  %v16007_v8 = vld [vmem:[#allocation30 + $0xeb4] sm:$0xf]  ;;  %v13784_v38 = vor.u32 %v15751_v58, %v13781_v18 }
 0x7ee   :  { %v15679_v35 = vld [vmem:[#allocation30 + $0x46c] sm:$0xf0]  ;;  %v14805_v28 = vld [vmem:[#allocation30 + $0xef0] sm:$0xf0] }
 0x7ef   :  { %v13971_v23 = vld [vmem:[#allocation30 + $0x830] sm:$0xf]  ;;  %v13460_v0 = vor.u32 %v15679_v35, %v13459_v27  ;;  %8973 = vmatpush.bf16.msra.mxu2 %v12948_v53  ;;  %v17785_v35 = vld [vmem:[#allocation1 + $0x1b] sm:$0xff]  ;;  %v8806_v53 = vpop.f32.mrf.mxu1 }
 0x7f0   :  { %v15807_v39 = vld [vmem:[#allocation30 + $0x86c] sm:$0xf0]  ;;  %v15607_v59 = vld [vmem:[#allocation30 + $0x234] sm:$0xf] }
 0x7f1   :  { %v14483_v40 = vld [vmem:[#allocation30 + $0xc30] sm:$0xf]  ;;  %v13972_v46 = vor.u32 %v15807_v39, %v13971_v23  ;;  %8986 = vmatpush.bf16.msra.mxu3 %v13460_v0  ;;  %v14296_v23 = vor.u32 %v15879_v24, %v14293_v19  ;;  %v14808_v39 = vor.u32 %v16007_v8, %v14805_v28  ;;  %v15863_v51 = vld [vmem:[#allocation30 + $0xa34] sm:$0xf]  ;;  %v13208_v0 = vor.u32 %v15607_v59, %v13205_v21  ;;  %v8795_v8 = vpop.f32.mrf.mxu0 }
 0x7f2   :  { %v15935_v36 = vld [vmem:[#allocation30 + $0xc6c] sm:$0xf0]  ;;  %8974 = vmatmul.bf16.vlgmr.msra.gmra.mxu2 %v17776_v34  ;;  %v14229_v56 = vld [vmem:[#allocation30 + $0xa70] sm:$0xf0]  ;;  %v15648_v8 = vld [vmem:[#allocation30 + $0x374] sm:$0xf0] }
 0x7f3   :  { %v14484_v60 = vor.u32 %v15935_v36, %v14483_v40  ;;  %8999 = vmatpush.bf16.msrb.mxu0 %v13972_v46  ;;  %9018 = vmatpush.bf16.msrb.mxu2 %v13400_v61  ;;  %v17782_v27 = vld [vmem:[#allocation1 + $0x12] sm:$0xff]  ;;  %v15735_v40 = vld [vmem:[#allocation30 + $0x634] sm:$0xf]  ;;  %v14232_v46 = vor.u32 %v15863_v51, %v14229_v56 }
 0x7f4   :  { %8987 = vmatmul.bf16.vlgmr.msra.gmra.mxu3 %v17779_v1  ;;  %v13717_v36 = vld [vmem:[#allocation30 + $0x670] sm:$0xf0] }
 0x7f5   :  { %9012 = vmatpush.bf16.msrb.mxu1 %v14484_v60  ;;  %9031 = vmatpush.bf16.msrb.mxu3 %v13912_v5  ;;  %v15991_v52 = vld [vmem:[#allocation30 + $0xe34] sm:$0xf]  ;;  %v13720_v55 = vor.u32 %v15735_v40, %v13717_v36 }
 0x7f6   :  { %9000 = vmatmul.bf16.vlgmr.msrb.gmra.mxu0 %v17782_v27  ;;  %v14741_v47 = vld [vmem:[#allocation30 + $0xe70] sm:$0xf0] }
 0x7f7   :  { %9044 = vmatpush.bf16.msra.mxu0 %v14424_v48  ;;  %9019 = vmatpush.bf16.msrb.mxu2 %v13336_v30  ;;  %v15591_v37 = vld [vmem:[#allocation30 + $0x1b4] sm:$0xf]  ;;  %v14744_v60 = vor.u32 %v15991_v52, %v14741_v47  ;;  %v8767_v30 = vpop.f32.mrf.mxu2  ;;  %v8808_v28 = vpop.f32.mrf.mxu1 }
 0x7f8   :  { %9013 = vmatmul.bf16.vlgmr.msrb.gmra.mxu1 %v17785_v35  ;;  %v13141_v41 = vld [vmem:[#allocation30 + $0x1f0] sm:$0xf0] }
 0x7f9   :  { %9057 = vmatpush.bf16.msra.mxu1 %v14936_v2  ;;  %9032 = vmatpush.bf16.msrb.mxu3 %v13848_v7  ;;  %v15719_v61 = vld [vmem:[#allocation30 + $0x5b4] sm:$0xf]  ;;  %v13144_v6 = vor.u32 %v15591_v37, %v13141_v41  ;;  %v8780_v7 = vpop.f32.mrf.mxu3 }
 0x7fa   :  { %v13653_v5 = vld [vmem:[#allocation30 + $0x5f0] sm:$0xf0] }
 0x7fb   :  { %9045 = vmatpush.bf16.msra.mxu0 %v14360_v44  ;;  %9020 = vmatpush.bf16.msrb.mxu2 %v13272_v3  ;;  %v15847_v45 = vld [vmem:[#allocation30 + $0x9b4] sm:$0xf]  ;;  %v13656_v11 = vor.u32 %v15719_v61, %v13653_v5 }
 0x7fc   :  { %v14165_v57 = vld [vmem:[#allocation30 + $0x9f0] sm:$0xf0] }
 0x7fd   :  { %9058 = vmatpush.bf16.msra.mxu1 %v14872_v9  ;;  %9033 = vmatpush.bf16.msrb.mxu3 %v13784_v38  ;;  %v15975_v48 = vld [vmem:[#allocation30 + $0xdb4] sm:$0xf]  ;;  %v14168_v25 = vor.u32 %v15847_v45, %v14165_v57  ;;  %v8768_v9 = vadd.f32 %v8767_v30, %v17652_v62 }
 0x7fe   :  { %v14677_v2 = vld [vmem:[#allocation30 + $0xdf0] sm:$0xf0] }
 0x7ff   :  { %9046 = vmatpush.bf16.msra.mxu0 %v14296_v23  ;;  %9021 = vmatpush.bf16.msrb.mxu2 %v13208_v0  ;;  %v15575_v31 = vld [vmem:[#allocation30 + $0x134] sm:$0xf]  ;;  %v14680_v42 = vor.u32 %v15975_v48, %v14677_v2  ;;  %v8781_v19 = vadd.f32 %v8780_v7, %v8768_v9  ;;  %v8769_v57 = vpop.f32.mrf.mxu2 }
 0x800   :  { %v13077_v22 = vld [vmem:[#allocation30 + $0x170] sm:$0xf0]  ;;  %v13211_v57 = vld [vmem:[#allocation30 + $0x238] sm:$0xf] }
 0x801   :  { %9059 = vmatpush.bf16.msra.mxu1 %v14808_v39  ;;  %9034 = vmatpush.bf16.msrb.mxu3 %v13720_v55  ;;  %v15703_v10 = vld [vmem:[#allocation30 + $0x534] sm:$0xf]  ;;  %v13080_v3 = vor.u32 %v15575_v31, %v13077_v22  ;;  %v8794_v62 = vadd.f32 %v8793_v16, %v8781_v19  ;;  %v8782_v48 = vpop.f32.mrf.mxu3  ;;  %v13403_v31 = vld [vmem:[#allocation30 + $0x3b8] sm:$0xf] }
 0x802   :  { %v13589_v32 = vld [vmem:[#allocation30 + $0x570] sm:$0xf0]  ;;  %v13915_v22 = vld [vmem:[#allocation30 + $0x7b8] sm:$0xf] }
 0x803   :  { %9047 = vmatpush.bf16.msra.mxu0 %v14232_v46  ;;  %v15831_v44 = vld [vmem:[#allocation30 + $0x934] sm:$0xf]  ;;  %9022 = vmatpush.bf16.msrb.mxu2 %v13144_v6  ;;  %v13592_v38 = vor.u32 %v15703_v10, %v13589_v32  ;;  %v17789_v55 = vadd.f32 %v8806_v53, %v8794_v62  ;;  %v15664_v53 = vld [vmem:[#allocation30 + $0x3f4] sm:$0xf0] }
 0x804   :  { %v14101_v58 = vld [vmem:[#allocation30 + $0x970] sm:$0xf0]  ;;  %v15920_v10 = vld [vmem:[#allocation30 + $0xbf4] sm:$0xf0] }
 0x805   :  { %9060 = vmatpush.bf16.msra.mxu1 %v14744_v60  ;;  %v15959_v18 = vld [vmem:[#allocation30 + $0xd34] sm:$0xf]  ;;  %9035 = vmatpush.bf16.msrb.mxu3 %v13656_v11  ;;  %v14104_v23 = vor.u32 %v15831_v44, %v14101_v58  ;;  %v14939_v32 = vld [vmem:[#allocation30 + $0xfb8] sm:$0xf] }
 0x806   :  { %v14613_v24 = vld [vmem:[#allocation30 + $0xd70] sm:$0xf0]  ;;  %v16048_v44 = vld [vmem:[#allocation30 + $0xff4] sm:$0xf0] }
 0x807   :  { %v15559_v59 = vld [vmem:[#allocation30 + $0xb4] sm:$0xf]  ;;  %9048 = vmatpush.bf16.msra.mxu0 %v14168_v25  ;;  %v14616_v39 = vor.u32 %v15959_v18, %v14613_v24  ;;  %9023 = vmatpush.bf16.msrb.mxu2 %v13080_v3  ;;  %v15792_v25 = vld [vmem:[#allocation30 + $0x7f4] sm:$0xf0]  ;;  %v13404_v18 = vor.u32 %v15664_v53, %v13403_v31  ;;  %v14940_v3 = vor.u32 %v16048_v44, %v14939_v32 }
 0x808   :  { %v13013_v21 = vld [vmem:[#allocation30 + $0xf0] sm:$0xf0]  ;;  %v13916_v24 = vor.u32 %v15792_v25, %v13915_v22  ;;  %v13339_v19 = vld [vmem:[#allocation30 + $0x338] sm:$0xf] }
 0x809   :  { %9061 = vmatpush.bf16.msra.mxu1 %v14680_v42  ;;  %v15687_v40 = vld [vmem:[#allocation30 + $0x4b4] sm:$0xf]  ;;  %9036 = vmatpush.bf16.msrb.mxu3 %v13592_v38  ;;  %v13016_v37 = vor.u32 %v15559_v59, %v13013_v21  ;;  %v14427_v42 = vld [vmem:[#allocation30 + $0xbb8] sm:$0xf] }
 0x80a   :  { %v13525_v36 = vld [vmem:[#allocation30 + $0x4f0] sm:$0xf0]  ;;  %v14428_v28 = vor.u32 %v15920_v10, %v14427_v42  ;;  %v13851_v38 = vld [vmem:[#allocation30 + $0x738] sm:$0xf]  ;;  %v8845_v42 = vpop.f32.mrf.mxu0 }
 0x80b   :  { %v15815_v51 = vld [vmem:[#allocation30 + $0x8b4] sm:$0xf]  ;;  %v13528_v41 = vor.u32 %v15687_v40, %v13525_v36  ;;  %9049 = vmatpush.bf16.msra.mxu0 %v14104_v23  ;;  %9024 = vmatpush.bf16.msrb.mxu2 %v13016_v37  ;;  %v15776_v59 = vld [vmem:[#allocation30 + $0x774] sm:$0xf0]  ;;  %v13340_v36 = vor.u32 %v15648_v8, %v13339_v19 }
 0x80c   :  { %v14037_v56 = vld [vmem:[#allocation30 + $0x8f0] sm:$0xf0]  ;;  %v14363_v21 = vld [vmem:[#allocation30 + $0xb38] sm:$0xf] }
 0x80d   :  { %v15943_v52 = vld [vmem:[#allocation30 + $0xcb4] sm:$0xf]  ;;  %9062 = vmatpush.bf16.msra.mxu1 %v14616_v39  ;;  %v14040_v5 = vor.u32 %v15815_v51, %v14037_v56  ;;  %9037 = vmatpush.bf16.msrb.mxu3 %v13528_v41  ;;  %v15904_v23 = vld [vmem:[#allocation30 + $0xb74] sm:$0xf0]  ;;  %v13852_v51 = vor.u32 %v15776_v59, %v13851_v38 }
 0x80e   :  { %v14549_v47 = vld [vmem:[#allocation30 + $0xcf0] sm:$0xf0]  ;;  %v14875_v39 = vld [vmem:[#allocation30 + $0xf38] sm:$0xf] }
 0x80f   :  { %v15543_v0 = vld [vmem:[#allocation30 + $0x34] sm:$0xf]  ;;  %v14552_v45 = vor.u32 %v15943_v52, %v14549_v47  ;;  %9050 = vmatpush.bf16.msra.mxu0 %v14040_v5  ;;  %v16032_v40 = vld [vmem:[#allocation30 + $0xf74] sm:$0xf0]  ;;  %v14364_v52 = vor.u32 %v15904_v23, %v14363_v21 }
 0x810   :  { %v12949_v46 = vld [vmem:[#allocation30 + $0x70] sm:$0xf0]  ;;  %v13275_v62 = vld [vmem:[#allocation30 + $0x2b8] sm:$0xf]  ;;  %v14876_v47 = vor.u32 %v16032_v40, %v14875_v39 }
 0x811   :  { %v15671_v60 = vld [vmem:[#allocation30 + $0x434] sm:$0xf]  ;;  %v12952_v30 = vor.u32 %v15543_v0, %v12949_v46  ;;  %9063 = vmatpush.bf16.msra.mxu1 %v14552_v45  ;;  %v15632_v56 = vld [vmem:[#allocation30 + $0x2f4] sm:$0xf0] }
 0x812   :  { %v13461_v61 = vld [vmem:[#allocation30 + $0x470] sm:$0xf0]  ;;  %v13787_v0 = vld [vmem:[#allocation30 + $0x6b8] sm:$0xf]  ;;  %v13276_v5 = vor.u32 %v15632_v56, %v13275_v62 }
 0x813   :  { %v15799_v16 = vld [vmem:[#allocation30 + $0x834] sm:$0xf]  ;;  %v13464_v7 = vor.u32 %v15671_v60, %v13461_v61  ;;  %9025 = vmatpush.bf16.msrb.mxu2 %v12952_v30  ;;  %v15760_v37 = vld [vmem:[#allocation30 + $0x6f4] sm:$0xf0]  ;;  %v8858_v30 = vpop.f32.mrf.mxu1 }
 0x814   :  { %v13973_v2 = vld [vmem:[#allocation30 + $0x870] sm:$0xf0]  ;;  %v14299_v41 = vld [vmem:[#allocation30 + $0xab8] sm:$0xf]  ;;  %v13788_v45 = vor.u32 %v15760_v37, %v13787_v0 }
 0x815   :  { %v15927_v6 = vld [vmem:[#allocation30 + $0xc34] sm:$0xf]  ;;  %v13976_v9 = vor.u32 %v15799_v16, %v13973_v2  ;;  %9038 = vmatpush.bf16.msrb.mxu3 %v13464_v7  ;;  %v15888_v46 = vld [vmem:[#allocation30 + $0xaf4] sm:$0xf0] }
 0x816   :  { %v14485_v11 = vld [vmem:[#allocation30 + $0xc70] sm:$0xf0]  ;;  %9026 = vmatmul.bf16.vlgmr.msrb.gmra.mxu2 %v17776_v34  ;;  %v14811_v60 = vld [vmem:[#allocation30 + $0xeb8] sm:$0xf]  ;;  %v14300_v16 = vor.u32 %v15888_v46, %v14299_v41 }
 0x817   :  { %v14488_v58 = vor.u32 %v15927_v6, %v14485_v11  ;;  %9051 = vmatpush.bf16.msra.mxu0 %v13976_v9  ;;  %9070 = vmatpush.bf16.msra.mxu2 %v13404_v18  ;;  %v16016_v61 = vld [vmem:[#allocation30 + $0xef4] sm:$0xf0] }
 0x818   :  { %9039 = vmatmul.bf16.vlgmr.msrb.gmra.mxu3 %v17779_v1  ;;  %v15616_v48 = vld [vmem:[#allocation30 + $0x274] sm:$0xf0]  ;;  %v14812_v2 = vor.u32 %v16016_v61, %v14811_v60  ;;  %v8847_v60 = vpop.f32.mrf.mxu0 }
 0x819   :  { %9064 = vmatpush.bf16.msra.mxu1 %v14488_v58  ;;  %9083 = vmatpush.bf16.msra.mxu3 %v13916_v24  ;;  %v13723_v6 = vld [vmem:[#allocation30 + $0x638] sm:$0xf]  ;;  %v13212_v7 = vor.u32 %v15616_v48, %v13211_v57  ;;  %v13341_v60 = vld [vmem:[#allocation30 + $0x378] sm:$0xf0] }
 0x81a   :  { %9052 = vmatmul.bf16.vlgmr.msra.gmra.mxu0 %v17782_v27  ;;  %v15744_v11 = vld [vmem:[#allocation30 + $0x674] sm:$0xf0] }
 0x81b   :  { %9096 = vmatpush.bf16.msrb.mxu0 %v14428_v28  ;;  %9071 = vmatpush.bf16.msra.mxu2 %v13340_v36  ;;  %v14235_v31 = vld [vmem:[#allocation30 + $0xa38] sm:$0xf]  ;;  %v13724_v10 = vor.u32 %v15744_v11, %v13723_v6  ;;  %v8819_v36 = vpop.f32.mrf.mxu2  ;;  %v8860_v61 = vpop.f32.mrf.mxu1 }
 0x81c   :  { %9065 = vmatmul.bf16.vlgmr.msra.gmra.mxu1 %v17785_v35  ;;  %v15872_v53 = vld [vmem:[#allocation30 + $0xa74] sm:$0xf0] }
 0x81d   :  { %9109 = vmatpush.bf16.msrb.mxu1 %v14940_v3  ;;  %9084 = vmatpush.bf16.msra.mxu3 %v13852_v51  ;;  %v14747_v22 = vld [vmem:[#allocation30 + $0xe38] sm:$0xf]  ;;  %v14236_v9 = vor.u32 %v15872_v53, %v14235_v31  ;;  %v8832_v51 = vpop.f32.mrf.mxu3 }
 0x81e   :  { %v16000_v25 = vld [vmem:[#allocation30 + $0xe74] sm:$0xf0] }
 0x81f   :  { %9097 = vmatpush.bf16.msrb.mxu0 %v14364_v52  ;;  %9072 = vmatpush.bf16.msra.mxu2 %v13276_v5  ;;  %v13147_v32 = vld [vmem:[#allocation30 + $0x1b8] sm:$0xf]  ;;  %v14748_v58 = vor.u32 %v16000_v25, %v14747_v22 }
 0x820   :  { %v15600_v44 = vld [vmem:[#allocation30 + $0x1f4] sm:$0xf0] }
 0x821   :  { %9110 = vmatpush.bf16.msrb.mxu1 %v14876_v47  ;;  %9085 = vmatpush.bf16.msra.mxu3 %v13788_v45  ;;  %v13659_v18 = vld [vmem:[#allocation30 + $0x5b8] sm:$0xf]  ;;  %v13148_v38 = vor.u32 %v15600_v44, %v13147_v32  ;;  %v8820_v47 = vadd.f32 %v8819_v36, %v17658_v4 }
 0x822   :  { %v15728_v24 = vld [vmem:[#allocation30 + $0x5f4] sm:$0xf0] }
 0x823   :  { %9098 = vmatpush.bf16.msrb.mxu0 %v14300_v16  ;;  %v14171_v19 = vld [vmem:[#allocation30 + $0x9b8] sm:$0xf]  ;;  %9073 = vmatpush.bf16.msra.mxu2 %v13212_v7  ;;  %v13660_v59 = vor.u32 %v15728_v24, %v13659_v18  ;;  %v8833_v46 = vadd.f32 %v8832_v51, %v8820_v47 }
 0x824   :  { %v15856_v8 = vld [vmem:[#allocation30 + $0x9f4] sm:$0xf0] }
 0x825   :  { %9111 = vmatpush.bf16.msrb.mxu1 %v14812_v2  ;;  %v14683_v28 = vld [vmem:[#allocation30 + $0xdb8] sm:$0xf]  ;;  %9086 = vmatpush.bf16.msra.mxu3 %v13724_v10  ;;  %v14172_v39 = vor.u32 %v15856_v8, %v14171_v19  ;;  %v8846_v4 = vadd.f32 %v8845_v42, %v8833_v46  ;;  %v8821_v8 = vpop.f32.mrf.mxu2  ;;  %v15640_v46 = vld [vmem:[#allocation30 + $0x33c] sm:$0xf] }
 0x826   :  { %v15984_v3 = vld [vmem:[#allocation30 + $0xdf4] sm:$0xf0]  ;;  %v15608_v8 = vld [vmem:[#allocation30 + $0x23c] sm:$0xf] }
 0x827   :  { %v13083_v21 = vld [vmem:[#allocation30 + $0x138] sm:$0xf]  ;;  %9099 = vmatpush.bf16.msrb.mxu0 %v14236_v9  ;;  %v14684_v40 = vor.u32 %v15984_v3, %v14683_v28  ;;  %9074 = vmatpush.bf16.msra.mxu2 %v13148_v38  ;;  %v17796_v10 = vadd.f32 %v8858_v30, %v8846_v4  ;;  %v8834_v28 = vpop.f32.mrf.mxu3  ;;  %v13405_v30 = vld [vmem:[#allocation30 + $0x3f8] sm:$0xf0] }
 0x828   :  { %v15584_v23 = vld [vmem:[#allocation30 + $0x174] sm:$0xf0]  ;;  %v15624_v4 = vld [vmem:[#allocation30 + $0x2bc] sm:$0xf] }
 0x829   :  { %9112 = vmatpush.bf16.msrb.mxu1 %v14748_v58  ;;  %v13595_v62 = vld [vmem:[#allocation30 + $0x538] sm:$0xf]  ;;  %9087 = vmatpush.bf16.msra.mxu3 %v13660_v59  ;;  %v13084_v5 = vor.u32 %v15584_v23, %v13083_v21  ;;  %v15656_v21 = vld [vmem:[#allocation30 + $0x3bc] sm:$0xf] }
 0x82a   :  { %v15712_v56 = vld [vmem:[#allocation30 + $0x574] sm:$0xf0]  ;;  %v15784_v23 = vld [vmem:[#allocation30 + $0x7bc] sm:$0xf] }
 0x82b   :  { %v14107_v52 = vld [vmem:[#allocation30 + $0x938] sm:$0xf]  ;;  %v13596_v45 = vor.u32 %v15712_v56, %v13595_v62  ;;  %9100 = vmatpush.bf16.msrb.mxu0 %v14172_v39  ;;  %9075 = vmatpush.bf16.msra.mxu2 %v13084_v5  ;;  %v13917_v39 = vld [vmem:[#allocation30 + $0x7f8] sm:$0xf0] }
 0x82c   :  { %v15840_v0 = vld [vmem:[#allocation30 + $0x974] sm:$0xf0]  ;;  %v14429_v62 = vld [vmem:[#allocation30 + $0xbf8] sm:$0xf0] }
 0x82d   :  { %v14619_v37 = vld [vmem:[#allocation30 + $0xd38] sm:$0xf]  ;;  %9113 = vmatpush.bf16.msrb.mxu1 %v14684_v40  ;;  %v14108_v16 = vor.u32 %v15840_v0, %v14107_v52  ;;  %9088 = vmatpush.bf16.msra.mxu3 %v13596_v45  ;;  %v15912_v40 = vld [vmem:[#allocation30 + $0xbbc] sm:$0xf] }
 0x82e   :  { %v15968_v41 = vld [vmem:[#allocation30 + $0xd74] sm:$0xf0]  ;;  %v16040_v56 = vld [vmem:[#allocation30 + $0xfbc] sm:$0xf]  ;;  %v14432_v61 = vor.u32 %v15912_v40, %v14429_v62  ;;  %v8897_v40 = vpop.f32.mrf.mxu0 }
 0x82f   :  { %v13019_v57 = vld [vmem:[#allocation30 + $0xb8] sm:$0xf]  ;;  %v14620_v2 = vor.u32 %v15968_v41, %v14619_v37  ;;  %9101 = vmatpush.bf16.msrb.mxu0 %v14108_v16  ;;  %v14941_v52 = vld [vmem:[#allocation30 + $0xff8] sm:$0xf0]  ;;  %v13408_v37 = vor.u32 %v15656_v21, %v13405_v30  ;;  %v13920_v41 = vor.u32 %v15784_v23, %v13917_v39 }
 0x830   :  { %v15568_v48 = vld [vmem:[#allocation30 + $0xf4] sm:$0xf0]  ;;  %v14944_v5 = vor.u32 %v16040_v56, %v14941_v52  ;;  %v15768_v45 = vld [vmem:[#allocation30 + $0x73c] sm:$0xf] }
 0x831   :  { %v13531_v6 = vld [vmem:[#allocation30 + $0x4b8] sm:$0xf]  ;;  %v13020_v32 = vor.u32 %v15568_v48, %v13019_v57  ;;  %9114 = vmatpush.bf16.msrb.mxu1 %v14620_v2  ;;  %v13853_v57 = vld [vmem:[#allocation30 + $0x778] sm:$0xf0] }
 0x832   :  { %v15696_v11 = vld [vmem:[#allocation30 + $0x4f4] sm:$0xf0]  ;;  %v15896_v48 = vld [vmem:[#allocation30 + $0xb3c] sm:$0xf] }
 0x833   :  { %v14043_v31 = vld [vmem:[#allocation30 + $0x8b8] sm:$0xf]  ;;  %v13532_v44 = vor.u32 %v15696_v11, %v13531_v6  ;;  %9076 = vmatpush.bf16.msra.mxu2 %v13020_v32  ;;  %v14365_v16 = vld [vmem:[#allocation30 + $0xb78] sm:$0xf0]  ;;  %v13344_v11 = vor.u32 %v15640_v46, %v13341_v60 }
 0x834   :  { %v15824_v53 = vld [vmem:[#allocation30 + $0x8f4] sm:$0xf0]  ;;  %v16024_v2 = vld [vmem:[#allocation30 + $0xf3c] sm:$0xf] }
 0x835   :  { %v14555_v22 = vld [vmem:[#allocation30 + $0xcb8] sm:$0xf]  ;;  %v14044_v24 = vor.u32 %v15824_v53, %v14043_v31  ;;  %9089 = vmatpush.bf16.msra.mxu3 %v13532_v44  ;;  %v14877_v6 = vld [vmem:[#allocation30 + $0xf78] sm:$0xf0]  ;;  %v13856_v31 = vor.u32 %v15768_v45, %v13853_v57 }
 0x836   :  { %v15952_v25 = vld [vmem:[#allocation30 + $0xcf4] sm:$0xf0]  ;;  %v13277_v53 = vld [vmem:[#allocation30 + $0x2f8] sm:$0xf0] }
 0x837   :  { %v12955_v7 = vld [vmem:[#allocation30 + $0x38] sm:$0xf]  ;;  %v14556_v19 = vor.u32 %v15952_v25, %v14555_v22  ;;  %9102 = vmatpush.bf16.msrb.mxu0 %v14044_v24  ;;  %v14368_v22 = vor.u32 %v15896_v48, %v14365_v16  ;;  %v14880_v25 = vor.u32 %v16024_v2, %v14877_v6  ;;  %v13789_v32 = vld [vmem:[#allocation30 + $0x6f8] sm:$0xf0]  ;;  %v13280_v24 = vor.u32 %v15624_v4, %v13277_v53 }
 0x838   :  { %v15552_v9 = vld [vmem:[#allocation30 + $0x74] sm:$0xf0]  ;;  %v15880_v44 = vld [vmem:[#allocation30 + $0xabc] sm:$0xf] }
 0x839   :  { %v13467_v58 = vld [vmem:[#allocation30 + $0x438] sm:$0xf]  ;;  %v12956_v36 = vor.u32 %v15552_v9, %v12955_v7  ;;  %9115 = vmatpush.bf16.msrb.mxu1 %v14556_v19  ;;  %v15752_v7 = vld [vmem:[#allocation30 + $0x6bc] sm:$0xf] }
 0x83a   :  { %v15680_v18 = vld [vmem:[#allocation30 + $0x474] sm:$0xf0]  ;;  %v14301_v9 = vld [vmem:[#allocation30 + $0xaf8] sm:$0xf0]  ;;  %v13792_v19 = vor.u32 %v15752_v7, %v13789_v32 }
 0x83b   :  { %v13979_v42 = vld [vmem:[#allocation30 + $0x838] sm:$0xf]  ;;  %v13468_v51 = vor.u32 %v15680_v18, %v13467_v58  ;;  %9077 = vmatpush.bf16.msra.mxu2 %v12956_v36  ;;  %v16008_v58 = vld [vmem:[#allocation30 + $0xebc] sm:$0xf]  ;;  %v8910_v36 = vpop.f32.mrf.mxu1 }
 0x83c   :  { %v15808_v3 = vld [vmem:[#allocation30 + $0x874] sm:$0xf0]  ;;  %v14813_v18 = vld [vmem:[#allocation30 + $0xef8] sm:$0xf0] }
 0x83d   :  { %v14491_v38 = vld [vmem:[#allocation30 + $0xc38] sm:$0xf]  ;;  %v13980_v47 = vor.u32 %v15808_v3, %v13979_v42  ;;  %9090 = vmatpush.bf16.msra.mxu3 %v13468_v51  ;;  %v13213_v28 = vld [vmem:[#allocation30 + $0x278] sm:$0xf0]  ;;  %v14304_v42 = vor.u32 %v15880_v44, %v14301_v9  ;;  %v14816_v3 = vor.u32 %v16008_v58, %v14813_v18  ;;  %v8899_v58 = vpop.f32.mrf.mxu0 }
 0x83e   :  { %v15936_v59 = vld [vmem:[#allocation30 + $0xc74] sm:$0xf0]  ;;  %9078 = vmatmul.bf16.vlgmr.msra.gmra.mxu2 %v17776_v34  ;;  %v15864_v21 = vld [vmem:[#allocation30 + $0xa3c] sm:$0xf]  ;;  %v13216_v51 = vor.u32 %v15608_v8, %v13213_v28 }
 0x83f   :  { %v14492_v0 = vor.u32 %v15936_v59, %v14491_v38  ;;  %9103 = vmatpush.bf16.msrb.mxu0 %v13980_v47  ;;  %9122 = vmatpush.bf16.msrb.mxu2 %v13408_v37  ;;  %v15736_v38 = vld [vmem:[#allocation30 + $0x63c] sm:$0xf] }
 0x840   :  { %9091 = vmatmul.bf16.vlgmr.msra.gmra.mxu3 %v17779_v1  ;;  %v13725_v59 = vld [vmem:[#allocation30 + $0x678] sm:$0xf0] }
 0x841   :  { %9116 = vmatpush.bf16.msrb.mxu1 %v14492_v0  ;;  %9135 = vmatpush.bf16.msrb.mxu3 %v13920_v41  ;;  %v14237_v30 = vld [vmem:[#allocation30 + $0xa78] sm:$0xf0]  ;;  %v13728_v62 = vor.u32 %v15736_v38, %v13725_v59 }
 0x842   :  { %9104 = vmatmul.bf16.vlgmr.msrb.gmra.mxu0 %v17782_v27  ;;  %v15992_v23 = vld [vmem:[#allocation30 + $0xe3c] sm:$0xf]  ;;  %v14240_v47 = vor.u32 %v15864_v21, %v14237_v30 }
 0x843   :  { %9148 = vmatpush.bf16.msra.mxu0 %v14432_v61  ;;  %9123 = vmatpush.bf16.msrb.mxu2 %v13344_v11  ;;  %v14749_v39 = vld [vmem:[#allocation30 + $0xe78] sm:$0xf0]  ;;  %v8871_v11 = vpop.f32.mrf.mxu2  ;;  %v8912_v18 = vpop.f32.mrf.mxu1 }
 0x844   :  { %9117 = vmatmul.bf16.vlgmr.msrb.gmra.mxu1 %v17785_v35  ;;  %v15592_v56 = vld [vmem:[#allocation30 + $0x1bc] sm:$0xf]  ;;  %v14752_v0 = vor.u32 %v15992_v23, %v14749_v39 }
 0x845   :  { %9161 = vmatpush.bf16.msra.mxu1 %v14944_v5  ;;  %9136 = vmatpush.bf16.msrb.mxu3 %v13856_v31  ;;  %v13149_v52 = vld [vmem:[#allocation30 + $0x1f8] sm:$0xf0]  ;;  %v8884_v31 = vpop.f32.mrf.mxu3 }
 0x846   :  { %v15720_v37 = vld [vmem:[#allocation30 + $0x5bc] sm:$0xf]  ;;  %v13152_v45 = vor.u32 %v15592_v56, %v13149_v52 }
 0x847   :  { %9149 = vmatpush.bf16.msra.mxu0 %v14368_v22  ;;  %9124 = vmatpush.bf16.msrb.mxu2 %v13280_v24  ;;  %v13661_v41 = vld [vmem:[#allocation30 + $0x5f8] sm:$0xf0] }
 0x848   :  { %v15848_v46 = vld [vmem:[#allocation30 + $0x9bc] sm:$0xf]  ;;  %v13664_v57 = vor.u32 %v15720_v37, %v13661_v41 }
 0x849   :  { %9162 = vmatpush.bf16.msra.mxu1 %v14880_v25  ;;  %9137 = vmatpush.bf16.msrb.mxu3 %v13792_v19  ;;  %v14173_v60 = vld [vmem:[#allocation30 + $0x9f8] sm:$0xf0]  ;;  %v8872_v25 = vadd.f32 %v8871_v11, %v17664_v17  ;;  %v16576_v11 = vld [vmem:[#allocation34 + $0x78] sm:$0xff] }
 0x84a   :  { %v15976_v61 = vld [vmem:[#allocation30 + $0xdbc] sm:$0xf]  ;;  %v14176_v2 = vor.u32 %v15848_v46, %v14173_v60 }
 0x84b   :  { %9150 = vmatpush.bf16.msra.mxu0 %v14304_v42  ;;  %v14685_v5 = vld [vmem:[#allocation30 + $0xdf8] sm:$0xf0]  ;;  %9125 = vmatpush.bf16.msrb.mxu2 %v13216_v51  ;;  %v8885_v9 = vadd.f32 %v8884_v31, %v8872_v25  ;;  %v8873_v41 = vpop.f32.mrf.mxu2  ;;  %v16584_v31 = vld [vmem:[#allocation34 + $0xb8] sm:$0xff]  ;;  %v16583_v25 = vld [vmem:[#allocation34 + $0xb0] sm:$0xff] }
 0x84c   :  { %v15576_v48 = vld [vmem:[#allocation30 + $0x13c] sm:$0xf]  ;;  %v14688_v6 = vor.u32 %v15976_v61, %v14685_v5 }
 0x84d   :  { %9163 = vmatpush.bf16.msra.mxu1 %v14816_v3  ;;  %9138 = vmatpush.bf16.msrb.mxu3 %v13728_v62  ;;  %v13085_v16 = vld [vmem:[#allocation30 + $0x178] sm:$0xf0]  ;;  %v8898_v17 = vadd.f32 %v8897_v40, %v8885_v9  ;;  %v8886_v46 = vpop.f32.mrf.mxu3  ;;  %v8949_v18 = vpop.f32.mrf.mxu0 }
 0x84e   :  { %v15704_v4 = vld [vmem:[#allocation30 + $0x53c] sm:$0xf]  ;;  %v13088_v24 = vor.u32 %v15576_v48, %v13085_v16 }
 0x84f   :  { %9151 = vmatpush.bf16.msra.mxu0 %v14240_v47  ;;  %v13597_v53 = vld [vmem:[#allocation30 + $0x578] sm:$0xf0]  ;;  %9126 = vmatpush.bf16.msrb.mxu2 %v13152_v45  ;;  %v17803_v51 = vadd.f32 %v8910_v36, %v8898_v17 }
 0x850   :  { %v15832_v22 = vld [vmem:[#allocation30 + $0x93c] sm:$0xf]  ;;  %v13600_v19 = vor.u32 %v15704_v4, %v13597_v53  ;;  %v16592_v4 = vld [vmem:[#allocation34 + $0xf8] sm:$0xff]  ;;  %v16567_v53 = vld [vmem:[#allocation34 + $0x30] sm:$0xff] }
 0x851   :  { %9164 = vmatpush.bf16.msra.mxu1 %v14752_v0  ;;  %v14109_v7 = vld [vmem:[#allocation30 + $0x978] sm:$0xf0]  ;;  %9139 = vmatpush.bf16.msrb.mxu3 %v13664_v57 }
 0x852   :  { %v15960_v32 = vld [vmem:[#allocation30 + $0xd3c] sm:$0xf]  ;;  %v14112_v42 = vor.u32 %v15832_v22, %v14109_v7  ;;  %v16575_v22 = vld [vmem:[#allocation34 + $0x70] sm:$0xff] }
 0x853   :  { %v14621_v44 = vld [vmem:[#allocation30 + $0xd78] sm:$0xf0]  ;;  %9152 = vmatpush.bf16.msra.mxu0 %v14176_v2  ;;  %9127 = vmatpush.bf16.msrb.mxu2 %v13088_v24  ;;  %v16591_v7 = vld [vmem:[#allocation34 + $0xf0] sm:$0xff]  ;;  %v8962_v24 = vpop.f32.mrf.mxu1 }
 0x854   :  { %v15560_v8 = vld [vmem:[#allocation30 + $0xbc] sm:$0xf]  ;;  %v14624_v3 = vor.u32 %v15960_v32, %v14621_v44 }
 0x855   :  { %v13021_v28 = vld [vmem:[#allocation30 + $0xf8] sm:$0xf0]  ;;  %9165 = vmatpush.bf16.msra.mxu1 %v14688_v6  ;;  %9140 = vmatpush.bf16.msrb.mxu3 %v13600_v19  ;;  %v16568_v6 = vld [vmem:[#allocation34 + $0x38] sm:$0xff]  ;;  %v16565_v19 = vld [vmem:[#allocation34 + $0x20] sm:$0xff] }
 0x856   :  { %v15688_v38 = vld [vmem:[#allocation30 + $0x4bc] sm:$0xf]  ;;  %v13024_v62 = vor.u32 %v15560_v8, %v13021_v28  ;;  %v16572_v8 = vld [vmem:[#allocation34 + $0x58] sm:$0xff] }
 0x857   :  { %v13533_v59 = vld [vmem:[#allocation30 + $0x4f8] sm:$0xf0]  ;;  %9153 = vmatpush.bf16.msra.mxu0 %v14112_v42  ;;  %v16580_v28 = vld [vmem:[#allocation34 + $0x98] sm:$0xff] }
 0x858   :  { %v15816_v21 = vld [vmem:[#allocation30 + $0x8bc] sm:$0xf]  ;;  %v13536_v56 = vor.u32 %v15688_v38, %v13533_v59  ;;  %9128 = vmatpush.bf16.msrb.mxu2 %v13024_v62  ;;  %v16588_v42 = vld [vmem:[#allocation34 + $0xd8] sm:$0xff]  ;;  %v8936_v38 = vpop.f32.mrf.mxu3  ;;  %v16571_v62 = vld [vmem:[#allocation34 + $0x50] sm:$0xff] }
 0x859   :  { %v14045_v30 = vld [vmem:[#allocation30 + $0x8f8] sm:$0xf0]  ;;  %9166 = vmatpush.bf16.msra.mxu1 %v14624_v3  ;;  %v8923_v3 = vpop.f32.mrf.mxu2 }
 0x85a   :  { %v15944_v23 = vld [vmem:[#allocation30 + $0xcbc] sm:$0xf]  ;;  %v14048_v0 = vor.u32 %v15816_v21, %v14045_v30  ;;  %9141 = vmatpush.bf16.msrb.mxu3 %v13536_v56  ;;  %v8924_v59 = vadd.f32 %v8923_v3, %v17670_v26  ;;  %v17810_v21 = vld [vmem:[#allocation33] sm:$0xff]  ;;  %v8951_v30 = vpop.f32.mrf.mxu0  ;;  %v16597_v3 = vld [vmem:[#allocation34 + $0x120] sm:$0xff] }
 0x85b   :  { %v14557_v39 = vld [vmem:[#allocation30 + $0xcf8] sm:$0xf0]  ;;  %v16579_v56 = vld [vmem:[#allocation34 + $0x90] sm:$0xff]  ;;  %v9180_v26 = vperm.slane %v17810_v21, 2  ;;  %v9181_v41 = vperm.slane %v17810_v21, 3  ;;  %v16596_v30 = vld [vmem:[#allocation34 + $0x118] sm:$0xff] }
 0x85c   :  { %v15544_v52 = vld [vmem:[#allocation30 + $0x3c] sm:$0xf]  ;;  %v14560_v37 = vor.u32 %v15944_v23, %v14557_v39  ;;  %9154 = vmatpush.bf16.msra.mxu0 %v14048_v0  ;;  %v8937_v17 = vadd.f32 %v8936_v38, %v8924_v59  ;;  %v8964_v23 = vpop.f32.mrf.mxu1  ;;  %v16563_v39 = vld [vmem:[#allocation34 + $0x10] sm:$0xff]  ;;  %v9179_v0 = vperm.slane %v17810_v21, 1  ;;  %v16605_v38 = vld [vmem:[#allocation34 + $0x160] sm:$0xff] }
 0x85d   :  { %v12957_v47 = vld [vmem:[#allocation30 + $0x78] sm:$0xf0]  ;;  %v16613_v59 = vld [vmem:[#allocation34 + $0x1a0] sm:$0xff]  ;;  %v16604_v23 = vld [vmem:[#allocation34 + $0x158] sm:$0xff] }
 0x85e   :  { %v15672_v60 = vld [vmem:[#allocation30 + $0x43c] sm:$0xf]  ;;  %v12960_v36 = vor.u32 %v15544_v52, %v12957_v47  ;;  %9167 = vmatpush.bf16.msra.mxu1 %v14560_v37  ;;  %v16587_v52 = vld [vmem:[#allocation34 + $0xd0] sm:$0xff]  ;;  %v9178_v47 = vperm.slane %v17810_v21, 0  ;;  %v8950_v37 = vadd.f32 %v8949_v18, %v8937_v17  ;;  %v16621_v17 = vld [vmem:[#allocation34 + $0x1e0] sm:$0xff] }
 0x85f   :  { %v13469_v61 = vld [vmem:[#allocation30 + $0x478] sm:$0xf0] }
 0x860   :  { %v15800_v40 = vld [vmem:[#allocation30 + $0x83c] sm:$0xf]  ;;  %v13472_v48 = vor.u32 %v15672_v60, %v13469_v61  ;;  %9129 = vmatpush.bf16.msrb.mxu2 %v12960_v36  ;;  %v17816_v46 = vadd.f32 %v8962_v24, %v8950_v37  ;;  %v9210_v36 = vadd.f32 %v9178_v47, %v17717_v14 }
 0x861   :  { %v13981_v5 = vld [vmem:[#allocation30 + $0x878] sm:$0xf0] }
 0x862   :  { %v15928_v45 = vld [vmem:[#allocation30 + $0xc3c] sm:$0xf]  ;;  %v13984_v16 = vor.u32 %v15800_v40, %v13981_v5  ;;  %9142 = vmatpush.bf16.msrb.mxu3 %v13472_v48  ;;  %v9211_v48 = vadd.f32 %v9179_v0, %v17724_v13  ;;  %v16624_v13 = vld [vmem:[#allocation34 + $0x1f8] sm:$0xff] }
 0x863   :  { %v14493_v57 = vld [vmem:[#allocation30 + $0xc78] sm:$0xf0]  ;;  %9130 = vmatmul.bf16.vlgmr.msrb.gmra.mxu2 %v17776_v34  ;;  %v16573_v34 = vld [vmem:[#allocation34 + $0x60] sm:$0xff] }
 0x864   :  { %v14496_v2 = vor.u32 %v15928_v45, %v14493_v57  ;;  %9155 = vmatpush.bf16.msra.mxu0 %v13984_v16  ;;  %10283 = vmatpush.bf16.msra.mxu2 %v16568_v6  ;;  %v16566_v32 = vld [vmem:[#allocation34 + $0x28] sm:$0xff]  ;;  %v8925_v45 = vpop.f32.mrf.mxu2  ;;  %v8938_v57 = vpop.f32.mrf.mxu3  ;;  %v9212_v16 = vadd.f32 %v9180_v26, %v17731_v15  ;;  %v16561_v6 = vld [vmem:[#allocation34] sm:$0xff] }
 0x865   :  { %9143 = vmatmul.bf16.vlgmr.msrb.gmra.mxu3 %v17779_v1  ;;  %v16574_v44 = vld [vmem:[#allocation34 + $0x68] sm:$0xff]  ;;  %v16581_v1 = vld [vmem:[#allocation34 + $0xa0] sm:$0xff]  ;;  %v9183_v45 = vperm.slane %v17810_v21, 5 }
 0x866   :  { %9168 = vmatpush.bf16.msra.mxu1 %v14496_v2  ;;  %10296 = vmatpush.bf16.msra.mxu3 %v16576_v11  ;;  %v16582_v9 = vld [vmem:[#allocation34 + $0xa8] sm:$0xff]  ;;  %v9213_v2 = vadd.f32 %v9181_v41, %v17738_v54  ;;  %v16569_v11 = vld [vmem:[#allocation34 + $0x40] sm:$0xff]  ;;  %v16595_v41 = vld [vmem:[#allocation34 + $0x110] sm:$0xff] }
 0x867   :  { %9156 = vmatmul.bf16.vlgmr.msra.gmra.mxu0 %v17782_v27  ;;  %v16590_v58 = vld [vmem:[#allocation34 + $0xe8] sm:$0xff]  ;;  %v16589_v27 = vld [vmem:[#allocation34 + $0xe0] sm:$0xff] }
 0x868   :  { %10309 = vmatpush.bf16.msrb.mxu0 %v16584_v31  ;;  %10284 = vmatpush.bf16.msra.mxu2 %v16567_v53  ;;  %v16562_v60 = vld [vmem:[#allocation34 + $0x8] sm:$0xff]  ;;  %v16577_v31 = vld [vmem:[#allocation34 + $0x80] sm:$0xff]  ;;  %v9226_v53 = vmax.f32 %v9210_v36, 0.0  ;;  %v9229_v14 = vmax.f32 %v9213_v2, 0.0  ;;  %v9184_v36 = vperm.slane %v17810_v21, 6 }
 0x869   :  { %9169 = vmatmul.bf16.vlgmr.msra.gmra.mxu1 %v17785_v35  ;;  %v16564_v35 = vld [vmem:[#allocation34 + $0x18] sm:$0xff]  ;;  %v16570_v61 = vld [vmem:[#allocation34 + $0x48] sm:$0xff] }
 0x86a   :  { %10322 = vmatpush.bf16.msrb.mxu1 %v16592_v4  ;;  %10297 = vmatpush.bf16.msra.mxu3 %v16575_v22  ;;  %v16578_v40 = vld [vmem:[#allocation34 + $0x88] sm:$0xff]  ;;  %v16585_v4 = vld [vmem:[#allocation34 + $0xc0] sm:$0xff]  ;;  %v9227_v22 = vmax.f32 %v9211_v48, 0.0  ;;  %v9243_v15 = vpack.c.bf16 %v9226_v53, %v9226_v53  ;;  %v9246_v24 = vpack.c.bf16 %v9229_v14, %v9229_v14 }
 0x86b   :  { %v16586_v5 = vld [vmem:[#allocation34 + $0xc8] sm:$0xff]  ;;  %v16609_v14 = vld [vmem:[#allocation34 + $0x180] sm:$0xff] }
 0x86c   :  { %10310 = vmatpush.bf16.msrb.mxu0 %v16583_v25  ;;  %10285 = vmatpush.bf16.msra.mxu2 %v16566_v32  ;;  %v16600_v25 = vld [vmem:[#allocation34 + $0x138] sm:$0xff]  ;;  %v9228_v32 = vmax.f32 %v9212_v16, 0.0  ;;  %v9244_v54 = vpack.c.bf16 %v9227_v22, %v9227_v22  ;;  %v16594_v16 = vld [vmem:[#allocation34 + $0x108] sm:$0xff]  ;;  %v9215_v22 = vadd.f32 %v9183_v45, %v17760_v49  ;;  %v16643_v45 = vld [vmem:[#allocation34 + $0x290] sm:$0xff] }
 0x86d   :  { %v16602_v2 = vld [vmem:[#allocation34 + $0x148] sm:$0xff]  ;;  %v16656_v49 = vld [vmem:[#allocation34 + $0x2f8] sm:$0xff] }
 0x86e   :  { %10323 = vmatpush.bf16.msrb.mxu1 %v16591_v7  ;;  %10298 = vmatpush.bf16.msra.mxu3 %v16574_v44  ;;  %v16608_v7 = vld [vmem:[#allocation34 + $0x178] sm:$0xff]  ;;  %v9245_v18 = vpack.c.bf16 %v9228_v32, %v9228_v32  ;;  %v16601_v32 = vld [vmem:[#allocation34 + $0x140] sm:$0xff] }
 0x86f   :  { %v16616_v44 = vld [vmem:[#allocation34 + $0x1b8] sm:$0xff] }
 0x870   :  { %10311 = vmatpush.bf16.msrb.mxu0 %v16582_v9  ;;  %10286 = vmatpush.bf16.msra.mxu2 %v16565_v19  ;;  %v16599_v9 = vld [vmem:[#allocation34 + $0x130] sm:$0xff] }
 0x871   :  { %v16615_v19 = vld [vmem:[#allocation34 + $0x1b0] sm:$0xff] }
 0x872   :  { %10324 = vmatpush.bf16.msrb.mxu1 %v16590_v58  ;;  %10299 = vmatpush.bf16.msra.mxu3 %v16573_v34  ;;  %v16607_v58 = vld [vmem:[#allocation34 + $0x170] sm:$0xff] }
 0x873   :  { %v16623_v34 = vld [vmem:[#allocation34 + $0x1f0] sm:$0xff] }
 0x874   :  { %10312 = vmatpush.bf16.msrb.mxu0 %v16581_v1  ;;  %10287 = vmatpush.bf16.msra.mxu2 %v16564_v35  ;;  %v16598_v1 = vld [vmem:[#allocation34 + $0x128] sm:$0xff] }
 0x875   :  { %v16614_v35 = vld [vmem:[#allocation34 + $0x1a8] sm:$0xff] }
 0x876   :  { %10325 = vmatpush.bf16.msrb.mxu1 %v16589_v27  ;;  %10300 = vmatpush.bf16.msra.mxu3 %v16572_v8  ;;  %v16606_v27 = vld [vmem:[#allocation34 + $0x168] sm:$0xff] }
 0x877   :  { %v16622_v8 = vld [vmem:[#allocation34 + $0x1e8] sm:$0xff] }
 0x878   :  { %10313 = vmatpush.bf16.msrb.mxu0 %v16580_v28  ;;  %10288 = vmatpush.bf16.msra.mxu2 %v16563_v39  ;;  %v9001_v28 = vpop.f32.mrf.mxu0  ;;  %v16612_v39 = vld [vmem:[#allocation34 + $0x198] sm:$0xff] }
 0x87a   :  { %10326 = vmatpush.bf16.msrb.mxu1 %v16588_v42  ;;  %10301 = vmatpush.bf16.msra.mxu3 %v16571_v62  ;;  %v9014_v42 = vpop.f32.mrf.mxu1  ;;  %v16620_v62 = vld [vmem:[#allocation34 + $0x1d8] sm:$0xff] }
 0x87c   :  { %10314 = vmatpush.bf16.msrb.mxu0 %v16579_v56  ;;  %10289 = vmatpush.bf16.msra.mxu2 %v16562_v60  ;;  %v8975_v56 = vpop.f32.mrf.mxu2  ;;  %v16603_v60 = vld [vmem:[#allocation34 + $0x150] sm:$0xff] }
 0x87d   :  { %v8976_v47 = vadd.f32 %v8975_v56, %v17684_v33  ;;  %v9185_v33 = vperm.slane %v17810_v21, 7  ;;  %v16636_v56 = vld [vmem:[#allocation34 + $0x258] sm:$0xff] }
 0x87e   :  { %10327 = vmatpush.bf16.msrb.mxu1 %v16587_v52  ;;  %10302 = vmatpush.bf16.msra.mxu3 %v16570_v61  ;;  %v8988_v52 = vpop.f32.mrf.mxu3  ;;  %v16611_v61 = vld [vmem:[#allocation34 + $0x190] sm:$0xff] }
 0x87f   :  { %v8989_v0 = vadd.f32 %v8988_v52, %v8976_v47  ;;  %v16644_v52 = vld [vmem:[#allocation34 + $0x298] sm:$0xff] }
 0x880   :  { %10315 = vmatpush.bf16.msrb.mxu0 %v16578_v40  ;;  %10290 = vmatpush.bf16.msra.mxu2 %v16561_v6  ;;  %v9003_v37 = vpop.f32.mrf.mxu0  ;;  %v16619_v40 = vld [vmem:[#allocation34 + $0x1d0] sm:$0xff]  ;;  %v16610_v6 = vld [vmem:[#allocation34 + $0x188] sm:$0xff]  ;;  %v16652_v47 = vld [vmem:[#allocation34 + $0x2d8] sm:$0xff] }
 0x881   :  { %v9002_v57 = vadd.f32 %v9001_v28, %v8989_v0  ;;  %v16638_v28 = vld [vmem:[#allocation34 + $0x268] sm:$0xff] }
 0x882   :  { %10328 = vmatpush.bf16.msrb.mxu1 %v16586_v5  ;;  %10303 = vmatpush.bf16.msra.mxu3 %v16569_v11  ;;  %v9016_v26 = vpop.f32.mrf.mxu1  ;;  %v9182_v5 = vperm.slane %v17810_v21, 4  ;;  %v16618_v11 = vld [vmem:[#allocation34 + $0x1c8] sm:$0xff]  ;;  %v9217_v21 = vadd.f32 %v9185_v33, %v17774_v12 }
 0x883   :  { %10291 = vmatmul.bf16.vlgmr.msra.gmra.mxu2 %v9243_v15  ;;  %v17827_v48 = vadd.f32 %v9014_v42, %v9002_v57  ;;  %v9231_v15 = vmax.f32 %v9215_v22, 0.0  ;;  %v16646_v42 = vld [vmem:[#allocation34 + $0x2a8] sm:$0xff]  ;;  %v17841_v26 = vld [vmem:[#allocation33 + $0x8] sm:$0xff]  ;;  %v16651_v57 = vld [vmem:[#allocation34 + $0x2d0] sm:$0xff] }
 0x884   :  { %10316 = vmatpush.bf16.msrb.mxu0 %v16577_v31  ;;  %10335 = vmatpush.bf16.msrb.mxu2 %v16600_v25  ;;  %v8977_v31 = vpop.f32.mrf.mxu2  ;;  %v9214_v53 = vadd.f32 %v9182_v5, %v17753_v43  ;;  %v9216_v25 = vadd.f32 %v9184_v36, %v17767_v63  ;;  %v9233_v43 = vmax.f32 %v9217_v21, 0.0  ;;  %v9186_v5 = vperm.slane %v17841_v26, 0 }
 0x885   :  { %10304 = vmatmul.bf16.vlgmr.msra.gmra.mxu3 %v9244_v54  ;;  %v16632_v54 = vld [vmem:[#allocation34 + $0x238] sm:$0xff]  ;;  %v9248_v12 = vpack.c.bf16 %v9231_v15, %v9231_v15  ;;  %v9187_v36 = vperm.slane %v17841_v26, 1  ;;  %v9188_v33 = vperm.slane %v17841_v26, 2  ;;  %v16642_v31 = vld [vmem:[#allocation34 + $0x288] sm:$0xff] }
 0x886   :  { %10329 = vmatpush.bf16.msrb.mxu1 %v16585_v4  ;;  %10348 = vmatpush.bf16.msrb.mxu3 %v16608_v7  ;;  %v8990_v4 = vpop.f32.mrf.mxu3  ;;  %v16593_v7 = vld [vmem:[#allocation34 + $0x100] sm:$0xff] }
 0x887   :  { %10317 = vmatmul.bf16.vlgmr.msrb.gmra.mxu0 %v9245_v18  ;;  %v16648_v18 = vld [vmem:[#allocation34 + $0x2b8] sm:$0xff]  ;;  %v16650_v4 = vld [vmem:[#allocation34 + $0x2c8] sm:$0xff]  ;;  %v9220_v21 = vadd.f32 %v9188_v33, %v17803_v51  ;;  %v16675_v33 = vld [vmem:[#allocation34 + $0x390] sm:$0xff] }
 0x888   :  { %10361 = vmatpush.bf16.msra.mxu0 %v16616_v44  ;;  %10336 = vmatpush.bf16.msrb.mxu2 %v16599_v9  ;;  %v16617_v44 = vld [vmem:[#allocation34 + $0x1c0] sm:$0xff]  ;;  %v16640_v9 = vld [vmem:[#allocation34 + $0x278] sm:$0xff] }
 0x889   :  { %10330 = vmatmul.bf16.vlgmr.msrb.gmra.mxu1 %v9246_v24  ;;  %v16631_v24 = vld [vmem:[#allocation34 + $0x230] sm:$0xff] }
 0x88a   :  { %10374 = vmatpush.bf16.msra.mxu1 %v16624_v13  ;;  %10349 = vmatpush.bf16.msrb.mxu3 %v16607_v58  ;;  %v9230_v13 = vmax.f32 %v9214_v53, 0.0  ;;  %v9232_v58 = vmax.f32 %v9216_v25, 0.0  ;;  %v9219_v25 = vadd.f32 %v9187_v36, %v17796_v10 }
 0x88c   :  { %10362 = vmatpush.bf16.msra.mxu0 %v16615_v19  ;;  %10337 = vmatpush.bf16.msrb.mxu2 %v16598_v1  ;;  %v9247_v63 = vpack.c.bf16 %v9230_v13, %v9230_v13  ;;  %v16639_v19 = vld [vmem:[#allocation34 + $0x270] sm:$0xff]  ;;  %v9250_v1 = vpack.c.bf16 %v9233_v43, %v9233_v43  ;;  %v16649_v13 = vld [vmem:[#allocation34 + $0x2c0] sm:$0xff]  ;;  %v9235_v15 = vmax.f32 %v9219_v25, 0.0  ;;  %v16674_v25 = vld [vmem:[#allocation34 + $0x388] sm:$0xff] }
 0x88e   :  { %10375 = vmatpush.bf16.msra.mxu1 %v16623_v34  ;;  %10350 = vmatpush.bf16.msrb.mxu3 %v16606_v27  ;;  %v9249_v34 = vpack.c.bf16 %v9232_v58, %v9232_v58  ;;  %v16647_v27 = vld [vmem:[#allocation34 + $0x2b0] sm:$0xff]  ;;  %v16672_v58 = vld [vmem:[#allocation34 + $0x378] sm:$0xff]  ;;  %v9252_v51 = vpack.c.bf16 %v9235_v15, %v9235_v15  ;;  %v16673_v15 = vld [vmem:[#allocation34 + $0x380] sm:$0xff] }
 0x890   :  { %10363 = vmatpush.bf16.msra.mxu0 %v16614_v35  ;;  %10338 = vmatpush.bf16.msrb.mxu2 %v16597_v3  ;;  %v16655_v35 = vld [vmem:[#allocation34 + $0x2f0] sm:$0xff]  ;;  %v16654_v3 = vld [vmem:[#allocation34 + $0x2e8] sm:$0xff] }
 0x892   :  { %10376 = vmatpush.bf16.msra.mxu1 %v16622_v8  ;;  %10351 = vmatpush.bf16.msrb.mxu3 %v16605_v38  ;;  %v16630_v8 = vld [vmem:[#allocation34 + $0x228] sm:$0xff] }
 0x894   :  { %10364 = vmatpush.bf16.msra.mxu0 %v16613_v59  ;;  %10339 = vmatpush.bf16.msrb.mxu2 %v16596_v30  ;;  %v16637_v30 = vld [vmem:[#allocation34 + $0x260] sm:$0xff] }
 0x896   :  { %10377 = vmatpush.bf16.msra.mxu1 %v16621_v17  ;;  %10352 = vmatpush.bf16.msrb.mxu3 %v16604_v23  ;;  %v16629_v17 = vld [vmem:[#allocation34 + $0x220] sm:$0xff] }
 0x897   :  { %v17833_v38 = vpop.f32.mrf.mxu0  ;;  %v16645_v23 = vld [vmem:[#allocation34 + $0x2a0] sm:$0xff] }
 0x898   :  { %10365 = vmatpush.bf16.msra.mxu0 %v16612_v39  ;;  %10340 = vmatpush.bf16.msrb.mxu2 %v16595_v41  ;;  %v16653_v39 = vld [vmem:[#allocation34 + $0x2e0] sm:$0xff] }
 0x899   :  { %v17835_v59 = vpop.f32.mrf.mxu1  ;;  %v17837_v0 = vpop.f32.mrf.mxu2 }
 0x89a   :  { %10378 = vmatpush.bf16.msra.mxu1 %v16620_v62  ;;  %10353 = vmatpush.bf16.msrb.mxu3 %v16603_v60  ;;  %v16628_v62 = vld [vmem:[#allocation34 + $0x218] sm:$0xff] }
 0x89b   :  { %v17839_v37 = vpop.f32.mrf.mxu3 }
 0x89c   :  { %10366 = vmatpush.bf16.msra.mxu0 %v16611_v61  ;;  %10341 = vmatpush.bf16.msrb.mxu2 %v16594_v16  ;;  %v16627_v61 = vld [vmem:[#allocation34 + $0x210] sm:$0xff]  ;;  %v9189_v16 = vperm.slane %v17841_v26, 3 }
 0x89e   :  { %10379 = vmatpush.bf16.msra.mxu1 %v16619_v40  ;;  %10354 = vmatpush.bf16.msrb.mxu3 %v16602_v2  ;;  %v16635_v40 = vld [vmem:[#allocation34 + $0x250] sm:$0xff]  ;;  %v16626_v2 = vld [vmem:[#allocation34 + $0x208] sm:$0xff] }
 0x89f   :  { %v9055_v41 = vpop.f32.mrf.mxu0 }
 0x8a0   :  { %10367 = vmatpush.bf16.msra.mxu0 %v16610_v6  ;;  %10342 = vmatpush.bf16.msrb.mxu2 %v16593_v7  ;;  %v16634_v6 = vld [vmem:[#allocation34 + $0x248] sm:$0xff]  ;;  %v9221_v7 = vadd.f32 %v9189_v16, %v17816_v46  ;;  %v16685_v41 = vld [vmem:[#allocation34 + $0x3e0] sm:$0xff]  ;;  %v16684_v16 = vld [vmem:[#allocation34 + $0x3d8] sm:$0xff] }
 0x8a1   :  { %v9068_v60 = vpop.f32.mrf.mxu1  ;;  %v9029_v53 = vpop.f32.mrf.mxu2 }
 0x8a2   :  { %10380 = vmatpush.bf16.msra.mxu1 %v16618_v11  ;;  %10355 = vmatpush.bf16.msrb.mxu3 %v16601_v32  ;;  %v9218_v11 = vadd.f32 %v9186_v5, %v17789_v55  ;;  %v16625_v32 = vld [vmem:[#allocation34 + $0x200] sm:$0xff]  ;;  %v9237_v43 = vmax.f32 %v9221_v7, 0.0  ;;  %v16659_v5 = vld [vmem:[#allocation34 + $0x310] sm:$0xff] }
 0x8a3   :  { %10343 = vmatmul.bf16.vlgmr.msrb.gmra.mxu2 %v9247_v63  ;;  %v9042_v22 = vpop.f32.mrf.mxu3  ;;  %v16641_v55 = vld [vmem:[#allocation34 + $0x280] sm:$0xff]  ;;  %v16671_v63 = vld [vmem:[#allocation34 + $0x370] sm:$0xff] }
 0x8a4   :  { %10368 = vmatpush.bf16.msra.mxu0 %v16609_v14  ;;  %10387 = vmatpush.bf16.msra.mxu2 %v16632_v54  ;;  %v16633_v14 = vld [vmem:[#allocation34 + $0x240] sm:$0xff]  ;;  %v9236_v54 = vmax.f32 %v9220_v21, 0.0  ;;  %v16683_v21 = vld [vmem:[#allocation34 + $0x3d0] sm:$0xff] }
 0x8a5   :  { %10356 = vmatmul.bf16.vlgmr.msrb.gmra.mxu3 %v9248_v12  ;;  %v9254_v12 = vpack.c.bf16 %v9237_v43, %v9237_v43  ;;  %v16681_v43 = vld [vmem:[#allocation34 + $0x3c0] sm:$0xff] }
 0x8a6   :  { %10381 = vmatpush.bf16.msra.mxu1 %v16617_v44  ;;  %10400 = vmatpush.bf16.msra.mxu3 %v16640_v9  ;;  %v9234_v44 = vmax.f32 %v9218_v11, 0.0  ;;  %v16664_v9 = vld [vmem:[#allocation34 + $0x338] sm:$0xff]  ;;  %v9253_v46 = vpack.c.bf16 %v9236_v54, %v9236_v54  ;;  %v16658_v11 = vld [vmem:[#allocation34 + $0x308] sm:$0xff] }
 0x8a7   :  { %10369 = vmatmul.bf16.vlgmr.msra.gmra.mxu0 %v9249_v34  ;;  %v16662_v34 = vld [vmem:[#allocation34 + $0x328] sm:$0xff] }
 0x8a8   :  { %10413 = vmatpush.bf16.msrb.mxu0 %v16648_v18  ;;  %10388 = vmatpush.bf16.msra.mxu2 %v16631_v24  ;;  %v16680_v18 = vld [vmem:[#allocation34 + $0x3b8] sm:$0xff]  ;;  %v9251_v10 = vpack.c.bf16 %v9234_v44, %v9234_v44  ;;  %v16679_v24 = vld [vmem:[#allocation34 + $0x3b0] sm:$0xff]  ;;  %v16665_v44 = vld [vmem:[#allocation34 + $0x340] sm:$0xff] }
 0x8a9   :  { %10382 = vmatmul.bf16.vlgmr.msra.gmra.mxu1 %v9250_v1  ;;  %v16670_v1 = vld [vmem:[#allocation34 + $0x368] sm:$0xff] }
 0x8aa   :  { %10426 = vmatpush.bf16.msrb.mxu1 %v16656_v49  ;;  %10401 = vmatpush.bf16.msra.mxu3 %v16639_v19  ;;  %v16663_v49 = vld [vmem:[#allocation34 + $0x330] sm:$0xff]  ;;  %v16688_v19 = vld [vmem:[#allocation34 + $0x3f8] sm:$0xff]  ;;  %v16682_v54 = vld [vmem:[#allocation34 + $0x3c8] sm:$0xff] }
 0x8ac   :  { %10414 = vmatpush.bf16.msrb.mxu0 %v16647_v27  ;;  %10389 = vmatpush.bf16.msra.mxu2 %v16630_v8  ;;  %v9028_v27 = vadd.f32 %v17837_v0, %v17690_v20  ;;  %v16687_v8 = vld [vmem:[#allocation34 + $0x3f0] sm:$0xff]  ;;  %v16668_v20 = vld [vmem:[#allocation34 + $0x358] sm:$0xff] }
 0x8ad   :  { %v16676_v0 = vld [vmem:[#allocation34 + $0x398] sm:$0xff] }
 0x8ae   :  { %10427 = vmatpush.bf16.msrb.mxu1 %v16655_v35  ;;  %10402 = vmatpush.bf16.msra.mxu3 %v16638_v28  ;;  %v16678_v35 = vld [vmem:[#allocation34 + $0x3a8] sm:$0xff] }
 0x8b0   :  { %10415 = vmatpush.bf16.msrb.mxu0 %v16646_v42  ;;  %10390 = vmatpush.bf16.msra.mxu2 %v16629_v17  ;;  %v16669_v17 = vld [vmem:[#allocation34 + $0x360] sm:$0xff] }
 0x8b2   :  { %10428 = vmatpush.bf16.msrb.mxu1 %v16654_v3  ;;  %10403 = vmatpush.bf16.msra.mxu3 %v16637_v30  ;;  %v16661_v3 = vld [vmem:[#allocation34 + $0x320] sm:$0xff]  ;;  %v9041_v30 = vadd.f32 %v17839_v37, %v9028_v27 }
 0x8b4   :  { %10416 = vmatpush.bf16.msrb.mxu0 %v16645_v23  ;;  %10391 = vmatpush.bf16.msra.mxu2 %v16628_v62  ;;  %v16677_v23 = vld [vmem:[#allocation34 + $0x3a0] sm:$0xff]  ;;  %v16660_v62 = vld [vmem:[#allocation34 + $0x318] sm:$0xff] }
 0x8b6   :  { %10429 = vmatpush.bf16.msrb.mxu1 %v16653_v39  ;;  %10404 = vmatpush.bf16.msra.mxu3 %v16636_v56  ;;  %v16686_v39 = vld [vmem:[#allocation34 + $0x3e8] sm:$0xff]  ;;  %v9054_v56 = vadd.f32 %v17833_v38, %v9041_v30  ;;  %v9191_v38 = vperm.slane %v17841_v26, 5 }
 0x8b8   :  { %10417 = vmatpush.bf16.msrb.mxu0 %v16644_v52  ;;  %10392 = vmatpush.bf16.msra.mxu2 %v16627_v61  ;;  %v9067_v36 = vadd.f32 %v17835_v59, %v9054_v56 }
 0x8ba   :  { %10430 = vmatpush.bf16.msrb.mxu1 %v16652_v47  ;;  %10405 = vmatpush.bf16.msra.mxu3 %v16635_v40  ;;  %v9223_v53 = vadd.f32 %v9191_v38, %v9067_v36 }
 0x8bc   :  { %10418 = vmatpush.bf16.msrb.mxu0 %v16643_v45  ;;  %10393 = vmatpush.bf16.msra.mxu2 %v16626_v2  ;;  %v16667_v45 = vld [vmem:[#allocation34 + $0x350] sm:$0xff] }
 0x8be   :  { %10431 = vmatpush.bf16.msrb.mxu1 %v16651_v57  ;;  %10406 = vmatpush.bf16.msra.mxu3 %v16634_v6  ;;  %v9190_v57 = vperm.slane %v17841_v26, 4 }
 0x8bf   :  { %v9105_v28 = vpop.f32.mrf.mxu0 }
 0x8c0   :  { %10419 = vmatpush.bf16.msrb.mxu0 %v16642_v31  ;;  %10394 = vmatpush.bf16.msra.mxu2 %v16625_v32  ;;  %v16666_v31 = vld [vmem:[#allocation34 + $0x348] sm:$0xff] }
 0x8c1   :  { %v9118_v42 = vpop.f32.mrf.mxu1  ;;  %v9079_v52 = vpop.f32.mrf.mxu2 }
 0x8c2   :  { %10432 = vmatpush.bf16.msrb.mxu1 %v16650_v4  ;;  %10407 = vmatpush.bf16.msra.mxu3 %v16633_v14  ;;  %v9080_v60 = vadd.f32 %v9079_v52, %v17696_v50  ;;  %v9192_v50 = vperm.slane %v17841_v26, 6  ;;  %v9222_v4 = vadd.f32 %v9190_v57, %v17827_v48  ;;  %v16657_v14 = vld [vmem:[#allocation34 + $0x300] sm:$0xff] }
 0x8c3   :  { %10395 = vmatmul.bf16.vlgmr.msra.gmra.mxu2 %v9251_v10  ;;  %v9092_v47 = vpop.f32.mrf.mxu3 }
 0x8c4   :  { %10420 = vmatpush.bf16.msrb.mxu0 %v16641_v55  ;;  %10439 = vmatpush.bf16.msrb.mxu2 %v16664_v9  ;;  %v9093_v37 = vadd.f32 %v9092_v47, %v9080_v60  ;;  %v9238_v55 = vmax.f32 %v9222_v4, 0.0 }
 0x8c5   :  { %10408 = vmatmul.bf16.vlgmr.msra.gmra.mxu3 %v9252_v51 }
 0x8c6   :  { %10433 = vmatpush.bf16.msrb.mxu1 %v16649_v13  ;;  %10452 = vmatpush.bf16.msrb.mxu3 %v16672_v58  ;;  %v9106_v2 = vadd.f32 %v9105_v28, %v9093_v37  ;;  %v9239_v13 = vmax.f32 %v9223_v53, 0.0  ;;  %v9255_v9 = vpack.c.bf16 %v9238_v55, %v9238_v55 }
 0x8c7   :  { %10421 = vmatmul.bf16.vlgmr.msrb.gmra.mxu0 %v9253_v46  ;;  %v9107_v61 = vpop.f32.mrf.mxu0 }
 0x8c8   :  { %10465 = vmatpush.bf16.msra.mxu0 %v16680_v18  ;;  %10440 = vmatpush.bf16.msrb.mxu2 %v16663_v49  ;;  %v9119_v6 = vadd.f32 %v9118_v42, %v9106_v2  ;;  %v9256_v58 = vpack.c.bf16 %v9239_v13, %v9239_v13 }
 0x8c9   :  { %10434 = vmatmul.bf16.vlgmr.msrb.gmra.mxu1 %v9254_v12  ;;  %v9120_v40 = vpop.f32.mrf.mxu1  ;;  %v9081_v22 = vpop.f32.mrf.mxu2 }
 0x8ca   :  { %10453 = vmatpush.bf16.msrb.mxu3 %v16671_v63  ;;  %10478 = vmatpush.bf16.msra.mxu1 %v16688_v19  ;;  %v9224_v7 = vadd.f32 %v9192_v50, %v9119_v6 }
 0x8cb   :  { %v9094_v59 = vpop.f32.mrf.mxu3 }
 0x8cc   :  { %10466 = vmatpush.bf16.msra.mxu0 %v16679_v24  ;;  %10441 = vmatpush.bf16.msrb.mxu2 %v16662_v34  ;;  %v9240_v32 = vmax.f32 %v9224_v7, 0.0  ;;  %v9193_v34 = vperm.slane %v17841_v26, 7 }
 0x8ce   :  { %10454 = vmatpush.bf16.msrb.mxu3 %v16670_v1  ;;  %10479 = vmatpush.bf16.msra.mxu1 %v16687_v8  ;;  %v9257_v48 = vpack.c.bf16 %v9240_v32, %v9240_v32 }
 0x8d0   :  { %10467 = vmatpush.bf16.msra.mxu0 %v16678_v35  ;;  %10442 = vmatpush.bf16.msrb.mxu2 %v16661_v3 }
 0x8d2   :  { %10455 = vmatpush.bf16.msrb.mxu3 %v16669_v17  ;;  %10480 = vmatpush.bf16.msra.mxu1 %v16686_v39 }
 0x8d4   :  { %10468 = vmatpush.bf16.msra.mxu0 %v16677_v23  ;;  %10443 = vmatpush.bf16.msrb.mxu2 %v16660_v62 }
 0x8d6   :  { %10456 = vmatpush.bf16.msrb.mxu3 %v16668_v20  ;;  %10481 = vmatpush.bf16.msra.mxu1 %v16685_v41 }
 0x8d8   :  { %10469 = vmatpush.bf16.msra.mxu0 %v16676_v0  ;;  %10444 = vmatpush.bf16.msrb.mxu2 %v16659_v5 }
 0x8da   :  { %10457 = vmatpush.bf16.msrb.mxu3 %v16667_v45  ;;  %10482 = vmatpush.bf16.msra.mxu1 %v16684_v16 }
 0x8dc   :  { %10470 = vmatpush.bf16.msra.mxu0 %v16675_v33  ;;  %10445 = vmatpush.bf16.msrb.mxu2 %v16658_v11 }
 0x8de   :  { %10458 = vmatpush.bf16.msrb.mxu3 %v16666_v31  ;;  %10483 = vmatpush.bf16.msra.mxu1 %v16683_v21  ;;  %v17285_v31 = vmov 0.0  }
 0x8df   :  { %1343 = vst [vmem:[#allocation4] sm:$0x3] %v17285_v31 }
 0x8e0   :  { %10471 = vmatpush.bf16.msra.mxu0 %v16674_v25  ;;  %10446 = vmatpush.bf16.msrb.mxu2 %v16657_v14 }
 0x8e2   :  { %10459 = vmatpush.bf16.msrb.mxu3 %v16665_v44  ;;  %10484 = vmatpush.bf16.msra.mxu1 %v16682_v54 }
 0x8e3   :  { %10447 = vmatmul.bf16.vlgmr.msrb.gmra.mxu2 %v9255_v9 }
 0x8e4   :  { %10472 = vmatpush.bf16.msra.mxu0 %v16673_v15  ;;  %v9157_v18 = vpop.f32.mrf.mxu0 }
 0x8e5   :  { %10460 = vmatmul.bf16.vlgmr.msrb.gmra.mxu3 %v9256_v58 }
 0x8e6   :  { %10485 = vmatpush.bf16.msra.mxu1 %v16681_v43  ;;  %v9170_v10 = vpop.f32.mrf.mxu1  ;;  %v9131_v51 = vpop.f32.mrf.mxu2  ;;  %v9242_v9 = vld [vmem:[#allocation4] sm:$0x3] }
 0x8e7   :  { %10473 = vmatmul.bf16.vlgmr.msra.gmra.mxu0 %v9257_v48  ;;  %v9132_v49 = vadd.f32 %v9131_v51, %v17702_v29  ;;  %v16727_v51 = vld [vmem:[#allocation36] ss:$0 sm:$0xff] }
 0x8e8   :  { %v9144_v46 = vpop.f32.mrf.mxu3 }
 0x8e9   :  { %v9145_v63 = vadd.f32 %v9144_v46, %v9132_v49 }
 0x8eb   :  { %v9158_v19 = vadd.f32 %v9157_v18, %v9145_v63 }
 0x8ec   :  { %v9159_v12 = vpop.f32.mrf.mxu0 }
 0x8ed   :  { %v9171_v1 = vadd.f32 %v9170_v10, %v9158_v19 }
 0x8ee   :  { %v9172_v24 = vpop.f32.mrf.mxu1  ;;  %v9133_v27 = vpop.f32.mrf.mxu2 }
 0x8ef   :  { %v9225_v8 = vadd.f32 %v9193_v34, %v9171_v1 }
 0x8f0   :  { %v9146_v35 = vpop.f32.mrf.mxu3 }
 0x8f1   :  { %v9241_v28 = vmax.f32 %v9225_v8, 0.0 }
 0x8f3   :  { %v9258_v42 = vpack.c.bf16 %v9241_v28, %v9241_v28 }
 0x8f5   :  { %10486 = vmatmul.bf16.vlgmr.msra.gmra.mxu1 %v9258_v42 }
 0x904   :  { %v10318_v3 = vpop.f32.mrf.mxu0 }
 0x906   :  { %v10331_v17 = vpop.f32.mrf.mxu1  ;;  %v10292_v30 = vpop.f32.mrf.mxu2 }
 0x908   :  { %v10305_v23 = vpop.f32.mrf.mxu3 }
 0x909   :  { %v10306_v39 = vadd.f32 %v10305_v23, %v10292_v30 }
 0x90b   :  { %v10319_v62 = vadd.f32 %v10318_v3, %v10306_v39 }
 0x90c   :  { %v10320_v29 = vpop.f32.mrf.mxu0 }
 0x90d   :  { %v10332_v56 = vadd.f32 %v10331_v17, %v10319_v62 }
 0x90e   :  { %v10333_v20 = vpop.f32.mrf.mxu1  ;;  %v10294_v52 = vpop.f32.mrf.mxu2 }
 0x910   :  { %v10307_v47 = vpop.f32.mrf.mxu3 }
 0x924   :  { %v10370_v0 = vpop.f32.mrf.mxu0 }
 0x926   :  { %v10383_v26 = vpop.f32.mrf.mxu1  ;;  %v10344_v41 = vpop.f32.mrf.mxu2 }
 0x927   :  { %v10345_v37 = vadd.f32 %v10344_v41, %v10332_v56 }
 0x928   :  { %v10357_v60 = vpop.f32.mrf.mxu3 }
 0x929   :  { %v10358_v61 = vadd.f32 %v10357_v60, %v10345_v37 }
 0x92b   :  { %v10371_v45 = vadd.f32 %v10370_v0, %v10358_v61 }
 0x92c   :  { %v10372_v40 = vpop.f32.mrf.mxu0 }
 0x92d   :  { %v10384_v57 = vadd.f32 %v10383_v26, %v10371_v45 }
 0x92e   :  { %v10385_v5 = vpop.f32.mrf.mxu1  ;;  %v10346_v36 = vpop.f32.mrf.mxu2 }
 0x930   :  { %v10359_v38 = vpop.f32.mrf.mxu3 }
 0x944   :  { %v10422_v33 = vpop.f32.mrf.mxu0 }
 0x946   :  { %v10435_v16 = vpop.f32.mrf.mxu1  ;;  %v10396_v2 = vpop.f32.mrf.mxu2 }
 0x947   :  { %v10397_v59 = vadd.f32 %v10396_v2, %v10384_v57 }
 0x948   :  { %v10409_v50 = vpop.f32.mrf.mxu3 }
 0x949   :  { %v10410_v7 = vadd.f32 %v10409_v50, %v10397_v59 }
 0x94b   :  { %v10423_v14 = vadd.f32 %v10422_v33, %v10410_v7 }
 0x94c   :  { %v10424_v6 = vpop.f32.mrf.mxu0 }
 0x94d   :  { %v10436_v13 = vadd.f32 %v10435_v16, %v10423_v14 }
 0x94e   :  { %v10437_v11 = vpop.f32.mrf.mxu1  ;;  %v10398_v4 = vpop.f32.mrf.mxu2 }
 0x950   :  { %v10411_v53 = vpop.f32.mrf.mxu3 }
 0x964   :  { %v10474_v22 = vpop.f32.mrf.mxu0 }
 0x966   :  { %v10448_v25 = vpop.f32.mrf.mxu2 }
 0x967   :  { %v10449_v15 = vadd.f32 %v10448_v25, %v10436_v13 }
 0x968   :  { %v10461_v21 = vpop.f32.mrf.mxu3 }
 0x969   :  { %v10462_v54 = vadd.f32 %v10461_v21, %v10449_v15 }
 0x96b   :  { %v10475_v48 = vadd.f32 %v10474_v22, %v10462_v54 }
 0x96c   :  { %v10476_v32 = vpop.f32.mrf.mxu0 }
 0x96e   :  { %v10450_v44 = vpop.f32.mrf.mxu2 }
 0x970   :  { %v10463_v55 = vpop.f32.mrf.mxu3 }
 0x972   :  { %v10487_v58 = vpop.f32.mrf.mxu1 }
 0x973   :  { %v10488_v43 = vadd.f32 %v10487_v58, %v10475_v48 }
 0x975   :  { %v10491_v18 = vadd.f32 %v10488_v43, %v9242_v9 }
 0x977   :  { %10492 = vst [vmem:[#allocation4] sm:$0x3] %v10491_v18 }
 0x97a   :  { %v10489_v10 = vpop.f32.mrf.mxu1 }
 0x97e   :  { %v10496_v46 = vld [vmem:[#allocation4] sm:$0x3] }
 0x97f   :  { %v10501_v49 = vadd.f32 %v16727_v51, %v10496_v46 }
 0x981   :  { %10502 = vst [vmem:[#allocation37] sm:$0x3] %v10501_v49 }
 0x982   :  { %10513 = dma.vmem_to_hbm [thread:$0]  %s10509_s11, 32, %s10511_s1, [#allocation9]  }
 0x983   :  { %17256 = dma.done.wait [#allocation9], 32  }
 0x984   :  { %17257 = vsyncadd [#allocation9], 4294967264 }
 0x985   :  { %10518 = vsyncpa [#allocation8], 1 }
 0x986   :  { %10519 = vsyncpa [#allocation11], 1 }
 0x987   :  { %10520 = vsyncpa [#allocation14], 1 }
 0x988   :  { %10521 = vsyncpa [#allocation17], 1 }
 0x989   :  { %10522 = vsyncpa [#allocation20], 1 }
 0x98a   :  { %10523 = vsyncpa [#allocation23], 1 }
 0x98b   :  { %10524 = vsyncpa [#allocation26], 1 }
 0x98c   :  { %10525 = vsyncpa [#allocation29], 1 }
 0x98d   :  { %10526 = vsyncpa [#allocation32], 1 }
 0x98e   :  { %10527 = vsyncpa [#allocation35], 1 }
 0x98f   :  { %10528 = vsyncpa [#allocation9], 1 }

</bundles_post_ra>
